<compile_context>
chip_gen: v6e
topology: v6e:2x2x1
jax: 0.10.0
libtpu: 0.0.40
codegen_flags: <defaults>
</compile_context>

<pallas_src>
import jax
import jax.numpy as jnp
from jax.experimental import pallas as pl
from jax.experimental.pallas import tpu as pltpu

INPUT_SHAPE   = 32    # D  (must equal NUM_HIDDEN, see note above)
NUM_HIDDEN    = 32    # H
NUM_FILTERS   = 32    # F
NUM_STEPS     = 10
FRACTAL_STEPS = 2
BATCH         = 128   # -> 256 diffusion rows

PAD       = 128                            # lane-dense padded feature width
N_SCALE   = 5 + 2 * NUM_STEPS              # 5 biases + alpha_t table + sigma_t table
N_SCALE_P = ((N_SCALE + 7) // 8) * 8       # sublane-aligned row count


def gdiffusion_kernel(x_ref, noise_ref, w_ref, s_ref, out_ref):
    # x_ref     : [T, PAD]              bf16  (row tile of the repeated input)
    # noise_ref : [NUM_STEPS, T, PAD]   bf16
    # w_ref     : [5, PAD, PAD]         bf16  rows: we1, we2, wg1, wg2, wg3 ([in, out])
    # s_ref     : [N_SCALE_P, PAD]      f32
    #   rows 0..4                    : biases  be1, be2, bg1, bg2, bg3
    #   rows 5 .. 5+NUM_STEPS-1      : alpha_t table (step order k = 0..NUM_STEPS-1)
    #   rows 5+NUM_STEPS .. 5+2NS-1  : sigma_t table
    # out_ref   : [T, PAD]              f32

    def dot_b(a, wi):
        # bf16 x bf16 -> f32 accumulation on the MXU.  Weights are indexed at the
        # use site (8 vregs each in bf16) so nothing spills on the serial chain.
        return jnp.dot(a.astype(jnp.bfloat16), w_ref[wi],
                       preferred_element_type=jnp.float32)

    # ---- encoder: Linear(D,F) -> ReLU -> Linear(F,H) ----
    h = jnp.maximum(dot_b(x_ref[...], 0) + s_ref[0:1, :], 0.0)
    z = dot_b(h, 1) + s_ref[1:2, :]

    # z.repeat(fractal_steps, 1) was applied to the *input rows* in the wrapper
    # (the encoder is row-wise, so the two are equivalent).

    # ---- reverse diffusion, fully unrolled (fixed 10-step trip count) ----
    for k in range(NUM_STEPS):                     # k = 0 .. 9  <=>  i = 9 .. 0
        a_t = s_ref[5 + k: 6 + k, :]                               # [1, PAD]
        s_t = s_ref[5 + NUM_STEPS + k: 6 + NUM_STEPS + k, :]       # [1, PAD]
        z = z * a_t + s_t * noise_ref[k].astype(jnp.float32)       # diffuse(z, i)
        if k == NUM_STEPS - 1:                     # i == 0 -> break before generator
            break
        # generator: Linear(H,F)->ReLU->Linear(F,F)->ReLU->Linear(F,D), then F.relu
        g = jnp.maximum(dot_b(z, 2) + s_ref[2:3, :], 0.0)
        g = jnp.maximum(dot_b(g, 3) + s_ref[3:4, :], 0.0)
        z = jnp.maximum(dot_b(g, 4) + s_ref[4:5, :], 0.0)

    out_ref[...] = z      # single lane-dense [T, 128] f32 store


def _round_up(n, m):
    return ((n + m - 1) // m) * m


def _pad2(a, rows, cols):
    return jnp.pad(a, ((0, rows - a.shape[0]), (0, cols - a.shape[1])))


def _is_dual_tensorcore():
    # v7x has 2 TensorCores per chip; v5e/v6e have 1.
    try:
        kind = jax.devices()[0].device_kind.lower()
    except Exception:
        return False
    return ("v7" in kind) or ("tpu7" in kind) or ("7x" in kind)


def gdiffusion_forward(x, noise, params, *, tile_rows=None):
    (we1, be1, we2, be2, wg1, bg1, wg2, bg2, wg3, bg3, alpha, sigma) = params
    b, d = x.shape
    fb = FRACTAL_STEPS * b

    if tile_rows is None:
        # Dual-TC v7x: 128-row tiles so the "parallel" grid axis shards across both
        # cores.  Single-TC v5e/v6e: one 256-row tile (half the serial MXU issues,
        # no extra grid-step overhead).  VMEM is ~2 MiB either way — not a constraint.
        cap = 128 if _is_dual_tensorcore() else 256
        tile_rows = max(8, min(cap, _round_up(fb, 8)))

    rows = _round_up(fb, tile_rows)

    # z.repeat(fractal_steps, 1): the encoder is row-wise, so repeating the input
    # rows before the call is equivalent to repeating the encoder output.
    x_rep = jnp.tile(x, (FRACTAL_STEPS, 1))                                   # [FB, D]
    x_p = jnp.pad(x_rep, ((0, rows - fb), (0, PAD - d))).astype(jnp.bfloat16) # [rows, PAD]
    noise_p = jnp.pad(noise, ((0, 0), (0, rows - fb), (0, PAD - d))
                      ).astype(jnp.bfloat16)                                  # [NS, rows, PAD]

    # pack the five weight matrices into one bf16 VMEM input
    w_packed = jnp.stack(
        [_pad2(w, PAD, PAD) for w in (we1, we2, wg1, wg2, wg3)]
    ).astype(jnp.bfloat16)                                                    # [5, PAD, PAD]

    # pack biases + precomputed alpha_t/sigma_t tables (f32) into one VMEM input
    # step k corresponds to i = NUM_STEPS-1-k, t = i / NUM_STEPS
    t = jnp.arange(NUM_STEPS - 1, -1, -1, dtype=jnp.float32)[:, None] / NUM_STEPS
    alpha_t = jnp.exp(-0.5 * alpha * t)                                       # [NS, D]
    sigma_t = jnp.exp(0.5 * sigma * t)                                        # [NS, D]
    biases = jnp.concatenate([be1, be2, bg1, bg2, bg3], axis=0)               # [5, D]
    scales = jnp.concatenate([biases, alpha_t, sigma_t], axis=0)              # [N_SCALE, D]
    s_packed = _pad2(scales, N_SCALE_P, PAD)                                  # [N_SCALE_P, PAD]

    grid = (rows // tile_rows,)
    out = pl.pallas_call(
        gdiffusion_kernel,
        out_shape=jax.ShapeDtypeStruct((rows, PAD), jnp.float32),
        grid=grid,
        in_specs=[
            pl.BlockSpec((tile_rows, PAD), lambda i: (i, 0)),                 # x (row-tiled, bf16)
            pl.BlockSpec((NUM_STEPS, tile_rows, PAD), lambda i: (0, i, 0)),   # noise (row-tiled, bf16)
            pl.BlockSpec((5, PAD, PAD), lambda i: (0, 0, 0)),                 # packed weights (bf16)
            pl.BlockSpec((N_SCALE_P, PAD), lambda i: (0, 0)),                 # packed biases+tables
        ],
        out_specs=pl.BlockSpec((tile_rows, PAD), lambda i: (i, 0)),
        compiler_params=pltpu.CompilerParams(
            dimension_semantics=("parallel",),    # row tiles are independent
        ),
    )(x_p, noise_p, w_packed, s_packed)

    # z.view(-1, *input_shape):
    # TODO(synk): the PyTorch `*self.input_shape` splat is a bug for int input_shape;
    # we implement the intended (-1, D) shape by slicing off the row/lane padding.
    return out[:fb, :d]


def init_params(key):
    """Deterministic parameter init (PyTorch Linear-style uniform; alpha/sigma = ones)."""
    ks = jax.random.split(key, 5)

    def lin(k, fan_in, fan_out):
        kw, kb = jax.random.split(k)
        bound = 1.0 / (fan_in ** 0.5)
        w = jax.random.uniform(kw, (fan_in, fan_out), jnp.float32, -bound, bound)
        b = jax.random.uniform(kb, (1, fan_out), jnp.float32, -bound, bound)
        return w, b

    we1, be1 = lin(ks[0], INPUT_SHAPE, NUM_FILTERS)   # encoder[0]
    we2, be2 = lin(ks[1], NUM_FILTERS, NUM_HIDDEN)    # encoder[2]
    wg1, bg1 = lin(ks[2], NUM_HIDDEN, NUM_FILTERS)    # generator[0]
    wg2, bg2 = lin(ks[3], NUM_FILTERS, NUM_FILTERS)   # generator[2]
    wg3, bg3 = lin(ks[4], NUM_FILTERS, INPUT_SHAPE)   # generator[4]
    alpha = jnp.ones((1, INPUT_SHAPE), jnp.float32)   # nn.Parameter(torch.ones(input_shape))
    sigma = jnp.ones((1, INPUT_SHAPE), jnp.float32)
    return (we1, be1, we2, be2, wg1, bg1, wg2, bg2, wg3, bg3, alpha, sigma)


def reference_forward(x, noise, params, *, matmul_dtype=jnp.float32):
    """Pure-JAX reference of the PyTorch forward (noise pre-sampled).

    matmul_dtype=jnp.bfloat16 reproduces the kernel's numerics exactly
    (bf16 operands at every dot, f32 accumulation); matmul_dtype=jnp.float32
    is the full-precision PyTorch reference (differences vs. the kernel are
    then precision-only, ~1e-2 relative).
    """
    (we1, be1, we2, be2, wg1, bg1, wg2, bg2, wg3, bg3, alpha, sigma) = params
    noise = noise.astype(jnp.float32)

    def mm(a, w):
        return jnp.dot(a.astype(matmul_dtype), w.astype(matmul_dtype),
                       preferred_element_type=jnp.float32)

    h = jnp.maximum(mm(x, we1) + be1, 0.0)
    z = mm(h, we2) + be2
    z = jnp.tile(z, (FRACTAL_STEPS, 1))
    for k in range(NUM_STEPS):
        i = NUM_STEPS - 1 - k
        t = i / NUM_STEPS
        a_t = jnp.exp(-0.5 * alpha * t)
        s_t = jnp.exp(0.5 * sigma * t)
        z = z * a_t + s_t * noise[k]
        if i == 0:
            break
        g = jnp.maximum(mm(z, wg1) + bg1, 0.0)
        g = jnp.maximum(mm(g, wg2) + bg2, 0.0)
        z = jnp.maximum(mm(g, wg3) + bg3, 0.0)
    return z


if __name__ == "__main__":
    key = jax.random.PRNGKey(0)
    kx, kn, kp = jax.random.split(key, 3)

    x = jax.random.normal(kx, (BATCH, INPUT_SHAPE), jnp.float32)
    # torch.randn_like noise for every diffusion step, pre-sampled deterministically
    # in RNG-consumption order (one draw per diffuse call, including the i==0 step).
    # Shipped to the kernel in bf16; the reference consumes the same quantized values.
    noise = jax.random.normal(
        kn, (NUM_STEPS, FRACTAL_STEPS * BATCH, INPUT_SHAPE), jnp.float32
    ).astype(jnp.bfloat16)
    params = init_params(kp)

    out = jax.block_until_ready(gdiffusion_forward(x, noise, params))

    assert out.shape == (FRACTAL_STEPS * BATCH, INPUT_SHAPE), out.shape
    assert bool(jnp.all(jnp.isfinite(out)))

    # Compare against a reference with the kernel's exact numerics (bf16 matmul
    # operands, f32 accumulation); remaining differences are accumulation-order only.
    ref = reference_forward(x, noise, params, matmul_dtype=jnp.bfloat16)
    assert bool(jnp.allclose(out, ref, rtol=1e-2, atol=1e-2)), float(
        jnp.max(jnp.abs(out - ref)))

    print("KERNEL_OK")
</pallas_src>

<mosaic_0001>
module attributes {stable_mosaic.version = 11 : i64} {
  func.func @gdiffusion_kernel(%arg0: i32, %arg1: memref<256x128xbf16, #tpu.memory_space<vmem>>, %arg2: memref<10x256x128xbf16, #tpu.memory_space<vmem>>, %arg3: memref<5x128x128xbf16, #tpu.memory_space<vmem>>, %arg4: memref<32x128xf32, #tpu.memory_space<vmem>>, %arg5: memref<256x128xf32, #tpu.memory_space<vmem>>) attributes {dimension_semantics = [#tpu.dimension_semantics<parallel>], iteration_bounds = array<i64: 1>, scalar_prefetch = 0 : i64, scratch_operands = 0 : i64, tpu.core_type = #tpu.core_type<tc>, window_params = [{transform_indices = @transform_0, window_bounds = array<i64: 256, 128>}, {transform_indices = @transform_1, window_bounds = array<i64: 10, 256, 128>}, {pipeline_mode = #tpu.pipeline_mode<synchronous>, transform_indices = @transform_2, window_bounds = array<i64: 5, 128, 128>}, {pipeline_mode = #tpu.pipeline_mode<synchronous>, transform_indices = @transform_3, window_bounds = array<i64: 32, 128>}, {transform_indices = @transform_4, window_bounds = array<i64: 256, 128>}]} {
    %c0 = arith.constant 0 : index
    %c0_0 = arith.constant 0 : index
    %0 = vector.load %arg1[%c0, %c0_0] : memref<256x128xbf16, #tpu.memory_space<vmem>>, vector<256x128xbf16>
    %c0_1 = arith.constant 0 : index
    %c0_2 = arith.constant 0 : index
    %c0_3 = arith.constant 0 : index
    %1 = vector.load %arg3[%c0_1, %c0_2, %c0_3] : memref<5x128x128xbf16, #tpu.memory_space<vmem>>, vector<1x128x128xbf16>
    %2 = vector.shape_cast %1 : vector<1x128x128xbf16> to vector<128x128xbf16>
    %cst = arith.constant dense<0.000000e+00> : vector<256x128xf32>
    %3 = tpu.matmul %0, %2, %cst {dimension_numbers = #tpu.dot_dimension_numbers<[1], [0], [0], [1], [0, 0, 1, 1], [], []>} : vector<256x128xbf16>, vector<128x128xbf16>, vector<256x128xf32> -> vector<256x128xf32>
    %c0_4 = arith.constant 0 : index
    %c0_5 = arith.constant 0 : index
    %4 = vector.load %arg4[%c0_4, %c0_5] : memref<32x128xf32, #tpu.memory_space<vmem>>, vector<1x128xf32>
    %5 = vector.broadcast %4 : vector<1x128xf32> to vector<256x128xf32>
    %6 = arith.addf %3, %5 : vector<256x128xf32>
    %cst_6 = arith.constant 0.000000e+00 : f32
    %7 = vector.broadcast %cst_6 : f32 to vector<256x128xf32>
    %8 = arith.maximumf %6, %7 : vector<256x128xf32>
    %9 = arith.truncf %8 : vector<256x128xf32> to vector<256x128xbf16>
    %c1 = arith.constant 1 : index
    %c0_7 = arith.constant 0 : index
    %c0_8 = arith.constant 0 : index
    %10 = vector.load %arg3[%c1, %c0_7, %c0_8] : memref<5x128x128xbf16, #tpu.memory_space<vmem>>, vector<1x128x128xbf16>
    %11 = vector.shape_cast %10 : vector<1x128x128xbf16> to vector<128x128xbf16>
    %cst_9 = arith.constant dense<0.000000e+00> : vector<256x128xf32>
    %12 = tpu.matmul %9, %11, %cst_9 {dimension_numbers = #tpu.dot_dimension_numbers<[1], [0], [0], [1], [0, 0, 1, 1], [], []>} : vector<256x128xbf16>, vector<128x128xbf16>, vector<256x128xf32> -> vector<256x128xf32>
    %c1_10 = arith.constant 1 : index
    %c0_11 = arith.constant 0 : index
    %13 = vector.load %arg4[%c1_10, %c0_11] : memref<32x128xf32, #tpu.memory_space<vmem>>, vector<1x128xf32>
    %14 = vector.broadcast %13 : vector<1x128xf32> to vector<256x128xf32>
    %15 = arith.addf %12, %14 : vector<256x128xf32>
    %c5 = arith.constant 5 : index
    %c0_12 = arith.constant 0 : index
    %16 = vector.load %arg4[%c5, %c0_12] : memref<32x128xf32, #tpu.memory_space<vmem>>, vector<1x128xf32>
    %c15 = arith.constant 15 : index
    %c0_13 = arith.constant 0 : index
    %17 = vector.load %arg4[%c15, %c0_13] : memref<32x128xf32, #tpu.memory_space<vmem>>, vector<1x128xf32>
    %18 = vector.broadcast %16 : vector<1x128xf32> to vector<256x128xf32>
    %19 = arith.mulf %15, %18 : vector<256x128xf32>
    %c0_14 = arith.constant 0 : index
    %c0_15 = arith.constant 0 : index
    %c0_16 = arith.constant 0 : index
    %20 = vector.load %arg2[%c0_14, %c0_15, %c0_16] : memref<10x256x128xbf16, #tpu.memory_space<vmem>>, vector<1x256x128xbf16>
    %21 = vector.shape_cast %20 : vector<1x256x128xbf16> to vector<256x128xbf16>
    %22 = arith.extf %21 : vector<256x128xbf16> to vector<256x128xf32>
    %23 = vector.broadcast %17 : vector<1x128xf32> to vector<256x128xf32>
    %24 = arith.mulf %23, %22 : vector<256x128xf32>
    %25 = arith.addf %19, %24 : vector<256x128xf32>
    %26 = arith.truncf %25 : vector<256x128xf32> to vector<256x128xbf16>
    %c2 = arith.constant 2 : index
    %c0_17 = arith.constant 0 : index
    %c0_18 = arith.constant 0 : index
    %27 = vector.load %arg3[%c2, %c0_17, %c0_18] : memref<5x128x128xbf16, #tpu.memory_space<vmem>>, vector<1x128x128xbf16>
    %28 = vector.shape_cast %27 : vector<1x128x128xbf16> to vector<128x128xbf16>
    %cst_19 = arith.constant dense<0.000000e+00> : vector<256x128xf32>
    %29 = tpu.matmul %26, %28, %cst_19 {dimension_numbers = #tpu.dot_dimension_numbers<[1], [0], [0], [1], [0, 0, 1, 1], [], []>} : vector<256x128xbf16>, vector<128x128xbf16>, vector<256x128xf32> -> vector<256x128xf32>
    %c2_20 = arith.constant 2 : index
    %c0_21 = arith.constant 0 : index
    %30 = vector.load %arg4[%c2_20, %c0_21] : memref<32x128xf32, #tpu.memory_space<vmem>>, vector<1x128xf32>
    %31 = vector.broadcast %30 : vector<1x128xf32> to vector<256x128xf32>
    %32 = arith.addf %29, %31 : vector<256x128xf32>
    %cst_22 = arith.constant 0.000000e+00 : f32
    %33 = vector.broadcast %cst_22 : f32 to vector<256x128xf32>
    %34 = arith.maximumf %32, %33 : vector<256x128xf32>
    %35 = arith.truncf %34 : vector<256x128xf32> to vector<256x128xbf16>
    %c3 = arith.constant 3 : index
    %c0_23 = arith.constant 0 : index
    %c0_24 = arith.constant 0 : index
    %36 = vector.load %arg3[%c3, %c0_23, %c0_24] : memref<5x128x128xbf16, #tpu.memory_space<vmem>>, vector<1x128x128xbf16>
    %37 = vector.shape_cast %36 : vector<1x128x128xbf16> to vector<128x128xbf16>
    %cst_25 = arith.constant dense<0.000000e+00> : vector<256x128xf32>
    %38 = tpu.matmul %35, %37, %cst_25 {dimension_numbers = #tpu.dot_dimension_numbers<[1], [0], [0], [1], [0, 0, 1, 1], [], []>} : vector<256x128xbf16>, vector<128x128xbf16>, vector<256x128xf32> -> vector<256x128xf32>
    %c3_26 = arith.constant 3 : index
    %c0_27 = arith.constant 0 : index
    %39 = vector.load %arg4[%c3_26, %c0_27] : memref<32x128xf32, #tpu.memory_space<vmem>>, vector<1x128xf32>
    %40 = vector.broadcast %39 : vector<1x128xf32> to vector<256x128xf32>
    %41 = arith.addf %38, %40 : vector<256x128xf32>
    %cst_28 = arith.constant 0.000000e+00 : f32
    %42 = vector.broadcast %cst_28 : f32 to vector<256x128xf32>
    %43 = arith.maximumf %41, %42 : vector<256x128xf32>
    %44 = arith.truncf %43 : vector<256x128xf32> to vector<256x128xbf16>
    %c4 = arith.constant 4 : index
    %c0_29 = arith.constant 0 : index
    %c0_30 = arith.constant 0 : index
    %45 = vector.load %arg3[%c4, %c0_29, %c0_30] : memref<5x128x128xbf16, #tpu.memory_space<vmem>>, vector<1x128x128xbf16>
    %46 = vector.shape_cast %45 : vector<1x128x128xbf16> to vector<128x128xbf16>
    %cst_31 = arith.constant dense<0.000000e+00> : vector<256x128xf32>
    %47 = tpu.matmul %44, %46, %cst_31 {dimension_numbers = #tpu.dot_dimension_numbers<[1], [0], [0], [1], [0, 0, 1, 1], [], []>} : vector<256x128xbf16>, vector<128x128xbf16>, vector<256x128xf32> -> vector<256x128xf32>
    %c4_32 = arith.constant 4 : index
    %c0_33 = arith.constant 0 : index
    %48 = vector.load %arg4[%c4_32, %c0_33] : memref<32x128xf32, #tpu.memory_space<vmem>>, vector<1x128xf32>
    %49 = vector.broadcast %48 : vector<1x128xf32> to vector<256x128xf32>
    %50 = arith.addf %47, %49 : vector<256x128xf32>
    %cst_34 = arith.constant 0.000000e+00 : f32
    %51 = vector.broadcast %cst_34 : f32 to vector<256x128xf32>
    %52 = arith.maximumf %50, %51 : vector<256x128xf32>
    %c6 = arith.constant 6 : index
    %c0_35 = arith.constant 0 : index
    %53 = vector.load %arg4[%c6, %c0_35] : memref<32x128xf32, #tpu.memory_space<vmem>>, vector<1x128xf32>
    %c16 = arith.constant 16 : index
    %c0_36 = arith.constant 0 : index
    %54 = vector.load %arg4[%c16, %c0_36] : memref<32x128xf32, #tpu.memory_space<vmem>>, vector<1x128xf32>
    %55 = vector.broadcast %53 : vector<1x128xf32> to vector<256x128xf32>
    %56 = arith.mulf %52, %55 : vector<256x128xf32>
    %c1_37 = arith.constant 1 : index
    %c0_38 = arith.constant 0 : index
    %c0_39 = arith.constant 0 : index
    %57 = vector.load %arg2[%c1_37, %c0_38, %c0_39] : memref<10x256x128xbf16, #tpu.memory_space<vmem>>, vector<1x256x128xbf16>
    %58 = vector.shape_cast %57 : vector<1x256x128xbf16> to vector<256x128xbf16>
    %59 = arith.extf %58 : vector<256x128xbf16> to vector<256x128xf32>
    %60 = vector.broadcast %54 : vector<1x128xf32> to vector<256x128xf32>
    %61 = arith.mulf %60, %59 : vector<256x128xf32>
    %62 = arith.addf %56, %61 : vector<256x128xf32>
    %63 = arith.truncf %62 : vector<256x128xf32> to vector<256x128xbf16>
    %c2_40 = arith.constant 2 : index
    %c0_41 = arith.constant 0 : index
    %c0_42 = arith.constant 0 : index
    %64 = vector.load %arg3[%c2_40, %c0_41, %c0_42] : memref<5x128x128xbf16, #tpu.memory_space<vmem>>, vector<1x128x128xbf16>
    %65 = vector.shape_cast %64 : vector<1x128x128xbf16> to vector<128x128xbf16>
    %cst_43 = arith.constant dense<0.000000e+00> : vector<256x128xf32>
    %66 = tpu.matmul %63, %65, %cst_43 {dimension_numbers = #tpu.dot_dimension_numbers<[1], [0], [0], [1], [0, 0, 1, 1], [], []>} : vector<256x128xbf16>, vector<128x128xbf16>, vector<256x128xf32> -> vector<256x128xf32>
    %c2_44 = arith.constant 2 : index
    %c0_45 = arith.constant 0 : index
    %67 = vector.load %arg4[%c2_44, %c0_45] : memref<32x128xf32, #tpu.memory_space<vmem>>, vector<1x128xf32>
    %68 = vector.broadcast %67 : vector<1x128xf32> to vector<256x128xf32>
    %69 = arith.addf %66, %68 : vector<256x128xf32>
    %cst_46 = arith.constant 0.000000e+00 : f32
    %70 = vector.broadcast %cst_46 : f32 to vector<256x128xf32>
    %71 = arith.maximumf %69, %70 : vector<256x128xf32>
    %72 = arith.truncf %71 : vector<256x128xf32> to vector<256x128xbf16>
    %c3_47 = arith.constant 3 : index
    %c0_48 = arith.constant 0 : index
    %c0_49 = arith.constant 0 : index
    %73 = vector.load %arg3[%c3_47, %c0_48, %c0_49] : memref<5x128x128xbf16, #tpu.memory_space<vmem>>, vector<1x128x128xbf16>
    %74 = vector.shape_cast %73 : vector<1x128x128xbf16> to vector<128x128xbf16>
    %cst_50 = arith.constant dense<0.000000e+00> : vector<256x128xf32>
    %75 = tpu.matmul %72, %74, %cst_50 {dimension_numbers = #tpu.dot_dimension_numbers<[1], [0], [0], [1], [0, 0, 1, 1], [], []>} : vector<256x128xbf16>, vector<128x128xbf16>, vector<256x128xf32> -> vector<256x128xf32>
    %c3_51 = arith.constant 3 : index
    %c0_52 = arith.constant 0 : index
    %76 = vector.load %arg4[%c3_51, %c0_52] : memref<32x128xf32, #tpu.memory_space<vmem>>, vector<1x128xf32>
    %77 = vector.broadcast %76 : vector<1x128xf32> to vector<256x128xf32>
    %78 = arith.addf %75, %77 : vector<256x128xf32>
    %cst_53 = arith.constant 0.000000e+00 : f32
    %79 = vector.broadcast %cst_53 : f32 to vector<256x128xf32>
    %80 = arith.maximumf %78, %79 : vector<256x128xf32>
    %81 = arith.truncf %80 : vector<256x128xf32> to vector<256x128xbf16>
    %c4_54 = arith.constant 4 : index
    %c0_55 = arith.constant 0 : index
    %c0_56 = arith.constant 0 : index
    %82 = vector.load %arg3[%c4_54, %c0_55, %c0_56] : memref<5x128x128xbf16, #tpu.memory_space<vmem>>, vector<1x128x128xbf16>
    %83 = vector.shape_cast %82 : vector<1x128x128xbf16> to vector<128x128xbf16>
    %cst_57 = arith.constant dense<0.000000e+00> : vector<256x128xf32>
    %84 = tpu.matmul %81, %83, %cst_57 {dimension_numbers = #tpu.dot_dimension_numbers<[1], [0], [0], [1], [0, 0, 1, 1], [], []>} : vector<256x128xbf16>, vector<128x128xbf16>, vector<256x128xf32> -> vector<256x128xf32>
    %c4_58 = arith.constant 4 : index
    %c0_59 = arith.constant 0 : index
    %85 = vector.load %arg4[%c4_58, %c0_59] : memref<32x128xf32, #tpu.memory_space<vmem>>, vector<1x128xf32>
    %86 = vector.broadcast %85 : vector<1x128xf32> to vector<256x128xf32>
    %87 = arith.addf %84, %86 : vector<256x128xf32>
    %cst_60 = arith.constant 0.000000e+00 : f32
    %88 = vector.broadcast %cst_60 : f32 to vector<256x128xf32>
    %89 = arith.maximumf %87, %88 : vector<256x128xf32>
    %c7 = arith.constant 7 : index
    %c0_61 = arith.constant 0 : index
    %90 = vector.load %arg4[%c7, %c0_61] : memref<32x128xf32, #tpu.memory_space<vmem>>, vector<1x128xf32>
    %c17 = arith.constant 17 : index
    %c0_62 = arith.constant 0 : index
    %91 = vector.load %arg4[%c17, %c0_62] : memref<32x128xf32, #tpu.memory_space<vmem>>, vector<1x128xf32>
    %92 = vector.broadcast %90 : vector<1x128xf32> to vector<256x128xf32>
    %93 = arith.mulf %89, %92 : vector<256x128xf32>
    %c2_63 = arith.constant 2 : index
    %c0_64 = arith.constant 0 : index
    %c0_65 = arith.constant 0 : index
    %94 = vector.load %arg2[%c2_63, %c0_64, %c0_65] : memref<10x256x128xbf16, #tpu.memory_space<vmem>>, vector<1x256x128xbf16>
    %95 = vector.shape_cast %94 : vector<1x256x128xbf16> to vector<256x128xbf16>
    %96 = arith.extf %95 : vector<256x128xbf16> to vector<256x128xf32>
    %97 = vector.broadcast %91 : vector<1x128xf32> to vector<256x128xf32>
    %98 = arith.mulf %97, %96 : vector<256x128xf32>
    %99 = arith.addf %93, %98 : vector<256x128xf32>
    %100 = arith.truncf %99 : vector<256x128xf32> to vector<256x128xbf16>
    %c2_66 = arith.constant 2 : index
    %c0_67 = arith.constant 0 : index
    %c0_68 = arith.constant 0 : index
    %101 = vector.load %arg3[%c2_66, %c0_67, %c0_68] : memref<5x128x128xbf16, #tpu.memory_space<vmem>>, vector<1x128x128xbf16>
    %102 = vector.shape_cast %101 : vector<1x128x128xbf16> to vector<128x128xbf16>
    %cst_69 = arith.constant dense<0.000000e+00> : vector<256x128xf32>
    %103 = tpu.matmul %100, %102, %cst_69 {dimension_numbers = #tpu.dot_dimension_numbers<[1], [0], [0], [1], [0, 0, 1, 1], [], []>} : vector<256x128xbf16>, vector<128x128xbf16>, vector<256x128xf32> -> vector<256x128xf32>
    %c2_70 = arith.constant 2 : index
    %c0_71 = arith.constant 0 : index
    %104 = vector.load %arg4[%c2_70, %c0_71] : memref<32x128xf32, #tpu.memory_space<vmem>>, vector<1x128xf32>
    %105 = vector.broadcast %104 : vector<1x128xf32> to vector<256x128xf32>
    %106 = arith.addf %103, %105 : vector<256x128xf32>
    %cst_72 = arith.constant 0.000000e+00 : f32
    %107 = vector.broadcast %cst_72 : f32 to vector<256x128xf32>
    %108 = arith.maximumf %106, %107 : vector<256x128xf32>
    %109 = arith.truncf %108 : vector<256x128xf32> to vector<256x128xbf16>
    %c3_73 = arith.constant 3 : index
    %c0_74 = arith.constant 0 : index
    %c0_75 = arith.constant 0 : index
    %110 = vector.load %arg3[%c3_73, %c0_74, %c0_75] : memref<5x128x128xbf16, #tpu.memory_space<vmem>>, vector<1x128x128xbf16>
    %111 = vector.shape_cast %110 : vector<1x128x128xbf16> to vector<128x128xbf16>
    %cst_76 = arith.constant dense<0.000000e+00> : vector<256x128xf32>
    %112 = tpu.matmul %109, %111, %cst_76 {dimension_numbers = #tpu.dot_dimension_numbers<[1], [0], [0], [1], [0, 0, 1, 1], [], []>} : vector<256x128xbf16>, vector<128x128xbf16>, vector<256x128xf32> -> vector<256x128xf32>
    %c3_77 = arith.constant 3 : index
    %c0_78 = arith.constant 0 : index
    %113 = vector.load %arg4[%c3_77, %c0_78] : memref<32x128xf32, #tpu.memory_space<vmem>>, vector<1x128xf32>
    %114 = vector.broadcast %113 : vector<1x128xf32> to vector<256x128xf32>
    %115 = arith.addf %112, %114 : vector<256x128xf32>
    %cst_79 = arith.constant 0.000000e+00 : f32
    %116 = vector.broadcast %cst_79 : f32 to vector<256x128xf32>
    %117 = arith.maximumf %115, %116 : vector<256x128xf32>
    %118 = arith.truncf %117 : vector<256x128xf32> to vector<256x128xbf16>
    %c4_80 = arith.constant 4 : index
    %c0_81 = arith.constant 0 : index
    %c0_82 = arith.constant 0 : index
    %119 = vector.load %arg3[%c4_80, %c0_81, %c0_82] : memref<5x128x128xbf16, #tpu.memory_space<vmem>>, vector<1x128x128xbf16>
    %120 = vector.shape_cast %119 : vector<1x128x128xbf16> to vector<128x128xbf16>
    %cst_83 = arith.constant dense<0.000000e+00> : vector<256x128xf32>
    %121 = tpu.matmul %118, %120, %cst_83 {dimension_numbers = #tpu.dot_dimension_numbers<[1], [0], [0], [1], [0, 0, 1, 1], [], []>} : vector<256x128xbf16>, vector<128x128xbf16>, vector<256x128xf32> -> vector<256x128xf32>
    %c4_84 = arith.constant 4 : index
    %c0_85 = arith.constant 0 : index
    %122 = vector.load %arg4[%c4_84, %c0_85] : memref<32x128xf32, #tpu.memory_space<vmem>>, vector<1x128xf32>
    %123 = vector.broadcast %122 : vector<1x128xf32> to vector<256x128xf32>
    %124 = arith.addf %121, %123 : vector<256x128xf32>
    %cst_86 = arith.constant 0.000000e+00 : f32
    %125 = vector.broadcast %cst_86 : f32 to vector<256x128xf32>
    %126 = arith.maximumf %124, %125 : vector<256x128xf32>
    %c8 = arith.constant 8 : index
    %c0_87 = arith.constant 0 : index
    %127 = vector.load %arg4[%c8, %c0_87] : memref<32x128xf32, #tpu.memory_space<vmem>>, vector<1x128xf32>
    %c18 = arith.constant 18 : index
    %c0_88 = arith.constant 0 : index
    %128 = vector.load %arg4[%c18, %c0_88] : memref<32x128xf32, #tpu.memory_space<vmem>>, vector<1x128xf32>
    %129 = vector.broadcast %127 : vector<1x128xf32> to vector<256x128xf32>
    %130 = arith.mulf %126, %129 : vector<256x128xf32>
    %c3_89 = arith.constant 3 : index
    %c0_90 = arith.constant 0 : index
    %c0_91 = arith.constant 0 : index
    %131 = vector.load %arg2[%c3_89, %c0_90, %c0_91] : memref<10x256x128xbf16, #tpu.memory_space<vmem>>, vector<1x256x128xbf16>
    %132 = vector.shape_cast %131 : vector<1x256x128xbf16> to vector<256x128xbf16>
    %133 = arith.extf %132 : vector<256x128xbf16> to vector<256x128xf32>
    %134 = vector.broadcast %128 : vector<1x128xf32> to vector<256x128xf32>
    %135 = arith.mulf %134, %133 : vector<256x128xf32>
    %136 = arith.addf %130, %135 : vector<256x128xf32>
    %137 = arith.truncf %136 : vector<256x128xf32> to vector<256x128xbf16>
    %c2_92 = arith.constant 2 : index
    %c0_93 = arith.constant 0 : index
    %c0_94 = arith.constant 0 : index
    %138 = vector.load %arg3[%c2_92, %c0_93, %c0_94] : memref<5x128x128xbf16, #tpu.memory_space<vmem>>, vector<1x128x128xbf16>
    %139 = vector.shape_cast %138 : vector<1x128x128xbf16> to vector<128x128xbf16>
    %cst_95 = arith.constant dense<0.000000e+00> : vector<256x128xf32>
    %140 = tpu.matmul %137, %139, %cst_95 {dimension_numbers = #tpu.dot_dimension_numbers<[1], [0], [0], [1], [0, 0, 1, 1], [], []>} : vector<256x128xbf16>, vector<128x128xbf16>, vector<256x128xf32> -> vector<256x128xf32>
    %c2_96 = arith.constant 2 : index
    %c0_97 = arith.constant 0 : index
    %141 = vector.load %arg4[%c2_96, %c0_97] : memref<32x128xf32, #tpu.memory_space<vmem>>, vector<1x128xf32>
    %142 = vector.broadcast %141 : vector<1x128xf32> to vector<256x128xf32>
    %143 = arith.addf %140, %142 : vector<256x128xf32>
    %cst_98 = arith.constant 0.000000e+00 : f32
    %144 = vector.broadcast %cst_98 : f32 to vector<256x128xf32>
    %145 = arith.maximumf %143, %144 : vector<256x128xf32>
    %146 = arith.truncf %145 : vector<256x128xf32> to vector<256x128xbf16>
    %c3_99 = arith.constant 3 : index
    %c0_100 = arith.constant 0 : index
    %c0_101 = arith.constant 0 : index
    %147 = vector.load %arg3[%c3_99, %c0_100, %c0_101] : memref<5x128x128xbf16, #tpu.memory_space<vmem>>, vector<1x128x128xbf16>
    %148 = vector.shape_cast %147 : vector<1x128x128xbf16> to vector<128x128xbf16>
    %cst_102 = arith.constant dense<0.000000e+00> : vector<256x128xf32>
    %149 = tpu.matmul %146, %148, %cst_102 {dimension_numbers = #tpu.dot_dimension_numbers<[1], [0], [0], [1], [0, 0, 1, 1], [], []>} : vector<256x128xbf16>, vector<128x128xbf16>, vector<256x128xf32> -> vector<256x128xf32>
    %c3_103 = arith.constant 3 : index
    %c0_104 = arith.constant 0 : index
    %150 = vector.load %arg4[%c3_103, %c0_104] : memref<32x128xf32, #tpu.memory_space<vmem>>, vector<1x128xf32>
    %151 = vector.broadcast %150 : vector<1x128xf32> to vector<256x128xf32>
    %152 = arith.addf %149, %151 : vector<256x128xf32>
    %cst_105 = arith.constant 0.000000e+00 : f32
    %153 = vector.broadcast %cst_105 : f32 to vector<256x128xf32>
    %154 = arith.maximumf %152, %153 : vector<256x128xf32>
    %155 = arith.truncf %154 : vector<256x128xf32> to vector<256x128xbf16>
    %c4_106 = arith.constant 4 : index
    %c0_107 = arith.constant 0 : index
    %c0_108 = arith.constant 0 : index
    %156 = vector.load %arg3[%c4_106, %c0_107, %c0_108] : memref<5x128x128xbf16, #tpu.memory_space<vmem>>, vector<1x128x128xbf16>
    %157 = vector.shape_cast %156 : vector<1x128x128xbf16> to vector<128x128xbf16>
    %cst_109 = arith.constant dense<0.000000e+00> : vector<256x128xf32>
    %158 = tpu.matmul %155, %157, %cst_109 {dimension_numbers = #tpu.dot_dimension_numbers<[1], [0], [0], [1], [0, 0, 1, 1], [], []>} : vector<256x128xbf16>, vector<128x128xbf16>, vector<256x128xf32> -> vector<256x128xf32>
    %c4_110 = arith.constant 4 : index
    %c0_111 = arith.constant 0 : index
    %159 = vector.load %arg4[%c4_110, %c0_111] : memref<32x128xf32, #tpu.memory_space<vmem>>, vector<1x128xf32>
    %160 = vector.broadcast %159 : vector<1x128xf32> to vector<256x128xf32>
    %161 = arith.addf %158, %160 : vector<256x128xf32>
    %cst_112 = arith.constant 0.000000e+00 : f32
    %162 = vector.broadcast %cst_112 : f32 to vector<256x128xf32>
    %163 = arith.maximumf %161, %162 : vector<256x128xf32>
    %c9 = arith.constant 9 : index
    %c0_113 = arith.constant 0 : index
    %164 = vector.load %arg4[%c9, %c0_113] : memref<32x128xf32, #tpu.memory_space<vmem>>, vector<1x128xf32>
    %c19 = arith.constant 19 : index
    %c0_114 = arith.constant 0 : index
    %165 = vector.load %arg4[%c19, %c0_114] : memref<32x128xf32, #tpu.memory_space<vmem>>, vector<1x128xf32>
    %166 = vector.broadcast %164 : vector<1x128xf32> to vector<256x128xf32>
    %167 = arith.mulf %163, %166 : vector<256x128xf32>
    %c4_115 = arith.constant 4 : index
    %c0_116 = arith.constant 0 : index
    %c0_117 = arith.constant 0 : index
    %168 = vector.load %arg2[%c4_115, %c0_116, %c0_117] : memref<10x256x128xbf16, #tpu.memory_space<vmem>>, vector<1x256x128xbf16>
    %169 = vector.shape_cast %168 : vector<1x256x128xbf16> to vector<256x128xbf16>
    %170 = arith.extf %169 : vector<256x128xbf16> to vector<256x128xf32>
    %171 = vector.broadcast %165 : vector<1x128xf32> to vector<256x128xf32>
    %172 = arith.mulf %171, %170 : vector<256x128xf32>
    %173 = arith.addf %167, %172 : vector<256x128xf32>
    %174 = arith.truncf %173 : vector<256x128xf32> to vector<256x128xbf16>
    %c2_118 = arith.constant 2 : index
    %c0_119 = arith.constant 0 : index
    %c0_120 = arith.constant 0 : index
    %175 = vector.load %arg3[%c2_118, %c0_119, %c0_120] : memref<5x128x128xbf16, #tpu.memory_space<vmem>>, vector<1x128x128xbf16>
    %176 = vector.shape_cast %175 : vector<1x128x128xbf16> to vector<128x128xbf16>
    %cst_121 = arith.constant dense<0.000000e+00> : vector<256x128xf32>
    %177 = tpu.matmul %174, %176, %cst_121 {dimension_numbers = #tpu.dot_dimension_numbers<[1], [0], [0], [1], [0, 0, 1, 1], [], []>} : vector<256x128xbf16>, vector<128x128xbf16>, vector<256x128xf32> -> vector<256x128xf32>
    %c2_122 = arith.constant 2 : index
    %c0_123 = arith.constant 0 : index
    %178 = vector.load %arg4[%c2_122, %c0_123] : memref<32x128xf32, #tpu.memory_space<vmem>>, vector<1x128xf32>
    %179 = vector.broadcast %178 : vector<1x128xf32> to vector<256x128xf32>
    %180 = arith.addf %177, %179 : vector<256x128xf32>
    %cst_124 = arith.constant 0.000000e+00 : f32
    %181 = vector.broadcast %cst_124 : f32 to vector<256x128xf32>
    %182 = arith.maximumf %180, %181 : vector<256x128xf32>
    %183 = arith.truncf %182 : vector<256x128xf32> to vector<256x128xbf16>
    %c3_125 = arith.constant 3 : index
    %c0_126 = arith.constant 0 : index
    %c0_127 = arith.constant 0 : index
    %184 = vector.load %arg3[%c3_125, %c0_126, %c0_127] : memref<5x128x128xbf16, #tpu.memory_space<vmem>>, vector<1x128x128xbf16>
    %185 = vector.shape_cast %184 : vector<1x128x128xbf16> to vector<128x128xbf16>
    %cst_128 = arith.constant dense<0.000000e+00> : vector<256x128xf32>
    %186 = tpu.matmul %183, %185, %cst_128 {dimension_numbers = #tpu.dot_dimension_numbers<[1], [0], [0], [1], [0, 0, 1, 1], [], []>} : vector<256x128xbf16>, vector<128x128xbf16>, vector<256x128xf32> -> vector<256x128xf32>
    %c3_129 = arith.constant 3 : index
    %c0_130 = arith.constant 0 : index
    %187 = vector.load %arg4[%c3_129, %c0_130] : memref<32x128xf32, #tpu.memory_space<vmem>>, vector<1x128xf32>
    %188 = vector.broadcast %187 : vector<1x128xf32> to vector<256x128xf32>
    %189 = arith.addf %186, %188 : vector<256x128xf32>
    %cst_131 = arith.constant 0.000000e+00 : f32
    %190 = vector.broadcast %cst_131 : f32 to vector<256x128xf32>
    %191 = arith.maximumf %189, %190 : vector<256x128xf32>
    %192 = arith.truncf %191 : vector<256x128xf32> to vector<256x128xbf16>
    %c4_132 = arith.constant 4 : index
    %c0_133 = arith.constant 0 : index
    %c0_134 = arith.constant 0 : index
    %193 = vector.load %arg3[%c4_132, %c0_133, %c0_134] : memref<5x128x128xbf16, #tpu.memory_space<vmem>>, vector<1x128x128xbf16>
    %194 = vector.shape_cast %193 : vector<1x128x128xbf16> to vector<128x128xbf16>
    %cst_135 = arith.constant dense<0.000000e+00> : vector<256x128xf32>
    %195 = tpu.matmul %192, %194, %cst_135 {dimension_numbers = #tpu.dot_dimension_numbers<[1], [0], [0], [1], [0, 0, 1, 1], [], []>} : vector<256x128xbf16>, vector<128x128xbf16>, vector<256x128xf32> -> vector<256x128xf32>
    %c4_136 = arith.constant 4 : index
    %c0_137 = arith.constant 0 : index
    %196 = vector.load %arg4[%c4_136, %c0_137] : memref<32x128xf32, #tpu.memory_space<vmem>>, vector<1x128xf32>
    %197 = vector.broadcast %196 : vector<1x128xf32> to vector<256x128xf32>
    %198 = arith.addf %195, %197 : vector<256x128xf32>
    %cst_138 = arith.constant 0.000000e+00 : f32
    %199 = vector.broadcast %cst_138 : f32 to vector<256x128xf32>
    %200 = arith.maximumf %198, %199 : vector<256x128xf32>
    %c10 = arith.constant 10 : index
    %c0_139 = arith.constant 0 : index
    %201 = vector.load %arg4[%c10, %c0_139] : memref<32x128xf32, #tpu.memory_space<vmem>>, vector<1x128xf32>
    %c20 = arith.constant 20 : index
    %c0_140 = arith.constant 0 : index
    %202 = vector.load %arg4[%c20, %c0_140] : memref<32x128xf32, #tpu.memory_space<vmem>>, vector<1x128xf32>
    %203 = vector.broadcast %201 : vector<1x128xf32> to vector<256x128xf32>
    %204 = arith.mulf %200, %203 : vector<256x128xf32>
    %c5_141 = arith.constant 5 : index
    %c0_142 = arith.constant 0 : index
    %c0_143 = arith.constant 0 : index
    %205 = vector.load %arg2[%c5_141, %c0_142, %c0_143] : memref<10x256x128xbf16, #tpu.memory_space<vmem>>, vector<1x256x128xbf16>
    %206 = vector.shape_cast %205 : vector<1x256x128xbf16> to vector<256x128xbf16>
    %207 = arith.extf %206 : vector<256x128xbf16> to vector<256x128xf32>
    %208 = vector.broadcast %202 : vector<1x128xf32> to vector<256x128xf32>
    %209 = arith.mulf %208, %207 : vector<256x128xf32>
    %210 = arith.addf %204, %209 : vector<256x128xf32>
    %211 = arith.truncf %210 : vector<256x128xf32> to vector<256x128xbf16>
    %c2_144 = arith.constant 2 : index
    %c0_145 = arith.constant 0 : index
    %c0_146 = arith.constant 0 : index
    %212 = vector.load %arg3[%c2_144, %c0_145, %c0_146] : memref<5x128x128xbf16, #tpu.memory_space<vmem>>, vector<1x128x128xbf16>
    %213 = vector.shape_cast %212 : vector<1x128x128xbf16> to vector<128x128xbf16>
    %cst_147 = arith.constant dense<0.000000e+00> : vector<256x128xf32>
    %214 = tpu.matmul %211, %213, %cst_147 {dimension_numbers = #tpu.dot_dimension_numbers<[1], [0], [0], [1], [0, 0, 1, 1], [], []>} : vector<256x128xbf16>, vector<128x128xbf16>, vector<256x128xf32> -> vector<256x128xf32>
    %c2_148 = arith.constant 2 : index
    %c0_149 = arith.constant 0 : index
    %215 = vector.load %arg4[%c2_148, %c0_149] : memref<32x128xf32, #tpu.memory_space<vmem>>, vector<1x128xf32>
    %216 = vector.broadcast %215 : vector<1x128xf32> to vector<256x128xf32>
    %217 = arith.addf %214, %216 : vector<256x128xf32>
    %cst_150 = arith.constant 0.000000e+00 : f32
    %218 = vector.broadcast %cst_150 : f32 to vector<256x128xf32>
    %219 = arith.maximumf %217, %218 : vector<256x128xf32>
    %220 = arith.truncf %219 : vector<256x128xf32> to vector<256x128xbf16>
    %c3_151 = arith.constant 3 : index
    %c0_152 = arith.constant 0 : index
    %c0_153 = arith.constant 0 : index
    %221 = vector.load %arg3[%c3_151, %c0_152, %c0_153] : memref<5x128x128xbf16, #tpu.memory_space<vmem>>, vector<1x128x128xbf16>
    %222 = vector.shape_cast %221 : vector<1x128x128xbf16> to vector<128x128xbf16>
    %cst_154 = arith.constant dense<0.000000e+00> : vector<256x128xf32>
    %223 = tpu.matmul %220, %222, %cst_154 {dimension_numbers = #tpu.dot_dimension_numbers<[1], [0], [0], [1], [0, 0, 1, 1], [], []>} : vector<256x128xbf16>, vector<128x128xbf16>, vector<256x128xf32> -> vector<256x128xf32>
    %c3_155 = arith.constant 3 : index
    %c0_156 = arith.constant 0 : index
    %224 = vector.load %arg4[%c3_155, %c0_156] : memref<32x128xf32, #tpu.memory_space<vmem>>, vector<1x128xf32>
    %225 = vector.broadcast %224 : vector<1x128xf32> to vector<256x128xf32>
    %226 = arith.addf %223, %225 : vector<256x128xf32>
    %cst_157 = arith.constant 0.000000e+00 : f32
    %227 = vector.broadcast %cst_157 : f32 to vector<256x128xf32>
    %228 = arith.maximumf %226, %227 : vector<256x128xf32>
    %229 = arith.truncf %228 : vector<256x128xf32> to vector<256x128xbf16>
    %c4_158 = arith.constant 4 : index
    %c0_159 = arith.constant 0 : index
    %c0_160 = arith.constant 0 : index
    %230 = vector.load %arg3[%c4_158, %c0_159, %c0_160] : memref<5x128x128xbf16, #tpu.memory_space<vmem>>, vector<1x128x128xbf16>
    %231 = vector.shape_cast %230 : vector<1x128x128xbf16> to vector<128x128xbf16>
    %cst_161 = arith.constant dense<0.000000e+00> : vector<256x128xf32>
    %232 = tpu.matmul %229, %231, %cst_161 {dimension_numbers = #tpu.dot_dimension_numbers<[1], [0], [0], [1], [0, 0, 1, 1], [], []>} : vector<256x128xbf16>, vector<128x128xbf16>, vector<256x128xf32> -> vector<256x128xf32>
    %c4_162 = arith.constant 4 : index
    %c0_163 = arith.constant 0 : index
    %233 = vector.load %arg4[%c4_162, %c0_163] : memref<32x128xf32, #tpu.memory_space<vmem>>, vector<1x128xf32>
    %234 = vector.broadcast %233 : vector<1x128xf32> to vector<256x128xf32>
    %235 = arith.addf %232, %234 : vector<256x128xf32>
    %cst_164 = arith.constant 0.000000e+00 : f32
    %236 = vector.broadcast %cst_164 : f32 to vector<256x128xf32>
    %237 = arith.maximumf %235, %236 : vector<256x128xf32>
    %c11 = arith.constant 11 : index
    %c0_165 = arith.constant 0 : index
    %238 = vector.load %arg4[%c11, %c0_165] : memref<32x128xf32, #tpu.memory_space<vmem>>, vector<1x128xf32>
    %c21 = arith.constant 21 : index
    %c0_166 = arith.constant 0 : index
    %239 = vector.load %arg4[%c21, %c0_166] : memref<32x128xf32, #tpu.memory_space<vmem>>, vector<1x128xf32>
    %240 = vector.broadcast %238 : vector<1x128xf32> to vector<256x128xf32>
    %241 = arith.mulf %237, %240 : vector<256x128xf32>
    %c6_167 = arith.constant 6 : index
    %c0_168 = arith.constant 0 : index
    %c0_169 = arith.constant 0 : index
    %242 = vector.load %arg2[%c6_167, %c0_168, %c0_169] : memref<10x256x128xbf16, #tpu.memory_space<vmem>>, vector<1x256x128xbf16>
    %243 = vector.shape_cast %242 : vector<1x256x128xbf16> to vector<256x128xbf16>
    %244 = arith.extf %243 : vector<256x128xbf16> to vector<256x128xf32>
    %245 = vector.broadcast %239 : vector<1x128xf32> to vector<256x128xf32>
    %246 = arith.mulf %245, %244 : vector<256x128xf32>
    %247 = arith.addf %241, %246 : vector<256x128xf32>
    %248 = arith.truncf %247 : vector<256x128xf32> to vector<256x128xbf16>
    %c2_170 = arith.constant 2 : index
    %c0_171 = arith.constant 0 : index
    %c0_172 = arith.constant 0 : index
    %249 = vector.load %arg3[%c2_170, %c0_171, %c0_172] : memref<5x128x128xbf16, #tpu.memory_space<vmem>>, vector<1x128x128xbf16>
    %250 = vector.shape_cast %249 : vector<1x128x128xbf16> to vector<128x128xbf16>
    %cst_173 = arith.constant dense<0.000000e+00> : vector<256x128xf32>
    %251 = tpu.matmul %248, %250, %cst_173 {dimension_numbers = #tpu.dot_dimension_numbers<[1], [0], [0], [1], [0, 0, 1, 1], [], []>} : vector<256x128xbf16>, vector<128x128xbf16>, vector<256x128xf32> -> vector<256x128xf32>
    %c2_174 = arith.constant 2 : index
    %c0_175 = arith.constant 0 : index
    %252 = vector.load %arg4[%c2_174, %c0_175] : memref<32x128xf32, #tpu.memory_space<vmem>>, vector<1x128xf32>
    %253 = vector.broadcast %252 : vector<1x128xf32> to vector<256x128xf32>
    %254 = arith.addf %251, %253 : vector<256x128xf32>
    %cst_176 = arith.constant 0.000000e+00 : f32
    %255 = vector.broadcast %cst_176 : f32 to vector<256x128xf32>
    %256 = arith.maximumf %254, %255 : vector<256x128xf32>
    %257 = arith.truncf %256 : vector<256x128xf32> to vector<256x128xbf16>
    %c3_177 = arith.constant 3 : index
    %c0_178 = arith.constant 0 : index
    %c0_179 = arith.constant 0 : index
    %258 = vector.load %arg3[%c3_177, %c0_178, %c0_179] : memref<5x128x128xbf16, #tpu.memory_space<vmem>>, vector<1x128x128xbf16>
    %259 = vector.shape_cast %258 : vector<1x128x128xbf16> to vector<128x128xbf16>
    %cst_180 = arith.constant dense<0.000000e+00> : vector<256x128xf32>
    %260 = tpu.matmul %257, %259, %cst_180 {dimension_numbers = #tpu.dot_dimension_numbers<[1], [0], [0], [1], [0, 0, 1, 1], [], []>} : vector<256x128xbf16>, vector<128x128xbf16>, vector<256x128xf32> -> vector<256x128xf32>
    %c3_181 = arith.constant 3 : index
    %c0_182 = arith.constant 0 : index
    %261 = vector.load %arg4[%c3_181, %c0_182] : memref<32x128xf32, #tpu.memory_space<vmem>>, vector<1x128xf32>
    %262 = vector.broadcast %261 : vector<1x128xf32> to vector<256x128xf32>
    %263 = arith.addf %260, %262 : vector<256x128xf32>
    %cst_183 = arith.constant 0.000000e+00 : f32
    %264 = vector.broadcast %cst_183 : f32 to vector<256x128xf32>
    %265 = arith.maximumf %263, %264 : vector<256x128xf32>
    %266 = arith.truncf %265 : vector<256x128xf32> to vector<256x128xbf16>
    %c4_184 = arith.constant 4 : index
    %c0_185 = arith.constant 0 : index
    %c0_186 = arith.constant 0 : index
    %267 = vector.load %arg3[%c4_184, %c0_185, %c0_186] : memref<5x128x128xbf16, #tpu.memory_space<vmem>>, vector<1x128x128xbf16>
    %268 = vector.shape_cast %267 : vector<1x128x128xbf16> to vector<128x128xbf16>
    %cst_187 = arith.constant dense<0.000000e+00> : vector<256x128xf32>
    %269 = tpu.matmul %266, %268, %cst_187 {dimension_numbers = #tpu.dot_dimension_numbers<[1], [0], [0], [1], [0, 0, 1, 1], [], []>} : vector<256x128xbf16>, vector<128x128xbf16>, vector<256x128xf32> -> vector<256x128xf32>
    %c4_188 = arith.constant 4 : index
    %c0_189 = arith.constant 0 : index
    %270 = vector.load %arg4[%c4_188, %c0_189] : memref<32x128xf32, #tpu.memory_space<vmem>>, vector<1x128xf32>
    %271 = vector.broadcast %270 : vector<1x128xf32> to vector<256x128xf32>
    %272 = arith.addf %269, %271 : vector<256x128xf32>
    %cst_190 = arith.constant 0.000000e+00 : f32
    %273 = vector.broadcast %cst_190 : f32 to vector<256x128xf32>
    %274 = arith.maximumf %272, %273 : vector<256x128xf32>
    %c12 = arith.constant 12 : index
    %c0_191 = arith.constant 0 : index
    %275 = vector.load %arg4[%c12, %c0_191] : memref<32x128xf32, #tpu.memory_space<vmem>>, vector<1x128xf32>
    %c22 = arith.constant 22 : index
    %c0_192 = arith.constant 0 : index
    %276 = vector.load %arg4[%c22, %c0_192] : memref<32x128xf32, #tpu.memory_space<vmem>>, vector<1x128xf32>
    %277 = vector.broadcast %275 : vector<1x128xf32> to vector<256x128xf32>
    %278 = arith.mulf %274, %277 : vector<256x128xf32>
    %c7_193 = arith.constant 7 : index
    %c0_194 = arith.constant 0 : index
    %c0_195 = arith.constant 0 : index
    %279 = vector.load %arg2[%c7_193, %c0_194, %c0_195] : memref<10x256x128xbf16, #tpu.memory_space<vmem>>, vector<1x256x128xbf16>
    %280 = vector.shape_cast %279 : vector<1x256x128xbf16> to vector<256x128xbf16>
    %281 = arith.extf %280 : vector<256x128xbf16> to vector<256x128xf32>
    %282 = vector.broadcast %276 : vector<1x128xf32> to vector<256x128xf32>
    %283 = arith.mulf %282, %281 : vector<256x128xf32>
    %284 = arith.addf %278, %283 : vector<256x128xf32>
    %285 = arith.truncf %284 : vector<256x128xf32> to vector<256x128xbf16>
    %c2_196 = arith.constant 2 : index
    %c0_197 = arith.constant 0 : index
    %c0_198 = arith.constant 0 : index
    %286 = vector.load %arg3[%c2_196, %c0_197, %c0_198] : memref<5x128x128xbf16, #tpu.memory_space<vmem>>, vector<1x128x128xbf16>
    %287 = vector.shape_cast %286 : vector<1x128x128xbf16> to vector<128x128xbf16>
    %cst_199 = arith.constant dense<0.000000e+00> : vector<256x128xf32>
    %288 = tpu.matmul %285, %287, %cst_199 {dimension_numbers = #tpu.dot_dimension_numbers<[1], [0], [0], [1], [0, 0, 1, 1], [], []>} : vector<256x128xbf16>, vector<128x128xbf16>, vector<256x128xf32> -> vector<256x128xf32>
    %c2_200 = arith.constant 2 : index
    %c0_201 = arith.constant 0 : index
    %289 = vector.load %arg4[%c2_200, %c0_201] : memref<32x128xf32, #tpu.memory_space<vmem>>, vector<1x128xf32>
    %290 = vector.broadcast %289 : vector<1x128xf32> to vector<256x128xf32>
    %291 = arith.addf %288, %290 : vector<256x128xf32>
    %cst_202 = arith.constant 0.000000e+00 : f32
    %292 = vector.broadcast %cst_202 : f32 to vector<256x128xf32>
    %293 = arith.maximumf %291, %292 : vector<256x128xf32>
    %294 = arith.truncf %293 : vector<256x128xf32> to vector<256x128xbf16>
    %c3_203 = arith.constant 3 : index
    %c0_204 = arith.constant 0 : index
    %c0_205 = arith.constant 0 : index
    %295 = vector.load %arg3[%c3_203, %c0_204, %c0_205] : memref<5x128x128xbf16, #tpu.memory_space<vmem>>, vector<1x128x128xbf16>
    %296 = vector.shape_cast %295 : vector<1x128x128xbf16> to vector<128x128xbf16>
    %cst_206 = arith.constant dense<0.000000e+00> : vector<256x128xf32>
    %297 = tpu.matmul %294, %296, %cst_206 {dimension_numbers = #tpu.dot_dimension_numbers<[1], [0], [0], [1], [0, 0, 1, 1], [], []>} : vector<256x128xbf16>, vector<128x128xbf16>, vector<256x128xf32> -> vector<256x128xf32>
    %c3_207 = arith.constant 3 : index
    %c0_208 = arith.constant 0 : index
    %298 = vector.load %arg4[%c3_207, %c0_208] : memref<32x128xf32, #tpu.memory_space<vmem>>, vector<1x128xf32>
    %299 = vector.broadcast %298 : vector<1x128xf32> to vector<256x128xf32>
    %300 = arith.addf %297, %299 : vector<256x128xf32>
    %cst_209 = arith.constant 0.000000e+00 : f32
    %301 = vector.broadcast %cst_209 : f32 to vector<256x128xf32>
    %302 = arith.maximumf %300, %301 : vector<256x128xf32>
    %303 = arith.truncf %302 : vector<256x128xf32> to vector<256x128xbf16>
    %c4_210 = arith.constant 4 : index
    %c0_211 = arith.constant 0 : index
    %c0_212 = arith.constant 0 : index
    %304 = vector.load %arg3[%c4_210, %c0_211, %c0_212] : memref<5x128x128xbf16, #tpu.memory_space<vmem>>, vector<1x128x128xbf16>
    %305 = vector.shape_cast %304 : vector<1x128x128xbf16> to vector<128x128xbf16>
    %cst_213 = arith.constant dense<0.000000e+00> : vector<256x128xf32>
    %306 = tpu.matmul %303, %305, %cst_213 {dimension_numbers = #tpu.dot_dimension_numbers<[1], [0], [0], [1], [0, 0, 1, 1], [], []>} : vector<256x128xbf16>, vector<128x128xbf16>, vector<256x128xf32> -> vector<256x128xf32>
    %c4_214 = arith.constant 4 : index
    %c0_215 = arith.constant 0 : index
    %307 = vector.load %arg4[%c4_214, %c0_215] : memref<32x128xf32, #tpu.memory_space<vmem>>, vector<1x128xf32>
    %308 = vector.broadcast %307 : vector<1x128xf32> to vector<256x128xf32>
    %309 = arith.addf %306, %308 : vector<256x128xf32>
    %cst_216 = arith.constant 0.000000e+00 : f32
    %310 = vector.broadcast %cst_216 : f32 to vector<256x128xf32>
    %311 = arith.maximumf %309, %310 : vector<256x128xf32>
    %c13 = arith.constant 13 : index
    %c0_217 = arith.constant 0 : index
    %312 = vector.load %arg4[%c13, %c0_217] : memref<32x128xf32, #tpu.memory_space<vmem>>, vector<1x128xf32>
    %c23 = arith.constant 23 : index
    %c0_218 = arith.constant 0 : index
    %313 = vector.load %arg4[%c23, %c0_218] : memref<32x128xf32, #tpu.memory_space<vmem>>, vector<1x128xf32>
    %314 = vector.broadcast %312 : vector<1x128xf32> to vector<256x128xf32>
    %315 = arith.mulf %311, %314 : vector<256x128xf32>
    %c8_219 = arith.constant 8 : index
    %c0_220 = arith.constant 0 : index
    %c0_221 = arith.constant 0 : index
    %316 = vector.load %arg2[%c8_219, %c0_220, %c0_221] : memref<10x256x128xbf16, #tpu.memory_space<vmem>>, vector<1x256x128xbf16>
    %317 = vector.shape_cast %316 : vector<1x256x128xbf16> to vector<256x128xbf16>
    %318 = arith.extf %317 : vector<256x128xbf16> to vector<256x128xf32>
    %319 = vector.broadcast %313 : vector<1x128xf32> to vector<256x128xf32>
    %320 = arith.mulf %319, %318 : vector<256x128xf32>
    %321 = arith.addf %315, %320 : vector<256x128xf32>
    %322 = arith.truncf %321 : vector<256x128xf32> to vector<256x128xbf16>
    %c2_222 = arith.constant 2 : index
    %c0_223 = arith.constant 0 : index
    %c0_224 = arith.constant 0 : index
    %323 = vector.load %arg3[%c2_222, %c0_223, %c0_224] : memref<5x128x128xbf16, #tpu.memory_space<vmem>>, vector<1x128x128xbf16>
    %324 = vector.shape_cast %323 : vector<1x128x128xbf16> to vector<128x128xbf16>
    %cst_225 = arith.constant dense<0.000000e+00> : vector<256x128xf32>
    %325 = tpu.matmul %322, %324, %cst_225 {dimension_numbers = #tpu.dot_dimension_numbers<[1], [0], [0], [1], [0, 0, 1, 1], [], []>} : vector<256x128xbf16>, vector<128x128xbf16>, vector<256x128xf32> -> vector<256x128xf32>
    %c2_226 = arith.constant 2 : index
    %c0_227 = arith.constant 0 : index
    %326 = vector.load %arg4[%c2_226, %c0_227] : memref<32x128xf32, #tpu.memory_space<vmem>>, vector<1x128xf32>
    %327 = vector.broadcast %326 : vector<1x128xf32> to vector<256x128xf32>
    %328 = arith.addf %325, %327 : vector<256x128xf32>
    %cst_228 = arith.constant 0.000000e+00 : f32
    %329 = vector.broadcast %cst_228 : f32 to vector<256x128xf32>
    %330 = arith.maximumf %328, %329 : vector<256x128xf32>
    %331 = arith.truncf %330 : vector<256x128xf32> to vector<256x128xbf16>
    %c3_229 = arith.constant 3 : index
    %c0_230 = arith.constant 0 : index
    %c0_231 = arith.constant 0 : index
    %332 = vector.load %arg3[%c3_229, %c0_230, %c0_231] : memref<5x128x128xbf16, #tpu.memory_space<vmem>>, vector<1x128x128xbf16>
    %333 = vector.shape_cast %332 : vector<1x128x128xbf16> to vector<128x128xbf16>
    %cst_232 = arith.constant dense<0.000000e+00> : vector<256x128xf32>
    %334 = tpu.matmul %331, %333, %cst_232 {dimension_numbers = #tpu.dot_dimension_numbers<[1], [0], [0], [1], [0, 0, 1, 1], [], []>} : vector<256x128xbf16>, vector<128x128xbf16>, vector<256x128xf32> -> vector<256x128xf32>
    %c3_233 = arith.constant 3 : index
    %c0_234 = arith.constant 0 : index
    %335 = vector.load %arg4[%c3_233, %c0_234] : memref<32x128xf32, #tpu.memory_space<vmem>>, vector<1x128xf32>
    %336 = vector.broadcast %335 : vector<1x128xf32> to vector<256x128xf32>
    %337 = arith.addf %334, %336 : vector<256x128xf32>
    %cst_235 = arith.constant 0.000000e+00 : f32
    %338 = vector.broadcast %cst_235 : f32 to vector<256x128xf32>
    %339 = arith.maximumf %337, %338 : vector<256x128xf32>
    %340 = arith.truncf %339 : vector<256x128xf32> to vector<256x128xbf16>
    %c4_236 = arith.constant 4 : index
    %c0_237 = arith.constant 0 : index
    %c0_238 = arith.constant 0 : index
    %341 = vector.load %arg3[%c4_236, %c0_237, %c0_238] : memref<5x128x128xbf16, #tpu.memory_space<vmem>>, vector<1x128x128xbf16>
    %342 = vector.shape_cast %341 : vector<1x128x128xbf16> to vector<128x128xbf16>
    %cst_239 = arith.constant dense<0.000000e+00> : vector<256x128xf32>
    %343 = tpu.matmul %340, %342, %cst_239 {dimension_numbers = #tpu.dot_dimension_numbers<[1], [0], [0], [1], [0, 0, 1, 1], [], []>} : vector<256x128xbf16>, vector<128x128xbf16>, vector<256x128xf32> -> vector<256x128xf32>
    %c4_240 = arith.constant 4 : index
    %c0_241 = arith.constant 0 : index
    %344 = vector.load %arg4[%c4_240, %c0_241] : memref<32x128xf32, #tpu.memory_space<vmem>>, vector<1x128xf32>
    %345 = vector.broadcast %344 : vector<1x128xf32> to vector<256x128xf32>
    %346 = arith.addf %343, %345 : vector<256x128xf32>
    %cst_242 = arith.constant 0.000000e+00 : f32
    %347 = vector.broadcast %cst_242 : f32 to vector<256x128xf32>
    %348 = arith.maximumf %346, %347 : vector<256x128xf32>
    %c14 = arith.constant 14 : index
    %c0_243 = arith.constant 0 : index
    %349 = vector.load %arg4[%c14, %c0_243] : memref<32x128xf32, #tpu.memory_space<vmem>>, vector<1x128xf32>
    %c24 = arith.constant 24 : index
    %c0_244 = arith.constant 0 : index
    %350 = vector.load %arg4[%c24, %c0_244] : memref<32x128xf32, #tpu.memory_space<vmem>>, vector<1x128xf32>
    %351 = vector.broadcast %349 : vector<1x128xf32> to vector<256x128xf32>
    %352 = arith.mulf %348, %351 : vector<256x128xf32>
    %c9_245 = arith.constant 9 : index
    %c0_246 = arith.constant 0 : index
    %c0_247 = arith.constant 0 : index
    %353 = vector.load %arg2[%c9_245, %c0_246, %c0_247] : memref<10x256x128xbf16, #tpu.memory_space<vmem>>, vector<1x256x128xbf16>
    %354 = vector.shape_cast %353 : vector<1x256x128xbf16> to vector<256x128xbf16>
    %355 = arith.extf %354 : vector<256x128xbf16> to vector<256x128xf32>
    %356 = vector.broadcast %350 : vector<1x128xf32> to vector<256x128xf32>
    %357 = arith.mulf %356, %355 : vector<256x128xf32>
    %358 = arith.addf %352, %357 : vector<256x128xf32>
    %c0_248 = arith.constant 0 : index
    %c0_249 = arith.constant 0 : index
    %359 = vector.load %arg5[%c0_248, %c0_249] : memref<256x128xf32, #tpu.memory_space<vmem>>, vector<256x128xf32>
    tpu.vector_store %arg5[%c0_248, %c0_249], %358 {strides = array<i32>} : memref<256x128xf32, #tpu.memory_space<vmem>>, vector<256x128xf32>,
    return
  }
  func.func @transform_0(%arg0: i32) -> (i32, i32) {
    %c0_i32 = arith.constant 0 : i32
    %c0_i32_0 = arith.constant 0 : i32
    return %arg0, %c0_i32 : i32, i32
  }
  func.func @transform_1(%arg0: i32) -> (i32, i32, i32) {
    %c0_i32 = arith.constant 0 : i32
    %c0_i32_0 = arith.constant 0 : i32
    %c0_i32_1 = arith.constant 0 : i32
    return %c0_i32, %arg0, %c0_i32_0 : i32, i32, i32
  }
  func.func @transform_2(%arg0: i32) -> (i32, i32, i32) {
    %c0_i32 = arith.constant 0 : i32
    %c0_i32_0 = arith.constant 0 : i32
    %c0_i32_1 = arith.constant 0 : i32
    %c0_i32_2 = arith.constant 0 : i32
    return %c0_i32, %c0_i32_0, %c0_i32_1 : i32, i32, i32
  }
  func.func @transform_3(%arg0: i32) -> (i32, i32) {
    %c0_i32 = arith.constant 0 : i32
    %c0_i32_0 = arith.constant 0 : i32
    %c0_i32_1 = arith.constant 0 : i32
    return %c0_i32, %c0_i32_0 : i32, i32
  }
  func.func @transform_4(%arg0: i32) -> (i32, i32) {
    %c0_i32 = arith.constant 0 : i32
    %c0_i32_0 = arith.constant 0 : i32
    return %arg0, %c0_i32 : i32, i32
  }
}

</mosaic_0001>

<bundles_post_ra>
// kernel: tpu_custom_call.1
= control target key start
LH: loop header
LB: loop body
LE: loop exit
PB: predicated region body
PF: predicated region fallthrough
CT: control target
= control target key end

     0   :  { %9 = vsyncpa [#allocation3], 0  ;;  %s13628_s0 = inlined_call_operand.hbm [shape: bf16[256,128], index: 0, kind: input, shape index: {}]   ;;  %s13629_s1 = inlined_call_operand.hbm [shape: bf16[10,256,128], index: 1, kind: input, shape index: {}]   ;;  %s13630_s2 = inlined_call_operand.hbm [shape: bf16[5,128,128], index: 2, kind: input, shape index: {}]   ;;  %s13631_s3 = inlined_call_operand.hbm [shape: f32[32,128], index: 3, kind: input, shape index: {}]   ;;  %s13632_s4 = inlined_call_operand.hbm [shape: f32[256,128], index: 4, kind: output, shape index: {}]  }
   0x1   :  { %10 = vsyncpa [#allocation6], 0 }
   0x2   :  { %11 = vsyncpa [#allocation9], 0 }
   0x3   :  { %12 = vsyncpa [#allocation4], 0  ;;  %s11664_s15 = smov [#allocation5]   ;;  %s11665_s17 = smov [#allocation2]  }
   0x4   :  { %s30_s16 = sshll.u32 %s11664_s15, 4  ;;  %s18_s18 = sshll.u32 %s11665_s17, 4  ;;  %s31_s16 = int_to_ptr.vmem [resolvable:$true] %s30_s16  ;;  %s19_s18 = int_to_ptr.vmem [resolvable:$true] %s18_s18 }
   0x5   :  { %s11564_s19 = scalar_lea.vmem %s31_s16, 20480  ;;  %p11569_p1 = scmp.lt.s32.totalorder %s31_s16, %s31_s16 }
   0x6   :  { %p11565_p0 = scmp.ne.s32.totalorder %s31_s16, %s11564_s19  ;;  %p11570_p2 = scmp.lt.s32.totalorder %s11564_s19, %s11564_s19 }
   0x8   :  { %p11571_p3 = por %p11570_p2, %p11569_p1 }
   0xa   :  { %p11572_p4 = pnand %p11571_p3, %p11565_p0 }
   0xc   :  { %11575 = shalt.err (!%p11572_p4)
}
   0xd   :  { %s11666_s20 = smov 64   ;;  %s11667_s21 = smov 4  }
   0xe   :  { %36 = dma.hbm_to_vmem [thread:$0]  %s13629_s1, 20480, %s31_s16, [#allocation6], %s11666_s20, %s11666_s20, %s11667_s21  }
   0xf   :  { %s11584_s24 = scalar_lea.vmem %s19_s18, 2048  ;;  %p11589_p6 = scmp.lt.s32.totalorder %s19_s18, %s19_s18 }
  0x10   :  { %p11585_p5 = scmp.ne.s32.totalorder %s19_s18, %s11584_s24  ;;  %p11590_p7 = scmp.lt.s32.totalorder %s11584_s24, %s11584_s24 }
  0x12   :  { %p11591_p8 = por %p11590_p7, %p11589_p6 }
  0x14   :  { %p11592_p9 = pnand %p11591_p8, %p11585_p5 }
  0x16   :  { %11595 = shalt.err (!%p11592_p9)
}
  0x17   :  { %24 = dma.hbm_to_vmem [thread:$0]  %s13628_s0, 2048, %s19_s18, [#allocation3], %s11666_s20, %s11666_s20, %s11667_s21  }
  0x18   :  { %s11668_s27 = smov [#allocation7]   ;;  %s11669_s29 = smov [#allocation8]  }
  0x19   :  { %s42_s28 = sshll.u32 %s11668_s27, 4  ;;  %s54_s30 = sshll.u32 %s11669_s29, 4  ;;  %s43_s28 = int_to_ptr.vmem [resolvable:$true] %s42_s28  ;;  %s55_s30 = int_to_ptr.vmem [resolvable:$true] %s54_s30 }
  0x1a   :  { %s11604_s5 = scalar_lea.vmem %s43_s28, 5120  ;;  %p11609_p11 = scmp.lt.s32.totalorder %s43_s28, %s43_s28 }
  0x1b   :  { %p11605_p10 = scmp.ne.s32.totalorder %s43_s28, %s11604_s5  ;;  %p11610_p12 = scmp.lt.s32.totalorder %s11604_s5, %s11604_s5 }
  0x1d   :  { %p11611_p13 = por %p11610_p12, %p11609_p11 }
  0x1f   :  { %p11612_p0 = pnand %p11611_p13, %p11605_p10 }
  0x21   :  { %11615 = shalt.err (!%p11612_p0)
}
  0x22   :  { %48 = dma.hbm_to_vmem [thread:$0]  %s13630_s2, 5120, %s43_s28, [#allocation6], %s11666_s20, %s11666_s20, %s11667_s21  }
  0x23   :  { %s11624_s7 = scalar_lea.vmem %s55_s30, 512  ;;  %p11629_p2 = scmp.lt.s32.totalorder %s55_s30, %s55_s30 }
  0x24   :  { %p11625_p1 = scmp.ne.s32.totalorder %s55_s30, %s11624_s7  ;;  %p11630_p3 = scmp.lt.s32.totalorder %s11624_s7, %s11624_s7 }
  0x26   :  { %p11631_p4 = por %p11630_p3, %p11629_p2 }
  0x28   :  { %p11632_p5 = pnand %p11631_p4, %p11625_p1 }
  0x2a   :  { %11635 = shalt.err (!%p11632_p5)
}
  0x2b   :  { %s11670_s0 = smov 128   ;;  %s11671_s8 = smov 8  }
  0x2c   :  { %60 = dma.hbm_to_vmem [thread:$0]  %s13631_s3, 512, %s55_s30, [#allocation9], %s11670_s0, %s11670_s0, %s11671_s8  }
  0x2d   :  { %11656 = dma.done.wait [#allocation3], 2048  }
  0x2e   :  { %11657 = vsyncadd [#allocation3], 4294965248 }
  0x2f   :  { %11658 = dma.done.wait [#allocation6], 25600  }
  0x30   :  { %11659 = vsyncadd [#allocation6], 4294941696 }
  0x31   :  { %11660 = dma.done.wait [#allocation9], 512  }
  0x32   :  { %11661 = vsyncadd [#allocation9], 4294966784  ;;  %v11308_v0 = vld [vmem:[#allocation7 + $0x38] sm:$0xff]   ;;  %v11309_v1 = vld [vmem:[#allocation7 + $0x30] sm:$0xff]   ;;  %s11672_s2 = smov [#allocation10]  }
  0x33   :  { %9891 = vmatprep.subr.bf16.mxu0 %v11308_v0  ;;  %11283 = vmatprep.subr.bf16.mxu1 %v11308_v0  ;;  %v11310_v2 = vld [vmem:[#allocation7 + $0x28] sm:$0xff]   ;;  %v11311_v3 = vld [vmem:[#allocation7 + $0x20] sm:$0xff]   ;;  %v11312_v5 = vld [vmem:[#allocation7 + $0x18] sm:$0xff]   ;;  %s8310_s3 = sshll.u32 %s11672_s2, 4  ;;  %s8311_s3 = int_to_ptr.vmem [resolvable:$true] %s8310_s3 }
  0x34   :  { %9892 = vmatpush3.bf16.msra.mxu0 %v11308_v0  ;;  %11291 = vmatpush3.bf16.msra.mxu1 %v11308_v0  ;;  %v11316_v4 = vld [vmem:[#allocation2] sm:$0xff]   ;;  %v11313_v6 = vld [vmem:[#allocation7 + $0x10] sm:$0xff]   ;;  %v11314_v8 = vld [vmem:[#allocation7 + $0x8] sm:$0xff]   ;;  %s11636_s11 = scalar_lea.vmem %s8311_s3, 4096  ;;  %p11641_p7 = scmp.lt.s32.totalorder %s8311_s3, %s8311_s3 }
  0x35   :  { %9893 = vmatprep.subr.bf16.mxu0 %v11309_v1  ;;  %11284 = vmatprep.subr.bf16.mxu1 %v11309_v1  ;;  %v11324_v7 = vld [vmem:[#allocation2 + $0x40] sm:$0xff]   ;;  %v11317_v10 = vld [vmem:[#allocation2 + $0x8] sm:$0xff]   ;;  %v11332_v12 = vld [vmem:[#allocation7 + $0x78] sm:$0xff]   ;;  %p11637_p6 = scmp.ne.s32.totalorder %s8311_s3, %s11636_s11  ;;  %p11642_p8 = scmp.lt.s32.totalorder %s11636_s11, %s11636_s11 }
  0x36   :  { %9907 = vmatprep.mubr.bf16.mxu0 %v11316_v4  ;;  %9923 = vmatprep.mubr.bf16.mxu1 %v11324_v7  ;;  %v11315_v9 = vld [vmem:[#allocation7] sm:$0xff]   ;;  %v11325_v11 = vld [vmem:[#allocation2 + $0x48] sm:$0xff]   ;;  %v11318_v13 = vld [vmem:[#allocation2 + $0x10] sm:$0xff]  }
  0x37   :  { %v11326_v14 = vld [vmem:[#allocation2 + $0x50] sm:$0xff]   ;;  %v11334_v16 = vld [vmem:[#allocation7 + $0x68] sm:$0xff]   ;;  %v11319_v17 = vld [vmem:[#allocation2 + $0x18] sm:$0xff]   ;;  %p11643_p9 = por %p11642_p8, %p11641_p7 }
  0x38   :  { %9894 = vmatpush3.bf16.msra.mxu0 %v11309_v1  ;;  %11292 = vmatpush3.bf16.msra.mxu1 %v11309_v1  ;;  %v11333_v15 = vld [vmem:[#allocation7 + $0x70] sm:$0xff]   ;;  %v11327_v18 = vld [vmem:[#allocation2 + $0x58] sm:$0xff]   ;;  %v11320_v19 = vld [vmem:[#allocation2 + $0x20] sm:$0xff]  }
  0x39   :  { %9895 = vmatprep.subr.bf16.mxu0 %v11310_v2  ;;  %11285 = vmatprep.subr.bf16.mxu1 %v11310_v2  ;;  %v11328_v20 = vld [vmem:[#allocation2 + $0x60] sm:$0xff]   ;;  %v11336_v22 = vld [vmem:[#allocation7 + $0x58] sm:$0xff]   ;;  %v11321_v23 = vld [vmem:[#allocation2 + $0x28] sm:$0xff]   ;;  %p11644_p10 = pnand %p11643_p9, %p11637_p6 }
  0x3a   :  { %v11335_v21 = vld [vmem:[#allocation7 + $0x60] sm:$0xff]   ;;  %v11329_v24 = vld [vmem:[#allocation2 + $0x68] sm:$0xff]   ;;  %v11322_v25 = vld [vmem:[#allocation2 + $0x30] sm:$0xff]  }
  0x3b   :  { %v11330_v26 = vld [vmem:[#allocation2 + $0x70] sm:$0xff]   ;;  %v11323_v27 = vld [vmem:[#allocation2 + $0x38] sm:$0xff]   ;;  %v11338_v30 = vld [vmem:[#allocation7 + $0x48] sm:$0xff]  }
  0x3c   :  { %9896 = vmatpush3.bf16.msra.mxu0 %v11310_v2  ;;  %11293 = vmatpush3.bf16.msra.mxu1 %v11310_v2  ;;  %v11331_v28 = vld [vmem:[#allocation2 + $0x78] sm:$0xff]   ;;  %v11337_v29 = vld [vmem:[#allocation7 + $0x50] sm:$0xff]   ;;  %v11339_v31 = vld [vmem:[#allocation7 + $0x40] sm:$0xff]  }
  0x3d   :  { %9897 = vmatprep.subr.bf16.mxu0 %v11311_v3  ;;  %11286 = vmatprep.subr.bf16.mxu1 %v11311_v3  ;;  %v11713_v32 = vld [vmem:[#allocation7 + $0xb8] sm:$0xff]   ;;  %v11715_v33 = vld [vmem:[#allocation7 + $0xb0] sm:$0xff]   ;;  %v11720_v34 = vld [vmem:[#allocation7 + $0xa8] sm:$0xff]  }
  0x3e   :  { %v11724_v35 = vld [vmem:[#allocation7 + $0xa0] sm:$0xff]   ;;  %v11728_v36 = vld [vmem:[#allocation7 + $0x98] sm:$0xff]  }
  0x3f   :  { %v11735_v41 = vld [vmem:[#allocation8] ss:$0 sm:$0xff] }
  0x40   :  { %9898 = vmatpush3.bf16.msra.mxu0 %v11311_v3  ;;  %11294 = vmatpush3.bf16.msra.mxu1 %v11311_v3 }
  0x41   :  { %9899 = vmatprep.subr.bf16.mxu0 %v11312_v5  ;;  %11287 = vmatprep.subr.bf16.mxu1 %v11312_v5 }
  0x44   :  { %9900 = vmatpush3.bf16.msra.mxu0 %v11312_v5  ;;  %11295 = vmatpush3.bf16.msra.mxu1 %v11312_v5 }
  0x45   :  { %9901 = vmatprep.subr.bf16.mxu0 %v11313_v6  ;;  %11288 = vmatprep.subr.bf16.mxu1 %v11313_v6 }
  0x48   :  { %9902 = vmatpush3.bf16.msra.mxu0 %v11313_v6  ;;  %11296 = vmatpush3.bf16.msra.mxu1 %v11313_v6 }
  0x49   :  { %9903 = vmatprep.subr.bf16.mxu0 %v11314_v8  ;;  %11289 = vmatprep.subr.bf16.mxu1 %v11314_v8 }
  0x4c   :  { %9904 = vmatpush3.bf16.msra.mxu0 %v11314_v8  ;;  %11297 = vmatpush3.bf16.msra.mxu1 %v11314_v8 }
  0x4d   :  { %9905 = vmatprep.subr.bf16.mxu0 %v11315_v9  ;;  %11290 = vmatprep.subr.bf16.mxu1 %v11315_v9 }
  0x50   :  { %9906 = vmatpush3.bf16.msra.mxu0 %v11315_v9  ;;  %11298 = vmatpush3.bf16.msra.mxu1 %v11315_v9 }
  0x51   :  { %9939 = vmatprep.subr.bf16.mxu1 %v11332_v12  ;;  %9987 = vmatprep.subr.bf16.mxu0 %v11713_v32 }
  0x53   :  { %9908 = vmatmul.mubr.bf16.vlgmr.msra.gmra.mxu0 %v11317_v10  ;;  %9924 = vmatmul.mubr.bf16.vlgmr.msra.gmra.mxu1 %v11325_v11 }
  0x54   :  { %9911 = vmatprep.mubr.bf16.mxu0 %v11318_v13  ;;  %9927 = vmatprep.mubr.bf16.mxu1 %v11326_v14 }
  0x55   :  { %9940 = vmatpush3.bf16.msra.mxu1 %v11332_v12  ;;  %9988 = vmatpush3.bf16.msra.mxu0 %v11713_v32 }
  0x56   :  { %9941 = vmatprep.subr.bf16.mxu1 %v11333_v15  ;;  %9989 = vmatprep.subr.bf16.mxu0 %v11715_v33 }
  0x59   :  { %9942 = vmatpush3.bf16.msra.mxu1 %v11333_v15  ;;  %9990 = vmatpush3.bf16.msra.mxu0 %v11715_v33 }
  0x5a   :  { %9943 = vmatprep.subr.bf16.mxu1 %v11334_v16  ;;  %9991 = vmatprep.subr.bf16.mxu0 %v11720_v34 }
  0x5b   :  { %9912 = vmatmul.mubr.bf16.gmra.mxu0 %v11319_v17  ;;  %9928 = vmatmul.mubr.bf16.gmra.mxu1 %v11327_v18 }
  0x5c   :  { %9915 = vmatprep.mubr.bf16.mxu0 %v11320_v19  ;;  %9931 = vmatprep.mubr.bf16.mxu1 %v11328_v20 }
  0x5d   :  { %9944 = vmatpush3.bf16.msra.mxu1 %v11334_v16  ;;  %9992 = vmatpush3.bf16.msra.mxu0 %v11720_v34 }
  0x5e   :  { %9945 = vmatprep.subr.bf16.mxu1 %v11335_v21  ;;  %9993 = vmatprep.subr.bf16.mxu0 %v11724_v35 }
  0x61   :  { %9946 = vmatpush3.bf16.msra.mxu1 %v11335_v21  ;;  %9994 = vmatpush3.bf16.msra.mxu0 %v11724_v35 }
  0x62   :  { %9947 = vmatprep.subr.bf16.mxu1 %v11336_v22  ;;  %9995 = vmatprep.subr.bf16.mxu0 %v11728_v36 }
  0x63   :  { %9916 = vmatmul.mubr.bf16.gmra.mxu0 %v11321_v23  ;;  %9932 = vmatmul.mubr.bf16.gmra.mxu1 %v11329_v24 }
  0x64   :  { %9919 = vmatprep.mubr.bf16.mxu0 %v11322_v25  ;;  %9935 = vmatprep.mubr.bf16.mxu1 %v11330_v26 }
  0x65   :  { %9948 = vmatpush3.bf16.msra.mxu1 %v11336_v22  ;;  %9996 = vmatpush3.bf16.msra.mxu0 %v11728_v36 }
  0x66   :  { %9949 = vmatprep.subr.bf16.mxu1 %v11337_v29 }
  0x69   :  { %9950 = vmatpush3.bf16.msra.mxu1 %v11337_v29 }
  0x6a   :  { %9951 = vmatprep.subr.bf16.mxu1 %v11338_v30 }
  0x6b   :  { %9920 = vmatmul.mubr.bf16.gmra.mxu0 %v11323_v27  ;;  %9936 = vmatmul.mubr.bf16.gmra.mxu1 %v11331_v28 }
  0x6d   :  { %9952 = vmatpush3.bf16.msra.mxu1 %v11338_v30 }
  0x6e   :  { %9953 = vmatprep.subr.bf16.mxu1 %v11339_v31 }
  0x71   :  { %9954 = vmatpush3.bf16.msra.mxu1 %v11339_v31 }
 0x113   :  { %v9909_v37 = vpop.f32.mrf.mxu0  ;;  %v11733_v38 = vpop.f32.mrf.mxu1 }
 0x114   :  { %v314_v46 = vadd.f32 %v9909_v37, %v11735_v41 }
 0x115   :  { %v305_v39 = vpop.f32.mrf.mxu0  ;;  %v369_v40 = vpop.f32.mrf.mxu1 }
 0x116   :  { %v306_v44 = vadd.f32 %v11735_v41, %v305_v39  ;;  %v434_v55 = vmax.f32 %v314_v46, 0.0  ;;  %v370_v26 = vadd.f32 %v11735_v41, %v369_v40 }
 0x117   :  { %v9910_v42 = vpop.f32.mrf.mxu0  ;;  %v11737_v43 = vpop.f32.mrf.mxu1 }
 0x118   :  { %v317_v45 = vadd.f32 %v9910_v42, %v11735_v41  ;;  %v432_v53 = vmax.f32 %v306_v44, 0.0 }
 0x119   :  { %v308_v47 = vpop.f32.mrf.mxu0  ;;  %v372_v48 = vpop.f32.mrf.mxu1 }
 0x11a   :  { %v309_v49 = vadd.f32 %v11735_v41, %v308_v47  ;;  %v435_v50 = vmax.f32 %v317_v45, 0.0  ;;  %v373_v28 = vadd.f32 %v11735_v41, %v372_v48  ;;  %v448_v45 = vmax.f32 %v370_v26, 0.0 }
 0x11b   :  { %v9913_v51 = vpop.f32.mrf.mxu0  ;;  %v11743_v52 = vpop.f32.mrf.mxu1 }
 0x11c   :  { %v433_v54 = vmax.f32 %v309_v49, 0.0  ;;  %v465_v59 = vpack.c.bf16 %v435_v50, %v434_v55  ;;  %v330_v0 = vadd.f32 %v9913_v51, %v11735_v41  ;;  %v449_v47 = vmax.f32 %v373_v28, 0.0 }
 0x11d   :  { %v321_v56 = vpop.f32.mrf.mxu0  ;;  %v385_v57 = vpop.f32.mrf.mxu1 }
 0x11e   :  { %v464_v58 = vpack.c.bf16 %v433_v54, %v432_v53  ;;  %v322_v62 = vadd.f32 %v11735_v41, %v321_v56  ;;  %v438_v8 = vmax.f32 %v330_v0, 0.0  ;;  %v386_v53 = vadd.f32 %v11735_v41, %v385_v57 }
 0x11f   :  { %v9914_v60 = vpop.f32.mrf.mxu0  ;;  %v11745_v61 = vpop.f32.mrf.mxu1  ;;  %v472_v55 = vpack.c.bf16 %v449_v47, %v448_v45  ;;  %v11817_v45 = vld [vmem:[#allocation7 + $0xc8] sm:$0xff]  }
 0x120   :  { %v333_v63 = vadd.f32 %v9914_v60, %v11735_v41  ;;  %9955 = vmatprep.mubr.bf16.mxu1 %v464_v58  ;;  %v436_v6 = vmax.f32 %v322_v62, 0.0  ;;  %v378_v58 = vadd.f32 %v11733_v38, %v11735_v41  ;;  %v381_v60 = vadd.f32 %v11737_v43, %v11735_v41 }
 0x121   :  { %v324_v1 = vpop.f32.mrf.mxu0  ;;  %9956 = vmatmul.mubr.bf16.vlgmr.msra.gmra.mxu1 %v465_v59  ;;  %v388_v5 = vpop.f32.mrf.mxu1  ;;  %v394_v38 = vadd.f32 %v11743_v52, %v11735_v41  ;;  %v397_v43 = vadd.f32 %v11745_v61, %v11735_v41 }
 0x122   :  { %v325_v2 = vadd.f32 %v11735_v41, %v324_v1  ;;  %v439_v3 = vmax.f32 %v333_v63, 0.0  ;;  %v389_v56 = vadd.f32 %v11735_v41, %v388_v5  ;;  %v452_v63 = vmax.f32 %v386_v53, 0.0 }
 0x123   :  { %v9917_v4 = vpop.f32.mrf.mxu0  ;;  %v11751_v13 = vpop.f32.mrf.mxu1  ;;  %v450_v1 = vmax.f32 %v378_v58, 0.0 }
 0x124   :  { %v437_v7 = vmax.f32 %v325_v2, 0.0  ;;  %v467_v11 = vpack.c.bf16 %v439_v3, %v438_v8  ;;  %v346_v16 = vadd.f32 %v9917_v4, %v11735_v41  ;;  %v453_v0 = vmax.f32 %v389_v56, 0.0 }
 0x125   :  { %v337_v9 = vpop.f32.mrf.mxu0  ;;  %v401_v21 = vpop.f32.mrf.mxu1  ;;  %v451_v2 = vmax.f32 %v381_v60, 0.0  ;;  %v410_v52 = vadd.f32 %v11751_v13, %v11735_v41  ;;  %v11782_v13 = vld [vmem:[#allocation7 + $0x90] sm:$0xff]   ;;  %v11828_v60 = vld [vmem:[#allocation8 + $0xf] ss:$0 sm:$0xff] }
 0x126   :  { %v466_v10 = vpack.c.bf16 %v437_v7, %v436_v6  ;;  %v338_v14 = vadd.f32 %v11735_v41, %v337_v9  ;;  %v442_v24 = vmax.f32 %v346_v16, 0.0  ;;  %v402_v3 = vadd.f32 %v11735_v41, %v401_v21  ;;  %9997 = vmatprep.subr.bf16.mxu0 %v11782_v13 }
 0x127   :  { %v9918_v12 = vpop.f32.mrf.mxu0  ;;  %v9934_v31 = vpop.f32.mrf.mxu1  ;;  %v474_v4 = vpack.c.bf16 %v453_v0, %v452_v63  ;;  %v473_v6 = vpack.c.bf16 %v451_v2, %v450_v1  ;;  %9998 = vmatpush3.bf16.msra.mxu0 %v11782_v13 }
 0x128   :  { %v349_v15 = vadd.f32 %v9918_v12, %v11735_v41  ;;  %9959 = vmatprep.mubr.bf16.mxu1 %v466_v10  ;;  %v440_v22 = vmax.f32 %v338_v14, 0.0  ;;  %v456_v8 = vmax.f32 %v402_v3, 0.0  ;;  %v454_v10 = vmax.f32 %v394_v38, 0.0 }
 0x129   :  { %v340_v17 = vpop.f32.mrf.mxu0  ;;  %9960 = vmatmul.mubr.bf16.gmra.mxu1 %v467_v11  ;;  %v404_v49 = vpop.f32.mrf.mxu1  ;;  %v455_v11 = vmax.f32 %v397_v43, 0.0 }
 0x12a   :  { %v341_v18 = vadd.f32 %v11735_v41, %v340_v17  ;;  %v443_v19 = vmax.f32 %v349_v15, 0.0  ;;  %v405_v5 = vadd.f32 %v11735_v41, %v404_v49  ;;  %v9045_v49 = vld [vmem:[#allocation5 + $0x8] sm:$0xff]  }
 0x12b   :  { %v9921_v20 = vpop.f32.mrf.mxu0  ;;  %v9937_v62 = vpop.f32.mrf.mxu1  ;;  %v475_v17 = vpack.c.bf16 %v455_v11, %v454_v10  ;;  %v8411_v56 = vunpack.c.l.bf16 %v9045_v49 }
 0x12c   :  { %v441_v23 = vmax.f32 %v341_v18, 0.0  ;;  %v469_v29 = vpack.c.bf16 %v443_v19, %v442_v24  ;;  %v362_v42 = vadd.f32 %v9921_v20, %v11735_v41  ;;  %v457_v9 = vmax.f32 %v405_v5, 0.0  ;;  %v9046_v5 = vld [vmem:[#allocation5 + $0x10] sm:$0xff]  }
 0x12d   :  { %v353_v25 = vpop.f32.mrf.mxu0  ;;  %v417_v57 = vpop.f32.mrf.mxu1  ;;  %v413_v18 = vadd.f32 %v9934_v31, %v11735_v41  ;;  %v458_v20 = vmax.f32 %v410_v52, 0.0  ;;  %v426_v24 = vadd.f32 %v9937_v62, %v11735_v41  ;;  %v11796_v31 = vld [vmem:[#allocation7 + $0xf0] sm:$0xff]   ;;  %v819_v38 = vmul.f32 %v8411_v56, %v11828_v60 }
 0x12e   :  { %v468_v27 = vpack.c.bf16 %v441_v23, %v440_v22  ;;  %v354_v37 = vadd.f32 %v11735_v41, %v353_v25  ;;  %v446_v51 = vmax.f32 %v362_v42, 0.0  ;;  %v418_v14 = vadd.f32 %v11735_v41, %v417_v57  ;;  %v11809_v42 = vld [vmem:[#allocation7 + $0xd8] sm:$0xff]  }
 0x12f   :  { %v9922_v30 = vpop.f32.mrf.mxu0  ;;  %v9938_v7 = vpop.f32.mrf.mxu1  ;;  %v476_v15 = vpack.c.bf16 %v457_v9, %v456_v8  ;;  %v459_v21 = vmax.f32 %v413_v18, 0.0  ;;  %v462_v26 = vmax.f32 %v426_v24, 0.0  ;;  %v9047_v8 = vld [vmem:[#allocation5 + $0x18] sm:$0xff]   ;;  %v8415_v11 = vunpack.c.l.bf16 %v9046_v5 }
 0x130   :  { %v365_v39 = vadd.f32 %v9922_v30, %v11735_v41  ;;  %9963 = vmatprep.mubr.bf16.mxu1 %v468_v27  ;;  %v444_v50 = vmax.f32 %v354_v37, 0.0  ;;  %v460_v61 = vmax.f32 %v418_v14, 0.0  ;;  %v429_v25 = vadd.f32 %v9938_v7, %v11735_v41  ;;  %v11790_v30 = vld [vmem:[#allocation7 + $0x80] sm:$0xff]   ;;  %v11801_v37 = vld [vmem:[#allocation7 + $0xe8] sm:$0xff]  }
 0x131   :  { %v356_v44 = vpop.f32.mrf.mxu0  ;;  %9964 = vmatmul.mubr.bf16.gmra.mxu1 %v469_v29  ;;  %v420_v12 = vpop.f32.mrf.mxu1  ;;  %v477_v23 = vpack.c.bf16 %v459_v21, %v458_v20  ;;  %v11786_v29 = vld [vmem:[#allocation7 + $0x88] sm:$0xff]  }
 0x132   :  { %v357_v46 = vadd.f32 %v11735_v41, %v356_v44  ;;  %v447_v40 = vmax.f32 %v365_v39, 0.0  ;;  %v421_v16 = vadd.f32 %v11735_v41, %v420_v12  ;;  %v463_v27 = vmax.f32 %v429_v25, 0.0  ;;  %9999 = vmatprep.subr.bf16.mxu0 %v11786_v29  ;;  %v11794_v41 = vld [vmem:[#allocation7 + $0xf8] sm:$0xff]   ;;  %v11805_v39 = vld [vmem:[#allocation7 + $0xe0] sm:$0xff]   ;;  %v11813_v44 = vld [vmem:[#allocation7 + $0xd0] sm:$0xff]  }
 0x133   :  { %10000 = vmatpush3.bf16.msra.mxu0 %v11786_v29  ;;  %10035 = vmatprep.subr.bf16.mxu1 %v11794_v41  ;;  %v8420_v12 = vunpack.c.h.bf16 %v9047_v8 }
 0x134   :  { %v445_v48 = vmax.f32 %v357_v46, 0.0  ;;  %v471_v59 = vpack.c.bf16 %v447_v40, %v446_v51  ;;  %v461_v19 = vmax.f32 %v421_v16, 0.0  ;;  %v479_v28 = vpack.c.bf16 %v463_v27, %v462_v26  ;;  %10001 = vmatprep.subr.bf16.mxu0 %v11790_v30  ;;  %10036 = vmatpush3.bf16.msra.mxu1 %v11794_v41  ;;  %v8406_v46 = vld [vmem:[#allocation5] sm:$0xff]  }
 0x135   :  { %10037 = vmatprep.subr.bf16.mxu1 %v11796_v31  ;;  %v11822_v40 = vld [vmem:[#allocation8 + $0x1] ss:$0 sm:$0xff]  ;;  %v8412_v51 = vunpack.c.h.bf16 %v9045_v49  ;;  %v824_v24 = vmul.f32 %v8420_v12, %v11828_v60 }
 0x136   :  { %v470_v54 = vpack.c.bf16 %v445_v48, %v444_v50  ;;  %v478_v22 = vpack.c.bf16 %v461_v19, %v460_v61  ;;  %v8407_v48 = vunpack.c.l.bf16 %v8406_v46  ;;  %v8419_v61 = vunpack.c.l.bf16 %v9047_v8 }
 0x137   :  { %10002 = vmatpush3.bf16.msra.mxu0 %v11790_v30  ;;  %v820_v0 = vmul.f32 %v8412_v51, %v11828_v60 }
 0x138   :  { %9967 = vmatprep.mubr.bf16.mxu1 %v470_v54  ;;  %10038 = vmatpush3.bf16.msra.mxu1 %v11796_v31  ;;  %v8408_v54 = vunpack.c.h.bf16 %v8406_v46  ;;  %v817_v63 = vmul.f32 %v8407_v48, %v11828_v60 }
 0x139   :  { %9968 = vmatmul.mubr.bf16.gmra.mxu1 %v471_v59  ;;  %10039 = vmatprep.subr.bf16.mxu1 %v11801_v37  ;;  %v11826_v59 = vld [vmem:[#allocation8 + $0x5] ss:$0 sm:$0xff] }
 0x13a   :  { %9971 = vmatprep.mubr.bf16.mxu1 %v472_v55 }
 0x13c   :  { %10040 = vmatpush3.bf16.msra.mxu1 %v11801_v37 }
 0x13d   :  { %10041 = vmatprep.subr.bf16.mxu1 %v11805_v39 }
 0x140   :  { %10042 = vmatpush3.bf16.msra.mxu1 %v11805_v39 }
 0x141   :  { %9972 = vmatmul.mubr.bf16.gmra.mxu1 %v473_v6  ;;  %10043 = vmatprep.subr.bf16.mxu1 %v11809_v42 }
 0x142   :  { %9975 = vmatprep.mubr.bf16.mxu1 %v474_v4  ;;  %v818_v4 = vmul.f32 %v8408_v54, %v11828_v60 }
 0x144   :  { %10044 = vmatpush3.bf16.msra.mxu1 %v11809_v42 }
 0x145   :  { %10045 = vmatprep.subr.bf16.mxu1 %v11813_v44 }
 0x148   :  { %10046 = vmatpush3.bf16.msra.mxu1 %v11813_v44 }
 0x149   :  { %9976 = vmatmul.mubr.bf16.gmra.mxu1 %v475_v17  ;;  %10047 = vmatprep.subr.bf16.mxu1 %v11817_v45  ;;  %v8416_v17 = vunpack.c.h.bf16 %v9046_v5 }
 0x14a   :  { %9979 = vmatprep.mubr.bf16.mxu1 %v476_v15 }
 0x14b   :  { %v822_v46 = vmul.f32 %v8416_v17, %v11828_v60 }
 0x14c   :  { %10048 = vmatpush3.bf16.msra.mxu1 %v11817_v45 }
 0x151   :  { %9980 = vmatmul.mubr.bf16.gmra.mxu1 %v477_v23  ;;  %v821_v23 = vmul.f32 %v8415_v11, %v11828_v60 }
 0x152   :  { %9983 = vmatprep.mubr.bf16.mxu1 %v478_v22 }
 0x159   :  { %9984 = vmatmul.mubr.bf16.gmra.mxu1 %v479_v28 }
 0x1e1   :  { %v9957_v47 = vpop.f32.mrf.mxu1 }
 0x1e2   :  { %v593_v55 = vadd.f32 %v9957_v47, %v11822_v40  ;;  %v9048_v47 = vld [vmem:[#allocation5 + $0x20] sm:$0xff]  }
 0x1e3   :  { %v584_v50 = vpop.f32.mrf.mxu1  ;;  %v8423_v56 = vunpack.c.l.bf16 %v9048_v47 }
 0x1e4   :  { %v585_v53 = vadd.f32 %v11822_v40, %v584_v50  ;;  %v719_v6 = vmul.f32 %v11826_v59, %v593_v55  ;;  %v823_v50 = vmul.f32 %v8419_v61, %v11828_v60 }
 0x1e5   :  { %v9958_v58 = vpop.f32.mrf.mxu1 }
 0x1e6   :  { %v596_v62 = vadd.f32 %v9958_v58, %v11822_v40  ;;  %v717_v2 = vmul.f32 %v11826_v59, %v585_v53  ;;  %v851_v52 = vadd.f32 %v819_v38, %v719_v6  ;;  %v9049_v53 = vld [vmem:[#allocation5 + $0x28] sm:$0xff]   ;;  %v825_v38 = vmul.f32 %v8423_v56, %v11828_v60 }
 0x1e7   :  { %v587_v1 = vpop.f32.mrf.mxu1  ;;  %v8428_v58 = vunpack.c.h.bf16 %v9049_v53 }
 0x1e8   :  { %v720_v57 = vmul.f32 %v11826_v59, %v596_v62  ;;  %v588_v3 = vadd.f32 %v11822_v40, %v587_v1  ;;  %v849_v14 = vadd.f32 %v817_v63, %v717_v2  ;;  %v8424_v1 = vunpack.c.h.bf16 %v9048_v47 }
 0x1e9   :  { %v9961_v43 = vpop.f32.mrf.mxu1 }
 0x1ea   :  { %v718_v7 = vmul.f32 %v11826_v59, %v588_v3  ;;  %v852_v9 = vadd.f32 %v820_v0, %v720_v57  ;;  %v609_v18 = vadd.f32 %v9961_v43, %v11822_v40  ;;  %v8427_v3 = vunpack.c.l.bf16 %v9049_v53 }
 0x1eb   :  { %v600_v10 = vpop.f32.mrf.mxu1  ;;  %v828_v43 = vmul.f32 %v8428_v58, %v11828_v60  ;;  %v826_v12 = vmul.f32 %v8424_v1, %v11828_v60 }
 0x1ec   :  { %v850_v15 = vadd.f32 %v818_v4, %v718_v7  ;;  %v601_v16 = vadd.f32 %v11822_v40, %v600_v10  ;;  %v882_v22 = vpack.c.bf16 %v852_v9, %v851_v52  ;;  %v723_v49 = vmul.f32 %v11826_v59, %v609_v18  ;;  %v9051_v18 = vld [vmem:[#allocation5 + $0x38] sm:$0xff]  }
 0x1ed   :  { %v9962_v19 = vpop.f32.mrf.mxu1 }
 0x1ee   :  { %v612_v20 = vadd.f32 %v9962_v19, %v11822_v40  ;;  %v881_v21 = vpack.c.bf16 %v850_v15, %v849_v14  ;;  %v721_v26 = vmul.f32 %v11826_v59, %v601_v16  ;;  %v855_v2 = vadd.f32 %v823_v50, %v723_v49  ;;  %v9050_v14 = vld [vmem:[#allocation5 + $0x30] sm:$0xff]  }
 0x1ef   :  { %v603_v25 = vpop.f32.mrf.mxu1  ;;  %v827_v16 = vmul.f32 %v8427_v3, %v11828_v60 }
 0x1f0   :  { %v724_v27 = vmul.f32 %v11826_v59, %v612_v20  ;;  %v604_v28 = vadd.f32 %v11822_v40, %v603_v25  ;;  %10003 = vmatprep.mubr.bf16.mxu0 %v881_v21  ;;  %v853_v62 = vadd.f32 %v821_v23, %v721_v26  ;;  %v8431_v20 = vunpack.c.l.bf16 %v9050_v14 }
 0x1f1   :  { %v9965_v48 = vpop.f32.mrf.mxu1  ;;  %10004 = vmatmul.mubr.bf16.vlgmr.msra.gmra.mxu0 %v882_v22  ;;  %v8436_v21 = vunpack.c.h.bf16 %v9051_v18  ;;  %v8432_v25 = vunpack.c.h.bf16 %v9050_v14 }
 0x1f2   :  { %v722_v51 = vmul.f32 %v11826_v59, %v604_v28  ;;  %v856_v54 = vadd.f32 %v824_v24, %v724_v27  ;;  %v625_v57 = vadd.f32 %v9965_v48, %v11822_v40  ;;  %v8435_v28 = vunpack.c.l.bf16 %v9051_v18 }
 0x1f3   :  { %v616_v55 = vpop.f32.mrf.mxu1  ;;  %v829_v50 = vmul.f32 %v8431_v20, %v11828_v60  ;;  %v832_v48 = vmul.f32 %v8436_v21, %v11828_v60  ;;  %v830_v58 = vmul.f32 %v8432_v25, %v11828_v60 }
 0x1f4   :  { %v854_v63 = vadd.f32 %v822_v46, %v722_v51  ;;  %v617_v0 = vadd.f32 %v11822_v40, %v616_v55  ;;  %v884_v8 = vpack.c.bf16 %v856_v54, %v855_v2  ;;  %v727_v15 = vmul.f32 %v11826_v59, %v625_v57  ;;  %v9053_v57 = vld [vmem:[#allocation5 + $0x48] sm:$0xff]  }
 0x1f5   :  { %v9966_v4 = vpop.f32.mrf.mxu1 }
 0x1f6   :  { %v628_v5 = vadd.f32 %v9966_v4, %v11822_v40  ;;  %v883_v6 = vpack.c.bf16 %v854_v63, %v853_v62  ;;  %v725_v9 = vmul.f32 %v11826_v59, %v617_v0  ;;  %v859_v26 = vadd.f32 %v827_v16, %v727_v15  ;;  %v9052_v62 = vld [vmem:[#allocation5 + $0x40] sm:$0xff]  }
 0x1f7   :  { %v619_v7 = vpop.f32.mrf.mxu1  ;;  %v831_v0 = vmul.f32 %v8435_v28, %v11828_v60 }
 0x1f8   :  { %v728_v10 = vmul.f32 %v11826_v59, %v628_v5  ;;  %v620_v11 = vadd.f32 %v11822_v40, %v619_v7  ;;  %10007 = vmatprep.mubr.bf16.mxu0 %v883_v6  ;;  %v857_v22 = vadd.f32 %v825_v38, %v725_v9  ;;  %v8439_v5 = vunpack.c.l.bf16 %v9052_v62 }
 0x1f9   :  { %v9969_v17 = vpop.f32.mrf.mxu1  ;;  %10008 = vmatmul.mubr.bf16.gmra.mxu0 %v884_v8  ;;  %v8444_v6 = vunpack.c.h.bf16 %v9053_v57  ;;  %v8440_v8 = vunpack.c.h.bf16 %v9052_v62 }
 0x1fa   :  { %v726_v52 = vmul.f32 %v11826_v59, %v620_v11  ;;  %v860_v61 = vadd.f32 %v828_v43, %v728_v10  ;;  %v641_v27 = vadd.f32 %v9969_v17, %v11822_v40  ;;  %v8443_v11 = vunpack.c.l.bf16 %v9053_v57 }
 0x1fb   :  { %v632_v19 = vpop.f32.mrf.mxu1  ;;  %v833_v16 = vmul.f32 %v8439_v5, %v11828_v60  ;;  %v836_v17 = vmul.f32 %v8444_v6, %v11828_v60  ;;  %v834_v21 = vmul.f32 %v8440_v8, %v11828_v60 }
 0x1fc   :  { %v858_v23 = vadd.f32 %v826_v12, %v726_v52  ;;  %v633_v24 = vadd.f32 %v11822_v40, %v632_v19  ;;  %v886_v53 = vpack.c.bf16 %v860_v61, %v859_v26  ;;  %v731_v63 = vmul.f32 %v11826_v59, %v641_v27  ;;  %v9055_v27 = vld [vmem:[#allocation5 + $0x58] sm:$0xff]  }
 0x1fd   :  { %v9970_v46 = vpop.f32.mrf.mxu1 }
 0x1fe   :  { %v644_v47 = vadd.f32 %v9970_v46, %v11822_v40  ;;  %v885_v49 = vpack.c.bf16 %v858_v23, %v857_v22  ;;  %v729_v54 = vmul.f32 %v11826_v59, %v633_v24  ;;  %v863_v9 = vadd.f32 %v831_v0, %v731_v63  ;;  %v9054_v22 = vld [vmem:[#allocation5 + $0x50] sm:$0xff]  }
 0x1ff   :  { %v635_v51 = vpop.f32.mrf.mxu1  ;;  %v835_v24 = vmul.f32 %v8443_v11, %v11828_v60 }
 0x200   :  { %v732_v55 = vmul.f32 %v11826_v59, %v644_v47  ;;  %v636_v56 = vadd.f32 %v11822_v40, %v635_v51  ;;  %10011 = vmatprep.mubr.bf16.mxu0 %v885_v49  ;;  %v861_v38 = vadd.f32 %v829_v50, %v729_v54  ;;  %v8447_v47 = vunpack.c.l.bf16 %v9054_v22 }
 0x201   :  { %v9973_v1 = vpop.f32.mrf.mxu1  ;;  %10012 = vmatmul.mubr.bf16.gmra.mxu0 %v886_v53  ;;  %v8452_v49 = vunpack.c.h.bf16 %v9055_v27  ;;  %v8448_v53 = vunpack.c.h.bf16 %v9054_v22 }
 0x202   :  { %v730_v2 = vmul.f32 %v11826_v59, %v636_v56  ;;  %v864_v3 = vadd.f32 %v832_v48, %v732_v55  ;;  %v657_v10 = vadd.f32 %v9973_v1, %v11822_v40  ;;  %v8451_v56 = vunpack.c.l.bf16 %v9055_v27 }
 0x203   :  { %v648_v4 = vpop.f32.mrf.mxu1  ;;  %v837_v0 = vmul.f32 %v8447_v47, %v11828_v60  ;;  %v840_v1 = vmul.f32 %v8452_v49, %v11828_v60  ;;  %v838_v6 = vmul.f32 %v8448_v53, %v11828_v60 }
 0x204   :  { %v862_v43 = vadd.f32 %v830_v58, %v730_v2  ;;  %v649_v7 = vadd.f32 %v11822_v40, %v648_v4  ;;  %v888_v18 = vpack.c.bf16 %v864_v3, %v863_v9  ;;  %v735_v23 = vmul.f32 %v11826_v59, %v657_v10  ;;  %v9057_v10 = vld [vmem:[#allocation5 + $0x68] sm:$0xff]  }
 0x205   :  { %v9974_v12 = vpop.f32.mrf.mxu1 }
 0x206   :  { %v660_v14 = vadd.f32 %v9974_v12, %v11822_v40  ;;  %v887_v15 = vpack.c.bf16 %v862_v43, %v861_v38  ;;  %v733_v61 = vmul.f32 %v11826_v59, %v649_v7  ;;  %v867_v54 = vadd.f32 %v835_v24, %v735_v23  ;;  %v9056_v38 = vld [vmem:[#allocation5 + $0x60] sm:$0xff]  }
 0x207   :  { %v651_v52 = vpop.f32.mrf.mxu1  ;;  %v839_v7 = vmul.f32 %v8451_v56, %v11828_v60 }
 0x208   :  { %v736_v19 = vmul.f32 %v11826_v59, %v660_v14  ;;  %v652_v20 = vadd.f32 %v11822_v40, %v651_v52  ;;  %10015 = vmatprep.mubr.bf16.mxu0 %v887_v15  ;;  %v865_v50 = vadd.f32 %v833_v16, %v733_v61  ;;  %v8455_v14 = vunpack.c.l.bf16 %v9056_v38 }
 0x209   :  { %v9977_v25 = vpop.f32.mrf.mxu1  ;;  %10016 = vmatmul.mubr.bf16.gmra.mxu0 %v888_v18  ;;  %v8460_v15 = vunpack.c.h.bf16 %v9057_v10  ;;  %v8456_v18 = vunpack.c.h.bf16 %v9056_v38 }
 0x20a   :  { %v734_v26 = vmul.f32 %v11826_v59, %v652_v20  ;;  %v868_v28 = vadd.f32 %v836_v17, %v736_v19  ;;  %v673_v55 = vadd.f32 %v9977_v25, %v11822_v40  ;;  %v8459_v20 = vunpack.c.l.bf16 %v9057_v10 }
 0x20b   :  { %v664_v46 = vpop.f32.mrf.mxu1  ;;  %v841_v24 = vmul.f32 %v8455_v14, %v11828_v60  ;;  %v844_v25 = vmul.f32 %v8460_v15, %v11828_v60  ;;  %v842_v49 = vmul.f32 %v8456_v18, %v11828_v60 }
 0x20c   :  { %v866_v48 = vadd.f32 %v834_v21, %v734_v26  ;;  %v665_v51 = vadd.f32 %v11822_v40, %v664_v46  ;;  %v890_v57 = vpack.c.bf16 %v868_v28, %v867_v54  ;;  %v739_v43 = vmul.f32 %v11826_v59, %v673_v55  ;;  %v9059_v55 = vld [vmem:[#allocation5 + $0x78] sm:$0xff]  }
 0x20d   :  { %v9978_v58 = vpop.f32.mrf.mxu1 }
 0x20e   :  { %v676_v62 = vadd.f32 %v9978_v58, %v11822_v40  ;;  %v889_v63 = vpack.c.bf16 %v866_v48, %v865_v50  ;;  %v737_v3 = vmul.f32 %v11826_v59, %v665_v51  ;;  %v871_v61 = vadd.f32 %v839_v7, %v739_v43  ;;  %v9058_v50 = vld [vmem:[#allocation5 + $0x70] sm:$0xff]  }
 0x20f   :  { %v667_v2 = vpop.f32.mrf.mxu1  ;;  %v843_v51 = vmul.f32 %v8459_v20, %v11828_v60 }
 0x210   :  { %v740_v4 = vmul.f32 %v11826_v59, %v676_v62  ;;  %v668_v5 = vadd.f32 %v11822_v40, %v667_v2  ;;  %10019 = vmatprep.mubr.bf16.mxu0 %v889_v63  ;;  %v869_v16 = vadd.f32 %v837_v0, %v737_v3  ;;  %v8463_v62 = vunpack.c.l.bf16 %v9058_v50 }
 0x211   :  { %v9981_v8 = vpop.f32.mrf.mxu1  ;;  %10020 = vmatmul.mubr.bf16.gmra.mxu0 %v890_v57  ;;  %v8468_v63 = vunpack.c.h.bf16 %v9059_v55  ;;  %v8464_v57 = vunpack.c.h.bf16 %v9058_v50 }
 0x212   :  { %v738_v9 = vmul.f32 %v11826_v59, %v668_v5  ;;  %v872_v11 = vadd.f32 %v840_v1, %v740_v4  ;;  %v689_v19 = vadd.f32 %v9981_v8, %v11822_v40  ;;  %v8467_v5 = vunpack.c.l.bf16 %v9059_v55 }
 0x213   :  { %v680_v12 = vpop.f32.mrf.mxu1  ;;  %v845_v7 = vmul.f32 %v8463_v62, %v11828_v60  ;;  %v848_v8 = vmul.f32 %v8468_v63, %v11828_v60  ;;  %v846_v15 = vmul.f32 %v8464_v57, %v11828_v60 }
 0x214   :  { %v870_v17 = vadd.f32 %v838_v6, %v738_v9  ;;  %v681_v52 = vadd.f32 %v11822_v40, %v680_v12  ;;  %v892_v27 = vpack.c.bf16 %v872_v11, %v871_v61  ;;  %v743_v48 = vmul.f32 %v11826_v59, %v689_v19 }
 0x215   :  { %v9982_v21 = vpop.f32.mrf.mxu1 }
 0x216   :  { %v692_v22 = vadd.f32 %v9982_v21, %v11822_v40  ;;  %v891_v23 = vpack.c.bf16 %v870_v17, %v869_v16  ;;  %v741_v28 = vmul.f32 %v11826_v59, %v681_v52  ;;  %v875_v3 = vadd.f32 %v843_v51, %v743_v48 }
 0x217   :  { %v683_v26 = vpop.f32.mrf.mxu1  ;;  %v847_v17 = vmul.f32 %v8467_v5, %v11828_v60  ;;  %v11931_v60 = vld [vmem:[#allocation7 + $0x130] sm:$0xff]  }
 0x218   :  { %v744_v46 = vmul.f32 %v11826_v59, %v692_v22  ;;  %v684_v47 = vadd.f32 %v11822_v40, %v683_v26  ;;  %10023 = vmatprep.mubr.bf16.mxu0 %v891_v23  ;;  %v873_v0 = vadd.f32 %v841_v24, %v741_v28  ;;  %v11924_v23 = vld [vmem:[#allocation7 + $0xc0] sm:$0xff]   ;;  %v11948_v26 = vld [vmem:[#allocation7 + $0x110] sm:$0xff]  }
 0x219   :  { %v9985_v53 = vpop.f32.mrf.mxu1  ;;  %10024 = vmatmul.mubr.bf16.gmra.mxu0 %v892_v27  ;;  %10049 = vmatprep.subr.bf16.mxu1 %v11924_v23  ;;  %v11940_v24 = vld [vmem:[#allocation7 + $0x120] sm:$0xff]   ;;  %v11952_v27 = vld [vmem:[#allocation7 + $0x108] sm:$0xff]  }
 0x21a   :  { %v742_v54 = vmul.f32 %v11826_v59, %v684_v47  ;;  %v876_v56 = vadd.f32 %v844_v25, %v744_v46  ;;  %v705_v4 = vadd.f32 %v9985_v53, %v11822_v40  ;;  %10050 = vmatpush3.bf16.msra.mxu1 %v11924_v23  ;;  %v11944_v25 = vld [vmem:[#allocation7 + $0x118] sm:$0xff]   ;;  %v11957_v47 = vld [vmem:[#allocation8 + $0x2] ss:$0 sm:$0xff] }
 0x21b   :  { %v696_v58 = vpop.f32.mrf.mxu1  ;;  %10131 = vmatprep.subr.bf16.mxu1 %v11713_v32 }
 0x21c   :  { %v874_v1 = vadd.f32 %v842_v49, %v742_v54  ;;  %v697_v2 = vadd.f32 %v11822_v40, %v696_v58  ;;  %v894_v10 = vpack.c.bf16 %v876_v56, %v875_v3  ;;  %v747_v16 = vmul.f32 %v11826_v59, %v705_v4 }
 0x21d   :  { %v9986_v6 = vpop.f32.mrf.mxu1 }
 0x21e   :  { %v708_v38 = vadd.f32 %v9986_v6, %v11822_v40  ;;  %v893_v43 = vpack.c.bf16 %v874_v1, %v873_v0  ;;  %v745_v11 = vmul.f32 %v11826_v59, %v697_v2  ;;  %v879_v20 = vadd.f32 %v847_v17, %v747_v16 }
 0x21f   :  { %v699_v9 = vpop.f32.mrf.mxu1 }
 0x220   :  { %v748_v12 = vmul.f32 %v11826_v59, %v708_v38  ;;  %v700_v14 = vadd.f32 %v11822_v40, %v699_v9  ;;  %10027 = vmatprep.mubr.bf16.mxu0 %v893_v43  ;;  %v877_v61 = vadd.f32 %v845_v7, %v745_v11  ;;  %v11929_v40 = vld [vmem:[#allocation7 + $0x138] sm:$0xff]  }
 0x221   :  { %10028 = vmatmul.mubr.bf16.gmra.mxu0 %v894_v10  ;;  %10083 = vmatprep.subr.bf16.mxu0 %v11929_v40 }
 0x222   :  { %v746_v52 = vmul.f32 %v11826_v59, %v700_v14  ;;  %v880_v18 = vadd.f32 %v848_v8, %v748_v12  ;;  %10084 = vmatpush3.bf16.msra.mxu0 %v11929_v40  ;;  %v11936_v59 = vld [vmem:[#allocation7 + $0x128] sm:$0xff]  }
 0x223   :  { %10085 = vmatprep.subr.bf16.mxu0 %v11931_v60 }
 0x224   :  { %v878_v19 = vadd.f32 %v846_v15, %v746_v52  ;;  %v896_v22 = vpack.c.bf16 %v880_v18, %v879_v20 }
 0x226   :  { %v895_v21 = vpack.c.bf16 %v878_v19, %v877_v61  ;;  %10086 = vmatpush3.bf16.msra.mxu0 %v11931_v60 }
 0x227   :  { %10087 = vmatprep.subr.bf16.mxu0 %v11936_v59 }
 0x228   :  { %10031 = vmatprep.mubr.bf16.mxu0 %v895_v21 }
 0x229   :  { %10032 = vmatmul.mubr.bf16.gmra.mxu0 %v896_v22 }
 0x22a   :  { %10088 = vmatpush3.bf16.msra.mxu0 %v11936_v59 }
 0x22b   :  { %10089 = vmatprep.subr.bf16.mxu0 %v11940_v24 }
 0x22e   :  { %10090 = vmatpush3.bf16.msra.mxu0 %v11940_v24 }
 0x22f   :  { %10091 = vmatprep.subr.bf16.mxu0 %v11944_v25 }
 0x232   :  { %10092 = vmatpush3.bf16.msra.mxu0 %v11944_v25 }
 0x233   :  { %10093 = vmatprep.subr.bf16.mxu0 %v11948_v26 }
 0x236   :  { %10094 = vmatpush3.bf16.msra.mxu0 %v11948_v26 }
 0x237   :  { %10095 = vmatprep.subr.bf16.mxu0 %v11952_v27 }
 0x23a   :  { %10096 = vmatpush3.bf16.msra.mxu0 %v11952_v27 }
 0x2b1   :  { %v10005_v28 = vpop.f32.mrf.mxu0 }
 0x2b2   :  { %v1010_v51 = vadd.f32 %v10005_v28, %v11957_v47 }
 0x2b3   :  { %v1001_v46 = vpop.f32.mrf.mxu0 }
 0x2b4   :  { %v1002_v50 = vadd.f32 %v11957_v47, %v1001_v46  ;;  %v1130_v63 = vmax.f32 %v1010_v51, 0.0 }
 0x2b5   :  { %v10006_v49 = vpop.f32.mrf.mxu0 }
 0x2b6   :  { %v1013_v48 = vadd.f32 %v10006_v49, %v11957_v47  ;;  %v1128_v58 = vmax.f32 %v1002_v50, 0.0 }
 0x2b7   :  { %v1004_v53 = vpop.f32.mrf.mxu0 }
 0x2b8   :  { %v1005_v54 = vadd.f32 %v11957_v47, %v1004_v53  ;;  %v1131_v55 = vmax.f32 %v1013_v48, 0.0 }
 0x2b9   :  { %v10009_v56 = vpop.f32.mrf.mxu0 }
 0x2ba   :  { %v1129_v62 = vmax.f32 %v1005_v54, 0.0  ;;  %v1161_v2 = vpack.c.bf16 %v1131_v55, %v1130_v63  ;;  %v1026_v5 = vadd.f32 %v10009_v56, %v11957_v47 }
 0x2bb   :  { %v1017_v0 = vpop.f32.mrf.mxu0 }
 0x2bc   :  { %v1160_v1 = vpack.c.bf16 %v1129_v62, %v1128_v58  ;;  %v1018_v3 = vadd.f32 %v11957_v47, %v1017_v0  ;;  %v1134_v10 = vmax.f32 %v1026_v5, 0.0 }
 0x2bd   :  { %v10010_v57 = vpop.f32.mrf.mxu0 }
 0x2be   :  { %v1029_v4 = vadd.f32 %v10010_v57, %v11957_v47  ;;  %10051 = vmatprep.mubr.bf16.mxu1 %v1160_v1  ;;  %v1132_v8 = vmax.f32 %v1018_v3, 0.0 }
 0x2bf   :  { %v1020_v6 = vpop.f32.mrf.mxu0  ;;  %10052 = vmatmul.mubr.bf16.vlgmr.msra.gmra.mxu1 %v1161_v2 }
 0x2c0   :  { %v1021_v38 = vadd.f32 %v11957_v47, %v1020_v6  ;;  %10132 = vmatpush3.bf16.msra.mxu1 %v11713_v32  ;;  %v1135_v43 = vmax.f32 %v1029_v4, 0.0 }
 0x2c1   :  { %v10013_v7 = vpop.f32.mrf.mxu0  ;;  %10133 = vmatprep.subr.bf16.mxu1 %v11715_v33 }
 0x2c2   :  { %v1133_v9 = vmax.f32 %v1021_v38, 0.0  ;;  %v1163_v14 = vpack.c.bf16 %v1135_v43, %v1134_v10  ;;  %v1042_v32 = vadd.f32 %v10013_v7, %v11957_v47 }
 0x2c3   :  { %v1033_v11 = vpop.f32.mrf.mxu0 }
 0x2c4   :  { %v1162_v12 = vpack.c.bf16 %v1133_v9, %v1132_v8  ;;  %10134 = vmatpush3.bf16.msra.mxu1 %v11715_v33  ;;  %v1034_v16 = vadd.f32 %v11957_v47, %v1033_v11  ;;  %v1138_v21 = vmax.f32 %v1042_v32, 0.0 }
 0x2c5   :  { %v10014_v15 = vpop.f32.mrf.mxu0  ;;  %10135 = vmatprep.subr.bf16.mxu1 %v11720_v34 }
 0x2c6   :  { %v1045_v17 = vadd.f32 %v10014_v15, %v11957_v47  ;;  %10055 = vmatprep.mubr.bf16.mxu1 %v1162_v12  ;;  %v1136_v33 = vmax.f32 %v1034_v16, 0.0 }
 0x2c7   :  { %v1036_v52 = vpop.f32.mrf.mxu0  ;;  %10056 = vmatmul.mubr.bf16.gmra.mxu1 %v1163_v14 }
 0x2c8   :  { %v1037_v18 = vadd.f32 %v11957_v47, %v1036_v52  ;;  %10136 = vmatpush3.bf16.msra.mxu1 %v11720_v34  ;;  %v1139_v61 = vmax.f32 %v1045_v17, 0.0 }
 0x2c9   :  { %v10017_v19 = vpop.f32.mrf.mxu0  ;;  %10137 = vmatprep.subr.bf16.mxu1 %v11724_v35 }
 0x2ca   :  { %v1137_v20 = vmax.f32 %v1037_v18, 0.0  ;;  %v1165_v46 = vpack.c.bf16 %v1139_v61, %v1138_v21  ;;  %v1058_v34 = vadd.f32 %v10017_v19, %v11957_v47 }
 0x2cb   :  { %v1049_v22 = vpop.f32.mrf.mxu0 }
 0x2cc   :  { %v1164_v28 = vpack.c.bf16 %v1137_v20, %v1136_v33  ;;  %10138 = vmatpush3.bf16.msra.mxu1 %v11724_v35  ;;  %v1050_v50 = vadd.f32 %v11957_v47, %v1049_v22  ;;  %v1142_v58 = vmax.f32 %v1058_v34, 0.0 }
 0x2cd   :  { %v10018_v49 = vpop.f32.mrf.mxu0  ;;  %10139 = vmatprep.subr.bf16.mxu1 %v11728_v36 }
 0x2ce   :  { %v1061_v48 = vadd.f32 %v10018_v49, %v11957_v47  ;;  %10059 = vmatprep.mubr.bf16.mxu1 %v1164_v28  ;;  %v1140_v35 = vmax.f32 %v1050_v50, 0.0 }
 0x2cf   :  { %v1052_v51 = vpop.f32.mrf.mxu0  ;;  %10060 = vmatmul.mubr.bf16.gmra.mxu1 %v1165_v46 }
 0x2d0   :  { %v1053_v53 = vadd.f32 %v11957_v47, %v1052_v51  ;;  %10140 = vmatpush3.bf16.msra.mxu1 %v11728_v36  ;;  %v1143_v54 = vmax.f32 %v1061_v48, 0.0 }
 0x2d1   :  { %v10021_v55 = vpop.f32.mrf.mxu0  ;;  %10141 = vmatprep.subr.bf16.mxu1 %v11782_v13 }
 0x2d2   :  { %v1141_v56 = vmax.f32 %v1053_v53, 0.0  ;;  %v1167_v0 = vpack.c.bf16 %v1143_v54, %v1142_v58  ;;  %v1074_v36 = vadd.f32 %v10021_v55, %v11957_v47 }
 0x2d3   :  { %v1065_v62 = vpop.f32.mrf.mxu0 }
 0x2d4   :  { %v1166_v63 = vpack.c.bf16 %v1141_v56, %v1140_v35  ;;  %10142 = vmatpush3.bf16.msra.mxu1 %v11782_v13  ;;  %v1066_v2 = vadd.f32 %v11957_v47, %v1065_v62  ;;  %v1146_v43 = vmax.f32 %v1074_v36, 0.0 }
 0x2d5   :  { %v10022_v1 = vpop.f32.mrf.mxu0  ;;  %10143 = vmatprep.subr.bf16.mxu1 %v11786_v29 }
 0x2d6   :  { %v1077_v57 = vadd.f32 %v10022_v1, %v11957_v47  ;;  %10063 = vmatprep.mubr.bf16.mxu1 %v1166_v63  ;;  %v1144_v13 = vmax.f32 %v1066_v2, 0.0 }
 0x2d7   :  { %v1068_v3 = vpop.f32.mrf.mxu0  ;;  %10064 = vmatmul.mubr.bf16.gmra.mxu1 %v1167_v0 }
 0x2d8   :  { %v1069_v4 = vadd.f32 %v11957_v47, %v1068_v3  ;;  %10144 = vmatpush3.bf16.msra.mxu1 %v11786_v29  ;;  %v1147_v5 = vmax.f32 %v1077_v57, 0.0 }
 0x2d9   :  { %v10025_v6 = vpop.f32.mrf.mxu0  ;;  %10145 = vmatprep.subr.bf16.mxu1 %v11790_v30 }
 0x2da   :  { %v1145_v38 = vmax.f32 %v1069_v4, 0.0  ;;  %v1169_v9 = vpack.c.bf16 %v1147_v5, %v1146_v43  ;;  %v1090_v29 = vadd.f32 %v10025_v6, %v11957_v47  ;;  %v12007_v5 = vld [vmem:[#allocation7 + $0x100] sm:$0xff]  }
 0x2db   :  { %v1081_v7 = vpop.f32.mrf.mxu0  ;;  %10097 = vmatprep.subr.bf16.mxu0 %v12007_v5 }
 0x2dc   :  { %v1168_v8 = vpack.c.bf16 %v1145_v38, %v1144_v13  ;;  %10146 = vmatpush3.bf16.msra.mxu1 %v11790_v30  ;;  %v1082_v11 = vadd.f32 %v11957_v47, %v1081_v7  ;;  %v1150_v30 = vmax.f32 %v1090_v29, 0.0  ;;  %10098 = vmatpush3.bf16.msra.mxu0 %v12007_v5  ;;  %v12012_v38 = vld [vmem:[#allocation8 + $0x3] ss:$0 sm:$0xff] }
 0x2dd   :  { %v10026_v10 = vpop.f32.mrf.mxu0  ;;  %10227 = vmatprep.subr.bf16.mxu1 %v11929_v40  ;;  %10179 = vmatprep.subr.bf16.mxu0 %v11794_v41 }
 0x2de   :  { %v1093_v12 = vadd.f32 %v10026_v10, %v11957_v47  ;;  %10067 = vmatprep.mubr.bf16.mxu1 %v1168_v8  ;;  %v1148_v32 = vmax.f32 %v1082_v11, 0.0 }
 0x2df   :  { %v1084_v14 = vpop.f32.mrf.mxu0  ;;  %10068 = vmatmul.mubr.bf16.gmra.mxu1 %v1169_v9 }
 0x2e0   :  { %v1085_v15 = vadd.f32 %v11957_v47, %v1084_v14  ;;  %v1151_v16 = vmax.f32 %v1093_v12, 0.0 }
 0x2e1   :  { %v10029_v17 = vpop.f32.mrf.mxu0 }
 0x2e2   :  { %v1149_v52 = vmax.f32 %v1085_v15, 0.0  ;;  %v1171_v19 = vpack.c.bf16 %v1151_v16, %v1150_v30  ;;  %v1106_v22 = vadd.f32 %v10029_v17, %v11957_v47 }
 0x2e3   :  { %v1097_v18 = vpop.f32.mrf.mxu0 }
 0x2e4   :  { %v1170_v61 = vpack.c.bf16 %v1149_v52, %v1148_v32  ;;  %v1098_v20 = vadd.f32 %v11957_v47, %v1097_v18  ;;  %v1154_v51 = vmax.f32 %v1106_v22, 0.0 }
 0x2e5   :  { %v10030_v33 = vpop.f32.mrf.mxu0 }
 0x2e6   :  { %v1109_v21 = vadd.f32 %v10030_v33, %v11957_v47  ;;  %10071 = vmatprep.mubr.bf16.mxu1 %v1170_v61  ;;  %v1152_v48 = vmax.f32 %v1098_v20, 0.0 }
 0x2e7   :  { %v1100_v28 = vpop.f32.mrf.mxu0  ;;  %10072 = vmatmul.mubr.bf16.gmra.mxu1 %v1171_v19 }
 0x2e8   :  { %v1101_v46 = vadd.f32 %v11957_v47, %v1100_v28  ;;  %v1155_v49 = vmax.f32 %v1109_v21, 0.0 }
 0x2e9   :  { %v10033_v50 = vpop.f32.mrf.mxu0 }
 0x2ea   :  { %v1153_v34 = vmax.f32 %v1101_v46, 0.0  ;;  %v1173_v55 = vpack.c.bf16 %v1155_v49, %v1154_v51  ;;  %v1122_v62 = vadd.f32 %v10033_v50, %v11957_v47 }
 0x2eb   :  { %v1113_v53 = vpop.f32.mrf.mxu0 }
 0x2ec   :  { %v1172_v54 = vpack.c.bf16 %v1153_v34, %v1152_v48  ;;  %v1114_v56 = vadd.f32 %v11957_v47, %v1113_v53  ;;  %v1158_v36 = vmax.f32 %v1122_v62, 0.0 }
 0x2ed   :  { %v10034_v35 = vpop.f32.mrf.mxu0 }
 0x2ee   :  { %v1125_v58 = vadd.f32 %v10034_v35, %v11957_v47  ;;  %10075 = vmatprep.mubr.bf16.mxu1 %v1172_v54  ;;  %v1156_v2 = vmax.f32 %v1114_v56, 0.0 }
 0x2ef   :  { %v1116_v63 = vpop.f32.mrf.mxu0  ;;  %10076 = vmatmul.mubr.bf16.gmra.mxu1 %v1173_v55 }
 0x2f0   :  { %v1117_v0 = vadd.f32 %v11957_v47, %v1116_v63  ;;  %v1159_v1 = vmax.f32 %v1125_v58, 0.0 }
 0x2f2   :  { %v1157_v57 = vmax.f32 %v1117_v0, 0.0  ;;  %v1175_v4 = vpack.c.bf16 %v1159_v1, %v1158_v36 }
 0x2f4   :  { %v1174_v3 = vpack.c.bf16 %v1157_v57, %v1156_v2 }
 0x2f6   :  { %10079 = vmatprep.mubr.bf16.mxu1 %v1174_v3 }
 0x2f7   :  { %10080 = vmatmul.mubr.bf16.gmra.mxu1 %v1175_v4 }
 0x37f   :  { %v10053_v6 = vpop.f32.mrf.mxu1 }
 0x380   :  { %v1289_v8 = vadd.f32 %v10053_v6, %v12012_v38 }
 0x381   :  { %v1280_v13 = vpop.f32.mrf.mxu1 }
 0x382   :  { %v1281_v43 = vadd.f32 %v12012_v38, %v1280_v13  ;;  %v1409_v15 = vmax.f32 %v1289_v8, 0.0 }
 0x383   :  { %v10054_v47 = vpop.f32.mrf.mxu1 }
 0x384   :  { %v1292_v7 = vadd.f32 %v10054_v47, %v12012_v38  ;;  %v1407_v29 = vmax.f32 %v1281_v43, 0.0 }
 0x385   :  { %v1283_v9 = vpop.f32.mrf.mxu1 }
 0x386   :  { %v1284_v10 = vadd.f32 %v12012_v38, %v1283_v9  ;;  %v1410_v11 = vmax.f32 %v1292_v7, 0.0 }
 0x387   :  { %v10057_v12 = vpop.f32.mrf.mxu1 }
 0x388   :  { %v1408_v14 = vmax.f32 %v1284_v10, 0.0  ;;  %v1440_v32 = vpack.c.bf16 %v1410_v11, %v1409_v15  ;;  %v1305_v61 = vadd.f32 %v10057_v12, %v12012_v38 }
 0x389   :  { %v1296_v16 = vpop.f32.mrf.mxu1 }
 0x38a   :  { %v1439_v17 = vpack.c.bf16 %v1408_v14, %v1407_v29  ;;  %v1297_v30 = vadd.f32 %v12012_v38, %v1296_v16  ;;  %v1413_v46 = vmax.f32 %v1305_v61, 0.0 }
 0x38b   :  { %v10058_v52 = vpop.f32.mrf.mxu1 }
 0x38c   :  { %v1308_v18 = vadd.f32 %v10058_v52, %v12012_v38  ;;  %10099 = vmatprep.mubr.bf16.mxu0 %v1439_v17  ;;  %v1411_v22 = vmax.f32 %v1297_v30, 0.0 }
 0x38d   :  { %v1299_v19 = vpop.f32.mrf.mxu1  ;;  %10100 = vmatmul.mubr.bf16.vlgmr.msra.gmra.mxu0 %v1440_v32 }
 0x38e   :  { %v1300_v33 = vadd.f32 %v12012_v38, %v1299_v19  ;;  %10180 = vmatpush3.bf16.msra.mxu0 %v11794_v41  ;;  %v1414_v20 = vmax.f32 %v1308_v18, 0.0  ;;  %v12049_v19 = vld [vmem:[#allocation7 + $0xb8] sm:$0xff]  }
 0x38f   :  { %v10061_v21 = vpop.f32.mrf.mxu1  ;;  %10181 = vmatprep.subr.bf16.mxu0 %v11796_v31 }
 0x390   :  { %v1412_v28 = vmax.f32 %v1300_v33, 0.0  ;;  %v1442_v48 = vpack.c.bf16 %v1414_v20, %v1413_v46  ;;  %v1321_v41 = vadd.f32 %v10061_v21, %v12012_v38 }
 0x391   :  { %v1312_v49 = vpop.f32.mrf.mxu1 }
 0x392   :  { %v1441_v50 = vpack.c.bf16 %v1412_v28, %v1411_v22  ;;  %10182 = vmatpush3.bf16.msra.mxu0 %v11796_v31  ;;  %v1313_v51 = vadd.f32 %v12012_v38, %v1312_v49  ;;  %v1417_v62 = vmax.f32 %v1321_v41, 0.0 }
 0x393   :  { %v10062_v34 = vpop.f32.mrf.mxu1  ;;  %10183 = vmatprep.subr.bf16.mxu0 %v11801_v37 }
 0x394   :  { %v1324_v53 = vadd.f32 %v10062_v34, %v12012_v38  ;;  %10103 = vmatprep.mubr.bf16.mxu0 %v1441_v50  ;;  %v1415_v31 = vmax.f32 %v1313_v51, 0.0 }
 0x395   :  { %v1315_v54 = vpop.f32.mrf.mxu1  ;;  %10104 = vmatmul.mubr.bf16.gmra.mxu0 %v1442_v48 }
 0x396   :  { %v1316_v55 = vadd.f32 %v12012_v38, %v1315_v54  ;;  %10184 = vmatpush3.bf16.msra.mxu0 %v11801_v37  ;;  %v1418_v35 = vmax.f32 %v1324_v53, 0.0 }
 0x397   :  { %v10065_v56 = vpop.f32.mrf.mxu1  ;;  %10185 = vmatprep.subr.bf16.mxu0 %v11805_v39 }
 0x398   :  { %v1416_v58 = vmax.f32 %v1316_v55, 0.0  ;;  %v1444_v1 = vpack.c.bf16 %v1418_v35, %v1417_v62  ;;  %v1337_v37 = vadd.f32 %v10065_v56, %v12012_v38 }
 0x399   :  { %v1328_v63 = vpop.f32.mrf.mxu1 }
 0x39a   :  { %v1443_v0 = vpack.c.bf16 %v1416_v58, %v1415_v31  ;;  %10186 = vmatpush3.bf16.msra.mxu0 %v11805_v39  ;;  %v1329_v57 = vadd.f32 %v12012_v38, %v1328_v63  ;;  %v1421_v43 = vmax.f32 %v1337_v37, 0.0 }
 0x39b   :  { %v10066_v2 = vpop.f32.mrf.mxu1  ;;  %10187 = vmatprep.subr.bf16.mxu0 %v11809_v42 }
 0x39c   :  { %v1340_v36 = vadd.f32 %v10066_v2, %v12012_v38  ;;  %10107 = vmatprep.mubr.bf16.mxu0 %v1443_v0  ;;  %v1419_v39 = vmax.f32 %v1329_v57, 0.0 }
 0x39d   :  { %v1331_v3 = vpop.f32.mrf.mxu1  ;;  %10108 = vmatmul.mubr.bf16.gmra.mxu0 %v1444_v1 }
 0x39e   :  { %v1332_v4 = vadd.f32 %v12012_v38, %v1331_v3  ;;  %10188 = vmatpush3.bf16.msra.mxu0 %v11809_v42  ;;  %v1422_v6 = vmax.f32 %v1340_v36, 0.0 }
 0x39f   :  { %v10069_v13 = vpop.f32.mrf.mxu1  ;;  %10189 = vmatprep.subr.bf16.mxu0 %v11813_v44 }
 0x3a0   :  { %v1420_v47 = vmax.f32 %v1332_v4, 0.0  ;;  %v1446_v9 = vpack.c.bf16 %v1422_v6, %v1421_v43  ;;  %v1353_v42 = vadd.f32 %v10069_v13, %v12012_v38 }
 0x3a1   :  { %v1344_v7 = vpop.f32.mrf.mxu1 }
 0x3a2   :  { %v1445_v8 = vpack.c.bf16 %v1420_v47, %v1419_v39  ;;  %10190 = vmatpush3.bf16.msra.mxu0 %v11813_v44  ;;  %v1345_v11 = vadd.f32 %v12012_v38, %v1344_v7  ;;  %v1425_v32 = vmax.f32 %v1353_v42, 0.0 }
 0x3a3   :  { %v10070_v10 = vpop.f32.mrf.mxu1  ;;  %10191 = vmatprep.subr.bf16.mxu0 %v11817_v45 }
 0x3a4   :  { %v1356_v12 = vadd.f32 %v10070_v10, %v12012_v38  ;;  %10111 = vmatprep.mubr.bf16.mxu0 %v1445_v8  ;;  %v1423_v44 = vmax.f32 %v1345_v11, 0.0  ;;  %v12064_v11 = vld [vmem:[#allocation8 + $0x4] ss:$0 sm:$0xff] }
 0x3a5   :  { %v1347_v29 = vpop.f32.mrf.mxu1  ;;  %10112 = vmatmul.mubr.bf16.gmra.mxu0 %v1446_v9 }
 0x3a6   :  { %v1348_v14 = vadd.f32 %v12012_v38, %v1347_v29  ;;  %10192 = vmatpush3.bf16.msra.mxu0 %v11817_v45  ;;  %v1426_v15 = vmax.f32 %v1356_v12, 0.0  ;;  %v9060_v29 = vld [vmem:[#allocation5 + $0x88] sm:$0xff]  }
 0x3a7   :  { %v10073_v16 = vpop.f32.mrf.mxu1  ;;  %10193 = vmatprep.subr.bf16.mxu0 %v11924_v23 }
 0x3a8   :  { %v1424_v17 = vmax.f32 %v1348_v14, 0.0  ;;  %v1448_v18 = vpack.c.bf16 %v1426_v15, %v1425_v32  ;;  %v1369_v20 = vadd.f32 %v10073_v16, %v12012_v38  ;;  %v8470_v15 = vld [vmem:[#allocation5 + $0x80] sm:$0xff]  }
 0x3a9   :  { %v1360_v52 = vpop.f32.mrf.mxu1 }
 0x3aa   :  { %v1447_v30 = vpack.c.bf16 %v1424_v17, %v1423_v44  ;;  %10194 = vmatpush3.bf16.msra.mxu0 %v11924_v23  ;;  %v1361_v33 = vadd.f32 %v12012_v38, %v1360_v52  ;;  %v1429_v50 = vmax.f32 %v1369_v20, 0.0  ;;  %v8476_v44 = vunpack.c.h.bf16 %v9060_v29 }
 0x3ab   :  { %v10074_v61 = vpop.f32.mrf.mxu1  ;;  %10275 = vmatprep.subr.bf16.mxu0 %v12049_v19  ;;  %v8475_v17 = vunpack.c.l.bf16 %v9060_v29  ;;  %v8471_v52 = vunpack.c.l.bf16 %v8470_v15 }
 0x3ac   :  { %v1372_v45 = vadd.f32 %v10074_v61, %v12012_v38  ;;  %10115 = vmatprep.mubr.bf16.mxu0 %v1447_v30  ;;  %v1427_v23 = vmax.f32 %v1361_v33, 0.0  ;;  %v12069_v33 = vld [vmem:[#allocation8 + $0x10] ss:$0 sm:$0xff] }
 0x3ad   :  { %v1363_v21 = vpop.f32.mrf.mxu1  ;;  %10116 = vmatmul.mubr.bf16.gmra.mxu0 %v1448_v18  ;;  %v8472_v18 = vunpack.c.h.bf16 %v8470_v15 }
 0x3ae   :  { %v1364_v22 = vadd.f32 %v12012_v38, %v1363_v21  ;;  %v1430_v28 = vmax.f32 %v1372_v45, 0.0  ;;  %v12072_v21 = vld [vmem:[#allocation8 + $0x6] ss:$0 sm:$0xff] }
 0x3af   :  { %v10077_v46 = vpop.f32.mrf.mxu1 }
 0x3b0   :  { %v1428_v49 = vmax.f32 %v1364_v22, 0.0  ;;  %v1450_v51 = vpack.c.bf16 %v1430_v28, %v1429_v50  ;;  %v1385_v55 = vadd.f32 %v10077_v46, %v12012_v38  ;;  %v1828_v46 = vmul.f32 %v8476_v44, %v12069_v33 }
 0x3b1   :  { %v1376_v48 = vpop.f32.mrf.mxu1 }
 0x3b2   :  { %v1449_v34 = vpack.c.bf16 %v1428_v49, %v1427_v23  ;;  %v1377_v41 = vadd.f32 %v12012_v38, %v1376_v48  ;;  %v1433_v0 = vmax.f32 %v1385_v55, 0.0  ;;  %v1827_v49 = vmul.f32 %v8475_v17, %v12069_v33  ;;  %v9064_v17 = vld [vmem:[#allocation5 + $0xa8] sm:$0xff]  }
 0x3b3   :  { %v10078_v53 = vpop.f32.mrf.mxu1  ;;  %v1825_v48 = vmul.f32 %v8471_v52, %v12069_v33  ;;  %v9063_v52 = vld [vmem:[#allocation5 + $0xa0] sm:$0xff]  }
 0x3b4   :  { %v1388_v54 = vadd.f32 %v10078_v53, %v12012_v38  ;;  %10119 = vmatprep.mubr.bf16.mxu0 %v1449_v34  ;;  %v1431_v62 = vmax.f32 %v1377_v41, 0.0  ;;  %v9062_v34 = vld [vmem:[#allocation5 + $0x98] sm:$0xff]   ;;  %v1826_v53 = vmul.f32 %v8472_v18, %v12069_v33  ;;  %v8492_v18 = vunpack.c.h.bf16 %v9064_v17 }
 0x3b5   :  { %v1379_v35 = vpop.f32.mrf.mxu1  ;;  %10120 = vmatmul.mubr.bf16.gmra.mxu0 %v1450_v51 }
 0x3b6   :  { %v1380_v56 = vadd.f32 %v12012_v38, %v1379_v35  ;;  %v1434_v31 = vmax.f32 %v1388_v54, 0.0 }
 0x3b7   :  { %v10081_v58 = vpop.f32.mrf.mxu1 }
 0x3b8   :  { %v1432_v63 = vmax.f32 %v1380_v56, 0.0  ;;  %v1452_v57 = vpack.c.bf16 %v1434_v31, %v1433_v0  ;;  %v1401_v4 = vadd.f32 %v10081_v58, %v12012_v38  ;;  %v9061_v56 = vld [vmem:[#allocation5 + $0x90] sm:$0xff]   ;;  %v8484_v58 = vunpack.c.h.bf16 %v9062_v34 }
 0x3b9   :  { %v1392_v1 = vpop.f32.mrf.mxu1 }
 0x3ba   :  { %v1451_v2 = vpack.c.bf16 %v1432_v63, %v1431_v62  ;;  %v1393_v37 = vadd.f32 %v12012_v38, %v1392_v1  ;;  %v1437_v7 = vmax.f32 %v1401_v4, 0.0  ;;  %v8483_v63 = vunpack.c.l.bf16 %v9062_v34 }
 0x3bb   :  { %v10082_v36 = vpop.f32.mrf.mxu1  ;;  %v8480_v1 = vunpack.c.h.bf16 %v9061_v56 }
 0x3bc   :  { %v1404_v3 = vadd.f32 %v10082_v36, %v12012_v38  ;;  %10123 = vmatprep.mubr.bf16.mxu0 %v1451_v2  ;;  %v1435_v47 = vmax.f32 %v1393_v37, 0.0  ;;  %v8479_v36 = vunpack.c.l.bf16 %v9061_v56 }
 0x3bd   :  { %v1395_v6 = vpop.f32.mrf.mxu1  ;;  %10124 = vmatmul.mubr.bf16.gmra.mxu0 %v1452_v57 }
 0x3be   :  { %v1396_v13 = vadd.f32 %v12012_v38, %v1395_v6  ;;  %v1438_v39 = vmax.f32 %v1404_v3, 0.0 }
 0x3c0   :  { %v1436_v43 = vmax.f32 %v1396_v13, 0.0  ;;  %v1454_v9 = vpack.c.bf16 %v1438_v39, %v1437_v7 }
 0x3c2   :  { %v1453_v8 = vpack.c.bf16 %v1436_v43, %v1435_v47  ;;  %v1832_v47 = vmul.f32 %v8484_v58, %v12069_v33 }
 0x3c4   :  { %10127 = vmatprep.mubr.bf16.mxu0 %v1453_v8 }
 0x3c5   :  { %10128 = vmatmul.mubr.bf16.gmra.mxu0 %v1454_v9 }
 0x44d   :  { %v10101_v10 = vpop.f32.mrf.mxu0 }
 0x44e   :  { %v1568_v42 = vadd.f32 %v10101_v10, %v12064_v11 }
 0x44f   :  { %v1559_v12 = vpop.f32.mrf.mxu0 }
 0x450   :  { %v1560_v14 = vadd.f32 %v12064_v11, %v1559_v12  ;;  %v1688_v61 = vmax.f32 %v1568_v42, 0.0  ;;  %v1830_v12 = vmul.f32 %v8480_v1, %v12069_v33  ;;  %v1831_v42 = vmul.f32 %v8483_v63, %v12069_v33 }
 0x451   :  { %v10102_v16 = vpop.f32.mrf.mxu0 }
 0x452   :  { %v1571_v38 = vadd.f32 %v10102_v16, %v12064_v11  ;;  %v1686_v32 = vmax.f32 %v1560_v14, 0.0  ;;  %v1726_v41 = vmul.f32 %v12072_v21, %v1688_v61  ;;  %v1829_v14 = vmul.f32 %v8479_v36, %v12069_v33 }
 0x453   :  { %v1562_v30 = vpop.f32.mrf.mxu0 }
 0x454   :  { %v1689_v45 = vmax.f32 %v1571_v38, 0.0  ;;  %v1563_v20 = vadd.f32 %v12064_v11, %v1562_v30  ;;  %v1724_v50 = vmul.f32 %v12072_v21, %v1686_v32  ;;  %v1859_v4 = vadd.f32 %v1827_v49, %v1726_v41 }
 0x455   :  { %v10105_v22 = vpop.f32.mrf.mxu0  ;;  %v8487_v49 = vunpack.c.l.bf16 %v9063_v52  ;;  %v1836_v41 = vmul.f32 %v8492_v18, %v12069_v33 }
 0x456   :  { %v1727_v28 = vmul.f32 %v12072_v21, %v1689_v45  ;;  %v1687_v23 = vmax.f32 %v1563_v20, 0.0  ;;  %v1584_v55 = vadd.f32 %v10105_v22, %v12064_v11  ;;  %v1857_v2 = vadd.f32 %v1825_v48, %v1724_v50 }
 0x457   :  { %v1575_v51 = vpop.f32.mrf.mxu0  ;;  %v8488_v22 = vunpack.c.h.bf16 %v9063_v52  ;;  %v1833_v63 = vmul.f32 %v8487_v49, %v12069_v33 }
 0x458   :  { %v1725_v54 = vmul.f32 %v12072_v21, %v1687_v23  ;;  %v1576_v35 = vadd.f32 %v12064_v11, %v1575_v51  ;;  %v1860_v62 = vadd.f32 %v1828_v46, %v1727_v28  ;;  %v1692_v6 = vmax.f32 %v1584_v55, 0.0 }
 0x459   :  { %v10106_v31 = vpop.f32.mrf.mxu0  ;;  %v8491_v46 = vunpack.c.l.bf16 %v9064_v17 }
 0x45a   :  { %v1587_v0 = vadd.f32 %v10106_v31, %v12064_v11  ;;  %v1690_v57 = vmax.f32 %v1576_v35, 0.0  ;;  %v1858_v3 = vadd.f32 %v1826_v53, %v1725_v54  ;;  %v1890_v8 = vpack.c.bf16 %v1860_v62, %v1859_v4 }
 0x45b   :  { %v1578_v37 = vpop.f32.mrf.mxu0  ;;  %v1730_v16 = vmul.f32 %v12072_v21, %v1692_v6  ;;  %v1834_v31 = vmul.f32 %v8488_v22, %v12069_v33  ;;  %v1835_v58 = vmul.f32 %v8491_v46, %v12069_v33  ;;  %v9068_v22 = vld [vmem:[#allocation5 + $0xc8] sm:$0xff]   ;;  %v9067_v46 = vld [vmem:[#allocation5 + $0xc0] sm:$0xff]  }
 0x45c   :  { %v1693_v13 = vmax.f32 %v1587_v0, 0.0  ;;  %v1579_v39 = vadd.f32 %v12064_v11, %v1578_v37  ;;  %v1889_v7 = vpack.c.bf16 %v1858_v3, %v1857_v2  ;;  %v1728_v29 = vmul.f32 %v12072_v21, %v1690_v57  ;;  %v9066_v57 = vld [vmem:[#allocation5 + $0xb8] sm:$0xff]   ;;  %v9065_v37 = vld [vmem:[#allocation5 + $0xb0] sm:$0xff]  }
 0x45d   :  { %v10109_v43 = vpop.f32.mrf.mxu0  ;;  %v1863_v48 = vadd.f32 %v1831_v42, %v1730_v16  ;;  %v8500_v4 = vunpack.c.h.bf16 %v9066_v57  ;;  %v8508_v49 = vunpack.c.h.bf16 %v9068_v22 }
 0x45e   :  { %v1731_v9 = vmul.f32 %v12072_v21, %v1693_v13  ;;  %v1691_v10 = vmax.f32 %v1579_v39, 0.0  ;;  %10147 = vmatprep.mubr.bf16.mxu1 %v1889_v7  ;;  %v1600_v44 = vadd.f32 %v10109_v43, %v12064_v11  ;;  %v1861_v28 = vadd.f32 %v1829_v14, %v1728_v29 }
 0x45f   :  { %v1591_v15 = vpop.f32.mrf.mxu0  ;;  %10148 = vmatmul.mubr.bf16.vlgmr.msra.gmra.mxu1 %v1890_v8  ;;  %v8499_v7 = vunpack.c.l.bf16 %v9066_v57 }
 0x460   :  { %v1729_v38 = vmul.f32 %v12072_v21, %v1691_v10  ;;  %v1592_v32 = vadd.f32 %v12064_v11, %v1591_v15  ;;  %10228 = vmatpush3.bf16.msra.mxu1 %v11929_v40  ;;  %v1864_v61 = vadd.f32 %v1832_v47, %v1731_v9  ;;  %v1696_v34 = vmax.f32 %v1600_v44, 0.0 }
 0x461   :  { %v10110_v30 = vpop.f32.mrf.mxu0  ;;  %10229 = vmatprep.subr.bf16.mxu1 %v11931_v60  ;;  %v8496_v47 = vunpack.c.h.bf16 %v9065_v37  ;;  %v8495_v9 = vunpack.c.l.bf16 %v9065_v37  ;;  %v1840_v15 = vmul.f32 %v8500_v4, %v12069_v33  ;;  %v1839_v52 = vmul.f32 %v8499_v7, %v12069_v33 }
 0x462   :  { %v1603_v45 = vadd.f32 %v10110_v30, %v12064_v11  ;;  %v1862_v20 = vadd.f32 %v1830_v12, %v1729_v38  ;;  %v1694_v23 = vmax.f32 %v1592_v32, 0.0  ;;  %v1892_v56 = vpack.c.bf16 %v1864_v61, %v1863_v48 }
 0x463   :  { %v1594_v50 = vpop.f32.mrf.mxu0  ;;  %v1734_v1 = vmul.f32 %v12072_v21, %v1696_v34  ;;  %v1838_v32 = vmul.f32 %v8496_v47, %v12069_v33  ;;  %v1837_v18 = vmul.f32 %v8495_v9, %v12069_v33  ;;  %v9069_v47 = vld [vmem:[#allocation5 + $0xd0] sm:$0xff]  }
 0x464   :  { %v1697_v51 = vmax.f32 %v1603_v45, 0.0  ;;  %v1595_v53 = vadd.f32 %v12064_v11, %v1594_v50  ;;  %v1891_v54 = vpack.c.bf16 %v1862_v20, %v1861_v28  ;;  %10230 = vmatpush3.bf16.msra.mxu1 %v11931_v60  ;;  %v1732_v62 = vmul.f32 %v12072_v21, %v1694_v23 }
 0x465   :  { %v10113_v40 = vpop.f32.mrf.mxu0  ;;  %10231 = vmatprep.subr.bf16.mxu1 %v11936_v59  ;;  %v1867_v12 = vadd.f32 %v1835_v58, %v1734_v1 }
 0x466   :  { %v1735_v55 = vmul.f32 %v12072_v21, %v1697_v51  ;;  %v1695_v35 = vmax.f32 %v1595_v53, 0.0  ;;  %10151 = vmatprep.mubr.bf16.mxu1 %v1891_v54  ;;  %v1616_v2 = vadd.f32 %v10113_v40, %v12064_v11  ;;  %v1865_v43 = vadd.f32 %v1833_v63, %v1732_v62 }
 0x467   :  { %v1607_v0 = vpop.f32.mrf.mxu0  ;;  %10152 = vmatmul.mubr.bf16.gmra.mxu1 %v1892_v56  ;;  %v8504_v51 = vunpack.c.h.bf16 %v9067_v46  ;;  %v8503_v54 = vunpack.c.l.bf16 %v9067_v46  ;;  %v1844_v62 = vmul.f32 %v8508_v49, %v12069_v33 }
 0x468   :  { %v1733_v60 = vmul.f32 %v12072_v21, %v1695_v35  ;;  %v1608_v36 = vadd.f32 %v12064_v11, %v1607_v0  ;;  %10232 = vmatpush3.bf16.msra.mxu1 %v11936_v59  ;;  %v1868_v6 = vadd.f32 %v1836_v41, %v1735_v55  ;;  %v1700_v42 = vmax.f32 %v1616_v2, 0.0 }
 0x469   :  { %v10114_v3 = vpop.f32.mrf.mxu0  ;;  %10233 = vmatprep.subr.bf16.mxu1 %v11940_v24  ;;  %v8507_v41 = vunpack.c.l.bf16 %v9068_v22  ;;  %v1842_v2 = vmul.f32 %v8504_v51, %v12069_v33  ;;  %v1841_v37 = vmul.f32 %v8503_v54, %v12069_v33 }
 0x46a   :  { %v1619_v13 = vadd.f32 %v10114_v3, %v12064_v11  ;;  %v1866_v39 = vadd.f32 %v1834_v31, %v1733_v60  ;;  %v1698_v8 = vmax.f32 %v1608_v36, 0.0  ;;  %v1894_v17 = vpack.c.bf16 %v1868_v6, %v1867_v12 }
 0x46b   :  { %v1610_v10 = vpop.f32.mrf.mxu0  ;;  %v1738_v45 = vmul.f32 %v12072_v21, %v1700_v42  ;;  %v1843_v57 = vmul.f32 %v8507_v41, %v12069_v33  ;;  %v8512_v12 = vunpack.c.h.bf16 %v9069_v47 }
 0x46c   :  { %v1701_v29 = vmax.f32 %v1619_v13, 0.0  ;;  %v1611_v14 = vadd.f32 %v12064_v11, %v1610_v10  ;;  %v1893_v16 = vpack.c.bf16 %v1866_v39, %v1865_v43  ;;  %10234 = vmatpush3.bf16.msra.mxu1 %v11940_v24  ;;  %v1736_v30 = vmul.f32 %v12072_v21, %v1698_v8  ;;  %v9070_v13 = vld [vmem:[#allocation5 + $0xd8] sm:$0xff]  }
 0x46d   :  { %v10117_v59 = vpop.f32.mrf.mxu0  ;;  %10235 = vmatprep.subr.bf16.mxu1 %v11944_v25  ;;  %v1871_v35 = vadd.f32 %v1839_v52, %v1738_v45  ;;  %v8516_v7 = vunpack.c.h.bf16 %v9070_v13  ;;  %v1846_v45 = vmul.f32 %v8512_v12, %v12069_v33 }
 0x46e   :  { %v1739_v38 = vmul.f32 %v12072_v21, %v1701_v29  ;;  %v1699_v44 = vmax.f32 %v1611_v14, 0.0  ;;  %10155 = vmatprep.mubr.bf16.mxu1 %v1893_v16  ;;  %v1632_v20 = vadd.f32 %v10117_v59, %v12064_v11  ;;  %v1869_v53 = vadd.f32 %v1837_v18, %v1736_v30 }
 0x46f   :  { %v1623_v61 = vpop.f32.mrf.mxu0  ;;  %10156 = vmatmul.mubr.bf16.gmra.mxu1 %v1894_v17  ;;  %v8515_v29 = vunpack.c.l.bf16 %v9070_v13 }
 0x470   :  { %v1737_v24 = vmul.f32 %v12072_v21, %v1699_v44  ;;  %v1624_v28 = vadd.f32 %v12064_v11, %v1623_v61  ;;  %10236 = vmatpush3.bf16.msra.mxu1 %v11944_v25  ;;  %v1872_v50 = vadd.f32 %v1840_v15, %v1739_v38  ;;  %v1704_v56 = vmax.f32 %v1632_v20, 0.0 }
 0x471   :  { %v10118_v23 = vpop.f32.mrf.mxu0  ;;  %10237 = vmatprep.subr.bf16.mxu1 %v11948_v26  ;;  %v8511_v15 = vunpack.c.l.bf16 %v9069_v47  ;;  %v1847_v20 = vmul.f32 %v8515_v29, %v12069_v33 }
 0x472   :  { %v1635_v48 = vadd.f32 %v10118_v23, %v12064_v11  ;;  %v1870_v34 = vadd.f32 %v1838_v32, %v1737_v24  ;;  %v1702_v40 = vmax.f32 %v1624_v28, 0.0  ;;  %v1896_v60 = vpack.c.bf16 %v1872_v50, %v1871_v35  ;;  %v12152_v24 = vld [vmem:[#allocation7 + $0xf8] sm:$0xff]   ;;  %v9072_v50 = vld [vmem:[#allocation5 + $0xe8] sm:$0xff]  }
 0x473   :  { %v1626_v55 = vpop.f32.mrf.mxu0  ;;  %v1742_v4 = vmul.f32 %v12072_v21, %v1704_v56  ;;  %v1848_v32 = vmul.f32 %v8516_v7, %v12069_v33  ;;  %v1845_v28 = vmul.f32 %v8511_v15, %v12069_v33  ;;  %v8523_v56 = vunpack.c.l.bf16 %v9072_v50 }
 0x474   :  { %v1705_v31 = vmax.f32 %v1635_v48, 0.0  ;;  %v1627_v58 = vadd.f32 %v12064_v11, %v1626_v55  ;;  %v1895_v63 = vpack.c.bf16 %v1870_v34, %v1869_v53  ;;  %10238 = vmatpush3.bf16.msra.mxu1 %v11948_v26  ;;  %v1740_v36 = vmul.f32 %v12072_v21, %v1702_v40  ;;  %v9071_v34 = vld [vmem:[#allocation5 + $0xe0] sm:$0xff]  }
 0x475   :  { %v10121_v25 = vpop.f32.mrf.mxu0  ;;  %10239 = vmatprep.subr.bf16.mxu1 %v11952_v27  ;;  %v1875_v16 = vadd.f32 %v1843_v57, %v1742_v4  ;;  %v8524_v53 = vunpack.c.h.bf16 %v9072_v50  ;;  %v8520_v55 = vunpack.c.h.bf16 %v9071_v34 }
 0x476   :  { %v1743_v0 = vmul.f32 %v12072_v21, %v1705_v31  ;;  %v1703_v1 = vmax.f32 %v1627_v58, 0.0  ;;  %10159 = vmatprep.mubr.bf16.mxu1 %v1895_v63  ;;  %v1648_v6 = vadd.f32 %v10121_v25, %v12064_v11  ;;  %v1873_v42 = vadd.f32 %v1841_v37, %v1740_v36 }
 0x477   :  { %v1639_v3 = vpop.f32.mrf.mxu0  ;;  %10160 = vmatmul.mubr.bf16.gmra.mxu1 %v1896_v60  ;;  %v8519_v58 = vunpack.c.l.bf16 %v9071_v34  ;;  %v1852_v60 = vmul.f32 %v8524_v53, %v12069_v33 }
 0x478   :  { %v1741_v26 = vmul.f32 %v12072_v21, %v1703_v1  ;;  %v1640_v39 = vadd.f32 %v12064_v11, %v1639_v3  ;;  %10240 = vmatpush3.bf16.msra.mxu1 %v11952_v27  ;;  %v1876_v8 = vadd.f32 %v1844_v62, %v1743_v0  ;;  %v1708_v38 = vmax.f32 %v1648_v6, 0.0  ;;  %v9073_v3 = vld [vmem:[#allocation5 + $0xf0] sm:$0xff]  }
 0x479   :  { %v10122_v43 = vpop.f32.mrf.mxu0  ;;  %10241 = vmatprep.subr.bf16.mxu1 %v12007_v5  ;;  %v1851_v6 = vmul.f32 %v8523_v56, %v12069_v33  ;;  %v8527_v12 = vunpack.c.l.bf16 %v9073_v3  ;;  %v12184_v56 = vld [vmem:[#allocation8 + $0x2] ss:$0 sm:$0xff] }
 0x47a   :  { %v1651_v9 = vadd.f32 %v10122_v43, %v12064_v11  ;;  %v1874_v10 = vadd.f32 %v1842_v2, %v1741_v26  ;;  %v1706_v14 = vmax.f32 %v1640_v39, 0.0  ;;  %v1898_v61 = vpack.c.bf16 %v1876_v8, %v1875_v16 }
 0x47b   :  { %v1642_v59 = vpop.f32.mrf.mxu0  ;;  %v1850_v26 = vmul.f32 %v8520_v55, %v12069_v33  ;;  %v1849_v39 = vmul.f32 %v8519_v58, %v12069_v33 }
 0x47c   :  { %v1709_v44 = vmax.f32 %v1651_v9, 0.0  ;;  %v1643_v17 = vadd.f32 %v12064_v11, %v1642_v59  ;;  %v1897_v52 = vpack.c.bf16 %v1874_v10, %v1873_v42  ;;  %10242 = vmatpush3.bf16.msra.mxu1 %v12007_v5  ;;  %v1744_v22 = vmul.f32 %v12072_v21, %v1706_v14  ;;  %v9074_v9 = vld [vmem:[#allocation5 + $0xf8] sm:$0xff]  }
 0x47d   :  { %v10125_v27 = vpop.f32.mrf.mxu0  ;;  %10323 = vmatprep.subr.bf16.mxu1 %v12152_v24  ;;  %v1746_v5 = vmul.f32 %v12072_v21, %v1708_v38  ;;  %v8532_v29 = vunpack.c.h.bf16 %v9074_v9  ;;  %v8528_v14 = vunpack.c.h.bf16 %v9073_v3 }
 0x47e   :  { %v1747_v30 = vmul.f32 %v12072_v21, %v1709_v44  ;;  %v1707_v18 = vmax.f32 %v1643_v17, 0.0  ;;  %10163 = vmatprep.mubr.bf16.mxu1 %v1897_v52  ;;  %v1664_v49 = vadd.f32 %v10125_v27, %v12064_v11  ;;  %v1877_v35 = vadd.f32 %v1845_v28, %v1744_v22 }
 0x47f   :  { %v1655_v46 = vpop.f32.mrf.mxu0  ;;  %10164 = vmatmul.mubr.bf16.gmra.mxu1 %v1898_v61  ;;  %v1879_v25 = vadd.f32 %v1847_v20, %v1746_v5  ;;  %v8531_v17 = vunpack.c.l.bf16 %v9074_v9  ;;  %v1853_v61 = vmul.f32 %v8527_v12, %v12069_v33  ;;  %v1854_v22 = vmul.f32 %v8528_v14, %v12069_v33  ;;  %v11368_v14 = vld [vmem:[#allocation7 + $0xa8] sm:$0xff]  }
 0x480   :  { %v1745_v23 = vmul.f32 %v12072_v21, %v1707_v18  ;;  %v1656_v48 = vadd.f32 %v12064_v11, %v1655_v46  ;;  %v1880_v41 = vadd.f32 %v1848_v32, %v1747_v30  ;;  %v1712_v63 = vmax.f32 %v1664_v49, 0.0 }
 0x481   :  { %v10126_v51 = vpop.f32.mrf.mxu0  ;;  %v1855_v50 = vmul.f32 %v8531_v17, %v12069_v33 }
 0x482   :  { %v1667_v40 = vadd.f32 %v10126_v51, %v12064_v11  ;;  %v1878_v54 = vadd.f32 %v1846_v45, %v1745_v23  ;;  %v1710_v31 = vmax.f32 %v1656_v48, 0.0  ;;  %v1900_v4 = vpack.c.bf16 %v1880_v41, %v1879_v25 }
 0x483   :  { %v1658_v62 = vpop.f32.mrf.mxu0  ;;  %v1750_v43 = vmul.f32 %v12072_v21, %v1712_v63  ;;  %v1856_v45 = vmul.f32 %v8532_v29, %v12069_v33 }
 0x484   :  { %v1713_v0 = vmax.f32 %v1667_v40, 0.0  ;;  %v1659_v1 = vadd.f32 %v12064_v11, %v1658_v62  ;;  %v1899_v57 = vpack.c.bf16 %v1878_v54, %v1877_v35  ;;  %v1748_v13 = vmul.f32 %v12072_v21, %v1710_v31 }
 0x485   :  { %v10129_v2 = vpop.f32.mrf.mxu0  ;;  %v1883_v27 = vadd.f32 %v1851_v6, %v1750_v43  ;;  %v11367_v43 = vld [vmem:[#allocation7 + $0xb0] sm:$0xff]  }
 0x486   :  { %v1751_v36 = vmul.f32 %v12072_v21, %v1713_v0  ;;  %v1711_v37 = vmax.f32 %v1659_v1, 0.0  ;;  %10167 = vmatprep.mubr.bf16.mxu1 %v1899_v57  ;;  %v1680_v8 = vadd.f32 %v10129_v2, %v12064_v11  ;;  %v1881_v44 = vadd.f32 %v1849_v39, %v1748_v13 }
 0x487   :  { %v1671_v47 = vpop.f32.mrf.mxu0  ;;  %10168 = vmatmul.mubr.bf16.gmra.mxu1 %v1900_v4 }
 0x488   :  { %v1749_v7 = vmul.f32 %v12072_v21, %v1711_v37  ;;  %v1672_v10 = vadd.f32 %v12064_v11, %v1671_v47  ;;  %v1884_v15 = vadd.f32 %v1852_v60, %v1751_v36  ;;  %v1716_v52 = vmax.f32 %v1680_v8, 0.0 }
 0x489   :  { %v10130_v42 = vpop.f32.mrf.mxu0 }
 0x48a   :  { %v1714_v59 = vmax.f32 %v1672_v10, 0.0  ;;  %v1683_v16 = vadd.f32 %v10130_v42, %v12064_v11  ;;  %v1882_v38 = vadd.f32 %v1850_v26, %v1749_v7  ;;  %v1902_v23 = vpack.c.bf16 %v1884_v15, %v1883_v27 }
 0x48b   :  { %v1674_v32 = vpop.f32.mrf.mxu0  ;;  %v1754_v49 = vmul.f32 %v12072_v21, %v1716_v52 }
 0x48c   :  { %v1717_v30 = vmax.f32 %v1683_v16, 0.0  ;;  %v1675_v18 = vadd.f32 %v12064_v11, %v1674_v32  ;;  %v1901_v20 = vpack.c.bf16 %v1882_v38, %v1881_v44  ;;  %v1752_v28 = vmul.f32 %v12072_v21, %v1714_v59  ;;  %v11369_v32 = vld [vmem:[#allocation7 + $0xa0] sm:$0xff]  }
 0x48d   :  { %v1887_v53 = vadd.f32 %v1855_v50, %v1754_v49 }
 0x48e   :  { %v1755_v46 = vmul.f32 %v12072_v21, %v1717_v30  ;;  %v1715_v5 = vmax.f32 %v1675_v18, 0.0  ;;  %10171 = vmatprep.mubr.bf16.mxu1 %v1901_v20  ;;  %v1885_v48 = vadd.f32 %v1853_v61, %v1752_v28 }
 0x48f   :  { %10172 = vmatmul.mubr.bf16.gmra.mxu1 %v1902_v23 }
 0x490   :  { %v1753_v11 = vmul.f32 %v12072_v21, %v1715_v5  ;;  %v1888_v34 = vadd.f32 %v1856_v45, %v1755_v46 }
 0x492   :  { %v1886_v51 = vadd.f32 %v1854_v22, %v1753_v11  ;;  %v1904_v40 = vpack.c.bf16 %v1888_v34, %v1887_v53  ;;  %v11370_v22 = vld [vmem:[#allocation7 + $0x98] sm:$0xff]  }
 0x494   :  { %v1903_v41 = vpack.c.bf16 %v1886_v51, %v1885_v48  ;;  %v11371_v48 = vld [vmem:[#allocation7 + $0x90] sm:$0xff]  }
 0x496   :  { %10175 = vmatprep.mubr.bf16.mxu1 %v1903_v41 }
 0x497   :  { %10176 = vmatmul.mubr.bf16.gmra.mxu1 %v1904_v40 }
 0x51f   :  { %v10149_v54 = vpop.f32.mrf.mxu1 }
 0x520   :  { %v1948_v21 = vadd.f32 %v12184_v56, %v10149_v54 }
 0x521   :  { %v1939_v55 = vpop.f32.mrf.mxu1 }
 0x522   :  { %v1940_v31 = vadd.f32 %v12184_v56, %v1939_v55  ;;  %v2068_v60 = vmax.f32 %v1948_v21, 0.0 }
 0x523   :  { %v10150_v35 = vpop.f32.mrf.mxu1 }
 0x524   :  { %v1951_v33 = vadd.f32 %v12184_v56, %v10150_v35  ;;  %v2066_v0 = vmax.f32 %v1940_v31, 0.0  ;;  %v11372_v35 = vld [vmem:[#allocation7 + $0x88] sm:$0xff]  }
 0x525   :  { %v1942_v58 = vpop.f32.mrf.mxu1 }
 0x526   :  { %v1943_v62 = vadd.f32 %v12184_v56, %v1942_v58  ;;  %v2069_v25 = vmax.f32 %v1951_v33, 0.0 }
 0x527   :  { %v10153_v63 = vpop.f32.mrf.mxu1 }
 0x528   :  { %v2067_v1 = vmax.f32 %v1943_v62, 0.0  ;;  %v2099_v36 = vpack.c.bf16 %v2069_v25, %v2068_v60  ;;  %v1964_v26 = vadd.f32 %v12184_v56, %v10153_v63 }
 0x529   :  { %v1955_v2 = vpop.f32.mrf.mxu1 }
 0x52a   :  { %v2098_v57 = vpack.c.bf16 %v2067_v1, %v2066_v0  ;;  %v1956_v3 = vadd.f32 %v12184_v56, %v1955_v2  ;;  %v2072_v9 = vmax.f32 %v1964_v26, 0.0  ;;  %v11373_v0 = vld [vmem:[#allocation7 + $0x80] sm:$0xff]  }
 0x52b   :  { %v10154_v37 = vpop.f32.mrf.mxu1 }
 0x52c   :  { %v1967_v4 = vadd.f32 %v12184_v56, %v10154_v37  ;;  %10195 = vmatprep.mubr.bf16.mxu0 %v2098_v57  ;;  %v2070_v7 = vmax.f32 %v1956_v3, 0.0 }
 0x52d   :  { %v1958_v6 = vpop.f32.mrf.mxu1  ;;  %10196 = vmatmul.mubr.bf16.vlgmr.msra.gmra.mxu0 %v2099_v36 }
 0x52e   :  { %v1959_v13 = vadd.f32 %v12184_v56, %v1958_v6  ;;  %10276 = vmatpush3.bf16.msra.mxu0 %v12049_v19  ;;  %v2073_v39 = vmax.f32 %v1967_v4, 0.0  ;;  %v12207_v4 = vld [vmem:[#allocation7 + $0x138] sm:$0xff]  }
 0x52f   :  { %v10157_v47 = vpop.f32.mrf.mxu1  ;;  %10277 = vmatprep.subr.bf16.mxu0 %v11367_v43 }
 0x530   :  { %v2071_v8 = vmax.f32 %v1959_v13, 0.0  ;;  %v2101_v42 = vpack.c.bf16 %v2073_v39, %v2072_v9  ;;  %v1980_v19 = vadd.f32 %v12184_v56, %v10157_v47 }
 0x531   :  { %v1971_v10 = vpop.f32.mrf.mxu1 }
 0x532   :  { %v2100_v12 = vpack.c.bf16 %v2071_v8, %v2070_v7  ;;  %10278 = vmatpush3.bf16.msra.mxu0 %v11367_v43  ;;  %v1972_v15 = vadd.f32 %v12184_v56, %v1971_v10  ;;  %v2076_v30 = vmax.f32 %v1980_v19, 0.0 }
 0x533   :  { %v10158_v29 = vpop.f32.mrf.mxu1  ;;  %10279 = vmatprep.subr.bf16.mxu0 %v11368_v14 }
 0x534   :  { %v1983_v59 = vadd.f32 %v12184_v56, %v10158_v29  ;;  %10199 = vmatprep.mubr.bf16.mxu0 %v2100_v12  ;;  %v2074_v27 = vmax.f32 %v1972_v15, 0.0 }
 0x535   :  { %v1974_v16 = vpop.f32.mrf.mxu1  ;;  %10200 = vmatmul.mubr.bf16.gmra.mxu0 %v2101_v42 }
 0x536   :  { %v1975_v38 = vadd.f32 %v12184_v56, %v1974_v16  ;;  %10280 = vmatpush3.bf16.msra.mxu0 %v11368_v14  ;;  %v2077_v44 = vmax.f32 %v1983_v59, 0.0 }
 0x537   :  { %v10161_v17 = vpop.f32.mrf.mxu1  ;;  %10281 = vmatprep.subr.bf16.mxu0 %v11369_v32 }
 0x538   :  { %v2075_v52 = vmax.f32 %v1975_v38, 0.0  ;;  %v2103_v45 = vpack.c.bf16 %v2077_v44, %v2076_v30  ;;  %v1996_v5 = vadd.f32 %v12184_v56, %v10161_v17 }
 0x539   :  { %v1987_v18 = vpop.f32.mrf.mxu1 }
 0x53a   :  { %v2102_v61 = vpack.c.bf16 %v2075_v52, %v2074_v27  ;;  %10282 = vmatpush3.bf16.msra.mxu0 %v11369_v32  ;;  %v1988_v28 = vadd.f32 %v12184_v56, %v1987_v18  ;;  %v2080_v53 = vmax.f32 %v1996_v5, 0.0 }
 0x53b   :  { %v10162_v20 = vpop.f32.mrf.mxu1  ;;  %10283 = vmatprep.subr.bf16.mxu0 %v11370_v22 }
 0x53c   :  { %v1999_v46 = vadd.f32 %v12184_v56, %v10162_v20  ;;  %10203 = vmatprep.mubr.bf16.mxu0 %v2102_v61  ;;  %v2078_v34 = vmax.f32 %v1988_v28, 0.0 }
 0x53d   :  { %v1990_v23 = vpop.f32.mrf.mxu1  ;;  %10204 = vmatmul.mubr.bf16.gmra.mxu0 %v2103_v45 }
 0x53e   :  { %v1991_v49 = vadd.f32 %v12184_v56, %v1990_v23  ;;  %10284 = vmatpush3.bf16.msra.mxu0 %v11370_v22  ;;  %v2081_v50 = vmax.f32 %v1999_v46, 0.0 }
 0x53f   :  { %v10165_v11 = vpop.f32.mrf.mxu1  ;;  %10285 = vmatprep.subr.bf16.mxu0 %v11371_v48 }
 0x540   :  { %v2079_v51 = vmax.f32 %v1991_v49, 0.0  ;;  %v2105_v54 = vpack.c.bf16 %v2081_v50, %v2080_v53  ;;  %v2012_v21 = vadd.f32 %v12184_v56, %v10165_v11 }
 0x541   :  { %v2003_v41 = vpop.f32.mrf.mxu1 }
 0x542   :  { %v2104_v40 = vpack.c.bf16 %v2079_v51, %v2078_v34  ;;  %10286 = vmatpush3.bf16.msra.mxu0 %v11371_v48  ;;  %v2004_v31 = vadd.f32 %v12184_v56, %v2003_v41  ;;  %v2084_v2 = vmax.f32 %v2012_v21, 0.0 }
 0x543   :  { %v10166_v55 = vpop.f32.mrf.mxu1  ;;  %10287 = vmatprep.subr.bf16.mxu0 %v11372_v35 }
 0x544   :  { %v2015_v33 = vadd.f32 %v12184_v56, %v10166_v55  ;;  %10207 = vmatprep.mubr.bf16.mxu0 %v2104_v40  ;;  %v2082_v1 = vmax.f32 %v2004_v31, 0.0  ;;  %v12222_v40 = vld [vmem:[#allocation8 + $0x3] ss:$0 sm:$0xff] }
 0x545   :  { %v2006_v58 = vpop.f32.mrf.mxu1  ;;  %10208 = vmatmul.mubr.bf16.gmra.mxu0 %v2105_v54 }
 0x546   :  { %v2007_v62 = vadd.f32 %v12184_v56, %v2006_v58  ;;  %10288 = vmatpush3.bf16.msra.mxu0 %v11372_v35  ;;  %v2085_v25 = vmax.f32 %v2015_v33, 0.0 }
 0x547   :  { %v10169_v63 = vpop.f32.mrf.mxu1  ;;  %10289 = vmatprep.subr.bf16.mxu0 %v11373_v0 }
 0x548   :  { %v2083_v60 = vmax.f32 %v2007_v62, 0.0  ;;  %v2107_v37 = vpack.c.bf16 %v2085_v25, %v2084_v2  ;;  %v2028_v13 = vadd.f32 %v12184_v56, %v10169_v63 }
 0x549   :  { %v2019_v57 = vpop.f32.mrf.mxu1 }
 0x54a   :  { %v2106_v36 = vpack.c.bf16 %v2083_v60, %v2082_v1  ;;  %10290 = vmatpush3.bf16.msra.mxu0 %v11373_v0  ;;  %v2020_v26 = vadd.f32 %v12184_v56, %v2019_v57  ;;  %v2088_v10 = vmax.f32 %v2028_v13, 0.0  ;;  %v11376_v13 = vld [vmem:[#allocation7 + $0xf0] sm:$0xff]  }
 0x54b   :  { %v10170_v3 = vpop.f32.mrf.mxu1  ;;  %10371 = vmatprep.subr.bf16.mxu0 %v12207_v4 }
 0x54c   :  { %v2031_v6 = vadd.f32 %v12184_v56, %v10170_v3  ;;  %10211 = vmatprep.mubr.bf16.mxu0 %v2106_v36  ;;  %v2086_v8 = vmax.f32 %v2020_v26, 0.0 }
 0x54d   :  { %v2022_v39 = vpop.f32.mrf.mxu1  ;;  %10212 = vmatmul.mubr.bf16.gmra.mxu0 %v2107_v37 }
 0x54e   :  { %v2023_v47 = vadd.f32 %v12184_v56, %v2022_v39  ;;  %v2089_v43 = vmax.f32 %v2031_v6, 0.0 }
 0x54f   :  { %v10173_v7 = vpop.f32.mrf.mxu1 }
 0x550   :  { %v2087_v9 = vmax.f32 %v2023_v47, 0.0  ;;  %v2109_v29 = vpack.c.bf16 %v2089_v43, %v2088_v10  ;;  %v2044_v19 = vadd.f32 %v12184_v56, %v10173_v7 }
 0x551   :  { %v2035_v12 = vpop.f32.mrf.mxu1 }
 0x552   :  { %v2108_v42 = vpack.c.bf16 %v2087_v9, %v2086_v8  ;;  %v2036_v15 = vadd.f32 %v12184_v56, %v2035_v12  ;;  %v2092_v52 = vmax.f32 %v2044_v19, 0.0  ;;  %v11377_v12 = vld [vmem:[#allocation7 + $0xe8] sm:$0xff]  }
 0x553   :  { %v10174_v14 = vpop.f32.mrf.mxu1 }
 0x554   :  { %v2047_v59 = vadd.f32 %v12184_v56, %v10174_v14  ;;  %10215 = vmatprep.mubr.bf16.mxu0 %v2108_v42  ;;  %v2090_v32 = vmax.f32 %v2036_v15, 0.0 }
 0x555   :  { %v2038_v16 = vpop.f32.mrf.mxu1  ;;  %10216 = vmatmul.mubr.bf16.gmra.mxu0 %v2109_v29 }
 0x556   :  { %v2039_v38 = vadd.f32 %v12184_v56, %v2038_v16  ;;  %v2093_v44 = vmax.f32 %v2047_v59, 0.0  ;;  %v11378_v16 = vld [vmem:[#allocation7 + $0xe0] sm:$0xff]  }
 0x557   :  { %v10177_v17 = vpop.f32.mrf.mxu1 }
 0x558   :  { %v2091_v27 = vmax.f32 %v2039_v38, 0.0  ;;  %v2111_v61 = vpack.c.bf16 %v2093_v44, %v2092_v52  ;;  %v2060_v28 = vadd.f32 %v12184_v56, %v10177_v17 }
 0x559   :  { %v2051_v30 = vpop.f32.mrf.mxu1 }
 0x55a   :  { %v2110_v18 = vpack.c.bf16 %v2091_v27, %v2090_v32  ;;  %v2052_v20 = vadd.f32 %v12184_v56, %v2051_v30  ;;  %v2096_v11 = vmax.f32 %v2060_v28, 0.0 }
 0x55b   :  { %v10178_v45 = vpop.f32.mrf.mxu1 }
 0x55c   :  { %v2063_v22 = vadd.f32 %v12184_v56, %v10178_v45  ;;  %10219 = vmatprep.mubr.bf16.mxu0 %v2110_v18  ;;  %v2094_v49 = vmax.f32 %v2052_v20, 0.0  ;;  %v11379_v18 = vld [vmem:[#allocation7 + $0xd8] sm:$0xff]  }
 0x55d   :  { %v2054_v46 = vpop.f32.mrf.mxu1  ;;  %10220 = vmatmul.mubr.bf16.gmra.mxu0 %v2111_v61 }
 0x55e   :  { %v2055_v5 = vadd.f32 %v12184_v56, %v2054_v46  ;;  %v2097_v23 = vmax.f32 %v2063_v22, 0.0 }
 0x560   :  { %v2095_v50 = vmax.f32 %v2055_v5, 0.0  ;;  %v2113_v34 = vpack.c.bf16 %v2097_v23, %v2096_v11  ;;  %v11380_v23 = vld [vmem:[#allocation7 + $0xd0] sm:$0xff]  }
 0x562   :  { %v2112_v48 = vpack.c.bf16 %v2095_v50, %v2094_v49 }
 0x564   :  { %10223 = vmatprep.mubr.bf16.mxu0 %v2112_v48 }
 0x565   :  { %10224 = vmatmul.mubr.bf16.gmra.mxu0 %v2113_v34 }
 0x5ed   :  { %v10197_v51 = vpop.f32.mrf.mxu0 }
 0x5ee   :  { %v2157_v35 = vadd.f32 %v12222_v40, %v10197_v51 }
 0x5ef   :  { %v2148_v53 = vpop.f32.mrf.mxu0 }
 0x5f0   :  { %v2149_v54 = vadd.f32 %v12222_v40, %v2148_v53  ;;  %v2277_v25 = vmax.f32 %v2157_v35, 0.0 }
 0x5f1   :  { %v10198_v41 = vpop.f32.mrf.mxu0 }
 0x5f2   :  { %v2160_v55 = vadd.f32 %v12222_v40, %v10198_v41  ;;  %v2275_v58 = vmax.f32 %v2149_v54, 0.0  ;;  %v11381_v41 = vld [vmem:[#allocation7 + $0xc8] sm:$0xff]  }
 0x5f3   :  { %v2151_v56 = vpop.f32.mrf.mxu0 }
 0x5f4   :  { %v2152_v31 = vadd.f32 %v12222_v40, %v2151_v56  ;;  %v2278_v33 = vmax.f32 %v2160_v55, 0.0 }
 0x5f5   :  { %v10201_v21 = vpop.f32.mrf.mxu0 }
 0x5f6   :  { %v2276_v62 = vmax.f32 %v2152_v31, 0.0  ;;  %v2308_v1 = vpack.c.bf16 %v2278_v33, %v2277_v25  ;;  %v2173_v36 = vadd.f32 %v12222_v40, %v10201_v21 }
 0x5f7   :  { %v2164_v63 = vpop.f32.mrf.mxu0 }
 0x5f8   :  { %v2307_v0 = vpack.c.bf16 %v2276_v62, %v2275_v58  ;;  %v2165_v2 = vadd.f32 %v12222_v40, %v2164_v63  ;;  %v2281_v43 = vmax.f32 %v2173_v36, 0.0  ;;  %v11382_v58 = vld [vmem:[#allocation7 + $0xc0] sm:$0xff]  }
 0x5f9   :  { %v10202_v60 = vpop.f32.mrf.mxu0 }
 0x5fa   :  { %v2176_v57 = vadd.f32 %v12222_v40, %v10202_v60  ;;  %10243 = vmatprep.mubr.bf16.mxu1 %v2307_v0  ;;  %v2279_v39 = vmax.f32 %v2165_v2, 0.0 }
 0x5fb   :  { %v2167_v37 = vpop.f32.mrf.mxu0  ;;  %10244 = vmatmul.mubr.bf16.vlgmr.msra.gmra.mxu1 %v2308_v1 }
 0x5fc   :  { %v2168_v3 = vadd.f32 %v12222_v40, %v2167_v37  ;;  %10324 = vmatpush3.bf16.msra.mxu1 %v12152_v24  ;;  %v2282_v26 = vmax.f32 %v2176_v57, 0.0  ;;  %v12245_v57 = vld [vmem:[#allocation7 + $0xb8] sm:$0xff]  }
 0x5fd   :  { %v10205_v6 = vpop.f32.mrf.mxu0  ;;  %10325 = vmatprep.subr.bf16.mxu1 %v11376_v13 }
 0x5fe   :  { %v2280_v47 = vmax.f32 %v2168_v3, 0.0  ;;  %v2310_v9 = vpack.c.bf16 %v2282_v26, %v2281_v43  ;;  %v2189_v24 = vadd.f32 %v12222_v40, %v10205_v6 }
 0x5ff   :  { %v2180_v7 = vpop.f32.mrf.mxu0 }
 0x600   :  { %v2309_v8 = vpack.c.bf16 %v2280_v47, %v2279_v39  ;;  %10326 = vmatpush3.bf16.msra.mxu1 %v11376_v13  ;;  %v2181_v42 = vadd.f32 %v12222_v40, %v2180_v7  ;;  %v2285_v17 = vmax.f32 %v2189_v24, 0.0 }
 0x601   :  { %v10206_v10 = vpop.f32.mrf.mxu0  ;;  %10327 = vmatprep.subr.bf16.mxu1 %v11377_v12 }
 0x602   :  { %v2192_v29 = vadd.f32 %v12222_v40, %v10206_v10  ;;  %10247 = vmatprep.mubr.bf16.mxu1 %v2309_v8  ;;  %v2283_v38 = vmax.f32 %v2181_v42, 0.0 }
 0x603   :  { %v2183_v14 = vpop.f32.mrf.mxu0  ;;  %10248 = vmatmul.mubr.bf16.gmra.mxu1 %v2310_v9 }
 0x604   :  { %v2184_v15 = vadd.f32 %v12222_v40, %v2183_v14  ;;  %10328 = vmatpush3.bf16.msra.mxu1 %v11377_v12  ;;  %v2286_v59 = vmax.f32 %v2192_v29, 0.0 }
 0x605   :  { %v10209_v19 = vpop.f32.mrf.mxu0  ;;  %10329 = vmatprep.subr.bf16.mxu1 %v11378_v16 }
 0x606   :  { %v2284_v44 = vmax.f32 %v2184_v15, 0.0  ;;  %v2312_v52 = vpack.c.bf16 %v2286_v59, %v2285_v17  ;;  %v2205_v20 = vadd.f32 %v12222_v40, %v10209_v19 }
 0x607   :  { %v2196_v32 = vpop.f32.mrf.mxu0 }
 0x608   :  { %v2311_v27 = vpack.c.bf16 %v2284_v44, %v2283_v38  ;;  %10330 = vmatpush3.bf16.msra.mxu1 %v11378_v16  ;;  %v2197_v61 = vadd.f32 %v12222_v40, %v2196_v32  ;;  %v2289_v11 = vmax.f32 %v2205_v20, 0.0 }
 0x609   :  { %v10210_v30 = vpop.f32.mrf.mxu0  ;;  %10331 = vmatprep.subr.bf16.mxu1 %v11379_v18 }
 0x60a   :  { %v2208_v45 = vadd.f32 %v12222_v40, %v10210_v30  ;;  %10251 = vmatprep.mubr.bf16.mxu1 %v2311_v27  ;;  %v2287_v49 = vmax.f32 %v2197_v61, 0.0 }
 0x60b   :  { %v2199_v22 = vpop.f32.mrf.mxu0  ;;  %10252 = vmatmul.mubr.bf16.gmra.mxu1 %v2312_v52 }
 0x60c   :  { %v2200_v28 = vadd.f32 %v12222_v40, %v2199_v22  ;;  %10332 = vmatpush3.bf16.msra.mxu1 %v11379_v18  ;;  %v2290_v46 = vmax.f32 %v2208_v45, 0.0 }
 0x60d   :  { %v10213_v5 = vpop.f32.mrf.mxu0  ;;  %10333 = vmatprep.subr.bf16.mxu1 %v11380_v23 }
 0x60e   :  { %v2288_v50 = vmax.f32 %v2200_v28, 0.0  ;;  %v2314_v51 = vpack.c.bf16 %v2290_v46, %v2289_v11  ;;  %v2221_v35 = vadd.f32 %v12222_v40, %v10213_v5 }
 0x60f   :  { %v2212_v48 = vpop.f32.mrf.mxu0 }
 0x610   :  { %v2313_v34 = vpack.c.bf16 %v2288_v50, %v2287_v49  ;;  %10334 = vmatpush3.bf16.msra.mxu1 %v11380_v23  ;;  %v2213_v54 = vadd.f32 %v12222_v40, %v2212_v48  ;;  %v2293_v63 = vmax.f32 %v2221_v35, 0.0  ;;  %v12260_v48 = vld [vmem:[#allocation8 + $0x4] ss:$0 sm:$0xff] }
 0x611   :  { %v10214_v53 = vpop.f32.mrf.mxu0  ;;  %10335 = vmatprep.subr.bf16.mxu1 %v11381_v41 }
 0x612   :  { %v2224_v55 = vadd.f32 %v12222_v40, %v10214_v53  ;;  %10255 = vmatprep.mubr.bf16.mxu1 %v2313_v34  ;;  %v2291_v62 = vmax.f32 %v2213_v54, 0.0 }
 0x613   :  { %v2215_v56 = vpop.f32.mrf.mxu0  ;;  %10256 = vmatmul.mubr.bf16.gmra.mxu1 %v2314_v51  ;;  %v9075_v51 = vld [vmem:[#allocation5 + $0x108] sm:$0xff]  }
 0x614   :  { %v2216_v31 = vadd.f32 %v12222_v40, %v2215_v56  ;;  %10336 = vmatpush3.bf16.msra.mxu1 %v11381_v41  ;;  %v2294_v33 = vmax.f32 %v2224_v55, 0.0  ;;  %v8534_v41 = vld [vmem:[#allocation5 + $0x100] sm:$0xff]   ;;  %v8540_v55 = vunpack.c.h.bf16 %v9075_v51  ;;  %v8539_v35 = vunpack.c.l.bf16 %v9075_v51 }
 0x615   :  { %v10217_v21 = vpop.f32.mrf.mxu0  ;;  %10337 = vmatprep.subr.bf16.mxu1 %v11382_v58 }
 0x616   :  { %v2292_v25 = vmax.f32 %v2216_v31, 0.0  ;;  %v2316_v60 = vpack.c.bf16 %v2294_v33, %v2293_v63  ;;  %v2237_v3 = vadd.f32 %v12222_v40, %v10217_v21  ;;  %v8535_v31 = vunpack.c.l.bf16 %v8534_v41 }
 0x617   :  { %v2228_v0 = vpop.f32.mrf.mxu0  ;;  %v8536_v21 = vunpack.c.h.bf16 %v8534_v41 }
 0x618   :  { %v2315_v1 = vpack.c.bf16 %v2292_v25, %v2291_v62  ;;  %10338 = vmatpush3.bf16.msra.mxu1 %v11382_v58  ;;  %v2229_v36 = vadd.f32 %v12222_v40, %v2228_v0  ;;  %v2297_v7 = vmax.f32 %v2237_v3, 0.0  ;;  %v12265_v62 = vld [vmem:[#allocation8 + $0x11] ss:$0 sm:$0xff]  ;;  %v12268_v0 = vld [vmem:[#allocation8 + $0x7] ss:$0 sm:$0xff] }
 0x619   :  { %v10218_v2 = vpop.f32.mrf.mxu0  ;;  %10419 = vmatprep.subr.bf16.mxu1 %v12245_v57  ;;  %v2625_v3 = vmul.f32 %v8539_v35, %v12265_v62 }
 0x61a   :  { %v2240_v37 = vadd.f32 %v12222_v40, %v10218_v2  ;;  %10259 = vmatprep.mubr.bf16.mxu1 %v2315_v1  ;;  %v2295_v47 = vmax.f32 %v2229_v36, 0.0  ;;  %v2626_v2 = vmul.f32 %v8540_v55, %v12265_v62 }
 0x61b   :  { %v2231_v26 = vpop.f32.mrf.mxu0  ;;  %10260 = vmatmul.mubr.bf16.gmra.mxu1 %v2316_v60 }
 0x61c   :  { %v2232_v6 = vadd.f32 %v12222_v40, %v2231_v26  ;;  %v2298_v13 = vmax.f32 %v2240_v37, 0.0  ;;  %v9077_v37 = vld [vmem:[#allocation5 + $0x118] sm:$0xff]  }
 0x61d   :  { %v10221_v39 = vpop.f32.mrf.mxu0 }
 0x61e   :  { %v2296_v43 = vmax.f32 %v2232_v6, 0.0  ;;  %v2318_v10 = vpack.c.bf16 %v2298_v13, %v2297_v7  ;;  %v2253_v24 = vadd.f32 %v12222_v40, %v10221_v39  ;;  %v2623_v6 = vmul.f32 %v8535_v31, %v12265_v62  ;;  %v9076_v39 = vld [vmem:[#allocation5 + $0x110] sm:$0xff]  }
 0x61f   :  { %v2244_v8 = vpop.f32.mrf.mxu0  ;;  %v11385_v31 = vld [vmem:[#allocation7 + $0x130] sm:$0xff]  }
 0x620   :  { %v2317_v9 = vpack.c.bf16 %v2296_v43, %v2295_v47  ;;  %v2245_v42 = vadd.f32 %v12222_v40, %v2244_v8  ;;  %v2301_v44 = vmax.f32 %v2253_v24, 0.0  ;;  %v2624_v47 = vmul.f32 %v8536_v21, %v12265_v62 }
 0x621   :  { %v10222_v12 = vpop.f32.mrf.mxu0 }
 0x622   :  { %v2256_v29 = vadd.f32 %v12222_v40, %v10222_v12  ;;  %10263 = vmatprep.mubr.bf16.mxu1 %v2317_v9  ;;  %v2299_v16 = vmax.f32 %v2245_v42, 0.0 }
 0x623   :  { %v2247_v14 = vpop.f32.mrf.mxu0  ;;  %10264 = vmatmul.mubr.bf16.gmra.mxu1 %v2318_v10  ;;  %v8547_v10 = vunpack.c.l.bf16 %v9077_v37 }
 0x624   :  { %v2248_v15 = vadd.f32 %v12222_v40, %v2247_v14  ;;  %v2302_v59 = vmax.f32 %v2256_v29, 0.0  ;;  %v8543_v29 = vunpack.c.l.bf16 %v9076_v39  ;;  %v8548_v14 = vunpack.c.h.bf16 %v9077_v37 }
 0x625   :  { %v10225_v19 = vpop.f32.mrf.mxu0 }
 0x626   :  { %v2300_v38 = vmax.f32 %v2248_v15, 0.0  ;;  %v2320_v27 = vpack.c.bf16 %v2302_v59, %v2301_v44  ;;  %v2269_v61 = vadd.f32 %v12222_v40, %v10225_v19 }
 0x627   :  { %v2260_v17 = vpop.f32.mrf.mxu0 }
 0x628   :  { %v2319_v32 = vpack.c.bf16 %v2300_v38, %v2299_v16  ;;  %v2261_v30 = vadd.f32 %v12222_v40, %v2260_v17  ;;  %v2305_v5 = vmax.f32 %v2269_v61, 0.0  ;;  %v8544_v38 = vunpack.c.h.bf16 %v9076_v39  ;;  %v9081_v39 = vld [vmem:[#allocation5 + $0x138] sm:$0xff]  }
 0x629   :  { %v10226_v52 = vpop.f32.mrf.mxu0 }
 0x62a   :  { %v2272_v18 = vadd.f32 %v12222_v40, %v10226_v52  ;;  %10267 = vmatprep.mubr.bf16.mxu1 %v2319_v32  ;;  %v2303_v28 = vmax.f32 %v2261_v30, 0.0 }
 0x62b   :  { %v2263_v45 = vpop.f32.mrf.mxu0  ;;  %10268 = vmatmul.mubr.bf16.gmra.mxu1 %v2320_v27 }
 0x62c   :  { %v2264_v20 = vadd.f32 %v12222_v40, %v2263_v45  ;;  %v2306_v22 = vmax.f32 %v2272_v18, 0.0  ;;  %v2630_v45 = vmul.f32 %v8548_v14, %v12265_v62 }
 0x62e   :  { %v2304_v46 = vmax.f32 %v2264_v20, 0.0  ;;  %v2322_v49 = vpack.c.bf16 %v2306_v22, %v2305_v5  ;;  %v9079_v22 = vld [vmem:[#allocation5 + $0x128] sm:$0xff]   ;;  %v2627_v5 = vmul.f32 %v8543_v29, %v12265_v62 }
 0x62f   :  { %v8555_v41 = vunpack.c.l.bf16 %v9079_v22 }
 0x630   :  { %v2321_v23 = vpack.c.bf16 %v2304_v46, %v2303_v28  ;;  %v2629_v28 = vmul.f32 %v8547_v10, %v12265_v62  ;;  %v9080_v10 = vld [vmem:[#allocation5 + $0x130] sm:$0xff]  }
 0x632   :  { %10271 = vmatprep.mubr.bf16.mxu1 %v2321_v23 }
 0x633   :  { %10272 = vmatmul.mubr.bf16.gmra.mxu1 %v2322_v49  ;;  %v9078_v49 = vld [vmem:[#allocation5 + $0x120] sm:$0xff]  }
 0x634   :  { %v8551_v55 = vunpack.c.l.bf16 %v9078_v49 }
 0x6bb   :  { %v10245_v50 = vpop.f32.mrf.mxu1 }
 0x6bc   :  { %v2366_v34 = vadd.f32 %v12260_v48, %v10245_v50  ;;  %v2628_v50 = vmul.f32 %v8544_v38, %v12265_v62 }
 0x6bd   :  { %v2357_v11 = vpop.f32.mrf.mxu1 }
 0x6be   :  { %v2358_v53 = vadd.f32 %v12260_v48, %v2357_v11  ;;  %v2486_v58 = vmax.f32 %v2366_v34, 0.0 }
 0x6bf   :  { %v10246_v54 = vpop.f32.mrf.mxu1 }
 0x6c0   :  { %v2369_v40 = vadd.f32 %v12260_v48, %v10246_v54  ;;  %v2484_v56 = vmax.f32 %v2358_v53, 0.0  ;;  %v2524_v43 = vmul.f32 %v12268_v0, %v2486_v58 }
 0x6c1   :  { %v2360_v33 = vpop.f32.mrf.mxu1 }
 0x6c2   :  { %v2487_v25 = vmax.f32 %v2369_v40, 0.0  ;;  %v2361_v63 = vadd.f32 %v12260_v48, %v2360_v33  ;;  %v2522_v26 = vmul.f32 %v12268_v0, %v2484_v56  ;;  %v2657_v44 = vadd.f32 %v2625_v3, %v2524_v43 }
 0x6c3   :  { %v10249_v1 = vpop.f32.mrf.mxu1  ;;  %v8556_v56 = vunpack.c.h.bf16 %v9079_v22  ;;  %v2633_v43 = vmul.f32 %v8555_v41, %v12265_v62 }
 0x6c4   :  { %v2525_v60 = vmul.f32 %v12268_v0, %v2487_v25  ;;  %v2485_v36 = vmax.f32 %v2361_v63, 0.0  ;;  %v2382_v8 = vadd.f32 %v12260_v48, %v10249_v1  ;;  %v2655_v15 = vadd.f32 %v2623_v6, %v2522_v26 }
 0x6c5   :  { %v2373_v13 = vpop.f32.mrf.mxu1  ;;  %v8552_v63 = vunpack.c.h.bf16 %v9078_v49  ;;  %v2634_v6 = vmul.f32 %v8556_v56, %v12265_v62 }
 0x6c6   :  { %v2523_v7 = vmul.f32 %v12268_v0, %v2485_v36  ;;  %v2374_v9 = vadd.f32 %v12260_v48, %v2373_v13  ;;  %v2658_v42 = vadd.f32 %v2626_v2, %v2525_v60  ;;  %v2490_v17 = vmax.f32 %v2382_v8, 0.0 }
 0x6c7   :  { %v10250_v12 = vpop.f32.mrf.mxu1  ;;  %v2631_v8 = vmul.f32 %v8551_v55, %v12265_v62 }
 0x6c8   :  { %v2385_v24 = vadd.f32 %v12260_v48, %v10250_v12  ;;  %v2488_v59 = vmax.f32 %v2374_v9, 0.0  ;;  %v2656_v16 = vadd.f32 %v2624_v47, %v2523_v7  ;;  %v2688_v18 = vpack.c.bf16 %v2658_v42, %v2657_v44  ;;  %v11386_v47 = vld [vmem:[#allocation7 + $0x128] sm:$0xff]  }
 0x6c9   :  { %v2376_v19 = vpop.f32.mrf.mxu1  ;;  %v2528_v11 = vmul.f32 %v12268_v0, %v2490_v17  ;;  %v2632_v12 = vmul.f32 %v8552_v63, %v12265_v62  ;;  %v8564_v44 = vunpack.c.h.bf16 %v9081_v39  ;;  %v11387_v17 = vld [vmem:[#allocation7 + $0x120] sm:$0xff]  }
 0x6ca   :  { %v2491_v32 = vmax.f32 %v2385_v24, 0.0  ;;  %v2377_v27 = vadd.f32 %v12260_v48, %v2376_v19  ;;  %v2687_v30 = vpack.c.bf16 %v2656_v16, %v2655_v15  ;;  %v2526_v46 = vmul.f32 %v12268_v0, %v2488_v59 }
 0x6cb   :  { %v10253_v52 = vpop.f32.mrf.mxu1  ;;  %v2661_v1 = vadd.f32 %v2629_v28, %v2528_v11  ;;  %v8563_v15 = vunpack.c.l.bf16 %v9081_v39  ;;  %v8559_v16 = vunpack.c.l.bf16 %v9080_v10  ;;  %v2638_v49 = vmul.f32 %v8564_v44, %v12265_v62  ;;  %v9083_v11 = vld [vmem:[#allocation5 + $0x148] sm:$0xff]  }
 0x6cc   :  { %v2529_v61 = vmul.f32 %v12268_v0, %v2491_v32  ;;  %v2489_v20 = vmax.f32 %v2377_v27, 0.0  ;;  %10291 = vmatprep.mubr.bf16.mxu0 %v2687_v30  ;;  %v2398_v51 = vadd.f32 %v12260_v48, %v10253_v52  ;;  %v2659_v33 = vadd.f32 %v2627_v5, %v2526_v46 }
 0x6cd   :  { %v2389_v23 = vpop.f32.mrf.mxu1  ;;  %10292 = vmatmul.mubr.bf16.vlgmr.msra.gmra.mxu0 %v2688_v18  ;;  %v8560_v18 = vunpack.c.h.bf16 %v9080_v10  ;;  %v2635_v41 = vmul.f32 %v8559_v16, %v12265_v62 }
 0x6ce   :  { %v2527_v34 = vmul.f32 %v12268_v0, %v2489_v20  ;;  %v2390_v53 = vadd.f32 %v12260_v48, %v2389_v23  ;;  %10372 = vmatpush3.bf16.msra.mxu0 %v12207_v4  ;;  %v2662_v40 = vadd.f32 %v2630_v45, %v2529_v61  ;;  %v2494_v60 = vmax.f32 %v2398_v51, 0.0 }
 0x6cf   :  { %v10254_v54 = vpop.f32.mrf.mxu1  ;;  %10373 = vmatprep.subr.bf16.mxu0 %v11385_v31  ;;  %v2637_v51 = vmul.f32 %v8563_v15, %v12265_v62  ;;  %v2636_v55 = vmul.f32 %v8560_v18, %v12265_v62 }
 0x6d0   :  { %v2401_v35 = vadd.f32 %v12260_v48, %v10254_v54  ;;  %v2492_v21 = vmax.f32 %v2390_v53, 0.0  ;;  %v2660_v25 = vadd.f32 %v2628_v50, %v2527_v34  ;;  %v2690_v4 = vpack.c.bf16 %v2662_v40, %v2661_v1  ;;  %v11388_v34 = vld [vmem:[#allocation7 + $0x118] sm:$0xff]   ;;  %v9082_v40 = vld [vmem:[#allocation5 + $0x140] sm:$0xff]  }
 0x6d1   :  { %v2392_v58 = vpop.f32.mrf.mxu1  ;;  %v2532_v42 = vmul.f32 %v12268_v0, %v2494_v60  ;;  %v8567_v63 = vunpack.c.l.bf16 %v9082_v40  ;;  %v8572_v60 = vunpack.c.h.bf16 %v9083_v11 }
 0x6d2   :  { %v2495_v2 = vmax.f32 %v2401_v35, 0.0  ;;  %v2393_v36 = vadd.f32 %v12260_v48, %v2392_v58  ;;  %v2689_v3 = vpack.c.bf16 %v2660_v25, %v2659_v33  ;;  %10374 = vmatpush3.bf16.msra.mxu0 %v11385_v31  ;;  %v2530_v7 = vmul.f32 %v12268_v0, %v2492_v21 }
 0x6d3   :  { %v10257_v37 = vpop.f32.mrf.mxu1  ;;  %10375 = vmatprep.subr.bf16.mxu0 %v11386_v47  ;;  %v2665_v61 = vadd.f32 %v2633_v43, %v2532_v42  ;;  %v8571_v21 = vunpack.c.l.bf16 %v9083_v11  ;;  %v2642_v10 = vmul.f32 %v8572_v60, %v12265_v62  ;;  %v9085_v42 = vld [vmem:[#allocation5 + $0x158] sm:$0xff]   ;;  %v2639_v15 = vmul.f32 %v8567_v63, %v12265_v62 }
 0x6d4   :  { %v2533_v26 = vmul.f32 %v12268_v0, %v2495_v2  ;;  %v2493_v13 = vmax.f32 %v2393_v36, 0.0  ;;  %10295 = vmatprep.mubr.bf16.mxu0 %v2689_v3  ;;  %v2414_v24 = vadd.f32 %v12260_v48, %v10257_v37  ;;  %v2663_v32 = vadd.f32 %v2631_v8, %v2530_v7  ;;  %v11389_v2 = vld [vmem:[#allocation7 + $0x110] sm:$0xff]  }
 0x6d5   :  { %v2405_v9 = vpop.f32.mrf.mxu1  ;;  %10296 = vmatmul.mubr.bf16.gmra.mxu0 %v2690_v4 }
 0x6d6   :  { %v2531_v29 = vmul.f32 %v12268_v0, %v2493_v13  ;;  %v2406_v14 = vadd.f32 %v12260_v48, %v2405_v9  ;;  %10376 = vmatpush3.bf16.msra.mxu0 %v11386_v47  ;;  %v2666_v19 = vadd.f32 %v2634_v6, %v2533_v26  ;;  %v2498_v45 = vmax.f32 %v2414_v24, 0.0 }
 0x6d7   :  { %v10258_v59 = vpop.f32.mrf.mxu1  ;;  %10377 = vmatprep.subr.bf16.mxu0 %v11387_v17  ;;  %v8568_v26 = vunpack.c.h.bf16 %v9082_v40  ;;  %v2641_v24 = vmul.f32 %v8571_v21, %v12265_v62 }
 0x6d8   :  { %v2417_v38 = vadd.f32 %v12260_v48, %v10258_v59  ;;  %v2496_v27 = vmax.f32 %v2406_v14, 0.0  ;;  %v2664_v30 = vadd.f32 %v2632_v12, %v2531_v29  ;;  %v2692_v5 = vpack.c.bf16 %v2666_v19, %v2665_v61  ;;  %v11390_v29 = vld [vmem:[#allocation7 + $0x108] sm:$0xff]   ;;  %v9084_v19 = vld [vmem:[#allocation5 + $0x150] sm:$0xff]  }
 0x6d9   :  { %v2408_v52 = vpop.f32.mrf.mxu1  ;;  %v2536_v35 = vmul.f32 %v12268_v0, %v2498_v45  ;;  %v2640_v16 = vmul.f32 %v8568_v26, %v12265_v62  ;;  %v8575_v18 = vunpack.c.l.bf16 %v9084_v19  ;;  %v8580_v45 = vunpack.c.h.bf16 %v9085_v42 }
 0x6da   :  { %v2499_v20 = vmax.f32 %v2417_v38, 0.0  ;;  %v2409_v22 = vadd.f32 %v12260_v48, %v2408_v52  ;;  %v2691_v46 = vpack.c.bf16 %v2664_v30, %v2663_v32  ;;  %10378 = vmatpush3.bf16.msra.mxu0 %v11387_v17  ;;  %v2534_v53 = vmul.f32 %v12268_v0, %v2496_v27 }
 0x6db   :  { %v10261_v28 = vpop.f32.mrf.mxu1  ;;  %10379 = vmatprep.subr.bf16.mxu0 %v11388_v34  ;;  %v2669_v6 = vadd.f32 %v2637_v51, %v2536_v35  ;;  %v8579_v27 = vunpack.c.l.bf16 %v9085_v42  ;;  %v2646_v40 = vmul.f32 %v8580_v45, %v12265_v62  ;;  %v9087_v35 = vld [vmem:[#allocation5 + $0x168] sm:$0xff]   ;;  %v2643_v21 = vmul.f32 %v8575_v18, %v12265_v62 }
 0x6dc   :  { %v2537_v23 = vmul.f32 %v12268_v0, %v2499_v20  ;;  %v2497_v50 = vmax.f32 %v2409_v22, 0.0  ;;  %10299 = vmatprep.mubr.bf16.mxu0 %v2691_v46  ;;  %v2430_v31 = vadd.f32 %v12260_v48, %v10261_v28  ;;  %v2667_v36 = vadd.f32 %v2635_v41, %v2534_v53  ;;  %v11391_v20 = vld [vmem:[#allocation7 + $0x100] sm:$0xff]  }
 0x6dd   :  { %v2421_v54 = vpop.f32.mrf.mxu1  ;;  %10300 = vmatmul.mubr.bf16.gmra.mxu0 %v2692_v5 }
 0x6de   :  { %v2535_v56 = vmul.f32 %v12268_v0, %v2497_v50  ;;  %v2422_v33 = vadd.f32 %v12260_v48, %v2421_v54  ;;  %10380 = vmatpush3.bf16.msra.mxu0 %v11388_v34  ;;  %v2670_v25 = vadd.f32 %v2638_v49, %v2537_v23  ;;  %v2502_v13 = vmax.f32 %v2430_v31, 0.0 }
 0x6df   :  { %v10262_v58 = vpop.f32.mrf.mxu1  ;;  %10381 = vmatprep.subr.bf16.mxu0 %v11389_v2  ;;  %v8576_v23 = vunpack.c.h.bf16 %v9084_v19  ;;  %v2645_v31 = vmul.f32 %v8579_v27, %v12265_v62 }
 0x6e0   :  { %v2433_v1 = vadd.f32 %v12260_v48, %v10262_v58  ;;  %v2500_v37 = vmax.f32 %v2422_v33, 0.0  ;;  %v2668_v4 = vadd.f32 %v2636_v55, %v2535_v56  ;;  %v2694_v8 = vpack.c.bf16 %v2670_v25, %v2669_v6  ;;  %v12333_v56 = vld [vmem:[#allocation7 + $0xf8] sm:$0xff]   ;;  %v9086_v25 = vld [vmem:[#allocation5 + $0x160] sm:$0xff]  }
 0x6e1   :  { %v2424_v3 = vpop.f32.mrf.mxu1  ;;  %v2540_v38 = vmul.f32 %v12268_v0, %v2502_v13  ;;  %v2644_v63 = vmul.f32 %v8576_v23, %v12265_v62  ;;  %v8583_v26 = vunpack.c.l.bf16 %v9086_v25  ;;  %v8588_v13 = vunpack.c.h.bf16 %v9087_v35 }
 0x6e2   :  { %v2503_v39 = vmax.f32 %v2433_v1, 0.0  ;;  %v2425_v47 = vadd.f32 %v12260_v48, %v2424_v3  ;;  %v2693_v7 = vpack.c.bf16 %v2668_v4, %v2667_v36  ;;  %10382 = vmatpush3.bf16.msra.mxu0 %v11389_v2  ;;  %v2538_v14 = vmul.f32 %v12268_v0, %v2500_v37 }
 0x6e3   :  { %v10265_v43 = vpop.f32.mrf.mxu1  ;;  %10383 = vmatprep.subr.bf16.mxu0 %v11390_v29  ;;  %v2673_v49 = vadd.f32 %v2641_v24, %v2540_v38  ;;  %v8587_v37 = vunpack.c.l.bf16 %v9087_v35 }
 0x6e4   :  { %v2541_v9 = vmul.f32 %v12268_v0, %v2503_v39  ;;  %v2501_v12 = vmax.f32 %v2425_v47, 0.0  ;;  %10303 = vmatprep.mubr.bf16.mxu0 %v2693_v7  ;;  %v2446_v17 = vadd.f32 %v12260_v48, %v10265_v43  ;;  %v2671_v22 = vadd.f32 %v2639_v15, %v2538_v14 }
 0x6e5   :  { %v2437_v59 = vpop.f32.mrf.mxu1  ;;  %10304 = vmatmul.mubr.bf16.gmra.mxu0 %v2694_v8  ;;  %v8584_v8 = vunpack.c.h.bf16 %v9086_v25  ;;  %v2649_v38 = vmul.f32 %v8587_v37, %v12265_v62 }
 0x6e6   :  { %v2539_v44 = vmul.f32 %v12268_v0, %v2501_v12  ;;  %v2438_v32 = vadd.f32 %v12260_v48, %v2437_v59  ;;  %10384 = vmatpush3.bf16.msra.mxu0 %v11390_v29  ;;  %v2674_v30 = vadd.f32 %v2642_v10, %v2541_v9  ;;  %v2506_v50 = vmax.f32 %v2446_v17, 0.0 }
 0x6e7   :  { %v10266_v52 = vpop.f32.mrf.mxu1  ;;  %10385 = vmatprep.subr.bf16.mxu0 %v11391_v20  ;;  %v2650_v59 = vmul.f32 %v8588_v13, %v12265_v62  ;;  %v2647_v17 = vmul.f32 %v8583_v26, %v12265_v62  ;;  %v2648_v27 = vmul.f32 %v8584_v8, %v12265_v62 }
 0x6e8   :  { %v2449_v61 = vadd.f32 %v12260_v48, %v10266_v52  ;;  %v2504_v28 = vmax.f32 %v2438_v32, 0.0  ;;  %v2672_v5 = vadd.f32 %v2640_v16, %v2539_v44  ;;  %v2696_v41 = vpack.c.bf16 %v2674_v30, %v2673_v49  ;;  %v9088_v16 = vld [vmem:[#allocation5 + $0x170] sm:$0xff]  }
 0x6e9   :  { %v2440_v46 = vpop.f32.mrf.mxu1  ;;  %v2544_v1 = vmul.f32 %v12268_v0, %v2506_v50 }
 0x6ea   :  { %v2507_v11 = vmax.f32 %v2449_v61, 0.0  ;;  %v2441_v34 = vadd.f32 %v12260_v48, %v2440_v46  ;;  %v2695_v53 = vpack.c.bf16 %v2672_v5, %v2671_v22  ;;  %10386 = vmatpush3.bf16.msra.mxu0 %v11391_v20  ;;  %v2542_v33 = vmul.f32 %v12268_v0, %v2504_v28  ;;  %v9089_v61 = vld [vmem:[#allocation5 + $0x178] sm:$0xff]  }
 0x6eb   :  { %v10269_v51 = vpop.f32.mrf.mxu1  ;;  %10467 = vmatprep.subr.bf16.mxu0 %v12333_v56  ;;  %v2677_v9 = vadd.f32 %v2645_v31, %v2544_v1  ;;  %v8591_v20 = vunpack.c.l.bf16 %v9088_v16  ;;  %v8596_v28 = vunpack.c.h.bf16 %v9089_v61  ;;  %v8592_v46 = vunpack.c.h.bf16 %v9088_v16 }
 0x6ec   :  { %v2545_v54 = vmul.f32 %v12268_v0, %v2507_v11  ;;  %v2505_v55 = vmax.f32 %v2441_v34, 0.0  ;;  %10307 = vmatprep.mubr.bf16.mxu0 %v2695_v53  ;;  %v2462_v2 = vadd.f32 %v12260_v48, %v10269_v51  ;;  %v2675_v39 = vadd.f32 %v2643_v21, %v2542_v33 }
 0x6ed   :  { %v2453_v58 = vpop.f32.mrf.mxu1  ;;  %10308 = vmatmul.mubr.bf16.gmra.mxu0 %v2696_v41  ;;  %v8595_v11 = vunpack.c.l.bf16 %v9089_v61  ;;  %v2654_v35 = vmul.f32 %v8596_v28, %v12265_v62  ;;  %v2652_v33 = vmul.f32 %v8592_v46, %v12265_v62  ;;  %v11395_v46 = vld [vmem:[#allocation7 + $0xa8] sm:$0xff]  }
 0x6ee   :  { %v2543_v60 = vmul.f32 %v12268_v0, %v2505_v55  ;;  %v2454_v36 = vadd.f32 %v12260_v48, %v2453_v58  ;;  %v2678_v4 = vadd.f32 %v2646_v40, %v2545_v54  ;;  %v2510_v10 = vmax.f32 %v2462_v2, 0.0 }
 0x6ef   :  { %v10270_v3 = vpop.f32.mrf.mxu1  ;;  %v2651_v55 = vmul.f32 %v8591_v20, %v12265_v62 }
 0x6f0   :  { %v2465_v6 = vadd.f32 %v12260_v48, %v10270_v3  ;;  %v2508_v47 = vmax.f32 %v2454_v36, 0.0  ;;  %v2676_v7 = vadd.f32 %v2644_v63, %v2543_v60  ;;  %v2698_v14 = vpack.c.bf16 %v2678_v4, %v2677_v9 }
 0x6f1   :  { %v2456_v43 = vpop.f32.mrf.mxu1  ;;  %v2548_v52 = vmul.f32 %v12268_v0, %v2510_v10  ;;  %v2653_v60 = vmul.f32 %v8595_v11, %v12265_v62 }
 0x6f2   :  { %v2511_v12 = vmax.f32 %v2465_v6, 0.0  ;;  %v2457_v42 = vadd.f32 %v12260_v48, %v2456_v43  ;;  %v2697_v24 = vpack.c.bf16 %v2676_v7, %v2675_v39  ;;  %v2546_v44 = vmul.f32 %v12268_v0, %v2508_v47  ;;  %v12366_v47 = vld [vmem:[#allocation8 + $0x2] ss:$0 sm:$0xff] }
 0x6f3   :  { %v10273_v29 = vpop.f32.mrf.mxu1  ;;  %v2681_v53 = vadd.f32 %v2649_v38, %v2548_v52  ;;  %v11394_v52 = vld [vmem:[#allocation7 + $0xb0] sm:$0xff]  }
 0x6f4   :  { %v2549_v15 = vmul.f32 %v12268_v0, %v2511_v12  ;;  %v2509_v19 = vmax.f32 %v2457_v42, 0.0  ;;  %10311 = vmatprep.mubr.bf16.mxu0 %v2697_v24  ;;  %v2478_v18 = vadd.f32 %v12260_v48, %v10273_v29  ;;  %v2679_v50 = vadd.f32 %v2647_v17, %v2546_v44 }
 0x6f5   :  { %v2469_v32 = vpop.f32.mrf.mxu1  ;;  %10312 = vmatmul.mubr.bf16.gmra.mxu0 %v2698_v14 }
 0x6f6   :  { %v2547_v30 = vmul.f32 %v12268_v0, %v2509_v19  ;;  %v2470_v45 = vadd.f32 %v12260_v48, %v2469_v32  ;;  %v2682_v5 = vadd.f32 %v2650_v59, %v2549_v15  ;;  %v2514_v41 = vmax.f32 %v2478_v18, 0.0 }
 0x6f7   :  { %v10274_v22 = vpop.f32.mrf.mxu1 }
 0x6f8   :  { %v2512_v23 = vmax.f32 %v2470_v45, 0.0  ;;  %v2481_v49 = vadd.f32 %v12260_v48, %v10274_v22  ;;  %v2680_v51 = vadd.f32 %v2648_v27, %v2547_v30  ;;  %v2700_v21 = vpack.c.bf16 %v2682_v5, %v2681_v53 }
 0x6f9   :  { %v2472_v34 = vpop.f32.mrf.mxu1  ;;  %v2552_v1 = vmul.f32 %v12268_v0, %v2514_v41 }
 0x6fa   :  { %v2515_v54 = vmax.f32 %v2481_v49, 0.0  ;;  %v2473_v40 = vadd.f32 %v12260_v48, %v2472_v34  ;;  %v2699_v31 = vpack.c.bf16 %v2680_v51, %v2679_v50  ;;  %v2550_v58 = vmul.f32 %v12268_v0, %v2512_v23  ;;  %v11396_v51 = vld [vmem:[#allocation7 + $0xa0] sm:$0xff]  }
 0x6fb   :  { %v2685_v3 = vadd.f32 %v2653_v60, %v2552_v1 }
 0x6fc   :  { %v2553_v25 = vmul.f32 %v12268_v0, %v2515_v54  ;;  %v2513_v63 = vmax.f32 %v2473_v40, 0.0  ;;  %10315 = vmatprep.mubr.bf16.mxu0 %v2699_v31  ;;  %v2683_v2 = vadd.f32 %v2651_v55, %v2550_v58 }
 0x6fd   :  { %10316 = vmatmul.mubr.bf16.gmra.mxu0 %v2700_v21 }
 0x6fe   :  { %v2551_v48 = vmul.f32 %v12268_v0, %v2513_v63  ;;  %v2686_v36 = vadd.f32 %v2654_v35, %v2553_v25 }
 0x700   :  { %v2684_v37 = vadd.f32 %v2652_v33, %v2551_v48  ;;  %v2702_v26 = vpack.c.bf16 %v2686_v36, %v2685_v3  ;;  %v11397_v33 = vld [vmem:[#allocation7 + $0x98] sm:$0xff]  }
 0x702   :  { %v2701_v4 = vpack.c.bf16 %v2684_v37, %v2683_v2  ;;  %v11398_v2 = vld [vmem:[#allocation7 + $0x90] sm:$0xff]  }
 0x704   :  { %10319 = vmatprep.mubr.bf16.mxu0 %v2701_v4 }
 0x705   :  { %10320 = vmatmul.mubr.bf16.gmra.mxu0 %v2702_v26 }
 0x78d   :  { %v10293_v6 = vpop.f32.mrf.mxu0 }
 0x78e   :  { %v2746_v0 = vadd.f32 %v12366_v47, %v10293_v6 }
 0x78f   :  { %v2737_v13 = vpop.f32.mrf.mxu0 }
 0x790   :  { %v2738_v43 = vadd.f32 %v12366_v47, %v2737_v13  ;;  %v2866_v29 = vmax.f32 %v2746_v0, 0.0 }
 0x791   :  { %v10294_v39 = vpop.f32.mrf.mxu0 }
 0x792   :  { %v2749_v62 = vadd.f32 %v12366_v47, %v10294_v39  ;;  %v2864_v12 = vmax.f32 %v2738_v43, 0.0  ;;  %v11399_v39 = vld [vmem:[#allocation7 + $0x88] sm:$0xff]  }
 0x793   :  { %v2740_v7 = vpop.f32.mrf.mxu0 }
 0x794   :  { %v2741_v8 = vadd.f32 %v12366_v47, %v2740_v7  ;;  %v2867_v9 = vmax.f32 %v2749_v62, 0.0 }
 0x795   :  { %v10297_v10 = vpop.f32.mrf.mxu0 }
 0x796   :  { %v2865_v42 = vmax.f32 %v2741_v8, 0.0  ;;  %v2897_v15 = vpack.c.bf16 %v2867_v9, %v2866_v29  ;;  %v2762_v38 = vadd.f32 %v12366_v47, %v10297_v10 }
 0x797   :  { %v2753_v24 = vpop.f32.mrf.mxu0 }
 0x798   :  { %v2896_v14 = vpack.c.bf16 %v2865_v42, %v2864_v12  ;;  %v2754_v19 = vadd.f32 %v12366_v47, %v2753_v24  ;;  %v2870_v61 = vmax.f32 %v2762_v38, 0.0  ;;  %v11400_v12 = vld [vmem:[#allocation7 + $0x80] sm:$0xff]  }
 0x799   :  { %v10298_v59 = vpop.f32.mrf.mxu0 }
 0x79a   :  { %v2765_v16 = vadd.f32 %v12366_v47, %v10298_v59  ;;  %10339 = vmatprep.mubr.bf16.mxu1 %v2896_v14  ;;  %v2868_v30 = vmax.f32 %v2754_v19, 0.0 }
 0x79b   :  { %v2756_v44 = vpop.f32.mrf.mxu0  ;;  %10340 = vmatmul.mubr.bf16.vlgmr.msra.gmra.mxu1 %v2897_v15 }
 0x79c   :  { %v2757_v17 = vadd.f32 %v12366_v47, %v2756_v44  ;;  %10420 = vmatpush3.bf16.msra.mxu1 %v12245_v57  ;;  %v2871_v32 = vmax.f32 %v2765_v16, 0.0  ;;  %v12389_v16 = vld [vmem:[#allocation7 + $0x138] sm:$0xff]  }
 0x79d   :  { %v10301_v27 = vpop.f32.mrf.mxu0  ;;  %10421 = vmatprep.subr.bf16.mxu1 %v11394_v52 }
 0x79e   :  { %v2869_v18 = vmax.f32 %v2757_v17, 0.0  ;;  %v2899_v22 = vpack.c.bf16 %v2871_v32, %v2870_v61  ;;  %v2778_v57 = vadd.f32 %v12366_v47, %v10301_v27 }
 0x79f   :  { %v2769_v45 = vpop.f32.mrf.mxu0 }
 0x7a0   :  { %v2898_v20 = vpack.c.bf16 %v2869_v18, %v2868_v30  ;;  %10422 = vmatpush3.bf16.msra.mxu1 %v11394_v52  ;;  %v2770_v5 = vadd.f32 %v12366_v47, %v2769_v45  ;;  %v2874_v54 = vmax.f32 %v2778_v57, 0.0 }
 0x7a1   :  { %v10302_v28 = vpop.f32.mrf.mxu0  ;;  %10423 = vmatprep.subr.bf16.mxu1 %v11395_v46 }
 0x7a2   :  { %v2781_v23 = vadd.f32 %v12366_v47, %v10302_v28  ;;  %10343 = vmatprep.mubr.bf16.mxu1 %v2898_v20  ;;  %v2872_v53 = vmax.f32 %v2770_v5, 0.0 }
 0x7a3   :  { %v2772_v49 = vpop.f32.mrf.mxu0  ;;  %10344 = vmatmul.mubr.bf16.gmra.mxu1 %v2899_v22 }
 0x7a4   :  { %v2773_v50 = vadd.f32 %v12366_v47, %v2772_v49  ;;  %10424 = vmatpush3.bf16.msra.mxu1 %v11395_v46  ;;  %v2875_v11 = vmax.f32 %v2781_v23, 0.0 }
 0x7a5   :  { %v10305_v34 = vpop.f32.mrf.mxu0  ;;  %10425 = vmatprep.subr.bf16.mxu1 %v11396_v51 }
 0x7a6   :  { %v2873_v41 = vmax.f32 %v2773_v50, 0.0  ;;  %v2901_v35 = vpack.c.bf16 %v2875_v11, %v2874_v54  ;;  %v2794_v25 = vadd.f32 %v12366_v47, %v10305_v34 }
 0x7a7   :  { %v2785_v40 = vpop.f32.mrf.mxu0 }
 0x7a8   :  { %v2900_v55 = vpack.c.bf16 %v2873_v41, %v2872_v53  ;;  %10426 = vmatpush3.bf16.msra.mxu1 %v11396_v51  ;;  %v2786_v21 = vadd.f32 %v12366_v47, %v2785_v40  ;;  %v2878_v3 = vmax.f32 %v2794_v25, 0.0 }
 0x7a9   :  { %v10306_v31 = vpop.f32.mrf.mxu0  ;;  %10427 = vmatprep.subr.bf16.mxu1 %v11397_v33 }
 0x7aa   :  { %v2797_v58 = vadd.f32 %v12366_v47, %v10306_v31  ;;  %10347 = vmatprep.mubr.bf16.mxu1 %v2900_v55  ;;  %v2876_v36 = vmax.f32 %v2786_v21, 0.0 }
 0x7ab   :  { %v2788_v63 = vpop.f32.mrf.mxu0  ;;  %10348 = vmatmul.mubr.bf16.gmra.mxu1 %v2901_v35 }
 0x7ac   :  { %v2789_v1 = vadd.f32 %v12366_v47, %v2788_v63  ;;  %10428 = vmatpush3.bf16.msra.mxu1 %v11397_v33  ;;  %v2879_v60 = vmax.f32 %v2797_v58, 0.0 }
 0x7ad   :  { %v10309_v48 = vpop.f32.mrf.mxu0  ;;  %10429 = vmatprep.subr.bf16.mxu1 %v11398_v2 }
 0x7ae   :  { %v2877_v37 = vmax.f32 %v2789_v1, 0.0  ;;  %v2903_v6 = vpack.c.bf16 %v2879_v60, %v2878_v3  ;;  %v2810_v0 = vadd.f32 %v12366_v47, %v10309_v48 }
 0x7af   :  { %v2801_v4 = vpop.f32.mrf.mxu0 }
 0x7b0   :  { %v2902_v26 = vpack.c.bf16 %v2877_v37, %v2876_v36  ;;  %10430 = vmatpush3.bf16.msra.mxu1 %v11398_v2  ;;  %v2802_v43 = vadd.f32 %v12366_v47, %v2801_v4  ;;  %v2882_v24 = vmax.f32 %v2810_v0, 0.0 }
 0x7b1   :  { %v10310_v13 = vpop.f32.mrf.mxu0  ;;  %10431 = vmatprep.subr.bf16.mxu1 %v11399_v39 }
 0x7b2   :  { %v2813_v62 = vadd.f32 %v12366_v47, %v10310_v13  ;;  %10351 = vmatprep.mubr.bf16.mxu1 %v2902_v26  ;;  %v2880_v42 = vmax.f32 %v2802_v43, 0.0  ;;  %v12404_v26 = vld [vmem:[#allocation8 + $0x3] ss:$0 sm:$0xff] }
 0x7b3   :  { %v2804_v7 = vpop.f32.mrf.mxu0  ;;  %10352 = vmatmul.mubr.bf16.gmra.mxu1 %v2903_v6 }
 0x7b4   :  { %v2805_v8 = vadd.f32 %v12366_v47, %v2804_v7  ;;  %10432 = vmatpush3.bf16.msra.mxu1 %v11399_v39  ;;  %v2883_v9 = vmax.f32 %v2813_v62, 0.0 }
 0x7b5   :  { %v10313_v10 = vpop.f32.mrf.mxu0  ;;  %10433 = vmatprep.subr.bf16.mxu1 %v11400_v12 }
 0x7b6   :  { %v2881_v29 = vmax.f32 %v2805_v8, 0.0  ;;  %v2905_v59 = vpack.c.bf16 %v2883_v9, %v2882_v24  ;;  %v2826_v17 = vadd.f32 %v12366_v47, %v10313_v10 }
 0x7b7   :  { %v2817_v14 = vpop.f32.mrf.mxu0 }
 0x7b8   :  { %v2904_v15 = vpack.c.bf16 %v2881_v29, %v2880_v42  ;;  %10434 = vmatpush3.bf16.msra.mxu1 %v11400_v12  ;;  %v2818_v38 = vadd.f32 %v12366_v47, %v2817_v14  ;;  %v2886_v45 = vmax.f32 %v2826_v17, 0.0  ;;  %v11403_v17 = vld [vmem:[#allocation7 + $0xf0] sm:$0xff]  }
 0x7b9   :  { %v10314_v19 = vpop.f32.mrf.mxu0  ;;  %10515 = vmatprep.subr.bf16.mxu1 %v12389_v16 }
 0x7ba   :  { %v2829_v44 = vadd.f32 %v12366_v47, %v10314_v19  ;;  %10355 = vmatprep.mubr.bf16.mxu1 %v2904_v15  ;;  %v2884_v18 = vmax.f32 %v2818_v38, 0.0 }
 0x7bb   :  { %v2820_v32 = vpop.f32.mrf.mxu0  ;;  %10356 = vmatmul.mubr.bf16.gmra.mxu1 %v2905_v59 }
 0x7bc   :  { %v2821_v27 = vadd.f32 %v12366_v47, %v2820_v32  ;;  %v2887_v52 = vmax.f32 %v2829_v44, 0.0 }
 0x7bd   :  { %v10317_v30 = vpop.f32.mrf.mxu0 }
 0x7be   :  { %v2885_v61 = vmax.f32 %v2821_v27, 0.0  ;;  %v2907_v28 = vpack.c.bf16 %v2887_v52, %v2886_v45  ;;  %v2842_v57 = vadd.f32 %v12366_v47, %v10317_v30 }
 0x7bf   :  { %v2833_v20 = vpop.f32.mrf.mxu0 }
 0x7c0   :  { %v2906_v22 = vpack.c.bf16 %v2885_v61, %v2884_v18  ;;  %v2834_v5 = vadd.f32 %v12366_v47, %v2833_v20  ;;  %v2890_v41 = vmax.f32 %v2842_v57, 0.0  ;;  %v11404_v20 = vld [vmem:[#allocation7 + $0xe8] sm:$0xff]  }
 0x7c1   :  { %v10318_v46 = vpop.f32.mrf.mxu0 }
 0x7c2   :  { %v2845_v23 = vadd.f32 %v12366_v47, %v10318_v46  ;;  %10359 = vmatprep.mubr.bf16.mxu1 %v2906_v22  ;;  %v2888_v51 = vmax.f32 %v2834_v5, 0.0 }
 0x7c3   :  { %v2836_v49 = vpop.f32.mrf.mxu0  ;;  %10360 = vmatmul.mubr.bf16.gmra.mxu1 %v2907_v28 }
 0x7c4   :  { %v2837_v50 = vadd.f32 %v12366_v47, %v2836_v49  ;;  %v2891_v11 = vmax.f32 %v2845_v23, 0.0  ;;  %v11405_v49 = vld [vmem:[#allocation7 + $0xe0] sm:$0xff]  }
 0x7c5   :  { %v10321_v34 = vpop.f32.mrf.mxu0 }
 0x7c6   :  { %v2889_v53 = vmax.f32 %v2837_v50, 0.0  ;;  %v2909_v55 = vpack.c.bf16 %v2891_v11, %v2890_v41  ;;  %v2858_v21 = vadd.f32 %v12366_v47, %v10321_v34 }
 0x7c7   :  { %v2849_v54 = vpop.f32.mrf.mxu0 }
 0x7c8   :  { %v2908_v40 = vpack.c.bf16 %v2889_v53, %v2888_v51  ;;  %v2850_v31 = vadd.f32 %v12366_v47, %v2849_v54  ;;  %v2894_v48 = vmax.f32 %v2858_v21, 0.0 }
 0x7c9   :  { %v10322_v35 = vpop.f32.mrf.mxu0 }
 0x7ca   :  { %v2861_v33 = vadd.f32 %v12366_v47, %v10322_v35  ;;  %10363 = vmatprep.mubr.bf16.mxu1 %v2908_v40  ;;  %v2892_v1 = vmax.f32 %v2850_v31, 0.0  ;;  %v11406_v40 = vld [vmem:[#allocation7 + $0xd8] sm:$0xff]  }
 0x7cb   :  { %v2852_v58 = vpop.f32.mrf.mxu0  ;;  %10364 = vmatmul.mubr.bf16.gmra.mxu1 %v2909_v55 }
 0x7cc   :  { %v2853_v25 = vadd.f32 %v12366_v47, %v2852_v58  ;;  %v2895_v63 = vmax.f32 %v2861_v33, 0.0 }
 0x7ce   :  { %v2893_v60 = vmax.f32 %v2853_v25, 0.0  ;;  %v2911_v36 = vpack.c.bf16 %v2895_v63, %v2894_v48  ;;  %v11407_v63 = vld [vmem:[#allocation7 + $0xd0] sm:$0xff]  }
 0x7d0   :  { %v2910_v2 = vpack.c.bf16 %v2893_v60, %v2892_v1 }
 0x7d2   :  { %10367 = vmatprep.mubr.bf16.mxu1 %v2910_v2 }
 0x7d3   :  { %10368 = vmatmul.mubr.bf16.gmra.mxu1 %v2911_v36 }
 0x85b   :  { %v10341_v37 = vpop.f32.mrf.mxu1 }
 0x85c   :  { %v2955_v39 = vadd.f32 %v12404_v26, %v10341_v37 }
 0x85d   :  { %v2946_v3 = vpop.f32.mrf.mxu1 }
 0x85e   :  { %v2947_v6 = vadd.f32 %v12404_v26, %v2946_v3  ;;  %v3075_v9 = vmax.f32 %v2955_v39, 0.0 }
 0x85f   :  { %v10342_v4 = vpop.f32.mrf.mxu1 }
 0x860   :  { %v2958_v13 = vadd.f32 %v12404_v26, %v10342_v4  ;;  %v3073_v7 = vmax.f32 %v2947_v6, 0.0  ;;  %v11408_v4 = vld [vmem:[#allocation7 + $0xc8] sm:$0xff]  }
 0x861   :  { %v2949_v47 = vpop.f32.mrf.mxu1 }
 0x862   :  { %v2950_v43 = vadd.f32 %v12404_v26, %v2949_v47  ;;  %v3076_v62 = vmax.f32 %v2958_v13, 0.0 }
 0x863   :  { %v10345_v0 = vpop.f32.mrf.mxu1 }
 0x864   :  { %v3074_v8 = vmax.f32 %v2950_v43, 0.0  ;;  %v3106_v42 = vpack.c.bf16 %v3076_v62, %v3075_v9  ;;  %v2971_v15 = vadd.f32 %v12404_v26, %v10345_v0 }
 0x865   :  { %v2962_v10 = vpop.f32.mrf.mxu1 }
 0x866   :  { %v3105_v12 = vpack.c.bf16 %v3074_v8, %v3073_v7  ;;  %v2963_v24 = vadd.f32 %v12404_v26, %v2962_v10  ;;  %v3079_v52 = vmax.f32 %v2971_v15, 0.0  ;;  %v11409_v7 = vld [vmem:[#allocation7 + $0xc0] sm:$0xff]  }
 0x867   :  { %v10346_v29 = vpop.f32.mrf.mxu1 }
 0x868   :  { %v2974_v14 = vadd.f32 %v12404_v26, %v10346_v29  ;;  %10387 = vmatprep.mubr.bf16.mxu0 %v3105_v12  ;;  %v3077_v32 = vmax.f32 %v2963_v24, 0.0 }
 0x869   :  { %v2965_v59 = vpop.f32.mrf.mxu1  ;;  %10388 = vmatmul.mubr.bf16.vlgmr.msra.gmra.mxu0 %v3106_v42 }
 0x86a   :  { %v2966_v19 = vadd.f32 %v12404_v26, %v2965_v59  ;;  %10468 = vmatpush3.bf16.msra.mxu0 %v12333_v56  ;;  %v3080_v38 = vmax.f32 %v2974_v14, 0.0  ;;  %v12427_v14 = vld [vmem:[#allocation7 + $0xb8] sm:$0xff]  }
 0x86b   :  { %v10349_v44 = vpop.f32.mrf.mxu1  ;;  %10469 = vmatprep.subr.bf16.mxu0 %v11403_v17 }
 0x86c   :  { %v3078_v27 = vmax.f32 %v2966_v19, 0.0  ;;  %v3108_v61 = vpack.c.bf16 %v3080_v38, %v3079_v52  ;;  %v2987_v56 = vadd.f32 %v12404_v26, %v10349_v44 }
 0x86d   :  { %v2978_v30 = vpop.f32.mrf.mxu1 }
 0x86e   :  { %v3107_v18 = vpack.c.bf16 %v3078_v27, %v3077_v32  ;;  %10470 = vmatpush3.bf16.msra.mxu0 %v11403_v17  ;;  %v2979_v22 = vadd.f32 %v12404_v26, %v2978_v30  ;;  %v3083_v34 = vmax.f32 %v2987_v56, 0.0 }
 0x86f   :  { %v10350_v45 = vpop.f32.mrf.mxu1  ;;  %10471 = vmatprep.subr.bf16.mxu0 %v11404_v20 }
 0x870   :  { %v2990_v28 = vadd.f32 %v12404_v26, %v10350_v45  ;;  %10391 = vmatprep.mubr.bf16.mxu0 %v3107_v18  ;;  %v3081_v50 = vmax.f32 %v2979_v22, 0.0 }
 0x871   :  { %v2981_v46 = vpop.f32.mrf.mxu1  ;;  %10392 = vmatmul.mubr.bf16.gmra.mxu0 %v3108_v61 }
 0x872   :  { %v2982_v5 = vadd.f32 %v12404_v26, %v2981_v46  ;;  %10472 = vmatpush3.bf16.msra.mxu0 %v11404_v20  ;;  %v3084_v23 = vmax.f32 %v2990_v28, 0.0 }
 0x873   :  { %v10353_v57 = vpop.f32.mrf.mxu1  ;;  %10473 = vmatprep.subr.bf16.mxu0 %v11405_v49 }
 0x874   :  { %v3082_v11 = vmax.f32 %v2982_v5, 0.0  ;;  %v3110_v41 = vpack.c.bf16 %v3084_v23, %v3083_v34  ;;  %v3003_v31 = vadd.f32 %v12404_v26, %v10353_v57 }
 0x875   :  { %v2994_v51 = vpop.f32.mrf.mxu1 }
 0x876   :  { %v3109_v53 = vpack.c.bf16 %v3082_v11, %v3081_v50  ;;  %10474 = vmatpush3.bf16.msra.mxu0 %v11405_v49  ;;  %v2995_v55 = vadd.f32 %v12404_v26, %v2994_v51  ;;  %v3087_v48 = vmax.f32 %v3003_v31, 0.0 }
 0x877   :  { %v10354_v54 = vpop.f32.mrf.mxu1  ;;  %10475 = vmatprep.subr.bf16.mxu0 %v11406_v40 }
 0x878   :  { %v3006_v35 = vadd.f32 %v12404_v26, %v10354_v54  ;;  %10395 = vmatprep.mubr.bf16.mxu0 %v3109_v53  ;;  %v3085_v1 = vmax.f32 %v2995_v55, 0.0 }
 0x879   :  { %v2997_v33 = vpop.f32.mrf.mxu1  ;;  %10396 = vmatmul.mubr.bf16.gmra.mxu0 %v3110_v41 }
 0x87a   :  { %v2998_v21 = vadd.f32 %v12404_v26, %v2997_v33  ;;  %10476 = vmatpush3.bf16.msra.mxu0 %v11406_v40  ;;  %v3088_v58 = vmax.f32 %v3006_v35, 0.0 }
 0x87b   :  { %v10357_v25 = vpop.f32.mrf.mxu1  ;;  %10477 = vmatprep.subr.bf16.mxu0 %v11407_v63 }
 0x87c   :  { %v3086_v60 = vmax.f32 %v2998_v21, 0.0  ;;  %v3112_v37 = vpack.c.bf16 %v3088_v58, %v3087_v48  ;;  %v3019_v39 = vadd.f32 %v12404_v26, %v10357_v25 }
 0x87d   :  { %v3010_v2 = vpop.f32.mrf.mxu1 }
 0x87e   :  { %v3111_v36 = vpack.c.bf16 %v3086_v60, %v3085_v1  ;;  %10478 = vmatpush3.bf16.msra.mxu0 %v11407_v63  ;;  %v3011_v6 = vadd.f32 %v12404_v26, %v3010_v2  ;;  %v3091_v10 = vmax.f32 %v3019_v39, 0.0  ;;  %v12442_v2 = vld [vmem:[#allocation8 + $0x4] ss:$0 sm:$0xff] }
 0x87f   :  { %v10358_v3 = vpop.f32.mrf.mxu1  ;;  %10479 = vmatprep.subr.bf16.mxu0 %v11408_v4 }
 0x880   :  { %v3022_v13 = vadd.f32 %v12404_v26, %v10358_v3  ;;  %10399 = vmatprep.mubr.bf16.mxu0 %v3111_v36  ;;  %v3089_v8 = vmax.f32 %v3011_v6, 0.0 }
 0x881   :  { %v3013_v47 = vpop.f32.mrf.mxu1  ;;  %10400 = vmatmul.mubr.bf16.gmra.mxu0 %v3112_v37  ;;  %v9090_v37 = vld [vmem:[#allocation5 + $0x188] sm:$0xff]  }
 0x882   :  { %v3014_v43 = vadd.f32 %v12404_v26, %v3013_v47  ;;  %10480 = vmatpush3.bf16.msra.mxu0 %v11408_v4  ;;  %v3092_v62 = vmax.f32 %v3022_v13, 0.0  ;;  %v8598_v4 = vld [vmem:[#allocation5 + $0x180] sm:$0xff]   ;;  %v8604_v13 = vunpack.c.h.bf16 %v9090_v37  ;;  %v8603_v39 = vunpack.c.l.bf16 %v9090_v37 }
 0x883   :  { %v10361_v0 = vpop.f32.mrf.mxu1  ;;  %10481 = vmatprep.subr.bf16.mxu0 %v11409_v7 }
 0x884   :  { %v3090_v9 = vmax.f32 %v3014_v43, 0.0  ;;  %v3114_v29 = vpack.c.bf16 %v3092_v62, %v3091_v10  ;;  %v3035_v19 = vadd.f32 %v12404_v26, %v10361_v0  ;;  %v8599_v43 = vunpack.c.l.bf16 %v8598_v4 }
 0x885   :  { %v3026_v12 = vpop.f32.mrf.mxu1  ;;  %v8600_v0 = vunpack.c.h.bf16 %v8598_v4 }
 0x886   :  { %v3113_v42 = vpack.c.bf16 %v3090_v9, %v3089_v8  ;;  %10482 = vmatpush3.bf16.msra.mxu0 %v11409_v7  ;;  %v3027_v15 = vadd.f32 %v12404_v26, %v3026_v12  ;;  %v3095_v30 = vmax.f32 %v3035_v19, 0.0  ;;  %v12447_v8 = vld [vmem:[#allocation8 + $0x12] ss:$0 sm:$0xff]  ;;  %v12450_v12 = vld [vmem:[#allocation8 + $0x8] ss:$0 sm:$0xff] }
 0x887   :  { %v10362_v24 = vpop.f32.mrf.mxu1  ;;  %10563 = vmatprep.subr.bf16.mxu0 %v12427_v14  ;;  %v3423_v19 = vmul.f32 %v8603_v39, %v12447_v8 }
 0x888   :  { %v3038_v59 = vadd.f32 %v12404_v26, %v10362_v24  ;;  %10403 = vmatprep.mubr.bf16.mxu0 %v3113_v42  ;;  %v3093_v27 = vmax.f32 %v3027_v15, 0.0  ;;  %v3424_v24 = vmul.f32 %v8604_v13, %v12447_v8 }
 0x889   :  { %v3029_v38 = vpop.f32.mrf.mxu1  ;;  %10404 = vmatmul.mubr.bf16.gmra.mxu0 %v3114_v29 }
 0x88a   :  { %v3030_v44 = vadd.f32 %v12404_v26, %v3029_v38  ;;  %v3096_v17 = vmax.f32 %v3038_v59, 0.0  ;;  %v9092_v59 = vld [vmem:[#allocation5 + $0x198] sm:$0xff]  }
 0x88b   :  { %v10365_v32 = vpop.f32.mrf.mxu1 }
 0x88c   :  { %v3094_v52 = vmax.f32 %v3030_v44, 0.0  ;;  %v3116_v45 = vpack.c.bf16 %v3096_v17, %v3095_v30  ;;  %v3051_v56 = vadd.f32 %v12404_v26, %v10365_v32  ;;  %v3421_v44 = vmul.f32 %v8599_v43, %v12447_v8  ;;  %v9091_v32 = vld [vmem:[#allocation5 + $0x190] sm:$0xff]  }
 0x88d   :  { %v3042_v18 = vpop.f32.mrf.mxu1  ;;  %v11412_v43 = vld [vmem:[#allocation7 + $0x130] sm:$0xff]  }
 0x88e   :  { %v3115_v61 = vpack.c.bf16 %v3094_v52, %v3093_v27  ;;  %v3043_v22 = vadd.f32 %v12404_v26, %v3042_v18  ;;  %v3099_v11 = vmax.f32 %v3051_v56, 0.0  ;;  %v3422_v27 = vmul.f32 %v8600_v0, %v12447_v8 }
 0x88f   :  { %v10366_v20 = vpop.f32.mrf.mxu1 }
 0x890   :  { %v3054_v28 = vadd.f32 %v12404_v26, %v10366_v20  ;;  %10407 = vmatprep.mubr.bf16.mxu0 %v3115_v61  ;;  %v3097_v49 = vmax.f32 %v3043_v22, 0.0 }
 0x891   :  { %v3045_v46 = vpop.f32.mrf.mxu1  ;;  %10408 = vmatmul.mubr.bf16.gmra.mxu0 %v3116_v45  ;;  %v8611_v45 = vunpack.c.l.bf16 %v9092_v59 }
 0x892   :  { %v3046_v5 = vadd.f32 %v12404_v26, %v3045_v46  ;;  %v3100_v23 = vmax.f32 %v3054_v28, 0.0  ;;  %v8607_v28 = vunpack.c.l.bf16 %v9091_v32  ;;  %v8612_v46 = vunpack.c.h.bf16 %v9092_v59 }
 0x893   :  { %v10369_v57 = vpop.f32.mrf.mxu1 }
 0x894   :  { %v3098_v50 = vmax.f32 %v3046_v5, 0.0  ;;  %v3118_v53 = vpack.c.bf16 %v3100_v23, %v3099_v11  ;;  %v3067_v55 = vadd.f32 %v12404_v26, %v10369_v57 }
 0x895   :  { %v3058_v34 = vpop.f32.mrf.mxu1 }
 0x896   :  { %v3117_v51 = vpack.c.bf16 %v3098_v50, %v3097_v49  ;;  %v3059_v54 = vadd.f32 %v12404_v26, %v3058_v34  ;;  %v3103_v25 = vmax.f32 %v3067_v55, 0.0  ;;  %v8608_v50 = vunpack.c.h.bf16 %v9091_v32  ;;  %v9096_v32 = vld [vmem:[#allocation5 + $0x1b8] sm:$0xff]  }
 0x897   :  { %v10370_v41 = vpop.f32.mrf.mxu1 }
 0x898   :  { %v3070_v40 = vadd.f32 %v12404_v26, %v10370_v41  ;;  %10411 = vmatprep.mubr.bf16.mxu0 %v3117_v51  ;;  %v3101_v21 = vmax.f32 %v3059_v54, 0.0 }
 0x899   :  { %v3061_v35 = vpop.f32.mrf.mxu1  ;;  %10412 = vmatmul.mubr.bf16.gmra.mxu0 %v3118_v53 }
 0x89a   :  { %v3062_v31 = vadd.f32 %v12404_v26, %v3061_v35  ;;  %v3104_v33 = vmax.f32 %v3070_v40, 0.0  ;;  %v3428_v35 = vmul.f32 %v8612_v46, %v12447_v8 }
 0x89c   :  { %v3102_v58 = vmax.f32 %v3062_v31, 0.0  ;;  %v3120_v1 = vpack.c.bf16 %v3104_v33, %v3103_v25  ;;  %v9094_v33 = vld [vmem:[#allocation5 + $0x1a8] sm:$0xff]   ;;  %v3425_v25 = vmul.f32 %v8607_v28, %v12447_v8 }
 0x89d   :  { %v8619_v4 = vunpack.c.l.bf16 %v9094_v33 }
 0x89e   :  { %v3119_v63 = vpack.c.bf16 %v3102_v58, %v3101_v21  ;;  %v3427_v21 = vmul.f32 %v8611_v45, %v12447_v8  ;;  %v9095_v45 = vld [vmem:[#allocation5 + $0x1b0] sm:$0xff]  }
 0x8a0   :  { %10415 = vmatprep.mubr.bf16.mxu0 %v3119_v63 }
 0x8a1   :  { %10416 = vmatmul.mubr.bf16.gmra.mxu0 %v3120_v1  ;;  %v9093_v1 = vld [vmem:[#allocation5 + $0x1a0] sm:$0xff]  }
 0x8a2   :  { %v8615_v13 = vunpack.c.l.bf16 %v9093_v1 }
 0x929   :  { %v10389_v60 = vpop.f32.mrf.mxu0 }
 0x92a   :  { %v3164_v36 = vadd.f32 %v12442_v2, %v10389_v60  ;;  %v3426_v60 = vmul.f32 %v8608_v50, %v12447_v8 }
 0x92b   :  { %v3155_v48 = vpop.f32.mrf.mxu0 }
 0x92c   :  { %v3156_v3 = vadd.f32 %v12442_v2, %v3155_v48  ;;  %v3284_v7 = vmax.f32 %v3164_v36, 0.0 }
 0x92d   :  { %v10390_v6 = vpop.f32.mrf.mxu0 }
 0x92e   :  { %v3167_v26 = vadd.f32 %v12442_v2, %v10390_v6  ;;  %v3282_v47 = vmax.f32 %v3156_v3, 0.0  ;;  %v3322_v52 = vmul.f32 %v12450_v12, %v3284_v7 }
 0x92f   :  { %v3158_v62 = vpop.f32.mrf.mxu0 }
 0x930   :  { %v3285_v9 = vmax.f32 %v3167_v26, 0.0  ;;  %v3159_v10 = vadd.f32 %v12442_v2, %v3158_v62  ;;  %v3320_v38 = vmul.f32 %v12450_v12, %v3282_v47  ;;  %v3455_v11 = vadd.f32 %v3423_v19, %v3322_v52 }
 0x931   :  { %v10393_v42 = vpop.f32.mrf.mxu0  ;;  %v8620_v47 = vunpack.c.h.bf16 %v9094_v33  ;;  %v3431_v52 = vmul.f32 %v8619_v4, %v12447_v8 }
 0x932   :  { %v3323_v29 = vmul.f32 %v12450_v12, %v3285_v9  ;;  %v3283_v15 = vmax.f32 %v3159_v10, 0.0  ;;  %v3180_v18 = vadd.f32 %v12442_v2, %v10393_v42  ;;  %v3453_v5 = vadd.f32 %v3421_v44, %v3320_v38 }
 0x933   :  { %v3171_v17 = vpop.f32.mrf.mxu0  ;;  %v8616_v10 = vunpack.c.h.bf16 %v9093_v1  ;;  %v3432_v44 = vmul.f32 %v8620_v47, %v12447_v8 }
 0x934   :  { %v3321_v30 = vmul.f32 %v12450_v12, %v3283_v15  ;;  %v3172_v61 = vadd.f32 %v12442_v2, %v3171_v17  ;;  %v3456_v22 = vadd.f32 %v3424_v24, %v3323_v29  ;;  %v3288_v34 = vmax.f32 %v3180_v18, 0.0 }
 0x935   :  { %v10394_v20 = vpop.f32.mrf.mxu0  ;;  %v3429_v18 = vmul.f32 %v8615_v13, %v12447_v8 }
 0x936   :  { %v3183_v56 = vadd.f32 %v12442_v2, %v10394_v20  ;;  %v3286_v23 = vmax.f32 %v3172_v61, 0.0  ;;  %v3454_v49 = vadd.f32 %v3422_v27, %v3321_v30  ;;  %v3486_v40 = vpack.c.bf16 %v3456_v22, %v3455_v11  ;;  %v11413_v27 = vld [vmem:[#allocation7 + $0x128] sm:$0xff]  }
 0x937   :  { %v3174_v57 = vpop.f32.mrf.mxu0  ;;  %v3326_v48 = vmul.f32 %v12450_v12, %v3288_v34  ;;  %v3430_v20 = vmul.f32 %v8616_v10, %v12447_v8  ;;  %v8628_v11 = vunpack.c.h.bf16 %v9096_v32  ;;  %v11414_v34 = vld [vmem:[#allocation7 + $0x120] sm:$0xff]  }
 0x938   :  { %v3289_v51 = vmax.f32 %v3183_v56, 0.0  ;;  %v3175_v53 = vadd.f32 %v12442_v2, %v3174_v57  ;;  %v3485_v54 = vpack.c.bf16 %v3454_v49, %v3453_v5  ;;  %v3324_v58 = vmul.f32 %v12450_v12, %v3286_v23 }
 0x939   :  { %v10397_v41 = vpop.f32.mrf.mxu0  ;;  %v3459_v42 = vadd.f32 %v3427_v21, %v3326_v48  ;;  %v8627_v5 = vunpack.c.l.bf16 %v9096_v32  ;;  %v8623_v49 = vunpack.c.l.bf16 %v9095_v45  ;;  %v3436_v1 = vmul.f32 %v8628_v11, %v12447_v8  ;;  %v9098_v48 = vld [vmem:[#allocation5 + $0x1c8] sm:$0xff]  }
 0x93a   :  { %v3327_v55 = vmul.f32 %v12450_v12, %v3289_v51  ;;  %v3287_v31 = vmax.f32 %v3175_v53, 0.0  ;;  %10435 = vmatprep.mubr.bf16.mxu1 %v3485_v54  ;;  %v3196_v37 = vadd.f32 %v12442_v2, %v10397_v41  ;;  %v3457_v62 = vadd.f32 %v3425_v25, %v3324_v58 }
 0x93b   :  { %v3187_v63 = vpop.f32.mrf.mxu0  ;;  %10436 = vmatmul.mubr.bf16.vlgmr.msra.gmra.mxu1 %v3486_v40  ;;  %v8624_v40 = vunpack.c.h.bf16 %v9095_v45  ;;  %v3433_v4 = vmul.f32 %v8623_v49, %v12447_v8 }
 0x93c   :  { %v3325_v36 = vmul.f32 %v12450_v12, %v3287_v31  ;;  %v3188_v3 = vadd.f32 %v12442_v2, %v3187_v63  ;;  %10516 = vmatpush3.bf16.msra.mxu1 %v12389_v16  ;;  %v3460_v26 = vadd.f32 %v3428_v35, %v3327_v55  ;;  %v3292_v29 = vmax.f32 %v3196_v37, 0.0 }
 0x93d   :  { %v10398_v6 = vpop.f32.mrf.mxu0  ;;  %10517 = vmatprep.subr.bf16.mxu1 %v11412_v43  ;;  %v3435_v37 = vmul.f32 %v8627_v5, %v12447_v8  ;;  %v3434_v13 = vmul.f32 %v8624_v40, %v12447_v8 }
 0x93e   :  { %v3199_v39 = vadd.f32 %v12442_v2, %v10398_v6  ;;  %v3290_v0 = vmax.f32 %v3188_v3, 0.0  ;;  %v3458_v9 = vadd.f32 %v3426_v60, %v3325_v36  ;;  %v3488_v16 = vpack.c.bf16 %v3460_v26, %v3459_v42  ;;  %v11415_v36 = vld [vmem:[#allocation7 + $0x118] sm:$0xff]   ;;  %v9097_v26 = vld [vmem:[#allocation5 + $0x1c0] sm:$0xff]  }
 0x93f   :  { %v3190_v7 = vpop.f32.mrf.mxu0  ;;  %v3330_v22 = vmul.f32 %v12450_v12, %v3292_v29  ;;  %v8631_v10 = vunpack.c.l.bf16 %v9097_v26  ;;  %v8636_v29 = vunpack.c.h.bf16 %v9098_v48 }
 0x940   :  { %v3293_v24 = vmax.f32 %v3199_v39, 0.0  ;;  %v3191_v15 = vadd.f32 %v12442_v2, %v3190_v7  ;;  %v3487_v19 = vpack.c.bf16 %v3458_v9, %v3457_v62  ;;  %10518 = vmatpush3.bf16.msra.mxu1 %v11412_v43  ;;  %v3328_v30 = vmul.f32 %v12450_v12, %v3290_v0 }
 0x941   :  { %v10401_v59 = vpop.f32.mrf.mxu0  ;;  %10519 = vmatprep.subr.bf16.mxu1 %v11413_v27  ;;  %v3463_v55 = vadd.f32 %v3431_v52, %v3330_v22  ;;  %v8635_v0 = vunpack.c.l.bf16 %v9098_v48  ;;  %v3440_v45 = vmul.f32 %v8636_v29, %v12447_v8  ;;  %v9100_v22 = vld [vmem:[#allocation5 + $0x1d8] sm:$0xff]   ;;  %v3437_v5 = vmul.f32 %v8631_v10, %v12447_v8 }
 0x942   :  { %v3331_v38 = vmul.f32 %v12450_v12, %v3293_v24  ;;  %v3291_v17 = vmax.f32 %v3191_v15, 0.0  ;;  %10439 = vmatprep.mubr.bf16.mxu1 %v3487_v19  ;;  %v3212_v56 = vadd.f32 %v12442_v2, %v10401_v59  ;;  %v3461_v51 = vadd.f32 %v3429_v18, %v3328_v30  ;;  %v11416_v24 = vld [vmem:[#allocation7 + $0x110] sm:$0xff]  }
 0x943   :  { %v3203_v61 = vpop.f32.mrf.mxu0  ;;  %10440 = vmatmul.mubr.bf16.gmra.mxu1 %v3488_v16 }
 0x944   :  { %v3329_v28 = vmul.f32 %v12450_v12, %v3291_v17  ;;  %v3204_v46 = vadd.f32 %v12442_v2, %v3203_v61  ;;  %10520 = vmatpush3.bf16.msra.mxu1 %v11413_v27  ;;  %v3464_v57 = vadd.f32 %v3432_v44, %v3331_v38  ;;  %v3296_v35 = vmax.f32 %v3212_v56, 0.0 }
 0x945   :  { %v10402_v23 = vpop.f32.mrf.mxu0  ;;  %10521 = vmatprep.subr.bf16.mxu1 %v11414_v34  ;;  %v8632_v38 = vunpack.c.h.bf16 %v9097_v26  ;;  %v3439_v56 = vmul.f32 %v8635_v0, %v12447_v8 }
 0x946   :  { %v3215_v50 = vadd.f32 %v12442_v2, %v10402_v23  ;;  %v3294_v53 = vmax.f32 %v3204_v46, 0.0  ;;  %v3462_v54 = vadd.f32 %v3430_v20, %v3329_v28  ;;  %v3490_v25 = vpack.c.bf16 %v3464_v57, %v3463_v55  ;;  %v11417_v28 = vld [vmem:[#allocation7 + $0x108] sm:$0xff]   ;;  %v9099_v57 = vld [vmem:[#allocation5 + $0x1d0] sm:$0xff]  }
 0x947   :  { %v3206_v41 = vpop.f32.mrf.mxu0  ;;  %v3334_v39 = vmul.f32 %v12450_v12, %v3296_v35  ;;  %v3438_v49 = vmul.f32 %v8632_v38, %v12447_v8  ;;  %v8639_v40 = vunpack.c.l.bf16 %v9099_v57  ;;  %v8644_v35 = vunpack.c.h.bf16 %v9100_v22 }
 0x948   :  { %v3297_v31 = vmax.f32 %v3215_v50, 0.0  ;;  %v3207_v33 = vadd.f32 %v12442_v2, %v3206_v41  ;;  %v3489_v58 = vpack.c.bf16 %v3462_v54, %v3461_v51  ;;  %10522 = vmatpush3.bf16.msra.mxu1 %v11414_v34  ;;  %v3332_v3 = vmul.f32 %v12450_v12, %v3294_v53 }
 0x949   :  { %v10405_v21 = vpop.f32.mrf.mxu0  ;;  %10523 = vmatprep.subr.bf16.mxu1 %v11415_v36  ;;  %v3467_v44 = vadd.f32 %v3435_v37, %v3334_v39  ;;  %v8643_v53 = vunpack.c.l.bf16 %v9100_v22  ;;  %v3444_v26 = vmul.f32 %v8644_v35, %v12447_v8  ;;  %v9102_v39 = vld [vmem:[#allocation5 + $0x1e8] sm:$0xff]   ;;  %v3441_v0 = vmul.f32 %v8639_v40, %v12447_v8 }
 0x94a   :  { %v3335_v63 = vmul.f32 %v12450_v12, %v3297_v31  ;;  %v3295_v60 = vmax.f32 %v3207_v33, 0.0  ;;  %10443 = vmatprep.mubr.bf16.mxu1 %v3489_v58  ;;  %v3228_v43 = vadd.f32 %v12442_v2, %v10405_v21  ;;  %v3465_v15 = vadd.f32 %v3433_v4, %v3332_v3  ;;  %v11418_v31 = vld [vmem:[#allocation7 + $0x100] sm:$0xff]  }
 0x94b   :  { %v3219_v6 = vpop.f32.mrf.mxu0  ;;  %10444 = vmatmul.mubr.bf16.gmra.mxu1 %v3490_v25 }
 0x94c   :  { %v3333_v47 = vmul.f32 %v12450_v12, %v3295_v60  ;;  %v3220_v62 = vadd.f32 %v12442_v2, %v3219_v6  ;;  %10524 = vmatpush3.bf16.msra.mxu1 %v11415_v36  ;;  %v3468_v9 = vadd.f32 %v3436_v1, %v3335_v63  ;;  %v3300_v17 = vmax.f32 %v3228_v43, 0.0 }
 0x94d   :  { %v10406_v7 = vpop.f32.mrf.mxu0  ;;  %10525 = vmatprep.subr.bf16.mxu1 %v11416_v24  ;;  %v8640_v63 = vunpack.c.h.bf16 %v9099_v57  ;;  %v3443_v43 = vmul.f32 %v8643_v53, %v12447_v8 }
 0x94e   :  { %v3231_v42 = vadd.f32 %v12442_v2, %v10406_v7  ;;  %v3298_v59 = vmax.f32 %v3220_v62, 0.0  ;;  %v3466_v16 = vadd.f32 %v3434_v13, %v3333_v47  ;;  %v3492_v18 = vpack.c.bf16 %v3468_v9, %v3467_v44  ;;  %v12515_v47 = vld [vmem:[#allocation7 + $0xf8] sm:$0xff]   ;;  %v9101_v9 = vld [vmem:[#allocation5 + $0x1e0] sm:$0xff]  }
 0x94f   :  { %v3222_v19 = vpop.f32.mrf.mxu0  ;;  %v3338_v50 = vmul.f32 %v12450_v12, %v3300_v17  ;;  %v3442_v10 = vmul.f32 %v8640_v63, %v12447_v8  ;;  %v8647_v38 = vunpack.c.l.bf16 %v9101_v9  ;;  %v8652_v17 = vunpack.c.h.bf16 %v9102_v39 }
 0x950   :  { %v3301_v32 = vmax.f32 %v3231_v42, 0.0  ;;  %v3223_v27 = vadd.f32 %v12442_v2, %v3222_v19  ;;  %v3491_v30 = vpack.c.bf16 %v3466_v16, %v3465_v15  ;;  %10526 = vmatpush3.bf16.msra.mxu1 %v11416_v24  ;;  %v3336_v46 = vmul.f32 %v12450_v12, %v3298_v59 }
 0x951   :  { %v10409_v52 = vpop.f32.mrf.mxu0  ;;  %10527 = vmatprep.subr.bf16.mxu1 %v11417_v28  ;;  %v3471_v1 = vadd.f32 %v3439_v56, %v3338_v50  ;;  %v8651_v59 = vunpack.c.l.bf16 %v9102_v39 }
 0x952   :  { %v3339_v61 = vmul.f32 %v12450_v12, %v3301_v32  ;;  %v3299_v20 = vmax.f32 %v3223_v27, 0.0  ;;  %10447 = vmatprep.mubr.bf16.mxu1 %v3491_v30  ;;  %v3244_v34 = vadd.f32 %v12442_v2, %v10409_v52  ;;  %v3469_v33 = vadd.f32 %v3437_v5, %v3336_v46 }
 0x953   :  { %v3235_v23 = vpop.f32.mrf.mxu0  ;;  %10448 = vmatmul.mubr.bf16.gmra.mxu1 %v3492_v18  ;;  %v8648_v18 = vunpack.c.h.bf16 %v9101_v9  ;;  %v3447_v50 = vmul.f32 %v8651_v59, %v12447_v8 }
 0x954   :  { %v3337_v11 = vmul.f32 %v12450_v12, %v3299_v20  ;;  %v3236_v51 = vadd.f32 %v12442_v2, %v3235_v23  ;;  %10528 = vmatpush3.bf16.msra.mxu1 %v11417_v28  ;;  %v3472_v54 = vadd.f32 %v3440_v45, %v3339_v61  ;;  %v3304_v60 = vmax.f32 %v3244_v34, 0.0 }
 0x955   :  { %v10410_v41 = vpop.f32.mrf.mxu0  ;;  %10529 = vmatprep.subr.bf16.mxu1 %v11418_v31  ;;  %v3448_v23 = vmul.f32 %v8652_v17, %v12447_v8  ;;  %v3445_v34 = vmul.f32 %v8647_v38, %v12447_v8  ;;  %v3446_v53 = vmul.f32 %v8648_v18, %v12447_v8 }
 0x956   :  { %v3247_v55 = vadd.f32 %v12442_v2, %v10410_v41  ;;  %v3302_v21 = vmax.f32 %v3236_v51, 0.0  ;;  %v3470_v25 = vadd.f32 %v3438_v49, %v3337_v11  ;;  %v3494_v4 = vpack.c.bf16 %v3472_v54, %v3471_v1  ;;  %v9103_v49 = vld [vmem:[#allocation5 + $0x1f0] sm:$0xff]  }
 0x957   :  { %v3238_v58 = vpop.f32.mrf.mxu0  ;;  %v3342_v42 = vmul.f32 %v12450_v12, %v3304_v60 }
 0x958   :  { %v3305_v48 = vmax.f32 %v3247_v55, 0.0  ;;  %v3239_v36 = vadd.f32 %v12442_v2, %v3238_v58  ;;  %v3493_v3 = vpack.c.bf16 %v3470_v25, %v3469_v33  ;;  %10530 = vmatpush3.bf16.msra.mxu1 %v11418_v31  ;;  %v3340_v62 = vmul.f32 %v12450_v12, %v3302_v21  ;;  %v9104_v55 = vld [vmem:[#allocation5 + $0x1f8] sm:$0xff]  }
 0x959   :  { %v10413_v37 = vpop.f32.mrf.mxu0  ;;  %10611 = vmatprep.subr.bf16.mxu1 %v12515_v47  ;;  %v3475_v61 = vadd.f32 %v3443_v43, %v3342_v42  ;;  %v8655_v31 = vunpack.c.l.bf16 %v9103_v49  ;;  %v8660_v21 = vunpack.c.h.bf16 %v9104_v55  ;;  %v8656_v58 = vunpack.c.h.bf16 %v9103_v49 }
 0x95a   :  { %v3343_v6 = vmul.f32 %v12450_v12, %v3305_v48  ;;  %v3303_v13 = vmax.f32 %v3239_v36, 0.0  ;;  %10451 = vmatprep.mubr.bf16.mxu1 %v3493_v3  ;;  %v3260_v24 = vadd.f32 %v12442_v2, %v10413_v37  ;;  %v3473_v32 = vadd.f32 %v3441_v0, %v3340_v62 }
 0x95b   :  { %v3251_v7 = vpop.f32.mrf.mxu0  ;;  %10452 = vmatmul.mubr.bf16.gmra.mxu1 %v3494_v4  ;;  %v8659_v48 = vunpack.c.l.bf16 %v9104_v55  ;;  %v3452_v39 = vmul.f32 %v8660_v21, %v12447_v8  ;;  %v3450_v62 = vmul.f32 %v8656_v58, %v12447_v8  ;;  %v11422_v58 = vld [vmem:[#allocation7 + $0xa8] sm:$0xff]  }
 0x95c   :  { %v3341_v29 = vmul.f32 %v12450_v12, %v3303_v13  ;;  %v3252_v15 = vadd.f32 %v12442_v2, %v3251_v7  ;;  %v3476_v16 = vadd.f32 %v3444_v26, %v3343_v6  ;;  %v3308_v45 = vmax.f32 %v3260_v24, 0.0 }
 0x95d   :  { %v10414_v19 = vpop.f32.mrf.mxu0  ;;  %v3449_v13 = vmul.f32 %v8655_v31, %v12447_v8 }
 0x95e   :  { %v3263_v44 = vadd.f32 %v12442_v2, %v10414_v19  ;;  %v3306_v27 = vmax.f32 %v3252_v15, 0.0  ;;  %v3474_v30 = vadd.f32 %v3442_v10, %v3341_v29  ;;  %v3496_v46 = vpack.c.bf16 %v3476_v16, %v3475_v61 }
 0x95f   :  { %v3254_v52 = vpop.f32.mrf.mxu0  ;;  %v3346_v41 = vmul.f32 %v12450_v12, %v3308_v45  ;;  %v3451_v29 = vmul.f32 %v8659_v48, %v12447_v8 }
 0x960   :  { %v3309_v20 = vmax.f32 %v3263_v44, 0.0  ;;  %v3255_v22 = vadd.f32 %v12442_v2, %v3254_v52  ;;  %v3495_v56 = vpack.c.bf16 %v3474_v30, %v3473_v32  ;;  %v3344_v11 = vmul.f32 %v12450_v12, %v3306_v27  ;;  %v12548_v27 = vld [vmem:[#allocation8 + $0x2] ss:$0 sm:$0xff] }
 0x961   :  { %v10417_v28 = vpop.f32.mrf.mxu0  ;;  %v3479_v3 = vadd.f32 %v3447_v50, %v3346_v41  ;;  %v11421_v41 = vld [vmem:[#allocation7 + $0xb0] sm:$0xff]  }
 0x962   :  { %v3347_v5 = vmul.f32 %v12450_v12, %v3309_v20  ;;  %v3307_v57 = vmax.f32 %v3255_v22, 0.0  ;;  %10455 = vmatprep.mubr.bf16.mxu1 %v3495_v56  ;;  %v3276_v40 = vadd.f32 %v12442_v2, %v10417_v28  ;;  %v3477_v60 = vadd.f32 %v3445_v34, %v3344_v11 }
 0x963   :  { %v3267_v51 = vpop.f32.mrf.mxu0  ;;  %10456 = vmatmul.mubr.bf16.gmra.mxu1 %v3496_v46 }
 0x964   :  { %v3345_v54 = vmul.f32 %v12450_v12, %v3307_v57  ;;  %v3268_v35 = vadd.f32 %v12442_v2, %v3267_v51  ;;  %v3480_v25 = vadd.f32 %v3448_v23, %v3347_v5  ;;  %v3312_v4 = vmax.f32 %v3276_v40, 0.0 }
 0x965   :  { %v10418_v33 = vpop.f32.mrf.mxu0 }
 0x966   :  { %v3310_v63 = vmax.f32 %v3268_v35, 0.0  ;;  %v3279_v1 = vadd.f32 %v12442_v2, %v10418_v33  ;;  %v3478_v37 = vadd.f32 %v3446_v53, %v3345_v54  ;;  %v3498_v0 = vpack.c.bf16 %v3480_v25, %v3479_v3 }
 0x967   :  { %v3270_v36 = vpop.f32.mrf.mxu0  ;;  %v3350_v42 = vmul.f32 %v12450_v12, %v3312_v4 }
 0x968   :  { %v3313_v6 = vmax.f32 %v3279_v1, 0.0  ;;  %v3271_v26 = vadd.f32 %v12442_v2, %v3270_v36  ;;  %v3497_v43 = vpack.c.bf16 %v3478_v37, %v3477_v60  ;;  %v3348_v7 = vmul.f32 %v12450_v12, %v3310_v63  ;;  %v11423_v37 = vld [vmem:[#allocation7 + $0xa0] sm:$0xff]  }
 0x969   :  { %v3483_v19 = vadd.f32 %v3451_v29, %v3350_v42 }
 0x96a   :  { %v3351_v9 = vmul.f32 %v12450_v12, %v3313_v6  ;;  %v3311_v10 = vmax.f32 %v3271_v26, 0.0  ;;  %10459 = vmatprep.mubr.bf16.mxu1 %v3497_v43  ;;  %v3481_v24 = vadd.f32 %v3449_v13, %v3348_v7 }
 0x96b   :  { %10460 = vmatmul.mubr.bf16.gmra.mxu1 %v3498_v0 }
 0x96c   :  { %v3349_v2 = vmul.f32 %v12450_v12, %v3311_v10  ;;  %v3484_v15 = vadd.f32 %v3452_v39, %v3351_v9 }
 0x96e   :  { %v3482_v59 = vadd.f32 %v3450_v62, %v3349_v2  ;;  %v3500_v38 = vpack.c.bf16 %v3484_v15, %v3483_v19  ;;  %v11424_v62 = vld [vmem:[#allocation7 + $0x98] sm:$0xff]  }
 0x970   :  { %v3499_v16 = vpack.c.bf16 %v3482_v59, %v3481_v24  ;;  %v11425_v24 = vld [vmem:[#allocation7 + $0x90] sm:$0xff]  }
 0x972   :  { %10463 = vmatprep.mubr.bf16.mxu1 %v3499_v16 }
 0x973   :  { %10464 = vmatmul.mubr.bf16.gmra.mxu1 %v3500_v38 }
 0x9fb   :  { %v10437_v44 = vpop.f32.mrf.mxu1 }
 0x9fc   :  { %v3544_v12 = vadd.f32 %v12548_v27, %v10437_v44 }
 0x9fd   :  { %v3535_v17 = vpop.f32.mrf.mxu1 }
 0x9fe   :  { %v3536_v52 = vadd.f32 %v12548_v27, %v3535_v17  ;;  %v3664_v28 = vmax.f32 %v3544_v12, 0.0 }
 0x9ff   :  { %v10438_v32 = vpop.f32.mrf.mxu1 }
 0xa00   :  { %v3547_v8 = vadd.f32 %v12548_v27, %v10438_v32  ;;  %v3662_v20 = vmax.f32 %v3536_v52, 0.0  ;;  %v11426_v32 = vld [vmem:[#allocation7 + $0x88] sm:$0xff]  }
 0xa01   :  { %v3538_v30 = vpop.f32.mrf.mxu1 }
 0xa02   :  { %v3539_v18 = vadd.f32 %v12548_v27, %v3538_v30  ;;  %v3665_v61 = vmax.f32 %v3547_v8, 0.0 }
 0xa03   :  { %v10441_v45 = vpop.f32.mrf.mxu1 }
 0xa04   :  { %v3663_v22 = vmax.f32 %v3539_v18, 0.0  ;;  %v3695_v5 = vpack.c.bf16 %v3665_v61, %v3664_v28  ;;  %v3560_v50 = vadd.f32 %v12548_v27, %v10441_v45 }
 0xa05   :  { %v3551_v56 = vpop.f32.mrf.mxu1 }
 0xa06   :  { %v3694_v46 = vpack.c.bf16 %v3663_v22, %v3662_v20  ;;  %v3552_v57 = vadd.f32 %v12548_v27, %v3551_v56  ;;  %v3668_v55 = vmax.f32 %v3560_v50, 0.0  ;;  %v11427_v20 = vld [vmem:[#allocation7 + $0x80] sm:$0xff]  }
 0xa07   :  { %v10442_v23 = vpop.f32.mrf.mxu1 }
 0xa08   :  { %v3563_v49 = vadd.f32 %v12548_v27, %v10442_v23  ;;  %10483 = vmatprep.mubr.bf16.mxu0 %v3694_v46  ;;  %v3666_v54 = vmax.f32 %v3552_v57, 0.0 }
 0xa09   :  { %v3554_v11 = vpop.f32.mrf.mxu1  ;;  %10484 = vmatmul.mubr.bf16.vlgmr.msra.gmra.mxu0 %v3695_v5 }
 0xa0a   :  { %v3555_v34 = vadd.f32 %v12548_v27, %v3554_v11  ;;  %10564 = vmatpush3.bf16.msra.mxu0 %v12427_v14  ;;  %v3669_v51 = vmax.f32 %v3563_v49, 0.0  ;;  %v12571_v49 = vld [vmem:[#allocation7 + $0x138] sm:$0xff]  }
 0xa0b   :  { %v10445_v53 = vpop.f32.mrf.mxu1  ;;  %10565 = vmatprep.subr.bf16.mxu0 %v11421_v41 }
 0xa0c   :  { %v3667_v40 = vmax.f32 %v3555_v34, 0.0  ;;  %v3697_v33 = vpack.c.bf16 %v3669_v51, %v3668_v55  ;;  %v3576_v14 = vadd.f32 %v12548_v27, %v10445_v53 }
 0xa0d   :  { %v3567_v35 = vpop.f32.mrf.mxu1 }
 0xa0e   :  { %v3696_v31 = vpack.c.bf16 %v3667_v40, %v3666_v54  ;;  %10566 = vmatpush3.bf16.msra.mxu0 %v11421_v41  ;;  %v3568_v25 = vadd.f32 %v12548_v27, %v3567_v35  ;;  %v3672_v6 = vmax.f32 %v3576_v14, 0.0 }
 0xa0f   :  { %v10446_v21 = vpop.f32.mrf.mxu1  ;;  %10567 = vmatprep.subr.bf16.mxu0 %v11422_v58 }
 0xa10   :  { %v3579_v63 = vadd.f32 %v12548_v27, %v10446_v21  ;;  %10487 = vmatprep.mubr.bf16.mxu0 %v3696_v31  ;;  %v3670_v3 = vmax.f32 %v3568_v25, 0.0 }
 0xa11   :  { %v3570_v1 = vpop.f32.mrf.mxu1  ;;  %10488 = vmatmul.mubr.bf16.gmra.mxu0 %v3697_v33 }
 0xa12   :  { %v3571_v60 = vadd.f32 %v12548_v27, %v3570_v1  ;;  %10568 = vmatpush3.bf16.msra.mxu0 %v11422_v58  ;;  %v3673_v48 = vmax.f32 %v3579_v63, 0.0 }
 0xa13   :  { %v10449_v36 = vpop.f32.mrf.mxu1  ;;  %10569 = vmatprep.subr.bf16.mxu0 %v11423_v37 }
 0xa14   :  { %v3671_v4 = vmax.f32 %v3571_v60, 0.0  ;;  %v3699_v39 = vpack.c.bf16 %v3673_v48, %v3672_v6  ;;  %v3592_v9 = vadd.f32 %v12548_v27, %v10449_v36 }
 0xa15   :  { %v3583_v26 = vpop.f32.mrf.mxu1 }
 0xa16   :  { %v3698_v13 = vpack.c.bf16 %v3671_v4, %v3670_v3  ;;  %10570 = vmatpush3.bf16.msra.mxu0 %v11423_v37  ;;  %v3584_v0 = vadd.f32 %v12548_v27, %v3583_v26  ;;  %v3676_v19 = vmax.f32 %v3592_v9, 0.0 }
 0xa17   :  { %v10450_v43 = vpop.f32.mrf.mxu1  ;;  %10571 = vmatprep.subr.bf16.mxu0 %v11424_v62 }
 0xa18   :  { %v3595_v7 = vadd.f32 %v12548_v27, %v10450_v43  ;;  %10491 = vmatprep.mubr.bf16.mxu0 %v3698_v13  ;;  %v3674_v15 = vmax.f32 %v3584_v0, 0.0 }
 0xa19   :  { %v3586_v10 = vpop.f32.mrf.mxu1  ;;  %10492 = vmatmul.mubr.bf16.gmra.mxu0 %v3699_v39 }
 0xa1a   :  { %v3587_v42 = vadd.f32 %v12548_v27, %v3586_v10  ;;  %10572 = vmatpush3.bf16.msra.mxu0 %v11424_v62  ;;  %v3677_v29 = vmax.f32 %v3595_v7, 0.0 }
 0xa1b   :  { %v10453_v2 = vpop.f32.mrf.mxu1  ;;  %10573 = vmatprep.subr.bf16.mxu0 %v11425_v24 }
 0xa1c   :  { %v3675_v59 = vmax.f32 %v3587_v42, 0.0  ;;  %v3701_v44 = vpack.c.bf16 %v3677_v29, %v3676_v19  ;;  %v3608_v12 = vadd.f32 %v12548_v27, %v10453_v2 }
 0xa1d   :  { %v3599_v16 = vpop.f32.mrf.mxu1 }
 0xa1e   :  { %v3700_v38 = vpack.c.bf16 %v3675_v59, %v3674_v15  ;;  %10574 = vmatpush3.bf16.msra.mxu0 %v11425_v24  ;;  %v3600_v52 = vadd.f32 %v12548_v27, %v3599_v16  ;;  %v3680_v56 = vmax.f32 %v3608_v12, 0.0 }
 0xa1f   :  { %v10454_v17 = vpop.f32.mrf.mxu1  ;;  %10575 = vmatprep.subr.bf16.mxu0 %v11426_v32 }
 0xa20   :  { %v3611_v8 = vadd.f32 %v12548_v27, %v10454_v17  ;;  %10495 = vmatprep.mubr.bf16.mxu0 %v3700_v38  ;;  %v3678_v22 = vmax.f32 %v3600_v52, 0.0  ;;  %v12586_v38 = vld [vmem:[#allocation8 + $0x3] ss:$0 sm:$0xff] }
 0xa21   :  { %v3602_v30 = vpop.f32.mrf.mxu1  ;;  %10496 = vmatmul.mubr.bf16.gmra.mxu0 %v3701_v44 }
 0xa22   :  { %v3603_v18 = vadd.f32 %v12548_v27, %v3602_v30  ;;  %10576 = vmatpush3.bf16.msra.mxu0 %v11426_v32  ;;  %v3681_v61 = vmax.f32 %v3611_v8, 0.0 }
 0xa23   :  { %v10457_v45 = vpop.f32.mrf.mxu1  ;;  %10577 = vmatprep.subr.bf16.mxu0 %v11427_v20 }
 0xa24   :  { %v3679_v28 = vmax.f32 %v3603_v18, 0.0  ;;  %v3703_v23 = vpack.c.bf16 %v3681_v61, %v3680_v56  ;;  %v3624_v34 = vadd.f32 %v12548_v27, %v10457_v45 }
 0xa25   :  { %v3615_v46 = vpop.f32.mrf.mxu1 }
 0xa26   :  { %v3702_v5 = vpack.c.bf16 %v3679_v28, %v3678_v22  ;;  %10578 = vmatpush3.bf16.msra.mxu0 %v11427_v20  ;;  %v3616_v50 = vadd.f32 %v12548_v27, %v3615_v46  ;;  %v3684_v35 = vmax.f32 %v3624_v34, 0.0  ;;  %v11430_v34 = vld [vmem:[#allocation7 + $0xf0] sm:$0xff]  }
 0xa27   :  { %v10458_v57 = vpop.f32.mrf.mxu1  ;;  %10659 = vmatprep.subr.bf16.mxu0 %v12571_v49 }
 0xa28   :  { %v3627_v11 = vadd.f32 %v12548_v27, %v10458_v57  ;;  %10499 = vmatprep.mubr.bf16.mxu0 %v3702_v5  ;;  %v3682_v40 = vmax.f32 %v3616_v50, 0.0 }
 0xa29   :  { %v3618_v51 = vpop.f32.mrf.mxu1  ;;  %10500 = vmatmul.mubr.bf16.gmra.mxu0 %v3703_v23 }
 0xa2a   :  { %v3619_v53 = vadd.f32 %v12548_v27, %v3618_v51  ;;  %v3685_v41 = vmax.f32 %v3627_v11, 0.0 }
 0xa2b   :  { %v10461_v54 = vpop.f32.mrf.mxu1 }
 0xa2c   :  { %v3683_v55 = vmax.f32 %v3619_v53, 0.0  ;;  %v3705_v21 = vpack.c.bf16 %v3685_v41, %v3684_v35  ;;  %v3640_v14 = vadd.f32 %v12548_v27, %v10461_v54 }
 0xa2d   :  { %v3631_v31 = vpop.f32.mrf.mxu1 }
 0xa2e   :  { %v3704_v33 = vpack.c.bf16 %v3683_v55, %v3682_v40  ;;  %v3632_v25 = vadd.f32 %v12548_v27, %v3631_v31  ;;  %v3688_v4 = vmax.f32 %v3640_v14, 0.0  ;;  %v11431_v31 = vld [vmem:[#allocation7 + $0xe8] sm:$0xff]  }
 0xa2f   :  { %v10462_v58 = vpop.f32.mrf.mxu1 }
 0xa30   :  { %v3643_v63 = vadd.f32 %v12548_v27, %v10462_v58  ;;  %10503 = vmatprep.mubr.bf16.mxu0 %v3704_v33  ;;  %v3686_v37 = vmax.f32 %v3632_v25, 0.0 }
 0xa31   :  { %v3634_v1 = vpop.f32.mrf.mxu1  ;;  %10504 = vmatmul.mubr.bf16.gmra.mxu0 %v3705_v21 }
 0xa32   :  { %v3635_v60 = vadd.f32 %v12548_v27, %v3634_v1  ;;  %v3689_v48 = vmax.f32 %v3643_v63, 0.0  ;;  %v11432_v1 = vld [vmem:[#allocation7 + $0xe0] sm:$0xff]  }
 0xa33   :  { %v10465_v36 = vpop.f32.mrf.mxu1 }
 0xa34   :  { %v3687_v3 = vmax.f32 %v3635_v60, 0.0  ;;  %v3707_v13 = vpack.c.bf16 %v3689_v48, %v3688_v4  ;;  %v3656_v0 = vadd.f32 %v12548_v27, %v10465_v36 }
 0xa35   :  { %v3647_v6 = vpop.f32.mrf.mxu1 }
 0xa36   :  { %v3706_v26 = vpack.c.bf16 %v3687_v3, %v3686_v37  ;;  %v3648_v43 = vadd.f32 %v12548_v27, %v3647_v6  ;;  %v3692_v2 = vmax.f32 %v3656_v0, 0.0 }
 0xa37   :  { %v10466_v39 = vpop.f32.mrf.mxu1 }
 0xa38   :  { %v3659_v62 = vadd.f32 %v12548_v27, %v10466_v39  ;;  %10507 = vmatprep.mubr.bf16.mxu0 %v3706_v26  ;;  %v3690_v42 = vmax.f32 %v3648_v43, 0.0  ;;  %v11433_v26 = vld [vmem:[#allocation7 + $0xd8] sm:$0xff]  }
 0xa39   :  { %v3650_v7 = vpop.f32.mrf.mxu1  ;;  %10508 = vmatmul.mubr.bf16.gmra.mxu0 %v3707_v13 }
 0xa3a   :  { %v3651_v9 = vadd.f32 %v12548_v27, %v3650_v7  ;;  %v3693_v10 = vmax.f32 %v3659_v62, 0.0 }
 0xa3c   :  { %v3691_v29 = vmax.f32 %v3651_v9, 0.0  ;;  %v3709_v15 = vpack.c.bf16 %v3693_v10, %v3692_v2  ;;  %v11434_v10 = vld [vmem:[#allocation7 + $0xd0] sm:$0xff]  }
 0xa3e   :  { %v3708_v24 = vpack.c.bf16 %v3691_v29, %v3690_v42 }
 0xa40   :  { %10511 = vmatprep.mubr.bf16.mxu0 %v3708_v24 }
 0xa41   :  { %10512 = vmatmul.mubr.bf16.gmra.mxu0 %v3709_v15 }
 0xac9   :  { %v10485_v59 = vpop.f32.mrf.mxu0 }
 0xaca   :  { %v3753_v32 = vadd.f32 %v12586_v38, %v10485_v59 }
 0xacb   :  { %v3744_v19 = vpop.f32.mrf.mxu0 }
 0xacc   :  { %v3745_v44 = vadd.f32 %v12586_v38, %v3744_v19  ;;  %v3873_v61 = vmax.f32 %v3753_v32, 0.0 }
 0xacd   :  { %v10486_v16 = vpop.f32.mrf.mxu0 }
 0xace   :  { %v3756_v17 = vadd.f32 %v12586_v38, %v10486_v16  ;;  %v3871_v30 = vmax.f32 %v3745_v44, 0.0  ;;  %v11435_v16 = vld [vmem:[#allocation7 + $0xc8] sm:$0xff]  }
 0xacf   :  { %v3747_v27 = vpop.f32.mrf.mxu0 }
 0xad0   :  { %v3748_v52 = vadd.f32 %v12586_v38, %v3747_v27  ;;  %v3874_v8 = vmax.f32 %v3756_v17, 0.0 }
 0xad1   :  { %v10489_v12 = vpop.f32.mrf.mxu0 }
 0xad2   :  { %v3872_v18 = vmax.f32 %v3748_v52, 0.0  ;;  %v3904_v22 = vpack.c.bf16 %v3874_v8, %v3873_v61  ;;  %v3769_v5 = vadd.f32 %v12586_v38, %v10489_v12 }
 0xad3   :  { %v3760_v45 = vpop.f32.mrf.mxu0 }
 0xad4   :  { %v3903_v20 = vpack.c.bf16 %v3872_v18, %v3871_v30  ;;  %v3761_v56 = vadd.f32 %v12586_v38, %v3760_v45  ;;  %v3877_v41 = vmax.f32 %v3769_v5, 0.0  ;;  %v11436_v30 = vld [vmem:[#allocation7 + $0xc0] sm:$0xff]  }
 0xad5   :  { %v10490_v28 = vpop.f32.mrf.mxu0 }
 0xad6   :  { %v3772_v46 = vadd.f32 %v12586_v38, %v10490_v28  ;;  %10531 = vmatprep.mubr.bf16.mxu1 %v3903_v20  ;;  %v3875_v51 = vmax.f32 %v3761_v56, 0.0 }
 0xad7   :  { %v3763_v23 = vpop.f32.mrf.mxu0  ;;  %10532 = vmatmul.mubr.bf16.vlgmr.msra.gmra.mxu1 %v3904_v22 }
 0xad8   :  { %v3764_v57 = vadd.f32 %v12586_v38, %v3763_v23  ;;  %10612 = vmatpush3.bf16.msra.mxu1 %v12515_v47  ;;  %v3878_v50 = vmax.f32 %v3772_v46, 0.0  ;;  %v12609_v46 = vld [vmem:[#allocation7 + $0xb8] sm:$0xff]  }
 0xad9   :  { %v10493_v11 = vpop.f32.mrf.mxu0  ;;  %10613 = vmatprep.subr.bf16.mxu1 %v11430_v34 }
 0xada   :  { %v3876_v53 = vmax.f32 %v3764_v57, 0.0  ;;  %v3906_v55 = vpack.c.bf16 %v3878_v50, %v3877_v41  ;;  %v3785_v47 = vadd.f32 %v12586_v38, %v10493_v11 }
 0xadb   :  { %v3776_v54 = vpop.f32.mrf.mxu0 }
 0xadc   :  { %v3905_v40 = vpack.c.bf16 %v3876_v53, %v3875_v51  ;;  %10614 = vmatpush3.bf16.msra.mxu1 %v11430_v34  ;;  %v3777_v33 = vadd.f32 %v12586_v38, %v3776_v54  ;;  %v3881_v36 = vmax.f32 %v3785_v47, 0.0 }
 0xadd   :  { %v10494_v35 = vpop.f32.mrf.mxu0  ;;  %10615 = vmatprep.subr.bf16.mxu1 %v11431_v31 }
 0xade   :  { %v3788_v21 = vadd.f32 %v12586_v38, %v10494_v35  ;;  %10535 = vmatprep.mubr.bf16.mxu1 %v3905_v40  ;;  %v3879_v60 = vmax.f32 %v3777_v33, 0.0 }
 0xadf   :  { %v3779_v58 = vpop.f32.mrf.mxu0  ;;  %10536 = vmatmul.mubr.bf16.gmra.mxu1 %v3906_v55 }
 0xae0   :  { %v3780_v25 = vadd.f32 %v12586_v38, %v3779_v58  ;;  %10616 = vmatpush3.bf16.msra.mxu1 %v11431_v31  ;;  %v3882_v63 = vmax.f32 %v3788_v21, 0.0 }
 0xae1   :  { %v10497_v14 = vpop.f32.mrf.mxu0  ;;  %10617 = vmatprep.subr.bf16.mxu1 %v11432_v1 }
 0xae2   :  { %v3880_v48 = vmax.f32 %v3780_v25, 0.0  ;;  %v3908_v4 = vpack.c.bf16 %v3882_v63, %v3881_v36  ;;  %v3801_v43 = vadd.f32 %v12586_v38, %v10497_v14 }
 0xae3   :  { %v3792_v37 = vpop.f32.mrf.mxu0 }
 0xae4   :  { %v3907_v3 = vpack.c.bf16 %v3880_v48, %v3879_v60  ;;  %10618 = vmatpush3.bf16.msra.mxu1 %v11432_v1  ;;  %v3793_v13 = vadd.f32 %v12586_v38, %v3792_v37  ;;  %v3885_v2 = vmax.f32 %v3801_v43, 0.0 }
 0xae5   :  { %v10498_v6 = vpop.f32.mrf.mxu0  ;;  %10619 = vmatprep.subr.bf16.mxu1 %v11433_v26 }
 0xae6   :  { %v3804_v39 = vadd.f32 %v12586_v38, %v10498_v6  ;;  %10539 = vmatprep.mubr.bf16.mxu1 %v3907_v3  ;;  %v3883_v42 = vmax.f32 %v3793_v13, 0.0 }
 0xae7   :  { %v3795_v62 = vpop.f32.mrf.mxu0  ;;  %10540 = vmatmul.mubr.bf16.gmra.mxu1 %v3908_v4 }
 0xae8   :  { %v3796_v0 = vadd.f32 %v12586_v38, %v3795_v62  ;;  %10620 = vmatpush3.bf16.msra.mxu1 %v11433_v26  ;;  %v3886_v7 = vmax.f32 %v3804_v39, 0.0 }
 0xae9   :  { %v10501_v9 = vpop.f32.mrf.mxu0  ;;  %10621 = vmatprep.subr.bf16.mxu1 %v11434_v10 }
 0xaea   :  { %v3884_v29 = vmax.f32 %v3796_v0, 0.0  ;;  %v3910_v59 = vpack.c.bf16 %v3886_v7, %v3885_v2  ;;  %v3817_v32 = vadd.f32 %v12586_v38, %v10501_v9 }
 0xaeb   :  { %v3808_v24 = vpop.f32.mrf.mxu0 }
 0xaec   :  { %v3909_v15 = vpack.c.bf16 %v3884_v29, %v3883_v42  ;;  %10622 = vmatpush3.bf16.msra.mxu1 %v11434_v10  ;;  %v3809_v44 = vadd.f32 %v12586_v38, %v3808_v24  ;;  %v3889_v45 = vmax.f32 %v3817_v32, 0.0  ;;  %v12624_v24 = vld [vmem:[#allocation8 + $0x4] ss:$0 sm:$0xff] }
 0xaed   :  { %v10502_v19 = vpop.f32.mrf.mxu0  ;;  %10623 = vmatprep.subr.bf16.mxu1 %v11435_v16 }
 0xaee   :  { %v3820_v17 = vadd.f32 %v12586_v38, %v10502_v19  ;;  %10543 = vmatprep.mubr.bf16.mxu1 %v3909_v15  ;;  %v3887_v18 = vmax.f32 %v3809_v44, 0.0 }
 0xaef   :  { %v3811_v27 = vpop.f32.mrf.mxu0  ;;  %10544 = vmatmul.mubr.bf16.gmra.mxu1 %v3910_v59  ;;  %v9105_v59 = vld [vmem:[#allocation5 + $0x208] sm:$0xff]  }
 0xaf0   :  { %v3812_v52 = vadd.f32 %v12586_v38, %v3811_v27  ;;  %10624 = vmatpush3.bf16.msra.mxu1 %v11435_v16  ;;  %v3890_v8 = vmax.f32 %v3820_v17, 0.0  ;;  %v8662_v16 = vld [vmem:[#allocation5 + $0x200] sm:$0xff]   ;;  %v8668_v17 = vunpack.c.h.bf16 %v9105_v59  ;;  %v8667_v32 = vunpack.c.l.bf16 %v9105_v59 }
 0xaf1   :  { %v10505_v12 = vpop.f32.mrf.mxu0  ;;  %10625 = vmatprep.subr.bf16.mxu1 %v11436_v30 }
 0xaf2   :  { %v3888_v61 = vmax.f32 %v3812_v52, 0.0  ;;  %v3912_v28 = vpack.c.bf16 %v3890_v8, %v3889_v45  ;;  %v3833_v57 = vadd.f32 %v12586_v38, %v10505_v12  ;;  %v8663_v52 = vunpack.c.l.bf16 %v8662_v16 }
 0xaf3   :  { %v3824_v20 = vpop.f32.mrf.mxu0  ;;  %v8664_v12 = vunpack.c.h.bf16 %v8662_v16 }
 0xaf4   :  { %v3911_v22 = vpack.c.bf16 %v3888_v61, %v3887_v18  ;;  %10626 = vmatpush3.bf16.msra.mxu1 %v11436_v30  ;;  %v3825_v5 = vadd.f32 %v12586_v38, %v3824_v20  ;;  %v3893_v54 = vmax.f32 %v3833_v57, 0.0  ;;  %v12629_v18 = vld [vmem:[#allocation8 + $0x13] ss:$0 sm:$0xff]  ;;  %v12632_v20 = vld [vmem:[#allocation8 + $0x9] ss:$0 sm:$0xff] }
 0xaf5   :  { %v10506_v56 = vpop.f32.mrf.mxu0  ;;  %10707 = vmatprep.subr.bf16.mxu1 %v12609_v46  ;;  %v4221_v57 = vmul.f32 %v8667_v32, %v12629_v18 }
 0xaf6   :  { %v3836_v23 = vadd.f32 %v12586_v38, %v10506_v56  ;;  %10547 = vmatprep.mubr.bf16.mxu1 %v3911_v22  ;;  %v3891_v53 = vmax.f32 %v3825_v5, 0.0  ;;  %v4222_v56 = vmul.f32 %v8668_v17, %v12629_v18 }
 0xaf7   :  { %v3827_v50 = vpop.f32.mrf.mxu0  ;;  %10548 = vmatmul.mubr.bf16.gmra.mxu1 %v3912_v28 }
 0xaf8   :  { %v3828_v11 = vadd.f32 %v12586_v38, %v3827_v50  ;;  %v3894_v34 = vmax.f32 %v3836_v23, 0.0  ;;  %v9107_v23 = vld [vmem:[#allocation5 + $0x218] sm:$0xff]  }
 0xaf9   :  { %v10509_v51 = vpop.f32.mrf.mxu0 }
 0xafa   :  { %v3892_v41 = vmax.f32 %v3828_v11, 0.0  ;;  %v3914_v35 = vpack.c.bf16 %v3894_v34, %v3893_v54  ;;  %v3849_v47 = vadd.f32 %v12586_v38, %v10509_v51  ;;  %v4219_v11 = vmul.f32 %v8663_v52, %v12629_v18  ;;  %v9106_v51 = vld [vmem:[#allocation5 + $0x210] sm:$0xff]  }
 0xafb   :  { %v3840_v40 = vpop.f32.mrf.mxu0  ;;  %v11439_v52 = vld [vmem:[#allocation7 + $0x130] sm:$0xff]  }
 0xafc   :  { %v3913_v55 = vpack.c.bf16 %v3892_v41, %v3891_v53  ;;  %v3841_v33 = vadd.f32 %v12586_v38, %v3840_v40  ;;  %v3897_v48 = vmax.f32 %v3849_v47, 0.0  ;;  %v4220_v53 = vmul.f32 %v8664_v12, %v12629_v18 }
 0xafd   :  { %v10510_v31 = vpop.f32.mrf.mxu0 }
 0xafe   :  { %v3852_v21 = vadd.f32 %v12586_v38, %v10510_v31  ;;  %10551 = vmatprep.mubr.bf16.mxu1 %v3913_v55  ;;  %v3895_v1 = vmax.f32 %v3841_v33, 0.0 }
 0xaff   :  { %v3843_v58 = vpop.f32.mrf.mxu0  ;;  %10552 = vmatmul.mubr.bf16.gmra.mxu1 %v3914_v35  ;;  %v8675_v35 = vunpack.c.l.bf16 %v9107_v23 }
 0xb00   :  { %v3844_v25 = vadd.f32 %v12586_v38, %v3843_v58  ;;  %v3898_v63 = vmax.f32 %v3852_v21, 0.0  ;;  %v8671_v21 = vunpack.c.l.bf16 %v9106_v51  ;;  %v8676_v58 = vunpack.c.h.bf16 %v9107_v23 }
 0xb01   :  { %v10513_v14 = vpop.f32.mrf.mxu0 }
 0xb02   :  { %v3896_v60 = vmax.f32 %v3844_v25, 0.0  ;;  %v3916_v3 = vpack.c.bf16 %v3898_v63, %v3897_v48  ;;  %v3865_v13 = vadd.f32 %v12586_v38, %v10513_v14 }
 0xb03   :  { %v3856_v36 = vpop.f32.mrf.mxu0 }
 0xb04   :  { %v3915_v37 = vpack.c.bf16 %v3896_v60, %v3895_v1  ;;  %v3857_v6 = vadd.f32 %v12586_v38, %v3856_v36  ;;  %v3901_v9 = vmax.f32 %v3865_v13, 0.0  ;;  %v8672_v60 = vunpack.c.h.bf16 %v9106_v51  ;;  %v9111_v51 = vld [vmem:[#allocation5 + $0x238] sm:$0xff]  }
 0xb05   :  { %v10514_v4 = vpop.f32.mrf.mxu0 }
 0xb06   :  { %v3868_v26 = vadd.f32 %v12586_v38, %v10514_v4  ;;  %10555 = vmatprep.mubr.bf16.mxu1 %v3915_v37  ;;  %v3899_v0 = vmax.f32 %v3857_v6, 0.0 }
 0xb07   :  { %v3859_v39 = vpop.f32.mrf.mxu0  ;;  %10556 = vmatmul.mubr.bf16.gmra.mxu1 %v3916_v3 }
 0xb08   :  { %v3860_v43 = vadd.f32 %v12586_v38, %v3859_v39  ;;  %v3902_v62 = vmax.f32 %v3868_v26, 0.0  ;;  %v4226_v39 = vmul.f32 %v8676_v58, %v12629_v18 }
 0xb0a   :  { %v3900_v7 = vmax.f32 %v3860_v43, 0.0  ;;  %v3918_v42 = vpack.c.bf16 %v3902_v62, %v3901_v9  ;;  %v9109_v62 = vld [vmem:[#allocation5 + $0x228] sm:$0xff]   ;;  %v4223_v9 = vmul.f32 %v8671_v21, %v12629_v18 }
 0xb0b   :  { %v8683_v16 = vunpack.c.l.bf16 %v9109_v62 }
 0xb0c   :  { %v3917_v10 = vpack.c.bf16 %v3900_v7, %v3899_v0  ;;  %v4225_v0 = vmul.f32 %v8675_v35, %v12629_v18  ;;  %v9110_v35 = vld [vmem:[#allocation5 + $0x230] sm:$0xff]  }
 0xb0e   :  { %10559 = vmatprep.mubr.bf16.mxu1 %v3917_v10 }
 0xb0f   :  { %10560 = vmatmul.mubr.bf16.gmra.mxu1 %v3918_v42  ;;  %v9108_v42 = vld [vmem:[#allocation5 + $0x220] sm:$0xff]  }
 0xb10   :  { %v8679_v17 = vunpack.c.l.bf16 %v9108_v42 }
 0xb97   :  { %v10533_v29 = vpop.f32.mrf.mxu1 }
 0xb98   :  { %v3962_v15 = vadd.f32 %v12624_v24, %v10533_v29  ;;  %v4224_v29 = vmul.f32 %v8672_v60, %v12629_v18 }
 0xb99   :  { %v3953_v2 = vpop.f32.mrf.mxu1 }
 0xb9a   :  { %v3954_v19 = vadd.f32 %v12624_v24, %v3953_v2  ;;  %v4082_v30 = vmax.f32 %v3962_v15, 0.0 }
 0xb9b   :  { %v10534_v44 = vpop.f32.mrf.mxu1 }
 0xb9c   :  { %v3965_v38 = vadd.f32 %v12624_v24, %v10534_v44  ;;  %v4080_v27 = vmax.f32 %v3954_v19, 0.0  ;;  %v4120_v41 = vmul.f32 %v12632_v20, %v4082_v30 }
 0xb9d   :  { %v3956_v8 = vpop.f32.mrf.mxu1 }
 0xb9e   :  { %v4083_v61 = vmax.f32 %v3965_v38, 0.0  ;;  %v3957_v45 = vadd.f32 %v12624_v24, %v3956_v8  ;;  %v4118_v50 = vmul.f32 %v12632_v20, %v4080_v27  ;;  %v4253_v48 = vadd.f32 %v4221_v57, %v4120_v41 }
 0xb9f   :  { %v10537_v22 = vpop.f32.mrf.mxu1  ;;  %v8684_v27 = vunpack.c.h.bf16 %v9109_v62  ;;  %v4229_v41 = vmul.f32 %v8683_v16, %v12629_v18 }
 0xba0   :  { %v4121_v28 = vmul.f32 %v12632_v20, %v4083_v61  ;;  %v4081_v5 = vmax.f32 %v3957_v45, 0.0  ;;  %v3978_v40 = vadd.f32 %v12624_v24, %v10537_v22  ;;  %v4251_v25 = vadd.f32 %v4219_v11, %v4118_v50 }
 0xba1   :  { %v3969_v34 = vpop.f32.mrf.mxu1  ;;  %v8680_v45 = vunpack.c.h.bf16 %v9108_v42  ;;  %v4230_v11 = vmul.f32 %v8684_v27, %v12629_v18 }
 0xba2   :  { %v4119_v54 = vmul.f32 %v12632_v20, %v4081_v5  ;;  %v3970_v55 = vadd.f32 %v12624_v24, %v3969_v34  ;;  %v4254_v33 = vadd.f32 %v4222_v56, %v4121_v28  ;;  %v4086_v36 = vmax.f32 %v3978_v40, 0.0 }
 0xba3   :  { %v10538_v31 = vpop.f32.mrf.mxu1  ;;  %v4227_v40 = vmul.f32 %v8679_v17, %v12629_v18 }
 0xba4   :  { %v3981_v47 = vadd.f32 %v12624_v24, %v10538_v31  ;;  %v4084_v63 = vmax.f32 %v3970_v55, 0.0  ;;  %v4252_v1 = vadd.f32 %v4220_v53, %v4119_v54  ;;  %v4284_v26 = vpack.c.bf16 %v4254_v33, %v4253_v48  ;;  %v11440_v53 = vld [vmem:[#allocation7 + $0x128] sm:$0xff]  }
 0xba5   :  { %v3972_v14 = vpop.f32.mrf.mxu1  ;;  %v4124_v2 = vmul.f32 %v12632_v20, %v4086_v36  ;;  %v4228_v31 = vmul.f32 %v8680_v45, %v12629_v18  ;;  %v8692_v48 = vunpack.c.h.bf16 %v9111_v51  ;;  %v11441_v36 = vld [vmem:[#allocation7 + $0x120] sm:$0xff]  }
 0xba6   :  { %v4087_v37 = vmax.f32 %v3981_v47, 0.0  ;;  %v3973_v3 = vadd.f32 %v12624_v24, %v3972_v14  ;;  %v4283_v6 = vpack.c.bf16 %v4252_v1, %v4251_v25  ;;  %v4122_v7 = vmul.f32 %v12632_v20, %v4084_v63 }
 0xba7   :  { %v10541_v4 = vpop.f32.mrf.mxu1  ;;  %v4257_v22 = vadd.f32 %v4225_v0, %v4124_v2  ;;  %v8691_v25 = vunpack.c.l.bf16 %v9111_v51  ;;  %v8687_v1 = vunpack.c.l.bf16 %v9110_v35  ;;  %v4234_v42 = vmul.f32 %v8692_v48, %v12629_v18  ;;  %v9113_v2 = vld [vmem:[#allocation5 + $0x248] sm:$0xff]  }
 0xba8   :  { %v4125_v13 = vmul.f32 %v12632_v20, %v4087_v37  ;;  %v4085_v43 = vmax.f32 %v3973_v3, 0.0  ;;  %10579 = vmatprep.mubr.bf16.mxu0 %v4283_v6  ;;  %v3994_v59 = vadd.f32 %v12624_v24, %v10541_v4  ;;  %v4255_v8 = vadd.f32 %v4223_v9, %v4122_v7 }
 0xba9   :  { %v3985_v10 = vpop.f32.mrf.mxu1  ;;  %10580 = vmatmul.mubr.bf16.vlgmr.msra.gmra.mxu0 %v4284_v26  ;;  %v8688_v26 = vunpack.c.h.bf16 %v9110_v35  ;;  %v4231_v16 = vmul.f32 %v8687_v1, %v12629_v18 }
 0xbaa   :  { %v4123_v15 = vmul.f32 %v12632_v20, %v4085_v43  ;;  %v3986_v19 = vadd.f32 %v12624_v24, %v3985_v10  ;;  %10660 = vmatpush3.bf16.msra.mxu0 %v12571_v49  ;;  %v4258_v38 = vadd.f32 %v4226_v39, %v4125_v13  ;;  %v4090_v28 = vmax.f32 %v3994_v59, 0.0 }
 0xbab   :  { %v10542_v44 = vpop.f32.mrf.mxu1  ;;  %10661 = vmatprep.subr.bf16.mxu0 %v11439_v52  ;;  %v4233_v59 = vmul.f32 %v8691_v25, %v12629_v18  ;;  %v4232_v17 = vmul.f32 %v8688_v26, %v12629_v18 }
 0xbac   :  { %v3997_v32 = vadd.f32 %v12624_v24, %v10542_v44  ;;  %v4088_v12 = vmax.f32 %v3986_v19, 0.0  ;;  %v4256_v61 = vadd.f32 %v4224_v29, %v4123_v15  ;;  %v4286_v49 = vpack.c.bf16 %v4258_v38, %v4257_v22  ;;  %v11442_v15 = vld [vmem:[#allocation7 + $0x118] sm:$0xff]   ;;  %v9112_v38 = vld [vmem:[#allocation5 + $0x240] sm:$0xff]  }
 0xbad   :  { %v3988_v30 = vpop.f32.mrf.mxu1  ;;  %v4128_v33 = vmul.f32 %v12632_v20, %v4090_v28  ;;  %v8695_v45 = vunpack.c.l.bf16 %v9112_v38  ;;  %v8700_v28 = vunpack.c.h.bf16 %v9113_v2 }
 0xbae   :  { %v4091_v56 = vmax.f32 %v3997_v32, 0.0  ;;  %v3989_v5 = vadd.f32 %v12624_v24, %v3988_v30  ;;  %v4285_v57 = vpack.c.bf16 %v4256_v61, %v4255_v8  ;;  %10662 = vmatpush3.bf16.msra.mxu0 %v11439_v52  ;;  %v4126_v54 = vmul.f32 %v12632_v20, %v4088_v12 }
 0xbaf   :  { %v10545_v23 = vpop.f32.mrf.mxu1  ;;  %10663 = vmatprep.subr.bf16.mxu0 %v11440_v53  ;;  %v4261_v13 = vadd.f32 %v4229_v41, %v4128_v33  ;;  %v8699_v12 = vunpack.c.l.bf16 %v9113_v2  ;;  %v4238_v35 = vmul.f32 %v8700_v28, %v12629_v18  ;;  %v9115_v33 = vld [vmem:[#allocation5 + $0x258] sm:$0xff]   ;;  %v4235_v25 = vmul.f32 %v8695_v45, %v12629_v18 }
 0xbb0   :  { %v4129_v50 = vmul.f32 %v12632_v20, %v4091_v56  ;;  %v4089_v34 = vmax.f32 %v3989_v5, 0.0  ;;  %10583 = vmatprep.mubr.bf16.mxu0 %v4285_v57  ;;  %v4010_v47 = vadd.f32 %v12624_v24, %v10545_v23  ;;  %v4259_v37 = vadd.f32 %v4227_v40, %v4126_v54  ;;  %v11443_v56 = vld [vmem:[#allocation7 + $0x110] sm:$0xff]  }
 0xbb1   :  { %v4001_v55 = vpop.f32.mrf.mxu1  ;;  %10584 = vmatmul.mubr.bf16.gmra.mxu0 %v4286_v49 }
 0xbb2   :  { %v4127_v21 = vmul.f32 %v12632_v20, %v4089_v34  ;;  %v4002_v58 = vadd.f32 %v12624_v24, %v4001_v55  ;;  %10664 = vmatpush3.bf16.msra.mxu0 %v11440_v53  ;;  %v4262_v14 = vadd.f32 %v4230_v11, %v4129_v50  ;;  %v4094_v39 = vmax.f32 %v4010_v47, 0.0 }
 0xbb3   :  { %v10546_v63 = vpop.f32.mrf.mxu1  ;;  %10665 = vmatprep.subr.bf16.mxu0 %v11441_v36  ;;  %v8696_v50 = vunpack.c.h.bf16 %v9112_v38  ;;  %v4237_v47 = vmul.f32 %v8699_v12, %v12629_v18 }
 0xbb4   :  { %v4013_v60 = vadd.f32 %v12624_v24, %v10546_v63  ;;  %v4092_v3 = vmax.f32 %v4002_v58, 0.0  ;;  %v4260_v6 = vadd.f32 %v4228_v31, %v4127_v21  ;;  %v4288_v9 = vpack.c.bf16 %v4262_v14, %v4261_v13  ;;  %v11444_v21 = vld [vmem:[#allocation7 + $0x108] sm:$0xff]   ;;  %v9114_v14 = vld [vmem:[#allocation5 + $0x250] sm:$0xff]  }
 0xbb5   :  { %v4004_v4 = vpop.f32.mrf.mxu1  ;;  %v4132_v32 = vmul.f32 %v12632_v20, %v4094_v39  ;;  %v4236_v1 = vmul.f32 %v8696_v50, %v12629_v18  ;;  %v8703_v26 = vunpack.c.l.bf16 %v9114_v14  ;;  %v8708_v39 = vunpack.c.h.bf16 %v9115_v33 }
 0xbb6   :  { %v4095_v43 = vmax.f32 %v4013_v60, 0.0  ;;  %v4005_v62 = vadd.f32 %v12624_v24, %v4004_v4  ;;  %v4287_v7 = vpack.c.bf16 %v4260_v6, %v4259_v37  ;;  %10666 = vmatpush3.bf16.msra.mxu0 %v11441_v36  ;;  %v4130_v19 = vmul.f32 %v12632_v20, %v4092_v3 }
 0xbb7   :  { %v10549_v0 = vpop.f32.mrf.mxu1  ;;  %10667 = vmatprep.subr.bf16.mxu0 %v11442_v15  ;;  %v4265_v11 = vadd.f32 %v4233_v59, %v4132_v32  ;;  %v8707_v3 = vunpack.c.l.bf16 %v9115_v33  ;;  %v4242_v38 = vmul.f32 %v8708_v39, %v12629_v18  ;;  %v9117_v32 = vld [vmem:[#allocation5 + $0x268] sm:$0xff]   ;;  %v4239_v12 = vmul.f32 %v8703_v26, %v12629_v18 }
 0xbb8   :  { %v4133_v10 = vmul.f32 %v12632_v20, %v4095_v43  ;;  %v4093_v29 = vmax.f32 %v4005_v62, 0.0  ;;  %10587 = vmatprep.mubr.bf16.mxu0 %v4287_v7  ;;  %v4026_v52 = vadd.f32 %v12624_v24, %v10549_v0  ;;  %v4263_v5 = vadd.f32 %v4231_v16, %v4130_v19  ;;  %v11445_v43 = vld [vmem:[#allocation7 + $0x100] sm:$0xff]  }
 0xbb9   :  { %v4017_v44 = vpop.f32.mrf.mxu1  ;;  %10588 = vmatmul.mubr.bf16.gmra.mxu0 %v4288_v9 }
 0xbba   :  { %v4131_v27 = vmul.f32 %v12632_v20, %v4093_v29  ;;  %v4018_v8 = vadd.f32 %v12624_v24, %v4017_v44  ;;  %10668 = vmatpush3.bf16.msra.mxu0 %v11442_v15  ;;  %v4266_v61 = vadd.f32 %v4234_v42, %v4133_v10  ;;  %v4098_v34 = vmax.f32 %v4026_v52, 0.0 }
 0xbbb   :  { %v10550_v30 = vpop.f32.mrf.mxu1  ;;  %10669 = vmatprep.subr.bf16.mxu0 %v11443_v56  ;;  %v8704_v10 = vunpack.c.h.bf16 %v9114_v14  ;;  %v4241_v52 = vmul.f32 %v8707_v3, %v12629_v18 }
 0xbbc   :  { %v4029_v22 = vadd.f32 %v12624_v24, %v10550_v30  ;;  %v4096_v23 = vmax.f32 %v4018_v8, 0.0  ;;  %v4264_v49 = vadd.f32 %v4232_v17, %v4131_v27  ;;  %v4290_v40 = vpack.c.bf16 %v4266_v61, %v4265_v11  ;;  %v12697_v27 = vld [vmem:[#allocation7 + $0xf8] sm:$0xff]   ;;  %v9116_v61 = vld [vmem:[#allocation5 + $0x260] sm:$0xff]  }
 0xbbd   :  { %v4020_v57 = vpop.f32.mrf.mxu1  ;;  %v4136_v60 = vmul.f32 %v12632_v20, %v4098_v34  ;;  %v4240_v45 = vmul.f32 %v8704_v10, %v12629_v18  ;;  %v8711_v50 = vunpack.c.l.bf16 %v9116_v61  ;;  %v8716_v34 = vunpack.c.h.bf16 %v9117_v32 }
 0xbbe   :  { %v4099_v51 = vmax.f32 %v4029_v22, 0.0  ;;  %v4021_v53 = vadd.f32 %v12624_v24, %v4020_v57  ;;  %v4289_v54 = vpack.c.bf16 %v4264_v49, %v4263_v5  ;;  %10670 = vmatpush3.bf16.msra.mxu0 %v11443_v56  ;;  %v4134_v58 = vmul.f32 %v12632_v20, %v4096_v23 }
 0xbbf   :  { %v10553_v41 = vpop.f32.mrf.mxu1  ;;  %10671 = vmatprep.subr.bf16.mxu0 %v11444_v21  ;;  %v4269_v42 = vadd.f32 %v4237_v47, %v4136_v60  ;;  %v8715_v23 = vunpack.c.l.bf16 %v9117_v32 }
 0xbc0   :  { %v4137_v55 = vmul.f32 %v12632_v20, %v4099_v51  ;;  %v4097_v31 = vmax.f32 %v4021_v53, 0.0  ;;  %10591 = vmatprep.mubr.bf16.mxu0 %v4289_v54  ;;  %v4042_v36 = vadd.f32 %v12624_v24, %v10553_v41  ;;  %v4267_v62 = vadd.f32 %v4235_v25, %v4134_v58 }
 0xbc1   :  { %v4033_v63 = vpop.f32.mrf.mxu1  ;;  %10592 = vmatmul.mubr.bf16.gmra.mxu0 %v4290_v40  ;;  %v8712_v40 = vunpack.c.h.bf16 %v9116_v61  ;;  %v4245_v60 = vmul.f32 %v8715_v23, %v12629_v18 }
 0xbc2   :  { %v4135_v48 = vmul.f32 %v12632_v20, %v4097_v31  ;;  %v4034_v37 = vadd.f32 %v12624_v24, %v4033_v63  ;;  %10672 = vmatpush3.bf16.msra.mxu0 %v11444_v21  ;;  %v4270_v6 = vadd.f32 %v4238_v35, %v4137_v55  ;;  %v4102_v29 = vmax.f32 %v4042_v36, 0.0 }
 0xbc3   :  { %v10554_v4 = vpop.f32.mrf.mxu1  ;;  %10673 = vmatprep.subr.bf16.mxu0 %v11445_v43  ;;  %v4246_v63 = vmul.f32 %v8716_v34, %v12629_v18  ;;  %v4243_v36 = vmul.f32 %v8711_v50, %v12629_v18  ;;  %v4244_v3 = vmul.f32 %v8712_v40, %v12629_v18 }
 0xbc4   :  { %v4045_v13 = vadd.f32 %v12624_v24, %v10554_v4  ;;  %v4100_v0 = vmax.f32 %v4034_v37, 0.0  ;;  %v4268_v9 = vadd.f32 %v4236_v1, %v4135_v48  ;;  %v4292_v16 = vpack.c.bf16 %v4270_v6, %v4269_v42  ;;  %v9118_v1 = vld [vmem:[#allocation5 + $0x270] sm:$0xff]  }
 0xbc5   :  { %v4036_v7 = vpop.f32.mrf.mxu1  ;;  %v4140_v22 = vmul.f32 %v12632_v20, %v4102_v29 }
 0xbc6   :  { %v4103_v2 = vmax.f32 %v4045_v13, 0.0  ;;  %v4037_v15 = vadd.f32 %v12624_v24, %v4036_v7  ;;  %v4291_v19 = vpack.c.bf16 %v4268_v9, %v4267_v62  ;;  %10674 = vmatpush3.bf16.msra.mxu0 %v11445_v43  ;;  %v4138_v8 = vmul.f32 %v12632_v20, %v4100_v0  ;;  %v9119_v13 = vld [vmem:[#allocation5 + $0x278] sm:$0xff]  }
 0xbc7   :  { %v10557_v59 = vpop.f32.mrf.mxu1  ;;  %10755 = vmatprep.subr.bf16.mxu0 %v12697_v27  ;;  %v4273_v55 = vadd.f32 %v4241_v52, %v4140_v22  ;;  %v8719_v43 = vunpack.c.l.bf16 %v9118_v1  ;;  %v8724_v0 = vunpack.c.h.bf16 %v9119_v13  ;;  %v8720_v7 = vunpack.c.h.bf16 %v9118_v1 }
 0xbc8   :  { %v4141_v44 = vmul.f32 %v12632_v20, %v4103_v2  ;;  %v4101_v17 = vmax.f32 %v4037_v15, 0.0  ;;  %10595 = vmatprep.mubr.bf16.mxu0 %v4291_v19  ;;  %v4058_v56 = vadd.f32 %v12624_v24, %v10557_v59  ;;  %v4271_v51 = vadd.f32 %v4239_v12, %v4138_v8 }
 0xbc9   :  { %v4049_v30 = vpop.f32.mrf.mxu1  ;;  %10596 = vmatmul.mubr.bf16.gmra.mxu0 %v4292_v16  ;;  %v8723_v2 = vunpack.c.l.bf16 %v9119_v13  ;;  %v4250_v32 = vmul.f32 %v8724_v0, %v12629_v18  ;;  %v4248_v8 = vmul.f32 %v8720_v7, %v12629_v18  ;;  %v11449_v7 = vld [vmem:[#allocation7 + $0xa8] sm:$0xff]  }
 0xbca   :  { %v4139_v28 = vmul.f32 %v12632_v20, %v4101_v17  ;;  %v4050_v5 = vadd.f32 %v12624_v24, %v4049_v30  ;;  %v4274_v49 = vadd.f32 %v4242_v38, %v4141_v44  ;;  %v4106_v35 = vmax.f32 %v4058_v56, 0.0 }
 0xbcb   :  { %v10558_v57 = vpop.f32.mrf.mxu1  ;;  %v4247_v17 = vmul.f32 %v8719_v43, %v12629_v18 }
 0xbcc   :  { %v4061_v11 = vadd.f32 %v12624_v24, %v10558_v57  ;;  %v4104_v53 = vmax.f32 %v4050_v5, 0.0  ;;  %v4272_v54 = vadd.f32 %v4240_v45, %v4139_v28  ;;  %v4294_v58 = vpack.c.bf16 %v4274_v49, %v4273_v55 }
 0xbcd   :  { %v4052_v41 = vpop.f32.mrf.mxu1  ;;  %v4144_v4 = vmul.f32 %v12632_v20, %v4106_v35  ;;  %v4249_v28 = vmul.f32 %v8723_v2, %v12629_v18 }
 0xbce   :  { %v4107_v31 = vmax.f32 %v4061_v11, 0.0  ;;  %v4053_v33 = vadd.f32 %v12624_v24, %v4052_v41  ;;  %v4293_v47 = vpack.c.bf16 %v4272_v54, %v4271_v51  ;;  %v4142_v48 = vmul.f32 %v12632_v20, %v4104_v53  ;;  %v12730_v53 = vld [vmem:[#allocation8 + $0x2] ss:$0 sm:$0xff] }
 0xbcf   :  { %v10561_v21 = vpop.f32.mrf.mxu1  ;;  %v4277_v19 = vadd.f32 %v4245_v60, %v4144_v4  ;;  %v11448_v4 = vld [vmem:[#allocation7 + $0xb0] sm:$0xff]  }
 0xbd0   :  { %v4145_v25 = vmul.f32 %v12632_v20, %v4107_v31  ;;  %v4105_v14 = vmax.f32 %v4053_v33, 0.0  ;;  %10599 = vmatprep.mubr.bf16.mxu0 %v4293_v47  ;;  %v4074_v26 = vadd.f32 %v12624_v24, %v10561_v21  ;;  %v4275_v29 = vadd.f32 %v4243_v36, %v4142_v48 }
 0xbd1   :  { %v4065_v37 = vpop.f32.mrf.mxu1  ;;  %10600 = vmatmul.mubr.bf16.gmra.mxu0 %v4294_v58 }
 0xbd2   :  { %v4143_v6 = vmul.f32 %v12632_v20, %v4105_v14  ;;  %v4066_v39 = vadd.f32 %v12624_v24, %v4065_v37  ;;  %v4278_v9 = vadd.f32 %v4246_v63, %v4145_v25  ;;  %v4110_v16 = vmax.f32 %v4074_v26, 0.0 }
 0xbd3   :  { %v10562_v62 = vpop.f32.mrf.mxu1 }
 0xbd4   :  { %v4108_v10 = vmax.f32 %v4066_v39, 0.0  ;;  %v4077_v42 = vadd.f32 %v12624_v24, %v10562_v62  ;;  %v4276_v59 = vadd.f32 %v4244_v3, %v4143_v6  ;;  %v4296_v12 = vpack.c.bf16 %v4278_v9, %v4277_v19 }
 0xbd5   :  { %v4068_v15 = vpop.f32.mrf.mxu1  ;;  %v4148_v22 = vmul.f32 %v12632_v20, %v4110_v16 }
 0xbd6   :  { %v4111_v44 = vmax.f32 %v4077_v42, 0.0  ;;  %v4069_v38 = vadd.f32 %v12624_v24, %v4068_v15  ;;  %v4295_v52 = vpack.c.bf16 %v4276_v59, %v4275_v29  ;;  %v4146_v30 = vmul.f32 %v12632_v20, %v4108_v10  ;;  %v11450_v59 = vld [vmem:[#allocation7 + $0xa0] sm:$0xff]  }
 0xbd7   :  { %v4281_v57 = vadd.f32 %v4249_v28, %v4148_v22 }
 0xbd8   :  { %v4149_v61 = vmul.f32 %v12632_v20, %v4111_v44  ;;  %v4109_v45 = vmax.f32 %v4069_v38, 0.0  ;;  %10603 = vmatprep.mubr.bf16.mxu0 %v4295_v52  ;;  %v4279_v56 = vadd.f32 %v4247_v17, %v4146_v30 }
 0xbd9   :  { %10604 = vmatmul.mubr.bf16.gmra.mxu0 %v4296_v12 }
 0xbda   :  { %v4147_v24 = vmul.f32 %v12632_v20, %v4109_v45  ;;  %v4282_v5 = vadd.f32 %v4250_v32, %v4149_v61 }
 0xbdc   :  { %v4280_v23 = vadd.f32 %v4248_v8, %v4147_v24  ;;  %v4298_v50 = vpack.c.bf16 %v4282_v5, %v4281_v57  ;;  %v11451_v8 = vld [vmem:[#allocation7 + $0x98] sm:$0xff]  }
 0xbde   :  { %v4297_v49 = vpack.c.bf16 %v4280_v23, %v4279_v56  ;;  %v11452_v56 = vld [vmem:[#allocation7 + $0x90] sm:$0xff]  }
 0xbe0   :  { %10607 = vmatprep.mubr.bf16.mxu0 %v4297_v49 }
 0xbe1   :  { %10608 = vmatmul.mubr.bf16.gmra.mxu0 %v4298_v50 }
 0xc69   :  { %v10581_v11 = vpop.f32.mrf.mxu0 }
 0xc6a   :  { %v4342_v20 = vadd.f32 %v12730_v53, %v10581_v11 }
 0xc6b   :  { %v4333_v34 = vpop.f32.mrf.mxu0 }
 0xc6c   :  { %v4334_v41 = vadd.f32 %v12730_v53, %v4333_v34  ;;  %v4462_v21 = vmax.f32 %v4342_v20, 0.0 }
 0xc6d   :  { %v10582_v51 = vpop.f32.mrf.mxu0 }
 0xc6e   :  { %v4345_v18 = vadd.f32 %v12730_v53, %v10582_v51  ;;  %v4460_v31 = vmax.f32 %v4334_v41, 0.0  ;;  %v11453_v51 = vld [vmem:[#allocation7 + $0x88] sm:$0xff]  }
 0xc6f   :  { %v4336_v54 = vpop.f32.mrf.mxu0 }
 0xc70   :  { %v4337_v40 = vadd.f32 %v12730_v53, %v4336_v54  ;;  %v4463_v55 = vmax.f32 %v4345_v18, 0.0 }
 0xc71   :  { %v10585_v35 = vpop.f32.mrf.mxu0 }
 0xc72   :  { %v4461_v33 = vmax.f32 %v4337_v40, 0.0  ;;  %v4493_v25 = vpack.c.bf16 %v4463_v55, %v4462_v21  ;;  %v4358_v60 = vadd.f32 %v12730_v53, %v10585_v35 }
 0xc73   :  { %v4349_v47 = vpop.f32.mrf.mxu0 }
 0xc74   :  { %v4492_v58 = vpack.c.bf16 %v4461_v33, %v4460_v31  ;;  %v4350_v14 = vadd.f32 %v12730_v53, %v4349_v47  ;;  %v4466_v13 = vmax.f32 %v4358_v60, 0.0  ;;  %v11454_v31 = vld [vmem:[#allocation7 + $0x80] sm:$0xff]  }
 0xc75   :  { %v10586_v63 = vpop.f32.mrf.mxu0 }
 0xc76   :  { %v4361_v1 = vadd.f32 %v12730_v53, %v10586_v63  ;;  %10627 = vmatprep.mubr.bf16.mxu1 %v4492_v58  ;;  %v4464_v6 = vmax.f32 %v4350_v14, 0.0 }
 0xc77   :  { %v4352_v48 = vpop.f32.mrf.mxu0  ;;  %10628 = vmatmul.mubr.bf16.vlgmr.msra.gmra.mxu1 %v4493_v25 }
 0xc78   :  { %v4353_v36 = vadd.f32 %v12730_v53, %v4352_v48  ;;  %10708 = vmatpush3.bf16.msra.mxu1 %v12609_v46  ;;  %v4467_v37 = vmax.f32 %v4361_v1, 0.0  ;;  %v12753_v1 = vld [vmem:[#allocation7 + $0x138] sm:$0xff]  }
 0xc79   :  { %v10589_v3 = vpop.f32.mrf.mxu0  ;;  %10709 = vmatprep.subr.bf16.mxu1 %v11448_v4 }
 0xc7a   :  { %v4465_v26 = vmax.f32 %v4353_v36, 0.0  ;;  %v4495_v62 = vpack.c.bf16 %v4467_v37, %v4466_v13  ;;  %v4374_v46 = vadd.f32 %v12730_v53, %v10589_v3 }
 0xc7b   :  { %v4365_v39 = vpop.f32.mrf.mxu0 }
 0xc7c   :  { %v4494_v43 = vpack.c.bf16 %v4465_v26, %v4464_v6  ;;  %10710 = vmatpush3.bf16.msra.mxu1 %v11448_v4  ;;  %v4366_v9 = vadd.f32 %v12730_v53, %v4365_v39  ;;  %v4470_v44 = vmax.f32 %v4374_v46, 0.0 }
 0xc7d   :  { %v10590_v0 = vpop.f32.mrf.mxu0  ;;  %10711 = vmatprep.subr.bf16.mxu1 %v11449_v7 }
 0xc7e   :  { %v4377_v10 = vadd.f32 %v12730_v53, %v10590_v0  ;;  %10631 = vmatprep.mubr.bf16.mxu1 %v4494_v43  ;;  %v4468_v19 = vmax.f32 %v4366_v9, 0.0 }
 0xc7f   :  { %v4368_v42 = vpop.f32.mrf.mxu0  ;;  %10632 = vmatmul.mubr.bf16.gmra.mxu1 %v4495_v62 }
 0xc80   :  { %v4369_v29 = vadd.f32 %v12730_v53, %v4368_v42  ;;  %10712 = vmatpush3.bf16.msra.mxu1 %v11449_v7  ;;  %v4471_v2 = vmax.f32 %v4377_v10, 0.0 }
 0xc81   :  { %v10593_v15 = vpop.f32.mrf.mxu0  ;;  %10713 = vmatprep.subr.bf16.mxu1 %v11450_v59 }
 0xc82   :  { %v4469_v16 = vmax.f32 %v4369_v29, 0.0  ;;  %v4497_v32 = vpack.c.bf16 %v4471_v2, %v4470_v44  ;;  %v4390_v61 = vadd.f32 %v12730_v53, %v10593_v15 }
 0xc83   :  { %v4381_v38 = vpop.f32.mrf.mxu0 }
 0xc84   :  { %v4496_v17 = vpack.c.bf16 %v4469_v16, %v4468_v19  ;;  %10714 = vmatpush3.bf16.msra.mxu1 %v11450_v59  ;;  %v4382_v12 = vadd.f32 %v12730_v53, %v4381_v38  ;;  %v4474_v57 = vmax.f32 %v4390_v61, 0.0 }
 0xc85   :  { %v10594_v52 = vpop.f32.mrf.mxu0  ;;  %10715 = vmatprep.subr.bf16.mxu1 %v11451_v8 }
 0xc86   :  { %v4393_v30 = vadd.f32 %v12730_v53, %v10594_v52  ;;  %10635 = vmatprep.mubr.bf16.mxu1 %v4496_v17  ;;  %v4472_v5 = vmax.f32 %v4382_v12, 0.0 }
 0xc87   :  { %v4384_v45 = vpop.f32.mrf.mxu0  ;;  %10636 = vmatmul.mubr.bf16.gmra.mxu1 %v4497_v32 }
 0xc88   :  { %v4385_v22 = vadd.f32 %v12730_v53, %v4384_v45  ;;  %10716 = vmatpush3.bf16.msra.mxu1 %v11451_v8  ;;  %v4475_v28 = vmax.f32 %v4393_v30, 0.0 }
 0xc89   :  { %v10597_v24 = vpop.f32.mrf.mxu0  ;;  %10717 = vmatprep.subr.bf16.mxu1 %v11452_v56 }
 0xc8a   :  { %v4473_v23 = vmax.f32 %v4385_v22, 0.0  ;;  %v4499_v11 = vpack.c.bf16 %v4475_v28, %v4474_v57  ;;  %v4406_v20 = vadd.f32 %v12730_v53, %v10597_v24 }
 0xc8b   :  { %v4397_v49 = vpop.f32.mrf.mxu0 }
 0xc8c   :  { %v4498_v50 = vpack.c.bf16 %v4473_v23, %v4472_v5  ;;  %10718 = vmatpush3.bf16.msra.mxu1 %v11452_v56  ;;  %v4398_v41 = vadd.f32 %v12730_v53, %v4397_v49  ;;  %v4478_v47 = vmax.f32 %v4406_v20, 0.0 }
 0xc8d   :  { %v10598_v34 = vpop.f32.mrf.mxu0  ;;  %10719 = vmatprep.subr.bf16.mxu1 %v11453_v51 }
 0xc8e   :  { %v4409_v18 = vadd.f32 %v12730_v53, %v10598_v34  ;;  %10639 = vmatprep.mubr.bf16.mxu1 %v4498_v50  ;;  %v4476_v33 = vmax.f32 %v4398_v41, 0.0  ;;  %v12768_v50 = vld [vmem:[#allocation8 + $0x3] ss:$0 sm:$0xff] }
 0xc8f   :  { %v4400_v54 = vpop.f32.mrf.mxu0  ;;  %10640 = vmatmul.mubr.bf16.gmra.mxu1 %v4499_v11 }
 0xc90   :  { %v4401_v40 = vadd.f32 %v12730_v53, %v4400_v54  ;;  %10720 = vmatpush3.bf16.msra.mxu1 %v11453_v51  ;;  %v4479_v55 = vmax.f32 %v4409_v18, 0.0 }
 0xc91   :  { %v10601_v35 = vpop.f32.mrf.mxu0  ;;  %10721 = vmatprep.subr.bf16.mxu1 %v11454_v31 }
 0xc92   :  { %v4477_v21 = vmax.f32 %v4401_v40, 0.0  ;;  %v4501_v63 = vpack.c.bf16 %v4479_v55, %v4478_v47  ;;  %v4422_v36 = vadd.f32 %v12730_v53, %v10601_v35 }
 0xc93   :  { %v4413_v58 = vpop.f32.mrf.mxu0 }
 0xc94   :  { %v4500_v25 = vpack.c.bf16 %v4477_v21, %v4476_v33  ;;  %10722 = vmatpush3.bf16.msra.mxu1 %v11454_v31  ;;  %v4414_v60 = vadd.f32 %v12730_v53, %v4413_v58  ;;  %v4482_v39 = vmax.f32 %v4422_v36, 0.0  ;;  %v11457_v36 = vld [vmem:[#allocation7 + $0xf0] sm:$0xff]  }
 0xc95   :  { %v10602_v14 = vpop.f32.mrf.mxu0  ;;  %10803 = vmatprep.subr.bf16.mxu1 %v12753_v1 }
 0xc96   :  { %v4425_v48 = vadd.f32 %v12730_v53, %v10602_v14  ;;  %10643 = vmatprep.mubr.bf16.mxu1 %v4500_v25  ;;  %v4480_v26 = vmax.f32 %v4414_v60, 0.0 }
 0xc97   :  { %v4416_v37 = vpop.f32.mrf.mxu0  ;;  %10644 = vmatmul.mubr.bf16.gmra.mxu1 %v4501_v63 }
 0xc98   :  { %v4417_v3 = vadd.f32 %v12730_v53, %v4416_v37  ;;  %v4483_v4 = vmax.f32 %v4425_v48, 0.0 }
 0xc99   :  { %v10605_v6 = vpop.f32.mrf.mxu0 }
 0xc9a   :  { %v4481_v13 = vmax.f32 %v4417_v3, 0.0  ;;  %v4503_v0 = vpack.c.bf16 %v4483_v4, %v4482_v39  ;;  %v4438_v46 = vadd.f32 %v12730_v53, %v10605_v6 }
 0xc9b   :  { %v4429_v43 = vpop.f32.mrf.mxu0 }
 0xc9c   :  { %v4502_v62 = vpack.c.bf16 %v4481_v13, %v4480_v26  ;;  %v4430_v9 = vadd.f32 %v12730_v53, %v4429_v43  ;;  %v4486_v16 = vmax.f32 %v4438_v46, 0.0  ;;  %v11458_v43 = vld [vmem:[#allocation7 + $0xe8] sm:$0xff]  }
 0xc9d   :  { %v10606_v7 = vpop.f32.mrf.mxu0 }
 0xc9e   :  { %v4441_v10 = vadd.f32 %v12730_v53, %v10606_v7  ;;  %10647 = vmatprep.mubr.bf16.mxu1 %v4502_v62  ;;  %v4484_v59 = vmax.f32 %v4430_v9, 0.0 }
 0xc9f   :  { %v4432_v42 = vpop.f32.mrf.mxu0  ;;  %10648 = vmatmul.mubr.bf16.gmra.mxu1 %v4503_v0 }
 0xca0   :  { %v4433_v29 = vadd.f32 %v12730_v53, %v4432_v42  ;;  %v4487_v2 = vmax.f32 %v4441_v10, 0.0  ;;  %v11459_v42 = vld [vmem:[#allocation7 + $0xe0] sm:$0xff]  }
 0xca1   :  { %v10609_v15 = vpop.f32.mrf.mxu0 }
 0xca2   :  { %v4485_v19 = vmax.f32 %v4433_v29, 0.0  ;;  %v4505_v17 = vpack.c.bf16 %v4487_v2, %v4486_v16  ;;  %v4454_v12 = vadd.f32 %v12730_v53, %v10609_v15 }
 0xca3   :  { %v4445_v44 = vpop.f32.mrf.mxu0 }
 0xca4   :  { %v4504_v38 = vpack.c.bf16 %v4485_v19, %v4484_v59  ;;  %v4446_v52 = vadd.f32 %v12730_v53, %v4445_v44  ;;  %v4490_v24 = vmax.f32 %v4454_v12, 0.0 }
 0xca5   :  { %v10610_v32 = vpop.f32.mrf.mxu0 }
 0xca6   :  { %v4457_v8 = vadd.f32 %v12730_v53, %v10610_v32  ;;  %10651 = vmatprep.mubr.bf16.mxu1 %v4504_v38  ;;  %v4488_v22 = vmax.f32 %v4446_v52, 0.0  ;;  %v11460_v38 = vld [vmem:[#allocation7 + $0xd8] sm:$0xff]  }
 0xca7   :  { %v4448_v30 = vpop.f32.mrf.mxu0  ;;  %10652 = vmatmul.mubr.bf16.gmra.mxu1 %v4505_v17 }
 0xca8   :  { %v4449_v61 = vadd.f32 %v12730_v53, %v4448_v30  ;;  %v4491_v45 = vmax.f32 %v4457_v8, 0.0 }
 0xcaa   :  { %v4489_v28 = vmax.f32 %v4449_v61, 0.0  ;;  %v4507_v5 = vpack.c.bf16 %v4491_v45, %v4490_v24  ;;  %v11461_v45 = vld [vmem:[#allocation7 + $0xd0] sm:$0xff]  }
 0xcac   :  { %v4506_v56 = vpack.c.bf16 %v4489_v28, %v4488_v22 }
 0xcae   :  { %10655 = vmatprep.mubr.bf16.mxu1 %v4506_v56 }
 0xcaf   :  { %10656 = vmatmul.mubr.bf16.gmra.mxu1 %v4507_v5 }
 0xd37   :  { %v10629_v23 = vpop.f32.mrf.mxu1 }
 0xd38   :  { %v4551_v51 = vadd.f32 %v12768_v50, %v10629_v23 }
 0xd39   :  { %v4542_v57 = vpop.f32.mrf.mxu1 }
 0xd3a   :  { %v4543_v11 = vadd.f32 %v12768_v50, %v4542_v57  ;;  %v4671_v55 = vmax.f32 %v4551_v51, 0.0 }
 0xd3b   :  { %v10630_v49 = vpop.f32.mrf.mxu1 }
 0xd3c   :  { %v4554_v34 = vadd.f32 %v12768_v50, %v10630_v49  ;;  %v4669_v54 = vmax.f32 %v4543_v11, 0.0  ;;  %v11462_v49 = vld [vmem:[#allocation7 + $0xc8] sm:$0xff]  }
 0xd3d   :  { %v4545_v53 = vpop.f32.mrf.mxu1 }
 0xd3e   :  { %v4546_v41 = vadd.f32 %v12768_v50, %v4545_v53  ;;  %v4672_v18 = vmax.f32 %v4554_v34, 0.0 }
 0xd3f   :  { %v10633_v20 = vpop.f32.mrf.mxu1 }
 0xd40   :  { %v4670_v40 = vmax.f32 %v4546_v41, 0.0  ;;  %v4702_v33 = vpack.c.bf16 %v4672_v18, %v4671_v55  ;;  %v4567_v25 = vadd.f32 %v12768_v50, %v10633_v20 }
 0xd41   :  { %v4558_v35 = vpop.f32.mrf.mxu1 }
 0xd42   :  { %v4701_v31 = vpack.c.bf16 %v4670_v40, %v4669_v54  ;;  %v4559_v47 = vadd.f32 %v12768_v50, %v4558_v35  ;;  %v4675_v4 = vmax.f32 %v4567_v25, 0.0  ;;  %v11463_v54 = vld [vmem:[#allocation7 + $0xc0] sm:$0xff]  }
 0xd43   :  { %v10634_v21 = vpop.f32.mrf.mxu1 }
 0xd44   :  { %v4570_v58 = vadd.f32 %v12768_v50, %v10634_v21  ;;  %10675 = vmatprep.mubr.bf16.mxu0 %v4701_v31  ;;  %v4673_v37 = vmax.f32 %v4559_v47, 0.0 }
 0xd45   :  { %v4561_v63 = vpop.f32.mrf.mxu1  ;;  %10676 = vmatmul.mubr.bf16.vlgmr.msra.gmra.mxu0 %v4702_v33 }
 0xd46   :  { %v4562_v14 = vadd.f32 %v12768_v50, %v4561_v63  ;;  %10756 = vmatpush3.bf16.msra.mxu0 %v12697_v27  ;;  %v4676_v60 = vmax.f32 %v4570_v58, 0.0  ;;  %v12791_v58 = vld [vmem:[#allocation7 + $0xb8] sm:$0xff]  }
 0xd47   :  { %v10637_v48 = vpop.f32.mrf.mxu1  ;;  %10757 = vmatprep.subr.bf16.mxu0 %v11457_v36 }
 0xd48   :  { %v4674_v3 = vmax.f32 %v4562_v14, 0.0  ;;  %v4704_v13 = vpack.c.bf16 %v4676_v60, %v4675_v4  ;;  %v4583_v27 = vadd.f32 %v12768_v50, %v10637_v48 }
 0xd49   :  { %v4574_v6 = vpop.f32.mrf.mxu1 }
 0xd4a   :  { %v4703_v26 = vpack.c.bf16 %v4674_v3, %v4673_v37  ;;  %10758 = vmatpush3.bf16.msra.mxu0 %v11457_v36  ;;  %v4575_v62 = vadd.f32 %v12768_v50, %v4574_v6  ;;  %v4679_v15 = vmax.f32 %v4583_v27, 0.0 }
 0xd4b   :  { %v10638_v39 = vpop.f32.mrf.mxu1  ;;  %10759 = vmatprep.subr.bf16.mxu0 %v11458_v43 }
 0xd4c   :  { %v4586_v0 = vadd.f32 %v12768_v50, %v10638_v39  ;;  %10679 = vmatprep.mubr.bf16.mxu0 %v4703_v26  ;;  %v4677_v29 = vmax.f32 %v4575_v62, 0.0 }
 0xd4d   :  { %v4577_v7 = vpop.f32.mrf.mxu1  ;;  %10680 = vmatmul.mubr.bf16.gmra.mxu0 %v4704_v13 }
 0xd4e   :  { %v4578_v9 = vadd.f32 %v12768_v50, %v4577_v7  ;;  %10760 = vmatpush3.bf16.msra.mxu0 %v11458_v43  ;;  %v4680_v10 = vmax.f32 %v4586_v0, 0.0 }
 0xd4f   :  { %v10641_v46 = vpop.f32.mrf.mxu1  ;;  %10761 = vmatprep.subr.bf16.mxu0 %v11459_v42 }
 0xd50   :  { %v4678_v2 = vmax.f32 %v4578_v9, 0.0  ;;  %v4706_v16 = vpack.c.bf16 %v4680_v10, %v4679_v15  ;;  %v4599_v52 = vadd.f32 %v12768_v50, %v10641_v46 }
 0xd51   :  { %v4590_v59 = vpop.f32.mrf.mxu1 }
 0xd52   :  { %v4705_v19 = vpack.c.bf16 %v4678_v2, %v4677_v29  ;;  %10762 = vmatpush3.bf16.msra.mxu0 %v11459_v42  ;;  %v4591_v17 = vadd.f32 %v12768_v50, %v4590_v59  ;;  %v4683_v24 = vmax.f32 %v4599_v52, 0.0 }
 0xd53   :  { %v10642_v44 = vpop.f32.mrf.mxu1  ;;  %10763 = vmatprep.subr.bf16.mxu0 %v11460_v38 }
 0xd54   :  { %v4602_v32 = vadd.f32 %v12768_v50, %v10642_v44  ;;  %10683 = vmatprep.mubr.bf16.mxu0 %v4705_v19  ;;  %v4681_v22 = vmax.f32 %v4591_v17, 0.0 }
 0xd55   :  { %v4593_v8 = vpop.f32.mrf.mxu1  ;;  %10684 = vmatmul.mubr.bf16.gmra.mxu0 %v4706_v16 }
 0xd56   :  { %v4594_v12 = vadd.f32 %v12768_v50, %v4593_v8  ;;  %10764 = vmatpush3.bf16.msra.mxu0 %v11460_v38  ;;  %v4684_v30 = vmax.f32 %v4602_v32, 0.0 }
 0xd57   :  { %v10645_v61 = vpop.f32.mrf.mxu1  ;;  %10765 = vmatprep.subr.bf16.mxu0 %v11461_v45 }
 0xd58   :  { %v4682_v28 = vmax.f32 %v4594_v12, 0.0  ;;  %v4708_v23 = vpack.c.bf16 %v4684_v30, %v4683_v24  ;;  %v4615_v51 = vadd.f32 %v12768_v50, %v10645_v61 }
 0xd59   :  { %v4606_v56 = vpop.f32.mrf.mxu1 }
 0xd5a   :  { %v4707_v5 = vpack.c.bf16 %v4682_v28, %v4681_v22  ;;  %10766 = vmatpush3.bf16.msra.mxu0 %v11461_v45  ;;  %v4607_v11 = vadd.f32 %v12768_v50, %v4606_v56  ;;  %v4687_v35 = vmax.f32 %v4615_v51, 0.0  ;;  %v12806_v56 = vld [vmem:[#allocation8 + $0x4] ss:$0 sm:$0xff] }
 0xd5b   :  { %v10646_v57 = vpop.f32.mrf.mxu1  ;;  %10767 = vmatprep.subr.bf16.mxu0 %v11462_v49 }
 0xd5c   :  { %v4618_v34 = vadd.f32 %v12768_v50, %v10646_v57  ;;  %10687 = vmatprep.mubr.bf16.mxu0 %v4707_v5  ;;  %v4685_v40 = vmax.f32 %v4607_v11, 0.0 }
 0xd5d   :  { %v4609_v53 = vpop.f32.mrf.mxu1  ;;  %10688 = vmatmul.mubr.bf16.gmra.mxu0 %v4708_v23  ;;  %v9120_v23 = vld [vmem:[#allocation5 + $0x288] sm:$0xff]  }
 0xd5e   :  { %v4610_v41 = vadd.f32 %v12768_v50, %v4609_v53  ;;  %10768 = vmatpush3.bf16.msra.mxu0 %v11462_v49  ;;  %v4688_v18 = vmax.f32 %v4618_v34, 0.0  ;;  %v8726_v49 = vld [vmem:[#allocation5 + $0x280] sm:$0xff]   ;;  %v8732_v34 = vunpack.c.h.bf16 %v9120_v23  ;;  %v8731_v51 = vunpack.c.l.bf16 %v9120_v23 }
 0xd5f   :  { %v10649_v20 = vpop.f32.mrf.mxu1  ;;  %10769 = vmatprep.subr.bf16.mxu0 %v11463_v54 }
 0xd60   :  { %v4686_v55 = vmax.f32 %v4610_v41, 0.0  ;;  %v4710_v21 = vpack.c.bf16 %v4688_v18, %v4687_v35  ;;  %v4631_v14 = vadd.f32 %v12768_v50, %v10649_v20  ;;  %v8727_v41 = vunpack.c.l.bf16 %v8726_v49 }
 0xd61   :  { %v4622_v31 = vpop.f32.mrf.mxu1  ;;  %v8728_v20 = vunpack.c.h.bf16 %v8726_v49 }
 0xd62   :  { %v4709_v33 = vpack.c.bf16 %v4686_v55, %v4685_v40  ;;  %10770 = vmatpush3.bf16.msra.mxu0 %v11463_v54  ;;  %v4623_v25 = vadd.f32 %v12768_v50, %v4622_v31  ;;  %v4691_v6 = vmax.f32 %v4631_v14, 0.0  ;;  %v12811_v40 = vld [vmem:[#allocation8 + $0x14] ss:$0 sm:$0xff]  ;;  %v12814_v31 = vld [vmem:[#allocation8 + $0xa] ss:$0 sm:$0xff] }
 0xd63   :  { %v10650_v47 = vpop.f32.mrf.mxu1  ;;  %10851 = vmatprep.subr.bf16.mxu0 %v12791_v58  ;;  %v5019_v14 = vmul.f32 %v8731_v51, %v12811_v40 }
 0xd64   :  { %v4634_v63 = vadd.f32 %v12768_v50, %v10650_v47  ;;  %10691 = vmatprep.mubr.bf16.mxu0 %v4709_v33  ;;  %v4689_v3 = vmax.f32 %v4623_v25, 0.0  ;;  %v5020_v47 = vmul.f32 %v8732_v34, %v12811_v40 }
 0xd65   :  { %v4625_v60 = vpop.f32.mrf.mxu1  ;;  %10692 = vmatmul.mubr.bf16.gmra.mxu0 %v4710_v21 }
 0xd66   :  { %v4626_v48 = vadd.f32 %v12768_v50, %v4625_v60  ;;  %v4692_v36 = vmax.f32 %v4634_v63, 0.0  ;;  %v9122_v63 = vld [vmem:[#allocation5 + $0x298] sm:$0xff]  }
 0xd67   :  { %v10653_v37 = vpop.f32.mrf.mxu1 }
 0xd68   :  { %v4690_v4 = vmax.f32 %v4626_v48, 0.0  ;;  %v4712_v39 = vpack.c.bf16 %v4692_v36, %v4691_v6  ;;  %v4647_v27 = vadd.f32 %v12768_v50, %v10653_v37  ;;  %v5017_v48 = vmul.f32 %v8727_v41, %v12811_v40  ;;  %v9121_v37 = vld [vmem:[#allocation5 + $0x290] sm:$0xff]  }
 0xd69   :  { %v4638_v26 = vpop.f32.mrf.mxu1  ;;  %v11466_v41 = vld [vmem:[#allocation7 + $0x130] sm:$0xff]  }
 0xd6a   :  { %v4711_v13 = vpack.c.bf16 %v4690_v4, %v4689_v3  ;;  %v4639_v62 = vadd.f32 %v12768_v50, %v4638_v26  ;;  %v4695_v2 = vmax.f32 %v4647_v27, 0.0  ;;  %v5018_v3 = vmul.f32 %v8728_v20, %v12811_v40 }
 0xd6b   :  { %v10654_v43 = vpop.f32.mrf.mxu1 }
 0xd6c   :  { %v4650_v0 = vadd.f32 %v12768_v50, %v10654_v43  ;;  %10695 = vmatprep.mubr.bf16.mxu0 %v4711_v13  ;;  %v4693_v42 = vmax.f32 %v4639_v62, 0.0 }
 0xd6d   :  { %v4641_v7 = vpop.f32.mrf.mxu1  ;;  %10696 = vmatmul.mubr.bf16.gmra.mxu0 %v4712_v39  ;;  %v8739_v39 = vunpack.c.l.bf16 %v9122_v63 }
 0xd6e   :  { %v4642_v9 = vadd.f32 %v12768_v50, %v4641_v7  ;;  %v4696_v10 = vmax.f32 %v4650_v0, 0.0  ;;  %v8735_v0 = vunpack.c.l.bf16 %v9121_v37  ;;  %v8740_v7 = vunpack.c.h.bf16 %v9122_v63 }
 0xd6f   :  { %v10657_v46 = vpop.f32.mrf.mxu1 }
 0xd70   :  { %v4694_v29 = vmax.f32 %v4642_v9, 0.0  ;;  %v4714_v19 = vpack.c.bf16 %v4696_v10, %v4695_v2  ;;  %v4663_v17 = vadd.f32 %v12768_v50, %v10657_v46 }
 0xd71   :  { %v4654_v15 = vpop.f32.mrf.mxu1 }
 0xd72   :  { %v4713_v59 = vpack.c.bf16 %v4694_v29, %v4693_v42  ;;  %v4655_v44 = vadd.f32 %v12768_v50, %v4654_v15  ;;  %v4699_v61 = vmax.f32 %v4663_v17, 0.0  ;;  %v8736_v29 = vunpack.c.h.bf16 %v9121_v37  ;;  %v9126_v37 = vld [vmem:[#allocation5 + $0x2b8] sm:$0xff]  }
 0xd73   :  { %v10658_v16 = vpop.f32.mrf.mxu1 }
 0xd74   :  { %v4666_v38 = vadd.f32 %v12768_v50, %v10658_v16  ;;  %10699 = vmatprep.mubr.bf16.mxu0 %v4713_v59  ;;  %v4697_v12 = vmax.f32 %v4655_v44, 0.0 }
 0xd75   :  { %v4657_v32 = vpop.f32.mrf.mxu1  ;;  %10700 = vmatmul.mubr.bf16.gmra.mxu0 %v4714_v19 }
 0xd76   :  { %v4658_v52 = vadd.f32 %v12768_v50, %v4657_v32  ;;  %v4700_v8 = vmax.f32 %v4666_v38, 0.0  ;;  %v5024_v32 = vmul.f32 %v8740_v7, %v12811_v40 }
 0xd78   :  { %v4698_v30 = vmax.f32 %v4658_v52, 0.0  ;;  %v4716_v22 = vpack.c.bf16 %v4700_v8, %v4699_v61  ;;  %v9124_v8 = vld [vmem:[#allocation5 + $0x2a8] sm:$0xff]   ;;  %v5021_v61 = vmul.f32 %v8735_v0, %v12811_v40 }
 0xd79   :  { %v8747_v49 = vunpack.c.l.bf16 %v9124_v8 }
 0xd7a   :  { %v4715_v45 = vpack.c.bf16 %v4698_v30, %v4697_v12  ;;  %v5023_v12 = vmul.f32 %v8739_v39, %v12811_v40  ;;  %v9125_v39 = vld [vmem:[#allocation5 + $0x2b0] sm:$0xff]  }
 0xd7c   :  { %10703 = vmatprep.mubr.bf16.mxu0 %v4715_v45 }
 0xd7d   :  { %10704 = vmatmul.mubr.bf16.gmra.mxu0 %v4716_v22  ;;  %v9123_v22 = vld [vmem:[#allocation5 + $0x2a0] sm:$0xff]  }
 0xd7e   :  { %v8743_v34 = vunpack.c.l.bf16 %v9123_v22 }
 0xe05   :  { %v10677_v28 = vpop.f32.mrf.mxu0 }
 0xe06   :  { %v4760_v5 = vadd.f32 %v12806_v56, %v10677_v28  ;;  %v5022_v28 = vmul.f32 %v8736_v29, %v12811_v40 }
 0xe07   :  { %v4751_v24 = vpop.f32.mrf.mxu0 }
 0xe08   :  { %v4752_v57 = vadd.f32 %v12806_v56, %v4751_v24  ;;  %v4880_v54 = vmax.f32 %v4760_v5, 0.0 }
 0xe09   :  { %v10678_v11 = vpop.f32.mrf.mxu0 }
 0xe0a   :  { %v4763_v50 = vadd.f32 %v12806_v56, %v10678_v11  ;;  %v4878_v53 = vmax.f32 %v4752_v57, 0.0  ;;  %v4918_v4 = vmul.f32 %v12814_v31, %v4880_v54 }
 0xe0b   :  { %v4754_v18 = vpop.f32.mrf.mxu0 }
 0xe0c   :  { %v4881_v55 = vmax.f32 %v4763_v50, 0.0  ;;  %v4755_v35 = vadd.f32 %v12806_v56, %v4754_v18  ;;  %v4916_v60 = vmul.f32 %v12814_v31, %v4878_v53  ;;  %v5051_v2 = vadd.f32 %v5019_v14, %v4918_v4 }
 0xe0d   :  { %v10681_v33 = vpop.f32.mrf.mxu0  ;;  %v8748_v53 = vunpack.c.h.bf16 %v9124_v8  ;;  %v5027_v4 = vmul.f32 %v8747_v49, %v12811_v40 }
 0xe0e   :  { %v4919_v21 = vmul.f32 %v12814_v31, %v4881_v55  ;;  %v4879_v25 = vmax.f32 %v4755_v35, 0.0  ;;  %v4776_v26 = vadd.f32 %v12806_v56, %v10681_v33  ;;  %v5049_v9 = vadd.f32 %v5017_v48, %v4916_v60 }
 0xe0f   :  { %v4767_v36 = vpop.f32.mrf.mxu0  ;;  %v8744_v35 = vunpack.c.h.bf16 %v9123_v22  ;;  %v5028_v48 = vmul.f32 %v8748_v53, %v12811_v40 }
 0xe10   :  { %v4917_v6 = vmul.f32 %v12814_v31, %v4879_v25  ;;  %v4768_v13 = vadd.f32 %v12806_v56, %v4767_v36  ;;  %v5052_v62 = vadd.f32 %v5020_v47, %v4919_v21  ;;  %v4884_v15 = vmax.f32 %v4776_v26, 0.0 }
 0xe11   :  { %v10682_v43 = vpop.f32.mrf.mxu0  ;;  %v5025_v26 = vmul.f32 %v8743_v34, %v12811_v40 }
 0xe12   :  { %v4779_v27 = vadd.f32 %v12806_v56, %v10682_v43  ;;  %v4882_v10 = vmax.f32 %v4768_v13, 0.0  ;;  %v5050_v42 = vadd.f32 %v5018_v3, %v4917_v6  ;;  %v5082_v38 = vpack.c.bf16 %v5052_v62, %v5051_v2  ;;  %v11467_v3 = vld [vmem:[#allocation7 + $0x128] sm:$0xff]  }
 0xe13   :  { %v4770_v46 = vpop.f32.mrf.mxu0  ;;  %v4922_v24 = vmul.f32 %v12814_v31, %v4884_v15  ;;  %v5026_v43 = vmul.f32 %v8744_v35, %v12811_v40  ;;  %v8756_v2 = vunpack.c.h.bf16 %v9126_v37  ;;  %v11468_v15 = vld [vmem:[#allocation7 + $0x120] sm:$0xff]  }
 0xe14   :  { %v4885_v59 = vmax.f32 %v4779_v27, 0.0  ;;  %v4771_v19 = vadd.f32 %v12806_v56, %v4770_v46  ;;  %v5081_v44 = vpack.c.bf16 %v5050_v42, %v5049_v9  ;;  %v4920_v30 = vmul.f32 %v12814_v31, %v4882_v10 }
 0xe15   :  { %v10685_v16 = vpop.f32.mrf.mxu0  ;;  %v5055_v33 = vadd.f32 %v5023_v12, %v4922_v24  ;;  %v8755_v9 = vunpack.c.l.bf16 %v9126_v37  ;;  %v8751_v42 = vunpack.c.l.bf16 %v9125_v39  ;;  %v5032_v22 = vmul.f32 %v8756_v2, %v12811_v40  ;;  %v9128_v24 = vld [vmem:[#allocation5 + $0x2c8] sm:$0xff]  }
 0xe16   :  { %v4923_v17 = vmul.f32 %v12814_v31, %v4885_v59  ;;  %v4883_v52 = vmax.f32 %v4771_v19, 0.0  ;;  %10723 = vmatprep.mubr.bf16.mxu1 %v5081_v44  ;;  %v4792_v23 = vadd.f32 %v12806_v56, %v10685_v16  ;;  %v5053_v18 = vadd.f32 %v5021_v61, %v4920_v30 }
 0xe17   :  { %v4783_v45 = vpop.f32.mrf.mxu0  ;;  %10724 = vmatmul.mubr.bf16.vlgmr.msra.gmra.mxu1 %v5082_v38  ;;  %v8752_v38 = vunpack.c.h.bf16 %v9125_v39  ;;  %v5029_v49 = vmul.f32 %v8751_v42, %v12811_v40 }
 0xe18   :  { %v4921_v5 = vmul.f32 %v12814_v31, %v4883_v52  ;;  %v4784_v57 = vadd.f32 %v12806_v56, %v4783_v45  ;;  %10804 = vmatpush3.bf16.msra.mxu1 %v12753_v1  ;;  %v5056_v50 = vadd.f32 %v5024_v32, %v4923_v17  ;;  %v4888_v21 = vmax.f32 %v4792_v23, 0.0 }
 0xe19   :  { %v10686_v11 = vpop.f32.mrf.mxu0  ;;  %10805 = vmatprep.subr.bf16.mxu1 %v11466_v41  ;;  %v5031_v23 = vmul.f32 %v8755_v9, %v12811_v40  ;;  %v5030_v34 = vmul.f32 %v8752_v38, %v12811_v40 }
 0xe1a   :  { %v4795_v51 = vadd.f32 %v12806_v56, %v10686_v11  ;;  %v4886_v20 = vmax.f32 %v4784_v57, 0.0  ;;  %v5054_v55 = vadd.f32 %v5022_v28, %v4921_v5  ;;  %v5084_v1 = vpack.c.bf16 %v5056_v50, %v5055_v33  ;;  %v11469_v5 = vld [vmem:[#allocation7 + $0x118] sm:$0xff]   ;;  %v9127_v50 = vld [vmem:[#allocation5 + $0x2c0] sm:$0xff]  }
 0xe1b   :  { %v4786_v54 = vpop.f32.mrf.mxu0  ;;  %v4926_v62 = vmul.f32 %v12814_v31, %v4888_v21  ;;  %v8759_v35 = vunpack.c.l.bf16 %v9127_v50  ;;  %v8764_v21 = vunpack.c.h.bf16 %v9128_v24 }
 0xe1c   :  { %v4889_v47 = vmax.f32 %v4795_v51, 0.0  ;;  %v4787_v25 = vadd.f32 %v12806_v56, %v4786_v54  ;;  %v5083_v14 = vpack.c.bf16 %v5054_v55, %v5053_v18  ;;  %10806 = vmatpush3.bf16.msra.mxu1 %v11466_v41  ;;  %v4924_v6 = vmul.f32 %v12814_v31, %v4886_v20 }
 0xe1d   :  { %v10689_v63 = vpop.f32.mrf.mxu0  ;;  %10807 = vmatprep.subr.bf16.mxu1 %v11467_v3  ;;  %v5059_v17 = vadd.f32 %v5027_v4, %v4926_v62  ;;  %v8763_v20 = vunpack.c.l.bf16 %v9128_v24  ;;  %v5036_v39 = vmul.f32 %v8764_v21, %v12811_v40  ;;  %v9130_v62 = vld [vmem:[#allocation5 + $0x2d8] sm:$0xff]   ;;  %v5033_v9 = vmul.f32 %v8759_v35, %v12811_v40 }
 0xe1e   :  { %v4927_v60 = vmul.f32 %v12814_v31, %v4889_v47  ;;  %v4887_v36 = vmax.f32 %v4787_v25, 0.0  ;;  %10727 = vmatprep.mubr.bf16.mxu1 %v5083_v14  ;;  %v4808_v27 = vadd.f32 %v12806_v56, %v10689_v63  ;;  %v5057_v59 = vadd.f32 %v5025_v26, %v4924_v6  ;;  %v11470_v47 = vld [vmem:[#allocation7 + $0x110] sm:$0xff]  }
 0xe1f   :  { %v4799_v13 = vpop.f32.mrf.mxu0  ;;  %10728 = vmatmul.mubr.bf16.gmra.mxu1 %v5084_v1 }
 0xe20   :  { %v4925_v0 = vmul.f32 %v12814_v31, %v4887_v36  ;;  %v4800_v7 = vadd.f32 %v12806_v56, %v4799_v13  ;;  %10808 = vmatpush3.bf16.msra.mxu1 %v11467_v3  ;;  %v5060_v46 = vadd.f32 %v5028_v48, %v4927_v60  ;;  %v4892_v32 = vmax.f32 %v4808_v27, 0.0 }
 0xe21   :  { %v10690_v10 = vpop.f32.mrf.mxu0  ;;  %10809 = vmatprep.subr.bf16.mxu1 %v11468_v15  ;;  %v8760_v60 = vunpack.c.h.bf16 %v9127_v50  ;;  %v5035_v27 = vmul.f32 %v8763_v20, %v12811_v40 }
 0xe22   :  { %v4811_v29 = vadd.f32 %v12806_v56, %v10690_v10  ;;  %v4890_v19 = vmax.f32 %v4800_v7, 0.0  ;;  %v5058_v44 = vadd.f32 %v5026_v43, %v4925_v0  ;;  %v5086_v61 = vpack.c.bf16 %v5060_v46, %v5059_v17  ;;  %v11471_v0 = vld [vmem:[#allocation7 + $0x108] sm:$0xff]   ;;  %v9129_v46 = vld [vmem:[#allocation5 + $0x2d0] sm:$0xff]  }
 0xe23   :  { %v4802_v16 = vpop.f32.mrf.mxu0  ;;  %v4930_v51 = vmul.f32 %v12814_v31, %v4892_v32  ;;  %v5034_v42 = vmul.f32 %v8760_v60, %v12811_v40  ;;  %v8767_v38 = vunpack.c.l.bf16 %v9129_v46  ;;  %v8772_v32 = vunpack.c.h.bf16 %v9130_v62 }
 0xe24   :  { %v4893_v52 = vmax.f32 %v4811_v29, 0.0  ;;  %v4803_v8 = vadd.f32 %v12806_v56, %v4802_v16  ;;  %v5085_v30 = vpack.c.bf16 %v5058_v44, %v5057_v59  ;;  %10810 = vmatpush3.bf16.msra.mxu1 %v11468_v15  ;;  %v4928_v57 = vmul.f32 %v12814_v31, %v4890_v19 }
 0xe25   :  { %v10693_v12 = vpop.f32.mrf.mxu0  ;;  %10811 = vmatprep.subr.bf16.mxu1 %v11469_v5  ;;  %v5063_v48 = vadd.f32 %v5031_v23, %v4930_v51  ;;  %v8771_v19 = vunpack.c.l.bf16 %v9130_v62  ;;  %v5040_v50 = vmul.f32 %v8772_v32, %v12811_v40  ;;  %v9132_v51 = vld [vmem:[#allocation5 + $0x2e8] sm:$0xff]   ;;  %v5037_v20 = vmul.f32 %v8767_v38, %v12811_v40 }
 0xe26   :  { %v4931_v45 = vmul.f32 %v12814_v31, %v4893_v52  ;;  %v4891_v28 = vmax.f32 %v4803_v8, 0.0  ;;  %10731 = vmatprep.mubr.bf16.mxu1 %v5085_v30  ;;  %v4824_v41 = vadd.f32 %v12806_v56, %v10693_v12  ;;  %v5061_v25 = vadd.f32 %v5029_v49, %v4928_v57  ;;  %v11472_v52 = vld [vmem:[#allocation7 + $0x100] sm:$0xff]  }
 0xe27   :  { %v4815_v11 = vpop.f32.mrf.mxu0  ;;  %10732 = vmatmul.mubr.bf16.gmra.mxu1 %v5086_v61 }
 0xe28   :  { %v4929_v53 = vmul.f32 %v12814_v31, %v4891_v28  ;;  %v4816_v18 = vadd.f32 %v12806_v56, %v4815_v11  ;;  %10812 = vmatpush3.bf16.msra.mxu1 %v11469_v5  ;;  %v5064_v55 = vadd.f32 %v5032_v22, %v4931_v45  ;;  %v4896_v36 = vmax.f32 %v4824_v41, 0.0 }
 0xe29   :  { %v10694_v54 = vpop.f32.mrf.mxu0  ;;  %10813 = vmatprep.subr.bf16.mxu1 %v11470_v47  ;;  %v8768_v45 = vunpack.c.h.bf16 %v9129_v46  ;;  %v5039_v41 = vmul.f32 %v8771_v19, %v12811_v40 }
 0xe2a   :  { %v4827_v33 = vadd.f32 %v12806_v56, %v10694_v54  ;;  %v4894_v63 = vmax.f32 %v4816_v18, 0.0  ;;  %v5062_v1 = vadd.f32 %v5030_v34, %v4929_v53  ;;  %v5088_v26 = vpack.c.bf16 %v5064_v55, %v5063_v48  ;;  %v12879_v53 = vld [vmem:[#allocation7 + $0xf8] sm:$0xff]   ;;  %v9131_v55 = vld [vmem:[#allocation5 + $0x2e0] sm:$0xff]  }
 0xe2b   :  { %v4818_v14 = vpop.f32.mrf.mxu0  ;;  %v4934_v29 = vmul.f32 %v12814_v31, %v4896_v36  ;;  %v5038_v35 = vmul.f32 %v8768_v45, %v12811_v40  ;;  %v8775_v60 = vunpack.c.l.bf16 %v9131_v55  ;;  %v8780_v36 = vunpack.c.h.bf16 %v9132_v51 }
 0xe2c   :  { %v4897_v37 = vmax.f32 %v4827_v33, 0.0  ;;  %v4819_v3 = vadd.f32 %v12806_v56, %v4818_v14  ;;  %v5087_v6 = vpack.c.bf16 %v5062_v1, %v5061_v25  ;;  %10814 = vmatpush3.bf16.msra.mxu1 %v11470_v47  ;;  %v4932_v7 = vmul.f32 %v12814_v31, %v4894_v63 }
 0xe2d   :  { %v10697_v4 = vpop.f32.mrf.mxu0  ;;  %10815 = vmatprep.subr.bf16.mxu1 %v11471_v0  ;;  %v5067_v22 = vadd.f32 %v5035_v27, %v4934_v29  ;;  %v8779_v63 = vunpack.c.l.bf16 %v9132_v51 }
 0xe2e   :  { %v4935_v13 = vmul.f32 %v12814_v31, %v4897_v37  ;;  %v4895_v43 = vmax.f32 %v4819_v3, 0.0  ;;  %10735 = vmatprep.mubr.bf16.mxu1 %v5087_v6  ;;  %v4840_v15 = vadd.f32 %v12806_v56, %v10697_v4  ;;  %v5065_v8 = vadd.f32 %v5033_v9, %v4932_v7 }
 0xe2f   :  { %v4831_v10 = vpop.f32.mrf.mxu0  ;;  %10736 = vmatmul.mubr.bf16.gmra.mxu1 %v5088_v26  ;;  %v8776_v26 = vunpack.c.h.bf16 %v9131_v55  ;;  %v5043_v29 = vmul.f32 %v8779_v63, %v12811_v40 }
 0xe30   :  { %v4933_v2 = vmul.f32 %v12814_v31, %v4895_v43  ;;  %v4832_v59 = vadd.f32 %v12806_v56, %v4831_v10  ;;  %10816 = vmatpush3.bf16.msra.mxu1 %v11471_v0  ;;  %v5068_v44 = vadd.f32 %v5036_v39, %v4935_v13  ;;  %v4900_v28 = vmax.f32 %v4840_v15, 0.0 }
 0xe31   :  { %v10698_v16 = vpop.f32.mrf.mxu0  ;;  %10817 = vmatprep.subr.bf16.mxu1 %v11472_v52  ;;  %v5044_v10 = vmul.f32 %v8780_v36, %v12811_v40  ;;  %v5041_v15 = vmul.f32 %v8775_v60, %v12811_v40  ;;  %v5042_v19 = vmul.f32 %v8776_v26, %v12811_v40 }
 0xe32   :  { %v4843_v17 = vadd.f32 %v12806_v56, %v10698_v16  ;;  %v4898_v12 = vmax.f32 %v4832_v59, 0.0  ;;  %v5066_v61 = vadd.f32 %v5034_v42, %v4933_v2  ;;  %v5090_v49 = vpack.c.bf16 %v5068_v44, %v5067_v22  ;;  %v9133_v42 = vld [vmem:[#allocation5 + $0x2f0] sm:$0xff]  }
 0xe33   :  { %v4834_v30 = vpop.f32.mrf.mxu0  ;;  %v4938_v33 = vmul.f32 %v12814_v31, %v4900_v28 }
 0xe34   :  { %v4901_v24 = vmax.f32 %v4843_v17, 0.0  ;;  %v4835_v5 = vadd.f32 %v12806_v56, %v4834_v30  ;;  %v5089_v57 = vpack.c.bf16 %v5066_v61, %v5065_v8  ;;  %10818 = vmatpush3.bf16.msra.mxu1 %v11472_v52  ;;  %v4936_v18 = vmul.f32 %v12814_v31, %v4898_v12  ;;  %v9134_v17 = vld [vmem:[#allocation5 + $0x2f8] sm:$0xff]  }
 0xe35   :  { %v10701_v23 = vpop.f32.mrf.mxu0  ;;  %10899 = vmatprep.subr.bf16.mxu1 %v12879_v53  ;;  %v5071_v13 = vadd.f32 %v5039_v41, %v4938_v33  ;;  %v8783_v52 = vunpack.c.l.bf16 %v9133_v42  ;;  %v8788_v12 = vunpack.c.h.bf16 %v9134_v17  ;;  %v8784_v30 = vunpack.c.h.bf16 %v9133_v42 }
 0xe36   :  { %v4939_v11 = vmul.f32 %v12814_v31, %v4901_v24  ;;  %v4899_v34 = vmax.f32 %v4835_v5, 0.0  ;;  %10739 = vmatprep.mubr.bf16.mxu1 %v5089_v57  ;;  %v4856_v47 = vadd.f32 %v12806_v56, %v10701_v23  ;;  %v5069_v37 = vadd.f32 %v5037_v20, %v4936_v18 }
 0xe37   :  { %v4847_v54 = vpop.f32.mrf.mxu0  ;;  %10740 = vmatmul.mubr.bf16.gmra.mxu1 %v5090_v49  ;;  %v8787_v24 = vunpack.c.l.bf16 %v9134_v17  ;;  %v5048_v51 = vmul.f32 %v8788_v12, %v12811_v40  ;;  %v5046_v18 = vmul.f32 %v8784_v30, %v12811_v40  ;;  %v11476_v30 = vld [vmem:[#allocation7 + $0xa8] sm:$0xff]  }
 0xe38   :  { %v4937_v21 = vmul.f32 %v12814_v31, %v4899_v34  ;;  %v4848_v25 = vadd.f32 %v12806_v56, %v4847_v54  ;;  %v5072_v1 = vadd.f32 %v5040_v50, %v4939_v11  ;;  %v4904_v39 = vmax.f32 %v4856_v47, 0.0 }
 0xe39   :  { %v10702_v14 = vpop.f32.mrf.mxu0  ;;  %v5045_v34 = vmul.f32 %v8783_v52, %v12811_v40 }
 0xe3a   :  { %v4859_v48 = vadd.f32 %v12806_v56, %v10702_v14  ;;  %v4902_v3 = vmax.f32 %v4848_v25, 0.0  ;;  %v5070_v6 = vadd.f32 %v5038_v35, %v4937_v21  ;;  %v5092_v7 = vpack.c.bf16 %v5072_v1, %v5071_v13 }
 0xe3b   :  { %v4850_v4 = vpop.f32.mrf.mxu0  ;;  %v4942_v16 = vmul.f32 %v12814_v31, %v4904_v39  ;;  %v5047_v21 = vmul.f32 %v8787_v24, %v12811_v40 }
 0xe3c   :  { %v4905_v43 = vmax.f32 %v4859_v48, 0.0  ;;  %v4851_v62 = vadd.f32 %v12806_v56, %v4850_v4  ;;  %v5091_v27 = vpack.c.bf16 %v5070_v6, %v5069_v37  ;;  %v4940_v2 = vmul.f32 %v12814_v31, %v4902_v3  ;;  %v12912_v3 = vld [vmem:[#allocation8 + $0x2] ss:$0 sm:$0xff] }
 0xe3d   :  { %v10705_v0 = vpop.f32.mrf.mxu0  ;;  %v5075_v57 = vadd.f32 %v5043_v29, %v4942_v16  ;;  %v11475_v16 = vld [vmem:[#allocation7 + $0xb0] sm:$0xff]  }
 0xe3e   :  { %v4943_v9 = vmul.f32 %v12814_v31, %v4905_v43  ;;  %v4903_v46 = vmax.f32 %v4851_v62, 0.0  ;;  %10743 = vmatprep.mubr.bf16.mxu1 %v5091_v27  ;;  %v4872_v38 = vadd.f32 %v12806_v56, %v10705_v0  ;;  %v5073_v28 = vadd.f32 %v5041_v15, %v4940_v2 }
 0xe3f   :  { %v4863_v59 = vpop.f32.mrf.mxu0  ;;  %10744 = vmatmul.mubr.bf16.gmra.mxu1 %v5092_v7 }
 0xe40   :  { %v4941_v44 = vmul.f32 %v12814_v31, %v4903_v46  ;;  %v4864_v32 = vadd.f32 %v12806_v56, %v4863_v59  ;;  %v5076_v61 = vadd.f32 %v5044_v10, %v4943_v9  ;;  %v4908_v49 = vmax.f32 %v4872_v38, 0.0 }
 0xe41   :  { %v10706_v8 = vpop.f32.mrf.mxu0 }
 0xe42   :  { %v4906_v45 = vmax.f32 %v4864_v32, 0.0  ;;  %v4875_v22 = vadd.f32 %v12806_v56, %v10706_v8  ;;  %v5074_v23 = vadd.f32 %v5042_v19, %v4941_v44  ;;  %v5094_v20 = vpack.c.bf16 %v5076_v61, %v5075_v57 }
 0xe43   :  { %v4866_v5 = vpop.f32.mrf.mxu0  ;;  %v4946_v33 = vmul.f32 %v12814_v31, %v4908_v49 }
 0xe44   :  { %v4909_v11 = vmax.f32 %v4875_v22, 0.0  ;;  %v4867_v50 = vadd.f32 %v12806_v56, %v4866_v5  ;;  %v5093_v41 = vpack.c.bf16 %v5074_v23, %v5073_v28  ;;  %v4944_v54 = vmul.f32 %v12814_v31, %v4906_v45  ;;  %v11477_v23 = vld [vmem:[#allocation7 + $0xa0] sm:$0xff]  }
 0xe45   :  { %v5079_v14 = vadd.f32 %v5047_v21, %v4946_v33 }
 0xe46   :  { %v4947_v55 = vmul.f32 %v12814_v31, %v4909_v11  ;;  %v4907_v35 = vmax.f32 %v4867_v50, 0.0  ;;  %10747 = vmatprep.mubr.bf16.mxu1 %v5093_v41  ;;  %v5077_v47 = vadd.f32 %v5045_v34, %v4944_v54 }
 0xe47   :  { %10748 = vmatmul.mubr.bf16.gmra.mxu1 %v5094_v20 }
 0xe48   :  { %v4945_v56 = vmul.f32 %v12814_v31, %v4907_v35  ;;  %v5080_v25 = vadd.f32 %v5048_v51, %v4947_v55 }
 0xe4a   :  { %v5078_v63 = vadd.f32 %v5046_v18, %v4945_v56  ;;  %v5096_v60 = vpack.c.bf16 %v5080_v25, %v5079_v14  ;;  %v11478_v18 = vld [vmem:[#allocation7 + $0x98] sm:$0xff]  }
 0xe4c   :  { %v5095_v1 = vpack.c.bf16 %v5078_v63, %v5077_v47  ;;  %v11479_v47 = vld [vmem:[#allocation7 + $0x90] sm:$0xff]  }
 0xe4e   :  { %10751 = vmatprep.mubr.bf16.mxu1 %v5095_v1 }
 0xe4f   :  { %10752 = vmatmul.mubr.bf16.gmra.mxu1 %v5096_v60 }
 0xed7   :  { %v10725_v48 = vpop.f32.mrf.mxu1 }
 0xed8   :  { %v5140_v31 = vadd.f32 %v12912_v3, %v10725_v48 }
 0xed9   :  { %v5131_v36 = vpop.f32.mrf.mxu1 }
 0xeda   :  { %v5132_v4 = vadd.f32 %v12912_v3, %v5131_v36  ;;  %v5260_v0 = vmax.f32 %v5140_v31, 0.0 }
 0xedb   :  { %v10726_v37 = vpop.f32.mrf.mxu1 }
 0xedc   :  { %v5143_v40 = vadd.f32 %v12912_v3, %v10726_v37  ;;  %v5258_v43 = vmax.f32 %v5132_v4, 0.0  ;;  %v11480_v37 = vld [vmem:[#allocation7 + $0x88] sm:$0xff]  }
 0xedd   :  { %v5134_v6 = vpop.f32.mrf.mxu1 }
 0xede   :  { %v5135_v26 = vadd.f32 %v12912_v3, %v5134_v6  ;;  %v5261_v13 = vmax.f32 %v5143_v40, 0.0 }
 0xedf   :  { %v10729_v39 = vpop.f32.mrf.mxu1 }
 0xee0   :  { %v5259_v62 = vmax.f32 %v5135_v26, 0.0  ;;  %v5291_v9 = vpack.c.bf16 %v5261_v13, %v5260_v0  ;;  %v5156_v29 = vadd.f32 %v12912_v3, %v10729_v39 }
 0xee1   :  { %v5147_v27 = vpop.f32.mrf.mxu1 }
 0xee2   :  { %v5290_v7 = vpack.c.bf16 %v5259_v62, %v5258_v43  ;;  %v5148_v46 = vadd.f32 %v12912_v3, %v5147_v27  ;;  %v5264_v17 = vmax.f32 %v5156_v29, 0.0  ;;  %v11481_v43 = vld [vmem:[#allocation7 + $0x80] sm:$0xff]  }
 0xee3   :  { %v10730_v10 = vpop.f32.mrf.mxu1 }
 0xee4   :  { %v5159_v42 = vadd.f32 %v12912_v3, %v10730_v10  ;;  %10771 = vmatprep.mubr.bf16.mxu0 %v5290_v7  ;;  %v5262_v44 = vmax.f32 %v5148_v46, 0.0 }
 0xee5   :  { %v5150_v2 = vpop.f32.mrf.mxu1  ;;  %10772 = vmatmul.mubr.bf16.vlgmr.msra.gmra.mxu0 %v5291_v9 }
 0xee6   :  { %v5151_v15 = vadd.f32 %v12912_v3, %v5150_v2  ;;  %10852 = vmatpush3.bf16.msra.mxu0 %v12791_v58  ;;  %v5265_v59 = vmax.f32 %v5159_v42, 0.0  ;;  %v12935_v42 = vld [vmem:[#allocation7 + $0x138] sm:$0xff]  }
 0xee7   :  { %v10733_v19 = vpop.f32.mrf.mxu1  ;;  %10853 = vmatprep.subr.bf16.mxu0 %v11475_v16 }
 0xee8   :  { %v5263_v38 = vmax.f32 %v5151_v15, 0.0  ;;  %v5293_v8 = vpack.c.bf16 %v5265_v59, %v5264_v17  ;;  %v5172_v58 = vadd.f32 %v12912_v3, %v10733_v19 }
 0xee9   :  { %v5163_v32 = vpop.f32.mrf.mxu1 }
 0xeea   :  { %v5292_v52 = vpack.c.bf16 %v5263_v38, %v5262_v44  ;;  %10854 = vmatpush3.bf16.msra.mxu0 %v11475_v16  ;;  %v5164_v61 = vadd.f32 %v12912_v3, %v5163_v32  ;;  %v5268_v11 = vmax.f32 %v5172_v58, 0.0 }
 0xeeb   :  { %v10734_v12 = vpop.f32.mrf.mxu1  ;;  %10855 = vmatprep.subr.bf16.mxu0 %v11476_v30 }
 0xeec   :  { %v5175_v45 = vadd.f32 %v12912_v3, %v10734_v12  ;;  %10775 = vmatprep.mubr.bf16.mxu0 %v5292_v52  ;;  %v5266_v57 = vmax.f32 %v5164_v61, 0.0 }
 0xeed   :  { %v5166_v22 = vpop.f32.mrf.mxu1  ;;  %10776 = vmatmul.mubr.bf16.gmra.mxu0 %v5293_v8 }
 0xeee   :  { %v5167_v28 = vadd.f32 %v12912_v3, %v5166_v22  ;;  %10856 = vmatpush3.bf16.msra.mxu0 %v11476_v30  ;;  %v5269_v24 = vmax.f32 %v5175_v45, 0.0 }
 0xeef   :  { %v10737_v5 = vpop.f32.mrf.mxu1  ;;  %10857 = vmatprep.subr.bf16.mxu0 %v11477_v23 }
 0xef0   :  { %v5267_v49 = vmax.f32 %v5167_v28, 0.0  ;;  %v5295_v51 = vpack.c.bf16 %v5269_v24, %v5268_v11  ;;  %v5188_v55 = vadd.f32 %v12912_v3, %v10737_v5 }
 0xef1   :  { %v5179_v50 = vpop.f32.mrf.mxu1 }
 0xef2   :  { %v5294_v34 = vpack.c.bf16 %v5267_v49, %v5266_v57  ;;  %10858 = vmatpush3.bf16.msra.mxu0 %v11477_v23  ;;  %v5180_v20 = vadd.f32 %v12912_v3, %v5179_v50  ;;  %v5272_v14 = vmax.f32 %v5188_v55, 0.0 }
 0xef3   :  { %v10738_v41 = vpop.f32.mrf.mxu1  ;;  %10859 = vmatprep.subr.bf16.mxu0 %v11478_v18 }
 0xef4   :  { %v5191_v54 = vadd.f32 %v12912_v3, %v10738_v41  ;;  %10779 = vmatprep.mubr.bf16.mxu0 %v5294_v34  ;;  %v5270_v25 = vmax.f32 %v5180_v20, 0.0 }
 0xef5   :  { %v5182_v35 = vpop.f32.mrf.mxu1  ;;  %10780 = vmatmul.mubr.bf16.gmra.mxu0 %v5295_v51 }
 0xef6   :  { %v5183_v33 = vadd.f32 %v12912_v3, %v5182_v35  ;;  %10860 = vmatpush3.bf16.msra.mxu0 %v11478_v18  ;;  %v5273_v21 = vmax.f32 %v5191_v54, 0.0 }
 0xef7   :  { %v10741_v56 = vpop.f32.mrf.mxu1  ;;  %10861 = vmatprep.subr.bf16.mxu0 %v11479_v47 }
 0xef8   :  { %v5271_v63 = vmax.f32 %v5183_v33, 0.0  ;;  %v5297_v48 = vpack.c.bf16 %v5273_v21, %v5272_v14  ;;  %v5204_v31 = vadd.f32 %v12912_v3, %v10741_v56 }
 0xef9   :  { %v5195_v1 = vpop.f32.mrf.mxu1 }
 0xefa   :  { %v5296_v60 = vpack.c.bf16 %v5271_v63, %v5270_v25  ;;  %10862 = vmatpush3.bf16.msra.mxu0 %v11479_v47  ;;  %v5196_v4 = vadd.f32 %v12912_v3, %v5195_v1  ;;  %v5276_v27 = vmax.f32 %v5204_v31, 0.0 }
 0xefb   :  { %v10742_v36 = vpop.f32.mrf.mxu1  ;;  %10863 = vmatprep.subr.bf16.mxu0 %v11480_v37 }
 0xefc   :  { %v5207_v40 = vadd.f32 %v12912_v3, %v10742_v36  ;;  %10783 = vmatprep.mubr.bf16.mxu0 %v5296_v60  ;;  %v5274_v62 = vmax.f32 %v5196_v4, 0.0  ;;  %v12950_v60 = vld [vmem:[#allocation8 + $0x3] ss:$0 sm:$0xff] }
 0xefd   :  { %v5198_v6 = vpop.f32.mrf.mxu1  ;;  %10784 = vmatmul.mubr.bf16.gmra.mxu0 %v5297_v48 }
 0xefe   :  { %v5199_v26 = vadd.f32 %v12912_v3, %v5198_v6  ;;  %10864 = vmatpush3.bf16.msra.mxu0 %v11480_v37  ;;  %v5277_v13 = vmax.f32 %v5207_v40, 0.0 }
 0xeff   :  { %v10745_v39 = vpop.f32.mrf.mxu1  ;;  %10865 = vmatprep.subr.bf16.mxu0 %v11481_v43 }
 0xf00   :  { %v5275_v0 = vmax.f32 %v5199_v26, 0.0  ;;  %v5299_v10 = vpack.c.bf16 %v5277_v13, %v5276_v27  ;;  %v5220_v15 = vadd.f32 %v12912_v3, %v10745_v39 }
 0xf01   :  { %v5211_v7 = vpop.f32.mrf.mxu1 }
 0xf02   :  { %v5298_v9 = vpack.c.bf16 %v5275_v0, %v5274_v62  ;;  %10866 = vmatpush3.bf16.msra.mxu0 %v11481_v43  ;;  %v5212_v29 = vadd.f32 %v12912_v3, %v5211_v7  ;;  %v5280_v32 = vmax.f32 %v5220_v15, 0.0  ;;  %v11484_v15 = vld [vmem:[#allocation7 + $0xf0] sm:$0xff]  }
 0xf03   :  { %v10746_v46 = vpop.f32.mrf.mxu1  ;;  %10947 = vmatprep.subr.bf16.mxu0 %v12935_v42 }
 0xf04   :  { %v5223_v2 = vadd.f32 %v12912_v3, %v10746_v46  ;;  %10787 = vmatprep.mubr.bf16.mxu0 %v5298_v9  ;;  %v5278_v38 = vmax.f32 %v5212_v29, 0.0 }
 0xf05   :  { %v5214_v59 = vpop.f32.mrf.mxu1  ;;  %10788 = vmatmul.mubr.bf16.gmra.mxu0 %v5299_v10 }
 0xf06   :  { %v5215_v19 = vadd.f32 %v12912_v3, %v5214_v59  ;;  %v5281_v16 = vmax.f32 %v5223_v2, 0.0 }
 0xf07   :  { %v10749_v44 = vpop.f32.mrf.mxu1 }
 0xf08   :  { %v5279_v17 = vmax.f32 %v5215_v19, 0.0  ;;  %v5301_v12 = vpack.c.bf16 %v5281_v16, %v5280_v32  ;;  %v5236_v58 = vadd.f32 %v12912_v3, %v10749_v44 }
 0xf09   :  { %v5227_v52 = vpop.f32.mrf.mxu1 }
 0xf0a   :  { %v5300_v8 = vpack.c.bf16 %v5279_v17, %v5278_v38  ;;  %v5228_v61 = vadd.f32 %v12912_v3, %v5227_v52  ;;  %v5284_v49 = vmax.f32 %v5236_v58, 0.0  ;;  %v11485_v52 = vld [vmem:[#allocation7 + $0xe8] sm:$0xff]  }
 0xf0b   :  { %v10750_v30 = vpop.f32.mrf.mxu1 }
 0xf0c   :  { %v5239_v45 = vadd.f32 %v12912_v3, %v10750_v30  ;;  %10791 = vmatprep.mubr.bf16.mxu0 %v5300_v8  ;;  %v5282_v23 = vmax.f32 %v5228_v61, 0.0 }
 0xf0d   :  { %v5230_v22 = vpop.f32.mrf.mxu1  ;;  %10792 = vmatmul.mubr.bf16.gmra.mxu0 %v5301_v12 }
 0xf0e   :  { %v5231_v28 = vadd.f32 %v12912_v3, %v5230_v22  ;;  %v5285_v24 = vmax.f32 %v5239_v45, 0.0  ;;  %v11486_v22 = vld [vmem:[#allocation7 + $0xe0] sm:$0xff]  }
 0xf0f   :  { %v10753_v5 = vpop.f32.mrf.mxu1 }
 0xf10   :  { %v5283_v57 = vmax.f32 %v5231_v28, 0.0  ;;  %v5303_v34 = vpack.c.bf16 %v5285_v24, %v5284_v49  ;;  %v5252_v20 = vadd.f32 %v12912_v3, %v10753_v5 }
 0xf11   :  { %v5243_v11 = vpop.f32.mrf.mxu1 }
 0xf12   :  { %v5302_v50 = vpack.c.bf16 %v5283_v57, %v5282_v23  ;;  %v5244_v41 = vadd.f32 %v12912_v3, %v5243_v11  ;;  %v5288_v56 = vmax.f32 %v5252_v20, 0.0 }
 0xf13   :  { %v10754_v51 = vpop.f32.mrf.mxu1 }
 0xf14   :  { %v5255_v18 = vadd.f32 %v12912_v3, %v10754_v51  ;;  %10795 = vmatprep.mubr.bf16.mxu0 %v5302_v50  ;;  %v5286_v33 = vmax.f32 %v5244_v41, 0.0  ;;  %v11487_v50 = vld [vmem:[#allocation7 + $0xd8] sm:$0xff]  }
 0xf15   :  { %v5246_v54 = vpop.f32.mrf.mxu1  ;;  %10796 = vmatmul.mubr.bf16.gmra.mxu0 %v5303_v34 }
 0xf16   :  { %v5247_v55 = vadd.f32 %v12912_v3, %v5246_v54  ;;  %v5289_v35 = vmax.f32 %v5255_v18, 0.0 }
 0xf18   :  { %v5287_v21 = vmax.f32 %v5247_v55, 0.0  ;;  %v5305_v25 = vpack.c.bf16 %v5289_v35, %v5288_v56  ;;  %v11488_v35 = vld [vmem:[#allocation7 + $0xd0] sm:$0xff]  }
 0xf1a   :  { %v5304_v47 = vpack.c.bf16 %v5287_v21, %v5286_v33 }
 0xf1c   :  { %10799 = vmatprep.mubr.bf16.mxu0 %v5304_v47 }
 0xf1d   :  { %10800 = vmatmul.mubr.bf16.gmra.mxu0 %v5305_v25 }
 0xfa5   :  { %v10773_v63 = vpop.f32.mrf.mxu0 }
 0xfa6   :  { %v5349_v37 = vadd.f32 %v12950_v60, %v10773_v63 }
 0xfa7   :  { %v5340_v14 = vpop.f32.mrf.mxu0 }
 0xfa8   :  { %v5341_v48 = vadd.f32 %v12950_v60, %v5340_v14  ;;  %v5469_v13 = vmax.f32 %v5349_v37, 0.0 }
 0xfa9   :  { %v10774_v1 = vpop.f32.mrf.mxu0 }
 0xfaa   :  { %v5352_v36 = vadd.f32 %v12950_v60, %v10774_v1  ;;  %v5467_v6 = vmax.f32 %v5341_v48, 0.0  ;;  %v11489_v1 = vld [vmem:[#allocation7 + $0xc8] sm:$0xff]  }
 0xfab   :  { %v5343_v3 = vpop.f32.mrf.mxu0 }
 0xfac   :  { %v5344_v4 = vadd.f32 %v12950_v60, %v5343_v3  ;;  %v5470_v40 = vmax.f32 %v5352_v36, 0.0 }
 0xfad   :  { %v10777_v31 = vpop.f32.mrf.mxu0 }
 0xfae   :  { %v5468_v26 = vmax.f32 %v5344_v4, 0.0  ;;  %v5500_v62 = vpack.c.bf16 %v5470_v40, %v5469_v13  ;;  %v5365_v9 = vadd.f32 %v12950_v60, %v10777_v31 }
 0xfaf   :  { %v5356_v39 = vpop.f32.mrf.mxu0 }
 0xfb0   :  { %v5499_v43 = vpack.c.bf16 %v5468_v26, %v5467_v6  ;;  %v5357_v27 = vadd.f32 %v12950_v60, %v5356_v39  ;;  %v5473_v16 = vmax.f32 %v5365_v9, 0.0  ;;  %v11490_v6 = vld [vmem:[#allocation7 + $0xc0] sm:$0xff]  }
 0xfb1   :  { %v10778_v0 = vpop.f32.mrf.mxu0 }
 0xfb2   :  { %v5368_v7 = vadd.f32 %v12950_v60, %v10778_v0  ;;  %10819 = vmatprep.mubr.bf16.mxu1 %v5499_v43  ;;  %v5471_v59 = vmax.f32 %v5357_v27, 0.0 }
 0xfb3   :  { %v5359_v10 = vpop.f32.mrf.mxu0  ;;  %10820 = vmatmul.mubr.bf16.vlgmr.msra.gmra.mxu1 %v5500_v62 }
 0xfb4   :  { %v5360_v46 = vadd.f32 %v12950_v60, %v5359_v10  ;;  %10900 = vmatpush3.bf16.msra.mxu1 %v12879_v53  ;;  %v5474_v29 = vmax.f32 %v5368_v7, 0.0  ;;  %v12973_v7 = vld [vmem:[#allocation7 + $0xb8] sm:$0xff]  }
 0xfb5   :  { %v10781_v2 = vpop.f32.mrf.mxu0  ;;  %10901 = vmatprep.subr.bf16.mxu1 %v11484_v15 }
 0xfb6   :  { %v5472_v19 = vmax.f32 %v5360_v46, 0.0  ;;  %v5502_v17 = vpack.c.bf16 %v5474_v29, %v5473_v16  ;;  %v5381_v53 = vadd.f32 %v12950_v60, %v10781_v2 }
 0xfb7   :  { %v5372_v44 = vpop.f32.mrf.mxu0 }
 0xfb8   :  { %v5501_v38 = vpack.c.bf16 %v5472_v19, %v5471_v59  ;;  %10902 = vmatpush3.bf16.msra.mxu1 %v11484_v15  ;;  %v5373_v8 = vadd.f32 %v12950_v60, %v5372_v44  ;;  %v5477_v5 = vmax.f32 %v5381_v53, 0.0 }
 0xfb9   :  { %v10782_v32 = vpop.f32.mrf.mxu0  ;;  %10903 = vmatprep.subr.bf16.mxu1 %v11485_v52 }
 0xfba   :  { %v5384_v12 = vadd.f32 %v12950_v60, %v10782_v32  ;;  %10823 = vmatprep.mubr.bf16.mxu1 %v5501_v38  ;;  %v5475_v28 = vmax.f32 %v5373_v8, 0.0 }
 0xfbb   :  { %v5375_v30 = vpop.f32.mrf.mxu0  ;;  %10824 = vmatmul.mubr.bf16.gmra.mxu1 %v5502_v17 }
 0xfbc   :  { %v5376_v61 = vadd.f32 %v12950_v60, %v5375_v30  ;;  %10904 = vmatpush3.bf16.msra.mxu1 %v11485_v52  ;;  %v5478_v45 = vmax.f32 %v5384_v12, 0.0 }
 0xfbd   :  { %v10785_v58 = vpop.f32.mrf.mxu0  ;;  %10905 = vmatprep.subr.bf16.mxu1 %v11486_v22 }
 0xfbe   :  { %v5476_v24 = vmax.f32 %v5376_v61, 0.0  ;;  %v5504_v49 = vpack.c.bf16 %v5478_v45, %v5477_v5  ;;  %v5397_v41 = vadd.f32 %v12950_v60, %v10785_v58 }
 0xfbf   :  { %v5388_v23 = vpop.f32.mrf.mxu0 }
 0xfc0   :  { %v5503_v57 = vpack.c.bf16 %v5476_v24, %v5475_v28  ;;  %10906 = vmatpush3.bf16.msra.mxu1 %v11486_v22  ;;  %v5389_v34 = vadd.f32 %v12950_v60, %v5388_v23  ;;  %v5481_v56 = vmax.f32 %v5397_v41, 0.0 }
 0xfc1   :  { %v10786_v11 = vpop.f32.mrf.mxu0  ;;  %10907 = vmatprep.subr.bf16.mxu1 %v11487_v50 }
 0xfc2   :  { %v5400_v51 = vadd.f32 %v12950_v60, %v10786_v11  ;;  %10827 = vmatprep.mubr.bf16.mxu1 %v5503_v57  ;;  %v5479_v33 = vmax.f32 %v5389_v34, 0.0 }
 0xfc3   :  { %v5391_v18 = vpop.f32.mrf.mxu0  ;;  %10828 = vmatmul.mubr.bf16.gmra.mxu1 %v5504_v49 }
 0xfc4   :  { %v5392_v20 = vadd.f32 %v12950_v60, %v5391_v18  ;;  %10908 = vmatpush3.bf16.msra.mxu1 %v11487_v50  ;;  %v5482_v54 = vmax.f32 %v5400_v51, 0.0 }
 0xfc5   :  { %v10789_v55 = vpop.f32.mrf.mxu0  ;;  %10909 = vmatprep.subr.bf16.mxu1 %v11488_v35 }
 0xfc6   :  { %v5480_v21 = vmax.f32 %v5392_v20, 0.0  ;;  %v5506_v63 = vpack.c.bf16 %v5482_v54, %v5481_v56  ;;  %v5413_v37 = vadd.f32 %v12950_v60, %v10789_v55 }
 0xfc7   :  { %v5404_v47 = vpop.f32.mrf.mxu0 }
 0xfc8   :  { %v5505_v25 = vpack.c.bf16 %v5480_v21, %v5479_v33  ;;  %10910 = vmatpush3.bf16.msra.mxu1 %v11488_v35  ;;  %v5405_v48 = vadd.f32 %v12950_v60, %v5404_v47  ;;  %v5485_v39 = vmax.f32 %v5413_v37, 0.0  ;;  %v12988_v47 = vld [vmem:[#allocation8 + $0x4] ss:$0 sm:$0xff] }
 0xfc9   :  { %v10790_v14 = vpop.f32.mrf.mxu0  ;;  %10911 = vmatprep.subr.bf16.mxu1 %v11489_v1 }
 0xfca   :  { %v5416_v36 = vadd.f32 %v12950_v60, %v10790_v14  ;;  %10831 = vmatprep.mubr.bf16.mxu1 %v5505_v25  ;;  %v5483_v26 = vmax.f32 %v5405_v48, 0.0 }
 0xfcb   :  { %v5407_v3 = vpop.f32.mrf.mxu0  ;;  %10832 = vmatmul.mubr.bf16.gmra.mxu1 %v5506_v63  ;;  %v9135_v63 = vld [vmem:[#allocation5 + $0x308] sm:$0xff]  }
 0xfcc   :  { %v5408_v4 = vadd.f32 %v12950_v60, %v5407_v3  ;;  %10912 = vmatpush3.bf16.msra.mxu1 %v11489_v1  ;;  %v5486_v40 = vmax.f32 %v5416_v36, 0.0  ;;  %v8790_v1 = vld [vmem:[#allocation5 + $0x300] sm:$0xff]   ;;  %v8796_v36 = vunpack.c.h.bf16 %v9135_v63  ;;  %v8795_v37 = vunpack.c.l.bf16 %v9135_v63 }
 0xfcd   :  { %v10793_v31 = vpop.f32.mrf.mxu0  ;;  %10913 = vmatprep.subr.bf16.mxu1 %v11490_v6 }
 0xfce   :  { %v5484_v13 = vmax.f32 %v5408_v4, 0.0  ;;  %v5508_v0 = vpack.c.bf16 %v5486_v40, %v5485_v39  ;;  %v5429_v46 = vadd.f32 %v12950_v60, %v10793_v31  ;;  %v8791_v4 = vunpack.c.l.bf16 %v8790_v1 }
 0xfcf   :  { %v5420_v43 = vpop.f32.mrf.mxu0  ;;  %v8792_v31 = vunpack.c.h.bf16 %v8790_v1 }
 0xfd0   :  { %v5507_v62 = vpack.c.bf16 %v5484_v13, %v5483_v26  ;;  %10914 = vmatpush3.bf16.msra.mxu1 %v11490_v6  ;;  %v5421_v9 = vadd.f32 %v12950_v60, %v5420_v43  ;;  %v5489_v44 = vmax.f32 %v5429_v46, 0.0  ;;  %v12993_v26 = vld [vmem:[#allocation8 + $0x15] ss:$0 sm:$0xff]  ;;  %v12996_v43 = vld [vmem:[#allocation8 + $0xb] ss:$0 sm:$0xff] }
 0xfd1   :  { %v10794_v27 = vpop.f32.mrf.mxu0  ;;  %10995 = vmatprep.subr.bf16.mxu1 %v12973_v7  ;;  %v5817_v46 = vmul.f32 %v8795_v37, %v12993_v26 }
 0xfd2   :  { %v5432_v10 = vadd.f32 %v12950_v60, %v10794_v27  ;;  %10835 = vmatprep.mubr.bf16.mxu1 %v5507_v62  ;;  %v5487_v19 = vmax.f32 %v5421_v9, 0.0  ;;  %v5818_v27 = vmul.f32 %v8796_v36, %v12993_v26 }
 0xfd3   :  { %v5423_v29 = vpop.f32.mrf.mxu0  ;;  %10836 = vmatmul.mubr.bf16.gmra.mxu1 %v5508_v0 }
 0xfd4   :  { %v5424_v2 = vadd.f32 %v12950_v60, %v5423_v29  ;;  %v5490_v15 = vmax.f32 %v5432_v10, 0.0  ;;  %v9137_v10 = vld [vmem:[#allocation5 + $0x318] sm:$0xff]  }
 0xfd5   :  { %v10797_v59 = vpop.f32.mrf.mxu0 }
 0xfd6   :  { %v5488_v16 = vmax.f32 %v5424_v2, 0.0  ;;  %v5510_v32 = vpack.c.bf16 %v5490_v15, %v5489_v44  ;;  %v5445_v53 = vadd.f32 %v12950_v60, %v10797_v59  ;;  %v5815_v2 = vmul.f32 %v8791_v4, %v12993_v26  ;;  %v9136_v59 = vld [vmem:[#allocation5 + $0x310] sm:$0xff]  }
 0xfd7   :  { %v5436_v38 = vpop.f32.mrf.mxu0  ;;  %v11493_v4 = vld [vmem:[#allocation7 + $0x130] sm:$0xff]  }
 0xfd8   :  { %v5509_v17 = vpack.c.bf16 %v5488_v16, %v5487_v19  ;;  %v5437_v8 = vadd.f32 %v12950_v60, %v5436_v38  ;;  %v5493_v24 = vmax.f32 %v5445_v53, 0.0  ;;  %v5816_v19 = vmul.f32 %v8792_v31, %v12993_v26 }
 0xfd9   :  { %v10798_v52 = vpop.f32.mrf.mxu0 }
 0xfda   :  { %v5448_v12 = vadd.f32 %v12950_v60, %v10798_v52  ;;  %10839 = vmatprep.mubr.bf16.mxu1 %v5509_v17  ;;  %v5491_v22 = vmax.f32 %v5437_v8, 0.0 }
 0xfdb   :  { %v5439_v30 = vpop.f32.mrf.mxu0  ;;  %10840 = vmatmul.mubr.bf16.gmra.mxu1 %v5510_v32  ;;  %v8803_v32 = vunpack.c.l.bf16 %v9137_v10 }
 0xfdc   :  { %v5440_v61 = vadd.f32 %v12950_v60, %v5439_v30  ;;  %v5494_v45 = vmax.f32 %v5448_v12, 0.0  ;;  %v8799_v12 = vunpack.c.l.bf16 %v9136_v59  ;;  %v8804_v30 = vunpack.c.h.bf16 %v9137_v10 }
 0xfdd   :  { %v10801_v58 = vpop.f32.mrf.mxu0 }
 0xfde   :  { %v5492_v28 = vmax.f32 %v5440_v61, 0.0  ;;  %v5512_v57 = vpack.c.bf16 %v5494_v45, %v5493_v24  ;;  %v5461_v34 = vadd.f32 %v12950_v60, %v10801_v58 }
 0xfdf   :  { %v5452_v5 = vpop.f32.mrf.mxu0 }
 0xfe0   :  { %v5511_v23 = vpack.c.bf16 %v5492_v28, %v5491_v22  ;;  %v5453_v11 = vadd.f32 %v12950_v60, %v5452_v5  ;;  %v5497_v55 = vmax.f32 %v5461_v34, 0.0  ;;  %v8800_v28 = vunpack.c.h.bf16 %v9136_v59  ;;  %v9141_v59 = vld [vmem:[#allocation5 + $0x338] sm:$0xff]  }
 0xfe1   :  { %v10802_v49 = vpop.f32.mrf.mxu0 }
 0xfe2   :  { %v5464_v50 = vadd.f32 %v12950_v60, %v10802_v49  ;;  %10843 = vmatprep.mubr.bf16.mxu1 %v5511_v23  ;;  %v5495_v20 = vmax.f32 %v5453_v11, 0.0 }
 0xfe3   :  { %v5455_v51 = vpop.f32.mrf.mxu0  ;;  %10844 = vmatmul.mubr.bf16.gmra.mxu1 %v5512_v57 }
 0xfe4   :  { %v5456_v41 = vadd.f32 %v12950_v60, %v5455_v51  ;;  %v5498_v18 = vmax.f32 %v5464_v50, 0.0  ;;  %v5822_v51 = vmul.f32 %v8804_v30, %v12993_v26 }
 0xfe6   :  { %v5496_v54 = vmax.f32 %v5456_v41, 0.0  ;;  %v5514_v33 = vpack.c.bf16 %v5498_v18, %v5497_v55  ;;  %v9139_v18 = vld [vmem:[#allocation5 + $0x328] sm:$0xff]   ;;  %v5819_v55 = vmul.f32 %v8799_v12, %v12993_v26 }
 0xfe7   :  { %v8811_v1 = vunpack.c.l.bf16 %v9139_v18 }
 0xfe8   :  { %v5513_v35 = vpack.c.bf16 %v5496_v54, %v5495_v20  ;;  %v5821_v20 = vmul.f32 %v8803_v32, %v12993_v26  ;;  %v9140_v32 = vld [vmem:[#allocation5 + $0x330] sm:$0xff]  }
 0xfea   :  { %10847 = vmatprep.mubr.bf16.mxu1 %v5513_v35 }
 0xfeb   :  { %10848 = vmatmul.mubr.bf16.gmra.mxu1 %v5514_v33  ;;  %v9138_v33 = vld [vmem:[#allocation5 + $0x320] sm:$0xff]  }
 0xfec   :  { %v8807_v36 = vunpack.c.l.bf16 %v9138_v33 }
0x1073   :  { %v10821_v21 = vpop.f32.mrf.mxu1 }
0x1074   :  { %v5558_v25 = vadd.f32 %v12988_v47, %v10821_v21  ;;  %v5820_v21 = vmul.f32 %v8800_v28, %v12993_v26 }
0x1075   :  { %v5549_v56 = vpop.f32.mrf.mxu1 }
0x1076   :  { %v5550_v14 = vadd.f32 %v12988_v47, %v5549_v56  ;;  %v5678_v6 = vmax.f32 %v5558_v25, 0.0 }
0x1077   :  { %v10822_v48 = vpop.f32.mrf.mxu1 }
0x1078   :  { %v5561_v60 = vadd.f32 %v12988_v47, %v10822_v48  ;;  %v5676_v3 = vmax.f32 %v5550_v14, 0.0  ;;  %v5716_v16 = vmul.f32 %v12996_v43, %v5678_v6 }
0x1079   :  { %v5552_v40 = vpop.f32.mrf.mxu1 }
0x107a   :  { %v5679_v13 = vmax.f32 %v5561_v60, 0.0  ;;  %v5553_v39 = vadd.f32 %v12988_v47, %v5552_v40  ;;  %v5714_v29 = vmul.f32 %v12996_v43, %v5676_v3  ;;  %v5849_v24 = vadd.f32 %v5817_v46, %v5716_v16 }
0x107b   :  { %v10825_v62 = vpop.f32.mrf.mxu1  ;;  %v8812_v3 = vunpack.c.h.bf16 %v9139_v18  ;;  %v5825_v16 = vmul.f32 %v8811_v1, %v12993_v26 }
0x107c   :  { %v5717_v0 = vmul.f32 %v12996_v43, %v5679_v13  ;;  %v5677_v9 = vmax.f32 %v5553_v39, 0.0  ;;  %v5574_v38 = vadd.f32 %v12988_v47, %v10825_v62  ;;  %v5847_v61 = vadd.f32 %v5815_v2, %v5714_v29 }
0x107d   :  { %v5565_v15 = vpop.f32.mrf.mxu1  ;;  %v8808_v39 = vunpack.c.h.bf16 %v9138_v33  ;;  %v5826_v2 = vmul.f32 %v8812_v3, %v12993_v26 }
0x107e   :  { %v5715_v44 = vmul.f32 %v12996_v43, %v5677_v9  ;;  %v5566_v17 = vadd.f32 %v12988_v47, %v5565_v15  ;;  %v5850_v8 = vadd.f32 %v5818_v27, %v5717_v0  ;;  %v5682_v5 = vmax.f32 %v5574_v38, 0.0 }
0x107f   :  { %v10826_v52 = vpop.f32.mrf.mxu1  ;;  %v5823_v38 = vmul.f32 %v8807_v36, %v12993_v26 }
0x1080   :  { %v5577_v53 = vadd.f32 %v12988_v47, %v10826_v52  ;;  %v5680_v45 = vmax.f32 %v5566_v17, 0.0  ;;  %v5848_v22 = vadd.f32 %v5816_v19, %v5715_v44  ;;  %v5880_v50 = vpack.c.bf16 %v5850_v8, %v5849_v24  ;;  %v11494_v19 = vld [vmem:[#allocation7 + $0x128] sm:$0xff]  }
0x1081   :  { %v5568_v58 = vpop.f32.mrf.mxu1  ;;  %v5720_v56 = vmul.f32 %v12996_v43, %v5682_v5  ;;  %v5824_v52 = vmul.f32 %v8808_v39, %v12993_v26  ;;  %v8820_v24 = vunpack.c.h.bf16 %v9141_v59  ;;  %v11495_v5 = vld [vmem:[#allocation7 + $0x120] sm:$0xff]  }
0x1082   :  { %v5683_v23 = vmax.f32 %v5577_v53, 0.0  ;;  %v5569_v57 = vadd.f32 %v12988_v47, %v5568_v58  ;;  %v5879_v11 = vpack.c.bf16 %v5848_v22, %v5847_v61  ;;  %v5718_v54 = vmul.f32 %v12996_v43, %v5680_v45 }
0x1083   :  { %v10829_v49 = vpop.f32.mrf.mxu1  ;;  %v5853_v62 = vadd.f32 %v5821_v20, %v5720_v56  ;;  %v8819_v61 = vunpack.c.l.bf16 %v9141_v59  ;;  %v8815_v22 = vunpack.c.l.bf16 %v9140_v32  ;;  %v5830_v33 = vmul.f32 %v8820_v24, %v12993_v26  ;;  %v9143_v56 = vld [vmem:[#allocation5 + $0x348] sm:$0xff]  }
0x1084   :  { %v5721_v34 = vmul.f32 %v12996_v43, %v5683_v23  ;;  %v5681_v41 = vmax.f32 %v5569_v57, 0.0  ;;  %10867 = vmatprep.mubr.bf16.mxu0 %v5879_v11  ;;  %v5590_v63 = vadd.f32 %v12988_v47, %v10829_v49  ;;  %v5851_v40 = vadd.f32 %v5819_v55, %v5718_v54 }
0x1085   :  { %v5581_v35 = vpop.f32.mrf.mxu1  ;;  %10868 = vmatmul.mubr.bf16.vlgmr.msra.gmra.mxu0 %v5880_v50  ;;  %v8816_v50 = vunpack.c.h.bf16 %v9140_v32  ;;  %v5827_v1 = vmul.f32 %v8815_v22, %v12993_v26 }
0x1086   :  { %v5719_v25 = vmul.f32 %v12996_v43, %v5681_v41  ;;  %v5582_v14 = vadd.f32 %v12988_v47, %v5581_v35  ;;  %10948 = vmatpush3.bf16.msra.mxu0 %v12935_v42  ;;  %v5854_v60 = vadd.f32 %v5822_v51, %v5721_v34  ;;  %v5686_v0 = vmax.f32 %v5590_v63, 0.0 }
0x1087   :  { %v10830_v48 = vpop.f32.mrf.mxu1  ;;  %10949 = vmatprep.subr.bf16.mxu0 %v11493_v4  ;;  %v5829_v63 = vmul.f32 %v8819_v61, %v12993_v26  ;;  %v5828_v36 = vmul.f32 %v8816_v50, %v12993_v26 }
0x1088   :  { %v5593_v37 = vadd.f32 %v12988_v47, %v10830_v48  ;;  %v5684_v31 = vmax.f32 %v5582_v14, 0.0  ;;  %v5852_v13 = vadd.f32 %v5820_v21, %v5719_v25  ;;  %v5882_v42 = vpack.c.bf16 %v5854_v60, %v5853_v62  ;;  %v11496_v25 = vld [vmem:[#allocation7 + $0x118] sm:$0xff]   ;;  %v9142_v60 = vld [vmem:[#allocation5 + $0x340] sm:$0xff]  }
0x1089   :  { %v5584_v6 = vpop.f32.mrf.mxu1  ;;  %v5724_v8 = vmul.f32 %v12996_v43, %v5686_v0  ;;  %v8823_v39 = vunpack.c.l.bf16 %v9142_v60  ;;  %v8828_v0 = vunpack.c.h.bf16 %v9143_v56 }
0x108a   :  { %v5687_v27 = vmax.f32 %v5593_v37, 0.0  ;;  %v5585_v9 = vadd.f32 %v12988_v47, %v5584_v6  ;;  %v5881_v46 = vpack.c.bf16 %v5852_v13, %v5851_v40  ;;  %10950 = vmatpush3.bf16.msra.mxu0 %v11493_v4  ;;  %v5722_v44 = vmul.f32 %v12996_v43, %v5684_v31 }
0x108b   :  { %v10833_v10 = vpop.f32.mrf.mxu1  ;;  %10951 = vmatprep.subr.bf16.mxu0 %v11494_v19  ;;  %v5857_v34 = vadd.f32 %v5825_v16, %v5724_v8  ;;  %v8827_v31 = vunpack.c.l.bf16 %v9143_v56  ;;  %v5834_v32 = vmul.f32 %v8828_v0, %v12993_v26  ;;  %v9145_v8 = vld [vmem:[#allocation5 + $0x358] sm:$0xff]   ;;  %v5831_v61 = vmul.f32 %v8823_v39, %v12993_v26 }
0x108c   :  { %v5725_v29 = vmul.f32 %v12996_v43, %v5687_v27  ;;  %v5685_v15 = vmax.f32 %v5585_v9, 0.0  ;;  %10871 = vmatprep.mubr.bf16.mxu0 %v5881_v46  ;;  %v5606_v53 = vadd.f32 %v12988_v47, %v10833_v10  ;;  %v5855_v23 = vadd.f32 %v5823_v38, %v5722_v44  ;;  %v11497_v27 = vld [vmem:[#allocation7 + $0x110] sm:$0xff]  }
0x108d   :  { %v5597_v17 = vpop.f32.mrf.mxu1  ;;  %10872 = vmatmul.mubr.bf16.gmra.mxu0 %v5882_v42 }
0x108e   :  { %v5723_v12 = vmul.f32 %v12996_v43, %v5685_v15  ;;  %v5598_v30 = vadd.f32 %v12988_v47, %v5597_v17  ;;  %10952 = vmatpush3.bf16.msra.mxu0 %v11494_v19  ;;  %v5858_v58 = vadd.f32 %v5826_v2, %v5725_v29  ;;  %v5690_v51 = vmax.f32 %v5606_v53, 0.0 }
0x108f   :  { %v10834_v45 = vpop.f32.mrf.mxu1  ;;  %10953 = vmatprep.subr.bf16.mxu0 %v11495_v5  ;;  %v8824_v29 = vunpack.c.h.bf16 %v9142_v60  ;;  %v5833_v53 = vmul.f32 %v8827_v31, %v12993_v26 }
0x1090   :  { %v5609_v28 = vadd.f32 %v12988_v47, %v10834_v45  ;;  %v5688_v57 = vmax.f32 %v5598_v30, 0.0  ;;  %v5856_v11 = vadd.f32 %v5824_v52, %v5723_v12  ;;  %v5884_v55 = vpack.c.bf16 %v5858_v58, %v5857_v34  ;;  %v11498_v12 = vld [vmem:[#allocation7 + $0x108] sm:$0xff]   ;;  %v9144_v58 = vld [vmem:[#allocation5 + $0x350] sm:$0xff]  }
0x1091   :  { %v5600_v49 = vpop.f32.mrf.mxu1  ;;  %v5728_v37 = vmul.f32 %v12996_v43, %v5690_v51  ;;  %v5832_v22 = vmul.f32 %v8824_v29, %v12993_v26  ;;  %v8831_v50 = vunpack.c.l.bf16 %v9144_v58  ;;  %v8836_v51 = vunpack.c.h.bf16 %v9145_v8 }
0x1092   :  { %v5691_v41 = vmax.f32 %v5609_v28, 0.0  ;;  %v5601_v18 = vadd.f32 %v12988_v47, %v5600_v49  ;;  %v5883_v54 = vpack.c.bf16 %v5856_v11, %v5855_v23  ;;  %10954 = vmatpush3.bf16.msra.mxu0 %v11495_v5  ;;  %v5726_v14 = vmul.f32 %v12996_v43, %v5688_v57 }
0x1093   :  { %v10837_v20 = vpop.f32.mrf.mxu1  ;;  %10955 = vmatprep.subr.bf16.mxu0 %v11496_v25  ;;  %v5861_v2 = vadd.f32 %v5829_v63, %v5728_v37  ;;  %v8835_v57 = vunpack.c.l.bf16 %v9145_v8  ;;  %v5838_v60 = vmul.f32 %v8836_v51, %v12993_v26  ;;  %v9147_v37 = vld [vmem:[#allocation5 + $0x368] sm:$0xff]   ;;  %v5835_v31 = vmul.f32 %v8831_v50, %v12993_v26 }
0x1094   :  { %v5729_v35 = vmul.f32 %v12996_v43, %v5691_v41  ;;  %v5689_v21 = vmax.f32 %v5601_v18, 0.0  ;;  %10875 = vmatprep.mubr.bf16.mxu0 %v5883_v54  ;;  %v5622_v4 = vadd.f32 %v12988_v47, %v10837_v20  ;;  %v5859_v9 = vadd.f32 %v5827_v1, %v5726_v14  ;;  %v11499_v41 = vld [vmem:[#allocation7 + $0x100] sm:$0xff]  }
0x1095   :  { %v5613_v48 = vpop.f32.mrf.mxu1  ;;  %10876 = vmatmul.mubr.bf16.gmra.mxu0 %v5884_v55 }
0x1096   :  { %v5727_v3 = vmul.f32 %v12996_v43, %v5689_v21  ;;  %v5614_v40 = vadd.f32 %v12988_v47, %v5613_v48  ;;  %10956 = vmatpush3.bf16.msra.mxu0 %v11496_v25  ;;  %v5862_v13 = vadd.f32 %v5830_v33, %v5729_v35  ;;  %v5694_v15 = vmax.f32 %v5622_v4, 0.0 }
0x1097   :  { %v10838_v6 = vpop.f32.mrf.mxu1  ;;  %10957 = vmatprep.subr.bf16.mxu0 %v11497_v27  ;;  %v8832_v35 = vunpack.c.h.bf16 %v9144_v58  ;;  %v5837_v4 = vmul.f32 %v8835_v57, %v12993_v26 }
0x1098   :  { %v5625_v62 = vadd.f32 %v12988_v47, %v10838_v6  ;;  %v5692_v10 = vmax.f32 %v5614_v40, 0.0  ;;  %v5860_v42 = vadd.f32 %v5828_v36, %v5727_v3  ;;  %v5886_v38 = vpack.c.bf16 %v5862_v13, %v5861_v2  ;;  %v13061_v3 = vld [vmem:[#allocation7 + $0xf8] sm:$0xff]   ;;  %v9146_v13 = vld [vmem:[#allocation5 + $0x360] sm:$0xff]  }
0x1099   :  { %v5616_v46 = vpop.f32.mrf.mxu1  ;;  %v5732_v28 = vmul.f32 %v12996_v43, %v5694_v15  ;;  %v5836_v39 = vmul.f32 %v8832_v35, %v12993_v26  ;;  %v8839_v29 = vunpack.c.l.bf16 %v9146_v13  ;;  %v8844_v15 = vunpack.c.h.bf16 %v9147_v37 }
0x109a   :  { %v5695_v59 = vmax.f32 %v5625_v62, 0.0  ;;  %v5617_v19 = vadd.f32 %v12988_v47, %v5616_v46  ;;  %v5885_v44 = vpack.c.bf16 %v5860_v42, %v5859_v9  ;;  %10958 = vmatpush3.bf16.msra.mxu0 %v11497_v27  ;;  %v5730_v30 = vmul.f32 %v12996_v43, %v5692_v10 }
0x109b   :  { %v10841_v16 = vpop.f32.mrf.mxu1  ;;  %10959 = vmatprep.subr.bf16.mxu0 %v11498_v12  ;;  %v5865_v33 = vadd.f32 %v5833_v53, %v5732_v28  ;;  %v8843_v10 = vunpack.c.l.bf16 %v9147_v37 }
0x109c   :  { %v5733_v17 = vmul.f32 %v12996_v43, %v5695_v59  ;;  %v5693_v52 = vmax.f32 %v5617_v19, 0.0  ;;  %10879 = vmatprep.mubr.bf16.mxu0 %v5885_v44  ;;  %v5638_v5 = vadd.f32 %v12988_v47, %v10841_v16  ;;  %v5863_v18 = vadd.f32 %v5831_v61, %v5730_v30 }
0x109d   :  { %v5629_v45 = vpop.f32.mrf.mxu1  ;;  %10880 = vmatmul.mubr.bf16.gmra.mxu0 %v5886_v38  ;;  %v8840_v38 = vunpack.c.h.bf16 %v9146_v13  ;;  %v5841_v28 = vmul.f32 %v8843_v10, %v12993_v26 }
0x109e   :  { %v5731_v24 = vmul.f32 %v12996_v43, %v5693_v52  ;;  %v5630_v23 = vadd.f32 %v12988_v47, %v5629_v45  ;;  %10960 = vmatpush3.bf16.msra.mxu0 %v11498_v12  ;;  %v5866_v11 = vadd.f32 %v5834_v32, %v5733_v17  ;;  %v5698_v21 = vmax.f32 %v5638_v5, 0.0 }
0x109f   :  { %v10842_v49 = vpop.f32.mrf.mxu1  ;;  %10961 = vmatprep.subr.bf16.mxu0 %v11499_v41  ;;  %v5842_v45 = vmul.f32 %v8844_v15, %v12993_v26  ;;  %v5839_v5 = vmul.f32 %v8839_v29, %v12993_v26  ;;  %v5840_v57 = vmul.f32 %v8840_v38, %v12993_v26 }
0x10a0   :  { %v5641_v34 = vadd.f32 %v12988_v47, %v10842_v49  ;;  %v5696_v20 = vmax.f32 %v5630_v23, 0.0  ;;  %v5864_v55 = vadd.f32 %v5832_v22, %v5731_v24  ;;  %v5888_v1 = vpack.c.bf16 %v5866_v11, %v5865_v33  ;;  %v9148_v22 = vld [vmem:[#allocation5 + $0x370] sm:$0xff]  }
0x10a1   :  { %v5632_v54 = vpop.f32.mrf.mxu1  ;;  %v5736_v62 = vmul.f32 %v12996_v43, %v5698_v21 }
0x10a2   :  { %v5699_v56 = vmax.f32 %v5641_v34, 0.0  ;;  %v5633_v25 = vadd.f32 %v12988_v47, %v5632_v54  ;;  %v5887_v14 = vpack.c.bf16 %v5864_v55, %v5863_v18  ;;  %10962 = vmatpush3.bf16.msra.mxu0 %v11499_v41  ;;  %v5734_v40 = vmul.f32 %v12996_v43, %v5696_v20  ;;  %v9149_v34 = vld [vmem:[#allocation5 + $0x378] sm:$0xff]  }
0x10a3   :  { %v10845_v63 = vpop.f32.mrf.mxu1  ;;  %11043 = vmatprep.subr.bf16.mxu0 %v13061_v3  ;;  %v5869_v17 = vadd.f32 %v5837_v4, %v5736_v62  ;;  %v8847_v41 = vunpack.c.l.bf16 %v9148_v22  ;;  %v8852_v20 = vunpack.c.h.bf16 %v9149_v34  ;;  %v8848_v54 = vunpack.c.h.bf16 %v9148_v22 }
0x10a4   :  { %v5737_v48 = vmul.f32 %v12996_v43, %v5699_v56  ;;  %v5697_v36 = vmax.f32 %v5633_v25, 0.0  ;;  %10883 = vmatprep.mubr.bf16.mxu0 %v5887_v14  ;;  %v5654_v27 = vadd.f32 %v12988_v47, %v10845_v63  ;;  %v5867_v59 = vadd.f32 %v5835_v31, %v5734_v40 }
0x10a5   :  { %v5645_v6 = vpop.f32.mrf.mxu1  ;;  %10884 = vmatmul.mubr.bf16.gmra.mxu0 %v5888_v1  ;;  %v8851_v56 = vunpack.c.l.bf16 %v9149_v34  ;;  %v5846_v37 = vmul.f32 %v8852_v20, %v12993_v26  ;;  %v5844_v40 = vmul.f32 %v8848_v54, %v12993_v26  ;;  %v11503_v54 = vld [vmem:[#allocation7 + $0xa8] sm:$0xff]  }
0x10a6   :  { %v5735_v0 = vmul.f32 %v12996_v43, %v5697_v36  ;;  %v5646_v9 = vadd.f32 %v12988_v47, %v5645_v6  ;;  %v5870_v42 = vadd.f32 %v5838_v60, %v5737_v48  ;;  %v5702_v32 = vmax.f32 %v5654_v27, 0.0 }
0x10a7   :  { %v10846_v46 = vpop.f32.mrf.mxu1  ;;  %v5843_v36 = vmul.f32 %v8847_v41, %v12993_v26 }
0x10a8   :  { %v5657_v2 = vadd.f32 %v12988_v47, %v10846_v46  ;;  %v5700_v19 = vmax.f32 %v5646_v9, 0.0  ;;  %v5868_v44 = vadd.f32 %v5836_v39, %v5735_v0  ;;  %v5890_v30 = vpack.c.bf16 %v5870_v42, %v5869_v17 }
0x10a9   :  { %v5648_v16 = vpop.f32.mrf.mxu1  ;;  %v5740_v49 = vmul.f32 %v12996_v43, %v5702_v32  ;;  %v5845_v0 = vmul.f32 %v8851_v56, %v12993_v26 }
0x10aa   :  { %v5703_v52 = vmax.f32 %v5657_v2, 0.0  ;;  %v5649_v8 = vadd.f32 %v12988_v47, %v5648_v16  ;;  %v5889_v53 = vpack.c.bf16 %v5868_v44, %v5867_v59  ;;  %v5738_v24 = vmul.f32 %v12996_v43, %v5700_v19  ;;  %v13094_v19 = vld [vmem:[#allocation8 + $0x2] ss:$0 sm:$0xff] }
0x10ab   :  { %v10849_v12 = vpop.f32.mrf.mxu1  ;;  %v5873_v14 = vadd.f32 %v5841_v28, %v5740_v49  ;;  %v11502_v49 = vld [vmem:[#allocation7 + $0xb0] sm:$0xff]  }
0x10ac   :  { %v5741_v61 = vmul.f32 %v12996_v43, %v5703_v52  ;;  %v5701_v58 = vmax.f32 %v5649_v8, 0.0  ;;  %10887 = vmatprep.mubr.bf16.mxu0 %v5889_v53  ;;  %v5670_v50 = vadd.f32 %v12988_v47, %v10849_v12  ;;  %v5871_v21 = vadd.f32 %v5839_v5, %v5738_v24 }
0x10ad   :  { %v5661_v23 = vpop.f32.mrf.mxu1  ;;  %10888 = vmatmul.mubr.bf16.gmra.mxu0 %v5890_v30 }
0x10ae   :  { %v5739_v11 = vmul.f32 %v12996_v43, %v5701_v58  ;;  %v5662_v51 = vadd.f32 %v12988_v47, %v5661_v23  ;;  %v5874_v55 = vadd.f32 %v5842_v45, %v5741_v61  ;;  %v5706_v1 = vmax.f32 %v5670_v50, 0.0 }
0x10af   :  { %v10850_v18 = vpop.f32.mrf.mxu1 }
0x10b0   :  { %v5704_v35 = vmax.f32 %v5662_v51, 0.0  ;;  %v5673_v33 = vadd.f32 %v12988_v47, %v10850_v18  ;;  %v5872_v63 = vadd.f32 %v5840_v57, %v5739_v11  ;;  %v5892_v31 = vpack.c.bf16 %v5874_v55, %v5873_v14 }
0x10b1   :  { %v5664_v25 = vpop.f32.mrf.mxu1  ;;  %v5744_v62 = vmul.f32 %v12996_v43, %v5706_v1 }
0x10b2   :  { %v5707_v48 = vmax.f32 %v5673_v33, 0.0  ;;  %v5665_v60 = vadd.f32 %v12988_v47, %v5664_v25  ;;  %v5891_v4 = vpack.c.bf16 %v5872_v63, %v5871_v21  ;;  %v5742_v6 = vmul.f32 %v12996_v43, %v5704_v35  ;;  %v11504_v63 = vld [vmem:[#allocation7 + $0xa0] sm:$0xff]  }
0x10b3   :  { %v5877_v46 = vadd.f32 %v5845_v0, %v5744_v62 }
0x10b4   :  { %v5745_v13 = vmul.f32 %v12996_v43, %v5707_v48  ;;  %v5705_v39 = vmax.f32 %v5665_v60, 0.0  ;;  %10891 = vmatprep.mubr.bf16.mxu0 %v5891_v4  ;;  %v5875_v27 = vadd.f32 %v5843_v36, %v5742_v6 }
0x10b5   :  { %10892 = vmatmul.mubr.bf16.gmra.mxu0 %v5892_v31 }
0x10b6   :  { %v5743_v47 = vmul.f32 %v12996_v43, %v5705_v39  ;;  %v5878_v9 = vadd.f32 %v5846_v37, %v5745_v13 }
0x10b8   :  { %v5876_v10 = vadd.f32 %v5844_v40, %v5743_v47  ;;  %v5894_v29 = vpack.c.bf16 %v5878_v9, %v5877_v46  ;;  %v11505_v40 = vld [vmem:[#allocation7 + $0x98] sm:$0xff]  }
0x10ba   :  { %v5893_v42 = vpack.c.bf16 %v5876_v10, %v5875_v27  ;;  %v11506_v27 = vld [vmem:[#allocation7 + $0x90] sm:$0xff]  }
0x10bc   :  { %10895 = vmatprep.mubr.bf16.mxu0 %v5893_v42 }
0x10bd   :  { %10896 = vmatmul.mubr.bf16.gmra.mxu0 %v5894_v29 }
0x1145   :  { %v10869_v2 = vpop.f32.mrf.mxu0 }
0x1146   :  { %v5938_v43 = vadd.f32 %v13094_v19, %v10869_v2 }
0x1147   :  { %v5929_v15 = vpop.f32.mrf.mxu0 }
0x1148   :  { %v5930_v16 = vadd.f32 %v13094_v19, %v5929_v15  ;;  %v6058_v12 = vmax.f32 %v5938_v43, 0.0 }
0x1149   :  { %v10870_v59 = vpop.f32.mrf.mxu0 }
0x114a   :  { %v5941_v26 = vadd.f32 %v13094_v19, %v10870_v59  ;;  %v6056_v52 = vmax.f32 %v5930_v16, 0.0  ;;  %v11507_v59 = vld [vmem:[#allocation7 + $0x88] sm:$0xff]  }
0x114b   :  { %v5932_v44 = vpop.f32.mrf.mxu0 }
0x114c   :  { %v5933_v38 = vadd.f32 %v13094_v19, %v5932_v44  ;;  %v6059_v17 = vmax.f32 %v5941_v26, 0.0 }
0x114d   :  { %v10873_v32 = vpop.f32.mrf.mxu0 }
0x114e   :  { %v6057_v8 = vmax.f32 %v5933_v38, 0.0  ;;  %v6089_v61 = vpack.c.bf16 %v6059_v17, %v6058_v12  ;;  %v5954_v28 = vadd.f32 %v13094_v19, %v10873_v32 }
0x114f   :  { %v5945_v53 = vpop.f32.mrf.mxu0 }
0x1150   :  { %v6088_v30 = vpack.c.bf16 %v6057_v8, %v6056_v52  ;;  %v5946_v58 = vadd.f32 %v13094_v19, %v5945_v53  ;;  %v6062_v34 = vmax.f32 %v5954_v28, 0.0  ;;  %v11508_v52 = vld [vmem:[#allocation7 + $0x80] sm:$0xff]  }
0x1151   :  { %v10874_v45 = vpop.f32.mrf.mxu0 }
0x1152   :  { %v5957_v22 = vadd.f32 %v13094_v19, %v10874_v45  ;;  %10915 = vmatprep.mubr.bf16.mxu1 %v6088_v30  ;;  %v6060_v11 = vmax.f32 %v5946_v58, 0.0 }
0x1153   :  { %v5948_v24 = vpop.f32.mrf.mxu0  ;;  %10916 = vmatmul.mubr.bf16.vlgmr.msra.gmra.mxu1 %v6089_v61 }
0x1154   :  { %v5949_v5 = vadd.f32 %v13094_v19, %v5948_v24  ;;  %10996 = vmatpush3.bf16.msra.mxu1 %v12973_v7  ;;  %v6063_v23 = vmax.f32 %v5957_v22, 0.0  ;;  %v13117_v22 = vld [vmem:[#allocation7 + $0x138] sm:$0xff]  }
0x1155   :  { %v10877_v57 = vpop.f32.mrf.mxu0  ;;  %10997 = vmatprep.subr.bf16.mxu1 %v11502_v49 }
0x1156   :  { %v6061_v50 = vmax.f32 %v5949_v5, 0.0  ;;  %v6091_v18 = vpack.c.bf16 %v6063_v23, %v6062_v34  ;;  %v5970_v7 = vadd.f32 %v13094_v19, %v10877_v57 }
0x1157   :  { %v5961_v51 = vpop.f32.mrf.mxu0 }
0x1158   :  { %v6090_v41 = vpack.c.bf16 %v6061_v50, %v6060_v11  ;;  %10998 = vmatpush3.bf16.msra.mxu1 %v11502_v49  ;;  %v5962_v55 = vadd.f32 %v13094_v19, %v5961_v51  ;;  %v6066_v48 = vmax.f32 %v5970_v7, 0.0 }
0x1159   :  { %v10878_v20 = vpop.f32.mrf.mxu0  ;;  %10999 = vmatprep.subr.bf16.mxu1 %v11503_v54 }
0x115a   :  { %v5973_v35 = vadd.f32 %v13094_v19, %v10878_v20  ;;  %10919 = vmatprep.mubr.bf16.mxu1 %v6090_v41  ;;  %v6064_v14 = vmax.f32 %v5962_v55, 0.0 }
0x115b   :  { %v5964_v33 = vpop.f32.mrf.mxu0  ;;  %10920 = vmatmul.mubr.bf16.gmra.mxu1 %v6091_v18 }
0x115c   :  { %v5965_v21 = vadd.f32 %v13094_v19, %v5964_v33  ;;  %11000 = vmatpush3.bf16.msra.mxu1 %v11503_v54  ;;  %v6067_v56 = vmax.f32 %v5973_v35, 0.0 }
0x115d   :  { %v10881_v25 = vpop.f32.mrf.mxu0  ;;  %11001 = vmatprep.subr.bf16.mxu1 %v11504_v63 }
0x115e   :  { %v6065_v1 = vmax.f32 %v5965_v21, 0.0  ;;  %v6093_v37 = vpack.c.bf16 %v6067_v56, %v6066_v48  ;;  %v5986_v13 = vadd.f32 %v13094_v19, %v10881_v25 }
0x115f   :  { %v5977_v60 = vpop.f32.mrf.mxu0 }
0x1160   :  { %v6092_v36 = vpack.c.bf16 %v6065_v1, %v6064_v14  ;;  %11002 = vmatpush3.bf16.msra.mxu1 %v11504_v63  ;;  %v5978_v31 = vadd.f32 %v13094_v19, %v5977_v60  ;;  %v6070_v46 = vmax.f32 %v5986_v13, 0.0 }
0x1161   :  { %v10882_v4 = vpop.f32.mrf.mxu0  ;;  %11003 = vmatprep.subr.bf16.mxu1 %v11505_v40 }
0x1162   :  { %v5989_v6 = vadd.f32 %v13094_v19, %v10882_v4  ;;  %10923 = vmatprep.mubr.bf16.mxu1 %v6092_v36  ;;  %v6068_v9 = vmax.f32 %v5978_v31, 0.0 }
0x1163   :  { %v5980_v39 = vpop.f32.mrf.mxu0  ;;  %10924 = vmatmul.mubr.bf16.gmra.mxu1 %v6093_v37 }
0x1164   :  { %v5981_v62 = vadd.f32 %v13094_v19, %v5980_v39  ;;  %11004 = vmatpush3.bf16.msra.mxu1 %v11505_v40  ;;  %v6071_v0 = vmax.f32 %v5989_v6, 0.0 }
0x1165   :  { %v10885_v47 = vpop.f32.mrf.mxu0  ;;  %11005 = vmatprep.subr.bf16.mxu1 %v11506_v27 }
0x1166   :  { %v6069_v10 = vmax.f32 %v5981_v62, 0.0  ;;  %v6095_v2 = vpack.c.bf16 %v6071_v0, %v6070_v46  ;;  %v6002_v43 = vadd.f32 %v13094_v19, %v10885_v47 }
0x1167   :  { %v5993_v42 = vpop.f32.mrf.mxu0 }
0x1168   :  { %v6094_v29 = vpack.c.bf16 %v6069_v10, %v6068_v9  ;;  %11006 = vmatpush3.bf16.msra.mxu1 %v11506_v27  ;;  %v5994_v16 = vadd.f32 %v13094_v19, %v5993_v42  ;;  %v6074_v53 = vmax.f32 %v6002_v43, 0.0 }
0x1169   :  { %v10886_v15 = vpop.f32.mrf.mxu0  ;;  %11007 = vmatprep.subr.bf16.mxu1 %v11507_v59 }
0x116a   :  { %v6005_v26 = vadd.f32 %v13094_v19, %v10886_v15  ;;  %10927 = vmatprep.mubr.bf16.mxu1 %v6094_v29  ;;  %v6072_v8 = vmax.f32 %v5994_v16, 0.0  ;;  %v13132_v29 = vld [vmem:[#allocation8 + $0x3] ss:$0 sm:$0xff] }
0x116b   :  { %v5996_v44 = vpop.f32.mrf.mxu0  ;;  %10928 = vmatmul.mubr.bf16.gmra.mxu1 %v6095_v2 }
0x116c   :  { %v5997_v38 = vadd.f32 %v13094_v19, %v5996_v44  ;;  %11008 = vmatpush3.bf16.msra.mxu1 %v11507_v59  ;;  %v6075_v17 = vmax.f32 %v6005_v26, 0.0 }
0x116d   :  { %v10889_v32 = vpop.f32.mrf.mxu0  ;;  %11009 = vmatprep.subr.bf16.mxu1 %v11508_v52 }
0x116e   :  { %v6073_v12 = vmax.f32 %v5997_v38, 0.0  ;;  %v6097_v45 = vpack.c.bf16 %v6075_v17, %v6074_v53  ;;  %v6018_v5 = vadd.f32 %v13094_v19, %v10889_v32 }
0x116f   :  { %v6009_v30 = vpop.f32.mrf.mxu0 }
0x1170   :  { %v6096_v61 = vpack.c.bf16 %v6073_v12, %v6072_v8  ;;  %11010 = vmatpush3.bf16.msra.mxu1 %v11508_v52  ;;  %v6010_v28 = vadd.f32 %v13094_v19, %v6009_v30  ;;  %v6078_v51 = vmax.f32 %v6018_v5, 0.0  ;;  %v11511_v5 = vld [vmem:[#allocation7 + $0xf0] sm:$0xff]  }
0x1171   :  { %v10890_v58 = vpop.f32.mrf.mxu0  ;;  %11091 = vmatprep.subr.bf16.mxu1 %v13117_v22 }
0x1172   :  { %v6021_v24 = vadd.f32 %v13094_v19, %v10890_v58  ;;  %10931 = vmatprep.mubr.bf16.mxu1 %v6096_v61  ;;  %v6076_v50 = vmax.f32 %v6010_v28, 0.0 }
0x1173   :  { %v6012_v23 = vpop.f32.mrf.mxu0  ;;  %10932 = vmatmul.mubr.bf16.gmra.mxu1 %v6097_v45 }
0x1174   :  { %v6013_v57 = vadd.f32 %v13094_v19, %v6012_v23  ;;  %v6079_v49 = vmax.f32 %v6021_v24, 0.0 }
0x1175   :  { %v10893_v11 = vpop.f32.mrf.mxu0 }
0x1176   :  { %v6077_v34 = vmax.f32 %v6013_v57, 0.0  ;;  %v6099_v20 = vpack.c.bf16 %v6079_v49, %v6078_v51  ;;  %v6034_v7 = vadd.f32 %v13094_v19, %v10893_v11 }
0x1177   :  { %v6025_v41 = vpop.f32.mrf.mxu0 }
0x1178   :  { %v6098_v18 = vpack.c.bf16 %v6077_v34, %v6076_v50  ;;  %v6026_v55 = vadd.f32 %v13094_v19, %v6025_v41  ;;  %v6082_v1 = vmax.f32 %v6034_v7, 0.0  ;;  %v11512_v41 = vld [vmem:[#allocation7 + $0xe8] sm:$0xff]  }
0x1179   :  { %v10894_v54 = vpop.f32.mrf.mxu0 }
0x117a   :  { %v6037_v35 = vadd.f32 %v13094_v19, %v10894_v54  ;;  %10935 = vmatprep.mubr.bf16.mxu1 %v6098_v18  ;;  %v6080_v63 = vmax.f32 %v6026_v55, 0.0 }
0x117b   :  { %v6028_v33 = vpop.f32.mrf.mxu0  ;;  %10936 = vmatmul.mubr.bf16.gmra.mxu1 %v6099_v20 }
0x117c   :  { %v6029_v21 = vadd.f32 %v13094_v19, %v6028_v33  ;;  %v6083_v56 = vmax.f32 %v6037_v35, 0.0  ;;  %v11513_v33 = vld [vmem:[#allocation7 + $0xe0] sm:$0xff]  }
0x117d   :  { %v10897_v25 = vpop.f32.mrf.mxu0 }
0x117e   :  { %v6081_v14 = vmax.f32 %v6029_v21, 0.0  ;;  %v6101_v36 = vpack.c.bf16 %v6083_v56, %v6082_v1  ;;  %v6050_v31 = vadd.f32 %v13094_v19, %v10897_v25 }
0x117f   :  { %v6041_v48 = vpop.f32.mrf.mxu0 }
0x1180   :  { %v6100_v60 = vpack.c.bf16 %v6081_v14, %v6080_v63  ;;  %v6042_v4 = vadd.f32 %v13094_v19, %v6041_v48  ;;  %v6086_v47 = vmax.f32 %v6050_v31, 0.0 }
0x1181   :  { %v10898_v37 = vpop.f32.mrf.mxu0 }
0x1182   :  { %v6053_v40 = vadd.f32 %v13094_v19, %v10898_v37  ;;  %10939 = vmatprep.mubr.bf16.mxu1 %v6100_v60  ;;  %v6084_v62 = vmax.f32 %v6042_v4, 0.0  ;;  %v11514_v60 = vld [vmem:[#allocation7 + $0xd8] sm:$0xff]  }
0x1183   :  { %v6044_v6 = vpop.f32.mrf.mxu0  ;;  %10940 = vmatmul.mubr.bf16.gmra.mxu1 %v6101_v36 }
0x1184   :  { %v6045_v13 = vadd.f32 %v13094_v19, %v6044_v6  ;;  %v6087_v39 = vmax.f32 %v6053_v40, 0.0 }
0x1186   :  { %v6085_v0 = vmax.f32 %v6045_v13, 0.0  ;;  %v6103_v9 = vpack.c.bf16 %v6087_v39, %v6086_v47  ;;  %v11515_v39 = vld [vmem:[#allocation7 + $0xd0] sm:$0xff]  }
0x1188   :  { %v6102_v27 = vpack.c.bf16 %v6085_v0, %v6084_v62 }
0x118a   :  { %10943 = vmatprep.mubr.bf16.mxu1 %v6102_v27 }
0x118b   :  { %10944 = vmatmul.mubr.bf16.gmra.mxu1 %v6103_v9 }
0x1213   :  { %v10917_v10 = vpop.f32.mrf.mxu1 }
0x1214   :  { %v6147_v59 = vadd.f32 %v13132_v29, %v10917_v10 }
0x1215   :  { %v6138_v46 = vpop.f32.mrf.mxu1 }
0x1216   :  { %v6139_v2 = vadd.f32 %v13132_v29, %v6138_v46  ;;  %v6267_v17 = vmax.f32 %v6147_v59, 0.0 }
0x1217   :  { %v10918_v42 = vpop.f32.mrf.mxu1 }
0x1218   :  { %v6150_v15 = vadd.f32 %v13132_v29, %v10918_v42  ;;  %v6265_v44 = vmax.f32 %v6139_v2, 0.0  ;;  %v11516_v42 = vld [vmem:[#allocation7 + $0xc8] sm:$0xff]  }
0x1219   :  { %v6141_v19 = vpop.f32.mrf.mxu1 }
0x121a   :  { %v6142_v16 = vadd.f32 %v13132_v29, %v6141_v19  ;;  %v6268_v26 = vmax.f32 %v6150_v15, 0.0 }
0x121b   :  { %v10921_v43 = vpop.f32.mrf.mxu1 }
0x121c   :  { %v6266_v38 = vmax.f32 %v6142_v16, 0.0  ;;  %v6298_v8 = vpack.c.bf16 %v6268_v26, %v6267_v17  ;;  %v6163_v61 = vadd.f32 %v13132_v29, %v10921_v43 }
0x121d   :  { %v6154_v32 = vpop.f32.mrf.mxu1 }
0x121e   :  { %v6297_v52 = vpack.c.bf16 %v6266_v38, %v6265_v44  ;;  %v6155_v53 = vadd.f32 %v13132_v29, %v6154_v32  ;;  %v6271_v49 = vmax.f32 %v6163_v61, 0.0  ;;  %v11517_v44 = vld [vmem:[#allocation7 + $0xc0] sm:$0xff]  }
0x121f   :  { %v10922_v12 = vpop.f32.mrf.mxu1 }
0x1220   :  { %v6166_v30 = vadd.f32 %v13132_v29, %v10922_v12  ;;  %10963 = vmatprep.mubr.bf16.mxu0 %v6297_v52  ;;  %v6269_v23 = vmax.f32 %v6155_v53, 0.0 }
0x1221   :  { %v6157_v45 = vpop.f32.mrf.mxu1  ;;  %10964 = vmatmul.mubr.bf16.vlgmr.msra.gmra.mxu0 %v6298_v8 }
0x1222   :  { %v6158_v58 = vadd.f32 %v13132_v29, %v6157_v45  ;;  %11044 = vmatpush3.bf16.msra.mxu0 %v13061_v3  ;;  %v6272_v28 = vmax.f32 %v6166_v30, 0.0  ;;  %v13155_v30 = vld [vmem:[#allocation7 + $0xb8] sm:$0xff]  }
0x1223   :  { %v10925_v24 = vpop.f32.mrf.mxu1  ;;  %11045 = vmatprep.subr.bf16.mxu0 %v11511_v5 }
0x1224   :  { %v6270_v57 = vmax.f32 %v6158_v58, 0.0  ;;  %v6300_v34 = vpack.c.bf16 %v6272_v28, %v6271_v49  ;;  %v6179_v3 = vadd.f32 %v13132_v29, %v10925_v24 }
0x1225   :  { %v6170_v11 = vpop.f32.mrf.mxu1 }
0x1226   :  { %v6299_v50 = vpack.c.bf16 %v6270_v57, %v6269_v23  ;;  %11046 = vmatpush3.bf16.msra.mxu0 %v11511_v5  ;;  %v6171_v18 = vadd.f32 %v13132_v29, %v6170_v11  ;;  %v6275_v25 = vmax.f32 %v6179_v3, 0.0 }
0x1227   :  { %v10926_v51 = vpop.f32.mrf.mxu1  ;;  %11047 = vmatprep.subr.bf16.mxu0 %v11512_v41 }
0x1228   :  { %v6182_v20 = vadd.f32 %v13132_v29, %v10926_v51  ;;  %10967 = vmatprep.mubr.bf16.mxu0 %v6299_v50  ;;  %v6273_v21 = vmax.f32 %v6171_v18, 0.0 }
0x1229   :  { %v6173_v54 = vpop.f32.mrf.mxu1  ;;  %10968 = vmatmul.mubr.bf16.gmra.mxu0 %v6300_v34 }
0x122a   :  { %v6174_v55 = vadd.f32 %v13132_v29, %v6173_v54  ;;  %11048 = vmatpush3.bf16.msra.mxu0 %v11512_v41  ;;  %v6276_v35 = vmax.f32 %v6182_v20, 0.0 }
0x122b   :  { %v10929_v7 = vpop.f32.mrf.mxu1  ;;  %11049 = vmatprep.subr.bf16.mxu0 %v11513_v33 }
0x122c   :  { %v6274_v56 = vmax.f32 %v6174_v55, 0.0  ;;  %v6302_v1 = vpack.c.bf16 %v6276_v35, %v6275_v25  ;;  %v6195_v4 = vadd.f32 %v13132_v29, %v10929_v7 }
0x122d   :  { %v6186_v63 = vpop.f32.mrf.mxu1 }
0x122e   :  { %v6301_v14 = vpack.c.bf16 %v6274_v56, %v6273_v21  ;;  %11050 = vmatpush3.bf16.msra.mxu0 %v11513_v33  ;;  %v6187_v36 = vadd.f32 %v13132_v29, %v6186_v63  ;;  %v6279_v47 = vmax.f32 %v6195_v4, 0.0 }
0x122f   :  { %v10930_v48 = vpop.f32.mrf.mxu1  ;;  %11051 = vmatprep.subr.bf16.mxu0 %v11514_v60 }
0x1230   :  { %v6198_v37 = vadd.f32 %v13132_v29, %v10930_v48  ;;  %10971 = vmatprep.mubr.bf16.mxu0 %v6301_v14  ;;  %v6277_v62 = vmax.f32 %v6187_v36, 0.0 }
0x1231   :  { %v6189_v40 = vpop.f32.mrf.mxu1  ;;  %10972 = vmatmul.mubr.bf16.gmra.mxu0 %v6302_v1 }
0x1232   :  { %v6190_v31 = vadd.f32 %v13132_v29, %v6189_v40  ;;  %11052 = vmatpush3.bf16.msra.mxu0 %v11514_v60  ;;  %v6280_v6 = vmax.f32 %v6198_v37, 0.0 }
0x1233   :  { %v10933_v13 = vpop.f32.mrf.mxu1  ;;  %11053 = vmatprep.subr.bf16.mxu0 %v11515_v39 }
0x1234   :  { %v6278_v0 = vmax.f32 %v6190_v31, 0.0  ;;  %v6304_v10 = vpack.c.bf16 %v6280_v6, %v6279_v47  ;;  %v6211_v59 = vadd.f32 %v13132_v29, %v10933_v13 }
0x1235   :  { %v6202_v27 = vpop.f32.mrf.mxu1 }
0x1236   :  { %v6303_v9 = vpack.c.bf16 %v6278_v0, %v6277_v62  ;;  %11054 = vmatpush3.bf16.msra.mxu0 %v11515_v39  ;;  %v6203_v2 = vadd.f32 %v13132_v29, %v6202_v27  ;;  %v6283_v32 = vmax.f32 %v6211_v59, 0.0  ;;  %v13170_v27 = vld [vmem:[#allocation8 + $0x4] ss:$0 sm:$0xff] }
0x1237   :  { %v10934_v46 = vpop.f32.mrf.mxu1  ;;  %11055 = vmatprep.subr.bf16.mxu0 %v11516_v42 }
0x1238   :  { %v6214_v15 = vadd.f32 %v13132_v29, %v10934_v46  ;;  %10975 = vmatprep.mubr.bf16.mxu0 %v6303_v9  ;;  %v6281_v38 = vmax.f32 %v6203_v2, 0.0 }
0x1239   :  { %v6205_v19 = vpop.f32.mrf.mxu1  ;;  %10976 = vmatmul.mubr.bf16.gmra.mxu0 %v6304_v10  ;;  %v9150_v10 = vld [vmem:[#allocation5 + $0x388] sm:$0xff]  }
0x123a   :  { %v6206_v16 = vadd.f32 %v13132_v29, %v6205_v19  ;;  %11056 = vmatpush3.bf16.msra.mxu0 %v11516_v42  ;;  %v6284_v26 = vmax.f32 %v6214_v15, 0.0  ;;  %v8854_v42 = vld [vmem:[#allocation5 + $0x380] sm:$0xff]   ;;  %v8860_v15 = vunpack.c.h.bf16 %v9150_v10  ;;  %v8859_v59 = vunpack.c.l.bf16 %v9150_v10 }
0x123b   :  { %v10937_v43 = vpop.f32.mrf.mxu1  ;;  %11057 = vmatprep.subr.bf16.mxu0 %v11517_v44 }
0x123c   :  { %v6282_v17 = vmax.f32 %v6206_v16, 0.0  ;;  %v6306_v12 = vpack.c.bf16 %v6284_v26, %v6283_v32  ;;  %v6227_v58 = vadd.f32 %v13132_v29, %v10937_v43  ;;  %v8855_v16 = vunpack.c.l.bf16 %v8854_v42 }
0x123d   :  { %v6218_v52 = vpop.f32.mrf.mxu1  ;;  %v8856_v43 = vunpack.c.h.bf16 %v8854_v42 }
0x123e   :  { %v6305_v8 = vpack.c.bf16 %v6282_v17, %v6281_v38  ;;  %11058 = vmatpush3.bf16.msra.mxu0 %v11517_v44  ;;  %v6219_v61 = vadd.f32 %v13132_v29, %v6218_v52  ;;  %v6287_v11 = vmax.f32 %v6227_v58, 0.0  ;;  %v13175_v38 = vld [vmem:[#allocation8 + $0x16] ss:$0 sm:$0xff]  ;;  %v13178_v52 = vld [vmem:[#allocation8 + $0xc] ss:$0 sm:$0xff] }
0x123f   :  { %v10938_v53 = vpop.f32.mrf.mxu1  ;;  %11139 = vmatprep.subr.bf16.mxu0 %v13155_v30  ;;  %v6615_v58 = vmul.f32 %v8859_v59, %v13175_v38 }
0x1240   :  { %v6230_v45 = vadd.f32 %v13132_v29, %v10938_v53  ;;  %10979 = vmatprep.mubr.bf16.mxu0 %v6305_v8  ;;  %v6285_v57 = vmax.f32 %v6219_v61, 0.0  ;;  %v6616_v53 = vmul.f32 %v8860_v15, %v13175_v38 }
0x1241   :  { %v6221_v28 = vpop.f32.mrf.mxu1  ;;  %10980 = vmatmul.mubr.bf16.gmra.mxu0 %v6306_v12 }
0x1242   :  { %v6222_v24 = vadd.f32 %v13132_v29, %v6221_v28  ;;  %v6288_v5 = vmax.f32 %v6230_v45, 0.0  ;;  %v9152_v45 = vld [vmem:[#allocation5 + $0x398] sm:$0xff]  }
0x1243   :  { %v10941_v23 = vpop.f32.mrf.mxu1 }
0x1244   :  { %v6286_v49 = vmax.f32 %v6222_v24, 0.0  ;;  %v6308_v51 = vpack.c.bf16 %v6288_v5, %v6287_v11  ;;  %v6243_v3 = vadd.f32 %v13132_v29, %v10941_v23  ;;  %v6613_v24 = vmul.f32 %v8855_v16, %v13175_v38  ;;  %v9151_v23 = vld [vmem:[#allocation5 + $0x390] sm:$0xff]  }
0x1245   :  { %v6234_v50 = vpop.f32.mrf.mxu1  ;;  %v11520_v16 = vld [vmem:[#allocation7 + $0x130] sm:$0xff]  }
0x1246   :  { %v6307_v34 = vpack.c.bf16 %v6286_v49, %v6285_v57  ;;  %v6235_v18 = vadd.f32 %v13132_v29, %v6234_v50  ;;  %v6291_v56 = vmax.f32 %v6243_v3, 0.0  ;;  %v6614_v57 = vmul.f32 %v8856_v43, %v13175_v38 }
0x1247   :  { %v10942_v41 = vpop.f32.mrf.mxu1 }
0x1248   :  { %v6246_v20 = vadd.f32 %v13132_v29, %v10942_v41  ;;  %10983 = vmatprep.mubr.bf16.mxu0 %v6307_v34  ;;  %v6289_v33 = vmax.f32 %v6235_v18, 0.0 }
0x1249   :  { %v6237_v54 = vpop.f32.mrf.mxu1  ;;  %10984 = vmatmul.mubr.bf16.gmra.mxu0 %v6308_v51  ;;  %v8867_v51 = vunpack.c.l.bf16 %v9152_v45 }
0x124a   :  { %v6238_v55 = vadd.f32 %v13132_v29, %v6237_v54  ;;  %v6292_v35 = vmax.f32 %v6246_v20, 0.0  ;;  %v8863_v20 = vunpack.c.l.bf16 %v9151_v23  ;;  %v8868_v54 = vunpack.c.h.bf16 %v9152_v45 }
0x124b   :  { %v10945_v7 = vpop.f32.mrf.mxu1 }
0x124c   :  { %v6290_v21 = vmax.f32 %v6238_v55, 0.0  ;;  %v6310_v14 = vpack.c.bf16 %v6292_v35, %v6291_v56  ;;  %v6259_v36 = vadd.f32 %v13132_v29, %v10945_v7 }
0x124d   :  { %v6250_v25 = vpop.f32.mrf.mxu1 }
0x124e   :  { %v6309_v63 = vpack.c.bf16 %v6290_v21, %v6289_v33  ;;  %v6251_v48 = vadd.f32 %v13132_v29, %v6250_v25  ;;  %v6295_v13 = vmax.f32 %v6259_v36, 0.0  ;;  %v8864_v21 = vunpack.c.h.bf16 %v9151_v23  ;;  %v9156_v23 = vld [vmem:[#allocation5 + $0x3b8] sm:$0xff]  }
0x124f   :  { %v10946_v1 = vpop.f32.mrf.mxu1 }
0x1250   :  { %v6262_v60 = vadd.f32 %v13132_v29, %v10946_v1  ;;  %10987 = vmatprep.mubr.bf16.mxu0 %v6309_v63  ;;  %v6293_v31 = vmax.f32 %v6251_v48, 0.0 }
0x1251   :  { %v6253_v37 = vpop.f32.mrf.mxu1  ;;  %10988 = vmatmul.mubr.bf16.gmra.mxu0 %v6310_v14 }
0x1252   :  { %v6254_v4 = vadd.f32 %v13132_v29, %v6253_v37  ;;  %v6296_v40 = vmax.f32 %v6262_v60, 0.0  ;;  %v6620_v37 = vmul.f32 %v8868_v54, %v13175_v38 }
0x1254   :  { %v6294_v6 = vmax.f32 %v6254_v4, 0.0  ;;  %v6312_v62 = vpack.c.bf16 %v6296_v40, %v6295_v13  ;;  %v9154_v40 = vld [vmem:[#allocation5 + $0x3a8] sm:$0xff]   ;;  %v6617_v13 = vmul.f32 %v8863_v20, %v13175_v38 }
0x1255   :  { %v8875_v42 = vunpack.c.l.bf16 %v9154_v40 }
0x1256   :  { %v6311_v39 = vpack.c.bf16 %v6294_v6, %v6293_v31  ;;  %v6619_v31 = vmul.f32 %v8867_v51, %v13175_v38  ;;  %v9155_v51 = vld [vmem:[#allocation5 + $0x3b0] sm:$0xff]  }
0x1258   :  { %10991 = vmatprep.mubr.bf16.mxu0 %v6311_v39 }
0x1259   :  { %10992 = vmatmul.mubr.bf16.gmra.mxu0 %v6312_v62  ;;  %v9153_v62 = vld [vmem:[#allocation5 + $0x3a0] sm:$0xff]  }
0x125a   :  { %v8871_v15 = vunpack.c.l.bf16 %v9153_v62 }
0x12e1   :  { %v10965_v0 = vpop.f32.mrf.mxu0 }
0x12e2   :  { %v6356_v9 = vadd.f32 %v13170_v27, %v10965_v0  ;;  %v6618_v0 = vmul.f32 %v8864_v21, %v13175_v38 }
0x12e3   :  { %v6347_v47 = vpop.f32.mrf.mxu0 }
0x12e4   :  { %v6348_v46 = vadd.f32 %v13170_v27, %v6347_v47  ;;  %v6476_v44 = vmax.f32 %v6356_v9, 0.0 }
0x12e5   :  { %v10966_v2 = vpop.f32.mrf.mxu0 }
0x12e6   :  { %v6359_v29 = vadd.f32 %v13170_v27, %v10966_v2  ;;  %v6474_v19 = vmax.f32 %v6348_v46, 0.0  ;;  %v6514_v49 = vmul.f32 %v13178_v52, %v6476_v44 }
0x12e7   :  { %v6350_v26 = vpop.f32.mrf.mxu0 }
0x12e8   :  { %v6477_v17 = vmax.f32 %v6359_v29, 0.0  ;;  %v6351_v32 = vadd.f32 %v13170_v27, %v6350_v26  ;;  %v6512_v28 = vmul.f32 %v13178_v52, %v6474_v19  ;;  %v6647_v56 = vadd.f32 %v6615_v58, %v6514_v49 }
0x12e9   :  { %v10969_v8 = vpop.f32.mrf.mxu0  ;;  %v8876_v19 = vunpack.c.h.bf16 %v9154_v40  ;;  %v6623_v49 = vmul.f32 %v8875_v42, %v13175_v38 }
0x12ea   :  { %v6515_v12 = vmul.f32 %v13178_v52, %v6477_v17  ;;  %v6475_v61 = vmax.f32 %v6351_v32, 0.0  ;;  %v6372_v50 = vadd.f32 %v13170_v27, %v10969_v8  ;;  %v6645_v55 = vadd.f32 %v6613_v24, %v6512_v28 }
0x12eb   :  { %v6363_v5 = vpop.f32.mrf.mxu0  ;;  %v8872_v32 = vunpack.c.h.bf16 %v9153_v62  ;;  %v6624_v24 = vmul.f32 %v8876_v19, %v13175_v38 }
0x12ec   :  { %v6513_v11 = vmul.f32 %v13178_v52, %v6475_v61  ;;  %v6364_v34 = vadd.f32 %v13170_v27, %v6363_v5  ;;  %v6648_v18 = vadd.f32 %v6616_v53, %v6515_v12  ;;  %v6480_v25 = vmax.f32 %v6372_v50, 0.0 }
0x12ed   :  { %v10970_v41 = vpop.f32.mrf.mxu0  ;;  %v6621_v50 = vmul.f32 %v8871_v15, %v13175_v38 }
0x12ee   :  { %v6375_v3 = vadd.f32 %v13170_v27, %v10970_v41  ;;  %v6478_v35 = vmax.f32 %v6364_v34, 0.0  ;;  %v6646_v33 = vadd.f32 %v6614_v57, %v6513_v11  ;;  %v6678_v60 = vpack.c.bf16 %v6648_v18, %v6647_v56  ;;  %v11521_v57 = vld [vmem:[#allocation7 + $0x128] sm:$0xff]  }
0x12ef   :  { %v6366_v7 = vpop.f32.mrf.mxu0  ;;  %v6518_v47 = vmul.f32 %v13178_v52, %v6480_v25  ;;  %v6622_v41 = vmul.f32 %v8872_v32, %v13175_v38  ;;  %v8884_v56 = vunpack.c.h.bf16 %v9156_v23  ;;  %v11522_v25 = vld [vmem:[#allocation7 + $0x120] sm:$0xff]  }
0x12f0   :  { %v6481_v63 = vmax.f32 %v6375_v3, 0.0  ;;  %v6367_v14 = vadd.f32 %v13170_v27, %v6366_v7  ;;  %v6677_v48 = vpack.c.bf16 %v6646_v33, %v6645_v55  ;;  %v6516_v6 = vmul.f32 %v13178_v52, %v6478_v35 }
0x12f1   :  { %v10973_v1 = vpop.f32.mrf.mxu0  ;;  %v6651_v8 = vadd.f32 %v6619_v31, %v6518_v47  ;;  %v8883_v55 = vunpack.c.l.bf16 %v9156_v23  ;;  %v8879_v33 = vunpack.c.l.bf16 %v9155_v51  ;;  %v6628_v62 = vmul.f32 %v8884_v56, %v13175_v38  ;;  %v9157_v47 = vld [vmem:[#allocation5 + $0x3c0] sm:$0xff]   ;;  %v9160_v56 = vld [vmem:[#allocation5 + $0x3d8] sm:$0xff]  }
0x12f2   :  { %v6519_v36 = vmul.f32 %v13178_v52, %v6481_v63  ;;  %v6479_v4 = vmax.f32 %v6367_v14, 0.0  ;;  %11011 = vmatprep.mubr.bf16.mxu1 %v6677_v48  ;;  %v6388_v10 = vadd.f32 %v13170_v27, %v10973_v1  ;;  %v6649_v26 = vadd.f32 %v6617_v13, %v6516_v6 }
0x12f3   :  { %v6379_v39 = vpop.f32.mrf.mxu0  ;;  %11012 = vmatmul.mubr.bf16.vlgmr.msra.gmra.mxu1 %v6678_v60  ;;  %v8880_v60 = vunpack.c.h.bf16 %v9155_v51  ;;  %v6625_v42 = vmul.f32 %v8879_v33, %v13175_v38  ;;  %v8888_v32 = vunpack.c.h.bf16 %v9157_v47 }
0x12f4   :  { %v6517_v9 = vmul.f32 %v13178_v52, %v6479_v4  ;;  %v6380_v46 = vadd.f32 %v13170_v27, %v6379_v39  ;;  %11092 = vmatpush3.bf16.msra.mxu1 %v13117_v22  ;;  %v6652_v29 = vadd.f32 %v6620_v37, %v6519_v36  ;;  %v6484_v12 = vmax.f32 %v6388_v10, 0.0 }
0x12f5   :  { %v10974_v2 = vpop.f32.mrf.mxu0  ;;  %11093 = vmatprep.subr.bf16.mxu1 %v11520_v16  ;;  %v6627_v10 = vmul.f32 %v8883_v55, %v13175_v38 }
0x12f6   :  { %v6391_v59 = vadd.f32 %v13170_v27, %v10974_v2  ;;  %v6482_v43 = vmax.f32 %v6380_v46, 0.0  ;;  %v6650_v17 = vadd.f32 %v6618_v0, %v6517_v9  ;;  %v6680_v22 = vpack.c.bf16 %v6652_v29, %v6651_v8  ;;  %v11523_v9 = vld [vmem:[#allocation7 + $0x118] sm:$0xff]  }
0x12f7   :  { %v6382_v44 = vpop.f32.mrf.mxu0  ;;  %v6522_v18 = vmul.f32 %v13178_v52, %v6484_v12  ;;  %v6626_v29 = vmul.f32 %v8880_v60, %v13175_v38 }
0x12f8   :  { %v6485_v53 = vmax.f32 %v6391_v59, 0.0  ;;  %v6383_v61 = vadd.f32 %v13170_v27, %v6382_v44  ;;  %v6679_v58 = vpack.c.bf16 %v6650_v17, %v6649_v26  ;;  %11094 = vmatpush3.bf16.msra.mxu1 %v11520_v16  ;;  %v6520_v11 = vmul.f32 %v13178_v52, %v6482_v43  ;;  %v9158_v16 = vld [vmem:[#allocation5 + $0x3c8] sm:$0xff]  }
0x12f9   :  { %v10977_v45 = vpop.f32.mrf.mxu0  ;;  %11095 = vmatprep.subr.bf16.mxu1 %v11521_v57  ;;  %v6655_v36 = vadd.f32 %v6623_v49, %v6522_v18  ;;  %v8887_v43 = vunpack.c.l.bf16 %v9157_v47  ;;  %v8892_v17 = vunpack.c.h.bf16 %v9158_v16 }
0x12fa   :  { %v6523_v28 = vmul.f32 %v13178_v52, %v6485_v53  ;;  %v6483_v5 = vmax.f32 %v6383_v61, 0.0  ;;  %11015 = vmatprep.mubr.bf16.mxu1 %v6679_v58  ;;  %v6404_v3 = vadd.f32 %v13170_v27, %v10977_v45  ;;  %v6653_v63 = vadd.f32 %v6621_v50, %v6520_v11  ;;  %v11524_v61 = vld [vmem:[#allocation7 + $0x110] sm:$0xff]  }
0x12fb   :  { %v6395_v34 = vpop.f32.mrf.mxu0  ;;  %11016 = vmatmul.mubr.bf16.gmra.mxu1 %v6680_v22  ;;  %v8891_v58 = vunpack.c.l.bf16 %v9158_v16  ;;  %v6629_v49 = vmul.f32 %v8887_v43, %v13175_v38  ;;  %v6632_v11 = vmul.f32 %v8892_v17, %v13175_v38  ;;  %v6630_v50 = vmul.f32 %v8888_v32, %v13175_v38 }
0x12fc   :  { %v6521_v20 = vmul.f32 %v13178_v52, %v6483_v5  ;;  %v6396_v54 = vadd.f32 %v13170_v27, %v6395_v34  ;;  %11096 = vmatpush3.bf16.msra.mxu1 %v11521_v57  ;;  %v6656_v7 = vadd.f32 %v6624_v24, %v6523_v28  ;;  %v6488_v37 = vmax.f32 %v6404_v3, 0.0 }
0x12fd   :  { %v10978_v35 = vpop.f32.mrf.mxu0  ;;  %11097 = vmatprep.subr.bf16.mxu1 %v11522_v25  ;;  %v6631_v55 = vmul.f32 %v8891_v58, %v13175_v38 }
0x12fe   :  { %v6407_v21 = vadd.f32 %v13170_v27, %v10978_v35  ;;  %v6486_v14 = vmax.f32 %v6396_v54, 0.0  ;;  %v6654_v48 = vadd.f32 %v6622_v41, %v6521_v20  ;;  %v6682_v13 = vpack.c.bf16 %v6656_v7, %v6655_v36  ;;  %v11525_v54 = vld [vmem:[#allocation7 + $0x108] sm:$0xff]  }
0x12ff   :  { %v6398_v1 = vpop.f32.mrf.mxu0  ;;  %v6526_v15 = vmul.f32 %v13178_v52, %v6488_v37 }
0x1300   :  { %v6489_v4 = vmax.f32 %v6407_v21, 0.0  ;;  %v6399_v40 = vadd.f32 %v13170_v27, %v6398_v1  ;;  %v6681_v6 = vpack.c.bf16 %v6654_v48, %v6653_v63  ;;  %11098 = vmatpush3.bf16.msra.mxu1 %v11522_v25  ;;  %v6524_v46 = vmul.f32 %v13178_v52, %v6486_v14  ;;  %v9159_v63 = vld [vmem:[#allocation5 + $0x3d0] sm:$0xff]  }
0x1301   :  { %v10981_v31 = vpop.f32.mrf.mxu0  ;;  %11099 = vmatprep.subr.bf16.mxu1 %v11523_v9  ;;  %v6659_v24 = vadd.f32 %v6627_v10, %v6526_v15  ;;  %v8900_v1 = vunpack.c.h.bf16 %v9160_v56  ;;  %v8896_v37 = vunpack.c.h.bf16 %v9159_v63 }
0x1302   :  { %v6527_v39 = vmul.f32 %v13178_v52, %v6489_v4  ;;  %v6487_v0 = vmax.f32 %v6399_v40, 0.0  ;;  %11019 = vmatprep.mubr.bf16.mxu1 %v6681_v6  ;;  %v6420_v19 = vadd.f32 %v13170_v27, %v10981_v31  ;;  %v6657_v45 = vadd.f32 %v6625_v42, %v6524_v46  ;;  %v11526_v4 = vld [vmem:[#allocation7 + $0x100] sm:$0xff]  }
0x1303   :  { %v6411_v2 = vpop.f32.mrf.mxu0  ;;  %11020 = vmatmul.mubr.bf16.gmra.mxu1 %v6682_v13  ;;  %v8899_v40 = vunpack.c.l.bf16 %v9160_v56  ;;  %v8895_v6 = vunpack.c.l.bf16 %v9159_v63  ;;  %v6634_v15 = vmul.f32 %v8896_v37, %v13175_v38 }
0x1304   :  { %v6525_v59 = vmul.f32 %v13178_v52, %v6487_v0  ;;  %v6412_v26 = vadd.f32 %v13170_v27, %v6411_v2  ;;  %11100 = vmatpush3.bf16.msra.mxu1 %v11523_v9  ;;  %v6660_v8 = vadd.f32 %v6628_v62, %v6527_v39  ;;  %v6492_v5 = vmax.f32 %v6420_v19, 0.0  ;;  %v13243_v19 = vld [vmem:[#allocation7 + $0xf8] sm:$0xff]  }
0x1305   :  { %v10982_v44 = vpop.f32.mrf.mxu0  ;;  %11101 = vmatprep.subr.bf16.mxu1 %v11524_v61  ;;  %v6636_v2 = vmul.f32 %v8900_v1, %v13175_v38  ;;  %v6635_v16 = vmul.f32 %v8899_v40, %v13175_v38  ;;  %v6633_v43 = vmul.f32 %v8895_v6, %v13175_v38 }
0x1306   :  { %v6490_v12 = vmax.f32 %v6412_v26, 0.0  ;;  %v6423_v53 = vadd.f32 %v13170_v27, %v10982_v44  ;;  %v6658_v28 = vadd.f32 %v6626_v29, %v6525_v59  ;;  %v6684_v41 = vpack.c.bf16 %v6660_v8, %v6659_v24  ;;  %v9161_v59 = vld [vmem:[#allocation5 + $0x3e0] sm:$0xff]  }
0x1307   :  { %v6414_v22 = vpop.f32.mrf.mxu0  ;;  %v6530_v7 = vmul.f32 %v13178_v52, %v6492_v5 }
0x1308   :  { %v6493_v23 = vmax.f32 %v6423_v53, 0.0  ;;  %v6415_v57 = vadd.f32 %v13170_v27, %v6414_v22  ;;  %v6683_v51 = vpack.c.bf16 %v6658_v28, %v6657_v45  ;;  %11102 = vmatpush3.bf16.msra.mxu1 %v11524_v61  ;;  %v6528_v18 = vmul.f32 %v13178_v52, %v6490_v12  ;;  %v9162_v53 = vld [vmem:[#allocation5 + $0x3e8] sm:$0xff]  }
0x1309   :  { %v10985_v34 = vpop.f32.mrf.mxu0  ;;  %11103 = vmatprep.subr.bf16.mxu1 %v11525_v54  ;;  %v6663_v62 = vadd.f32 %v6631_v55, %v6530_v7  ;;  %v8903_v45 = vunpack.c.l.bf16 %v9161_v59  ;;  %v8908_v22 = vunpack.c.h.bf16 %v9162_v53  ;;  %v8904_v28 = vunpack.c.h.bf16 %v9161_v59 }
0x130a   :  { %v6531_v20 = vmul.f32 %v13178_v52, %v6493_v23  ;;  %v6491_v3 = vmax.f32 %v6415_v57, 0.0  ;;  %11023 = vmatprep.mubr.bf16.mxu1 %v6683_v51  ;;  %v6436_v21 = vadd.f32 %v13170_v27, %v10985_v34  ;;  %v6661_v48 = vadd.f32 %v6629_v49, %v6528_v18 }
0x130b   :  { %v6427_v35 = vpop.f32.mrf.mxu0  ;;  %11024 = vmatmul.mubr.bf16.gmra.mxu1 %v6684_v41 }
0x130c   :  { %v6529_v33 = vmul.f32 %v13178_v52, %v6491_v3  ;;  %v6428_v25 = vadd.f32 %v13170_v27, %v6427_v35  ;;  %11104 = vmatpush3.bf16.msra.mxu1 %v11525_v54  ;;  %v6664_v60 = vadd.f32 %v6632_v11, %v6531_v20  ;;  %v6496_v0 = vmax.f32 %v6436_v21, 0.0 }
0x130d   :  { %v10986_v14 = vpop.f32.mrf.mxu0  ;;  %11105 = vmatprep.subr.bf16.mxu1 %v11526_v4  ;;  %v8907_v11 = vunpack.c.l.bf16 %v9162_v53  ;;  %v6637_v20 = vmul.f32 %v8903_v45, %v13175_v38  ;;  %v6640_v3 = vmul.f32 %v8908_v22, %v13175_v38  ;;  %v6638_v54 = vmul.f32 %v8904_v28, %v13175_v38 }
0x130e   :  { %v6662_v36 = vadd.f32 %v6630_v50, %v6529_v33  ;;  %v6494_v31 = vmax.f32 %v6428_v25, 0.0  ;;  %v6439_v13 = vadd.f32 %v13170_v27, %v10986_v14  ;;  %v6686_v42 = vpack.c.bf16 %v6664_v60, %v6663_v62  ;;  %v9163_v25 = vld [vmem:[#allocation5 + $0x3f0] sm:$0xff]  }
0x130f   :  { %v6430_v39 = vpop.f32.mrf.mxu0  ;;  %v6534_v32 = vmul.f32 %v13178_v52, %v6496_v0  ;;  %v6639_v63 = vmul.f32 %v8907_v11, %v13175_v38  ;;  %v8912_v6 = vunpack.c.h.bf16 %v9163_v25 }
0x1310   :  { %v6431_v47 = vadd.f32 %v13170_v27, %v6430_v39  ;;  %v6685_v9 = vpack.c.bf16 %v6662_v36, %v6661_v48  ;;  %v6497_v10 = vmax.f32 %v6439_v13, 0.0  ;;  %11106 = vmatpush3.bf16.msra.mxu1 %v11526_v4  ;;  %v6532_v26 = vmul.f32 %v13178_v52, %v6494_v31  ;;  %v9164_v36 = vld [vmem:[#allocation5 + $0x3f8] sm:$0xff]  }
0x1311   :  { %v10989_v46 = vpop.f32.mrf.mxu0  ;;  %11187 = vmatprep.subr.bf16.mxu1 %v13243_v19  ;;  %v6667_v34 = vadd.f32 %v6635_v16, %v6534_v32  ;;  %v8911_v4 = vunpack.c.l.bf16 %v9163_v25  ;;  %v8916_v31 = vunpack.c.h.bf16 %v9164_v36 }
0x1312   :  { %v6495_v29 = vmax.f32 %v6431_v47, 0.0  ;;  %11027 = vmatprep.mubr.bf16.mxu1 %v6685_v9  ;;  %v6535_v44 = vmul.f32 %v13178_v52, %v6497_v10  ;;  %v6452_v12 = vadd.f32 %v13170_v27, %v10989_v46  ;;  %v6665_v49 = vadd.f32 %v6633_v43, %v6532_v26 }
0x1313   :  { %v6443_v17 = vpop.f32.mrf.mxu0  ;;  %11028 = vmatmul.mubr.bf16.gmra.mxu1 %v6686_v42  ;;  %v8915_v47 = vunpack.c.l.bf16 %v9164_v36  ;;  %v6644_v16 = vmul.f32 %v8916_v31, %v13175_v38 }
0x1314   :  { %v6533_v8 = vmul.f32 %v13178_v52, %v6495_v29  ;;  %v6444_v61 = vadd.f32 %v13170_v27, %v6443_v17  ;;  %v6668_v24 = vadd.f32 %v6636_v2, %v6535_v44  ;;  %v6500_v51 = vmax.f32 %v6452_v12, 0.0 }
0x1315   :  { %v10990_v58 = vpop.f32.mrf.mxu0  ;;  %v6642_v17 = vmul.f32 %v8912_v6, %v13175_v38  ;;  %v6643_v12 = vmul.f32 %v8915_v47, %v13175_v38  ;;  %v11530_v6 = vld [vmem:[#allocation7 + $0xa8] sm:$0xff]  }
0x1316   :  { %v6666_v5 = vadd.f32 %v6634_v15, %v6533_v8  ;;  %v6498_v23 = vmax.f32 %v6444_v61, 0.0  ;;  %v6455_v57 = vadd.f32 %v13170_v27, %v10990_v58  ;;  %v6688_v7 = vpack.c.bf16 %v6668_v24, %v6667_v34 }
0x1317   :  { %v6446_v50 = vpop.f32.mrf.mxu0  ;;  %v6538_v1 = vmul.f32 %v13178_v52, %v6500_v51  ;;  %v6641_v15 = vmul.f32 %v8911_v4, %v13175_v38 }
0x1318   :  { %v6501_v41 = vmax.f32 %v6455_v57, 0.0  ;;  %v6447_v18 = vadd.f32 %v13170_v27, %v6446_v50  ;;  %v6687_v35 = vpack.c.bf16 %v6666_v5, %v6665_v49  ;;  %v6536_v33 = vmul.f32 %v13178_v52, %v6498_v23  ;;  %v13276_v57 = vld [vmem:[#allocation8 + $0x2] ss:$0 sm:$0xff] }
0x1319   :  { %v10993_v55 = vpop.f32.mrf.mxu0  ;;  %v6671_v46 = vadd.f32 %v6639_v63, %v6538_v1  ;;  %v11529_v1 = vld [vmem:[#allocation7 + $0xb0] sm:$0xff]  }
0x131a   :  { %v6539_v21 = vmul.f32 %v13178_v52, %v6501_v41  ;;  %v6499_v56 = vmax.f32 %v6447_v18, 0.0  ;;  %11031 = vmatprep.mubr.bf16.mxu1 %v6687_v35  ;;  %v6468_v60 = vadd.f32 %v13170_v27, %v10993_v55  ;;  %v6669_v13 = vadd.f32 %v6637_v20, %v6536_v33 }
0x131b   :  { %v6459_v14 = vpop.f32.mrf.mxu0  ;;  %11032 = vmatmul.mubr.bf16.gmra.mxu1 %v6688_v7 }
0x131c   :  { %v6537_v48 = vmul.f32 %v13178_v52, %v6499_v56  ;;  %v6460_v37 = vadd.f32 %v13170_v27, %v6459_v14  ;;  %v6672_v39 = vadd.f32 %v6640_v3, %v6539_v21  ;;  %v6504_v42 = vmax.f32 %v6468_v60, 0.0 }
0x131d   :  { %v10994_v40 = vpop.f32.mrf.mxu0 }
0x131e   :  { %v6670_v62 = vadd.f32 %v6638_v54, %v6537_v48  ;;  %v6502_v0 = vmax.f32 %v6460_v37, 0.0  ;;  %v6471_v9 = vadd.f32 %v13170_v27, %v10994_v40  ;;  %v6690_v26 = vpack.c.bf16 %v6672_v39, %v6671_v46 }
0x131f   :  { %v6462_v10 = vpop.f32.mrf.mxu0  ;;  %v6542_v8 = vmul.f32 %v13178_v52, %v6504_v42 }
0x1320   :  { %v6463_v2 = vadd.f32 %v13170_v27, %v6462_v10  ;;  %v6689_v29 = vpack.c.bf16 %v6670_v62, %v6669_v13  ;;  %v6505_v59 = vmax.f32 %v6471_v9, 0.0  ;;  %v6540_v43 = vmul.f32 %v13178_v52, %v6502_v0  ;;  %v11531_v10 = vld [vmem:[#allocation7 + $0xa0] sm:$0xff]  }
0x1321   :  { %v6675_v58 = vadd.f32 %v6643_v12, %v6542_v8 }
0x1322   :  { %v6503_v44 = vmax.f32 %v6463_v2, 0.0  ;;  %11035 = vmatprep.mubr.bf16.mxu1 %v6689_v29  ;;  %v6543_v32 = vmul.f32 %v13178_v52, %v6505_v59  ;;  %v6673_v53 = vadd.f32 %v6641_v15, %v6540_v43 }
0x1323   :  { %11036 = vmatmul.mubr.bf16.gmra.mxu1 %v6690_v26  ;;  %v11532_v26 = vld [vmem:[#allocation7 + $0x98] sm:$0xff]  }
0x1324   :  { %v6541_v27 = vmul.f32 %v13178_v52, %v6503_v44  ;;  %v6676_v61 = vadd.f32 %v6644_v16, %v6543_v32 }
0x1326   :  { %v6674_v45 = vadd.f32 %v6642_v17, %v6541_v27  ;;  %v6692_v28 = vpack.c.bf16 %v6676_v61, %v6675_v58 }
0x1328   :  { %v6691_v22 = vpack.c.bf16 %v6674_v45, %v6673_v53  ;;  %v11533_v53 = vld [vmem:[#allocation7 + $0x90] sm:$0xff]  }
0x132a   :  { %11039 = vmatprep.mubr.bf16.mxu1 %v6691_v22 }
0x132b   :  { %11040 = vmatmul.mubr.bf16.gmra.mxu1 %v6692_v28 }
0x13b3   :  { %v11013_v24 = vpop.f32.mrf.mxu1 }
0x13b4   :  { %v6736_v52 = vadd.f32 %v13276_v57, %v11013_v24 }
0x13b5   :  { %v6727_v5 = vpop.f32.mrf.mxu1 }
0x13b6   :  { %v6728_v49 = vadd.f32 %v13276_v57, %v6727_v5  ;;  %v6856_v20 = vmax.f32 %v6736_v52, 0.0 }
0x13b7   :  { %v11014_v23 = vpop.f32.mrf.mxu1 }
0x13b8   :  { %v6739_v38 = vadd.f32 %v13276_v57, %v11014_v23  ;;  %v6854_v41 = vmax.f32 %v6728_v49, 0.0  ;;  %v11534_v23 = vld [vmem:[#allocation7 + $0x88] sm:$0xff]  }
0x13b9   :  { %v6730_v11 = vpop.f32.mrf.mxu1 }
0x13ba   :  { %v6731_v50 = vadd.f32 %v13276_v57, %v6730_v11  ;;  %v6857_v34 = vmax.f32 %v6739_v38, 0.0 }
0x13bb   :  { %v11017_v51 = vpop.f32.mrf.mxu1 }
0x13bc   :  { %v6855_v18 = vmax.f32 %v6731_v50, 0.0  ;;  %v6887_v55 = vpack.c.bf16 %v6857_v34, %v6856_v20  ;;  %v6752_v21 = vadd.f32 %v13276_v57, %v11017_v51 }
0x13bd   :  { %v6743_v3 = vpop.f32.mrf.mxu1 }
0x13be   :  { %v6886_v54 = vpack.c.bf16 %v6855_v18, %v6854_v41  ;;  %v6744_v7 = vadd.f32 %v13276_v57, %v6743_v3  ;;  %v6860_v36 = vmax.f32 %v6752_v21, 0.0  ;;  %v11535_v41 = vld [vmem:[#allocation7 + $0x80] sm:$0xff]  }
0x13bf   :  { %v11018_v35 = vpop.f32.mrf.mxu1 }
0x13c0   :  { %v6755_v33 = vadd.f32 %v13276_v57, %v11018_v35  ;;  %11059 = vmatprep.mubr.bf16.mxu0 %v6886_v54  ;;  %v6858_v48 = vmax.f32 %v6744_v7, 0.0 }
0x13c1   :  { %v6746_v56 = vpop.f32.mrf.mxu1  ;;  %11060 = vmatmul.mubr.bf16.vlgmr.msra.gmra.mxu0 %v6887_v55 }
0x13c2   :  { %v6747_v25 = vadd.f32 %v13276_v57, %v6746_v56  ;;  %11140 = vmatpush3.bf16.msra.mxu0 %v13155_v30  ;;  %v6861_v63 = vmax.f32 %v6755_v33, 0.0  ;;  %v13299_v33 = vld [vmem:[#allocation7 + $0x138] sm:$0xff]  }
0x13c3   :  { %v11021_v14 = vpop.f32.mrf.mxu1  ;;  %11141 = vmatprep.subr.bf16.mxu0 %v11529_v1 }
0x13c4   :  { %v6859_v60 = vmax.f32 %v6747_v25, 0.0  ;;  %v6889_v40 = vpack.c.bf16 %v6861_v63, %v6860_v36  ;;  %v6768_v30 = vadd.f32 %v13276_v57, %v11021_v14 }
0x13c5   :  { %v6759_v37 = vpop.f32.mrf.mxu1 }
0x13c6   :  { %v6888_v4 = vpack.c.bf16 %v6859_v60, %v6858_v48  ;;  %11142 = vmatpush3.bf16.msra.mxu0 %v11529_v1  ;;  %v6760_v13 = vadd.f32 %v13276_v57, %v6759_v37  ;;  %v6864_v2 = vmax.f32 %v6768_v30, 0.0 }
0x13c7   :  { %v11022_v31 = vpop.f32.mrf.mxu1  ;;  %11143 = vmatprep.subr.bf16.mxu0 %v11530_v6 }
0x13c8   :  { %v6771_v39 = vadd.f32 %v13276_v57, %v11022_v31  ;;  %11063 = vmatprep.mubr.bf16.mxu0 %v6888_v4  ;;  %v6862_v46 = vmax.f32 %v6760_v13, 0.0 }
0x13c9   :  { %v6762_v62 = vpop.f32.mrf.mxu1  ;;  %11064 = vmatmul.mubr.bf16.gmra.mxu0 %v6889_v40 }
0x13ca   :  { %v6763_v0 = vadd.f32 %v13276_v57, %v6762_v62  ;;  %11144 = vmatpush3.bf16.msra.mxu0 %v11530_v6  ;;  %v6865_v47 = vmax.f32 %v6771_v39, 0.0 }
0x13cb   :  { %v11025_v9 = vpop.f32.mrf.mxu1  ;;  %11145 = vmatprep.subr.bf16.mxu0 %v11531_v10 }
0x13cc   :  { %v6863_v42 = vmax.f32 %v6763_v0, 0.0  ;;  %v6891_v59 = vpack.c.bf16 %v6865_v47, %v6864_v2  ;;  %v6784_v17 = vadd.f32 %v13276_v57, %v11025_v9 }
0x13cd   :  { %v6775_v29 = vpop.f32.mrf.mxu1 }
0x13ce   :  { %v6890_v15 = vpack.c.bf16 %v6863_v42, %v6862_v46  ;;  %11146 = vmatpush3.bf16.msra.mxu0 %v11531_v10  ;;  %v6776_v43 = vadd.f32 %v13276_v57, %v6775_v29  ;;  %v6868_v58 = vmax.f32 %v6784_v17, 0.0 }
0x13cf   :  { %v11026_v16 = vpop.f32.mrf.mxu1  ;;  %11147 = vmatprep.subr.bf16.mxu0 %v11532_v26 }
0x13d0   :  { %v6787_v44 = vadd.f32 %v13276_v57, %v11026_v16  ;;  %11067 = vmatprep.mubr.bf16.mxu0 %v6890_v15  ;;  %v6866_v61 = vmax.f32 %v6776_v43, 0.0 }
0x13d1   :  { %v6778_v32 = vpop.f32.mrf.mxu1  ;;  %11068 = vmatmul.mubr.bf16.gmra.mxu0 %v6891_v59 }
0x13d2   :  { %v6779_v8 = vadd.f32 %v13276_v57, %v6778_v32  ;;  %11148 = vmatpush3.bf16.msra.mxu0 %v11532_v26  ;;  %v6869_v12 = vmax.f32 %v6787_v44, 0.0 }
0x13d3   :  { %v11029_v27 = vpop.f32.mrf.mxu1  ;;  %11149 = vmatprep.subr.bf16.mxu0 %v11533_v53 }
0x13d4   :  { %v6867_v45 = vmax.f32 %v6779_v8, 0.0  ;;  %v6893_v24 = vpack.c.bf16 %v6869_v12, %v6868_v58  ;;  %v6800_v52 = vadd.f32 %v13276_v57, %v11029_v27 }
0x13d5   :  { %v6791_v22 = vpop.f32.mrf.mxu1 }
0x13d6   :  { %v6892_v28 = vpack.c.bf16 %v6867_v45, %v6866_v61  ;;  %11150 = vmatpush3.bf16.msra.mxu0 %v11533_v53  ;;  %v6792_v49 = vadd.f32 %v13276_v57, %v6791_v22  ;;  %v6872_v3 = vmax.f32 %v6800_v52, 0.0 }
0x13d7   :  { %v11030_v5 = vpop.f32.mrf.mxu1  ;;  %11151 = vmatprep.subr.bf16.mxu0 %v11534_v23 }
0x13d8   :  { %v6803_v38 = vadd.f32 %v13276_v57, %v11030_v5  ;;  %11071 = vmatprep.mubr.bf16.mxu0 %v6892_v28  ;;  %v6870_v18 = vmax.f32 %v6792_v49, 0.0  ;;  %v13314_v28 = vld [vmem:[#allocation8 + $0x3] ss:$0 sm:$0xff] }
0x13d9   :  { %v6794_v11 = vpop.f32.mrf.mxu1  ;;  %11072 = vmatmul.mubr.bf16.gmra.mxu0 %v6893_v24 }
0x13da   :  { %v6795_v50 = vadd.f32 %v13276_v57, %v6794_v11  ;;  %11152 = vmatpush3.bf16.msra.mxu0 %v11534_v23  ;;  %v6873_v34 = vmax.f32 %v6803_v38, 0.0 }
0x13db   :  { %v11033_v51 = vpop.f32.mrf.mxu1  ;;  %11153 = vmatprep.subr.bf16.mxu0 %v11535_v41 }
0x13dc   :  { %v6871_v20 = vmax.f32 %v6795_v50, 0.0  ;;  %v6895_v35 = vpack.c.bf16 %v6873_v34, %v6872_v3  ;;  %v6816_v25 = vadd.f32 %v13276_v57, %v11033_v51 }
0x13dd   :  { %v6807_v54 = vpop.f32.mrf.mxu1 }
0x13de   :  { %v6894_v55 = vpack.c.bf16 %v6871_v20, %v6870_v18  ;;  %11154 = vmatpush3.bf16.msra.mxu0 %v11535_v41  ;;  %v6808_v21 = vadd.f32 %v13276_v57, %v6807_v54  ;;  %v6876_v37 = vmax.f32 %v6816_v25, 0.0  ;;  %v11538_v25 = vld [vmem:[#allocation7 + $0xf0] sm:$0xff]  }
0x13df   :  { %v11034_v7 = vpop.f32.mrf.mxu1  ;;  %11235 = vmatprep.subr.bf16.mxu0 %v13299_v33 }
0x13e0   :  { %v6819_v56 = vadd.f32 %v13276_v57, %v11034_v7  ;;  %11075 = vmatprep.mubr.bf16.mxu0 %v6894_v55  ;;  %v6874_v60 = vmax.f32 %v6808_v21, 0.0 }
0x13e1   :  { %v6810_v63 = vpop.f32.mrf.mxu1  ;;  %11076 = vmatmul.mubr.bf16.gmra.mxu0 %v6895_v35 }
0x13e2   :  { %v6811_v14 = vadd.f32 %v13276_v57, %v6810_v63  ;;  %v6877_v1 = vmax.f32 %v6819_v56, 0.0 }
0x13e3   :  { %v11037_v48 = vpop.f32.mrf.mxu1 }
0x13e4   :  { %v6875_v36 = vmax.f32 %v6811_v14, 0.0  ;;  %v6897_v31 = vpack.c.bf16 %v6877_v1, %v6876_v37  ;;  %v6832_v30 = vadd.f32 %v13276_v57, %v11037_v48 }
0x13e5   :  { %v6823_v4 = vpop.f32.mrf.mxu1 }
0x13e6   :  { %v6896_v40 = vpack.c.bf16 %v6875_v36, %v6874_v60  ;;  %v6824_v13 = vadd.f32 %v13276_v57, %v6823_v4  ;;  %v6880_v42 = vmax.f32 %v6832_v30, 0.0  ;;  %v11539_v4 = vld [vmem:[#allocation7 + $0xe8] sm:$0xff]  }
0x13e7   :  { %v11038_v6 = vpop.f32.mrf.mxu1 }
0x13e8   :  { %v6835_v39 = vadd.f32 %v13276_v57, %v11038_v6  ;;  %11079 = vmatprep.mubr.bf16.mxu0 %v6896_v40  ;;  %v6878_v10 = vmax.f32 %v6824_v13, 0.0 }
0x13e9   :  { %v6826_v62 = vpop.f32.mrf.mxu1  ;;  %11080 = vmatmul.mubr.bf16.gmra.mxu0 %v6897_v31 }
0x13ea   :  { %v6827_v0 = vadd.f32 %v13276_v57, %v6826_v62  ;;  %v6881_v47 = vmax.f32 %v6835_v39, 0.0  ;;  %v11540_v62 = vld [vmem:[#allocation7 + $0xe0] sm:$0xff]  }
0x13eb   :  { %v11041_v9 = vpop.f32.mrf.mxu1 }
0x13ec   :  { %v6879_v46 = vmax.f32 %v6827_v0, 0.0  ;;  %v6899_v15 = vpack.c.bf16 %v6881_v47, %v6880_v42  ;;  %v6848_v43 = vadd.f32 %v13276_v57, %v11041_v9 }
0x13ed   :  { %v6839_v2 = vpop.f32.mrf.mxu1 }
0x13ee   :  { %v6898_v29 = vpack.c.bf16 %v6879_v46, %v6878_v10  ;;  %v6840_v16 = vadd.f32 %v13276_v57, %v6839_v2  ;;  %v6884_v27 = vmax.f32 %v6848_v43, 0.0 }
0x13ef   :  { %v11042_v59 = vpop.f32.mrf.mxu1 }
0x13f0   :  { %v6851_v26 = vadd.f32 %v13276_v57, %v11042_v59  ;;  %11083 = vmatprep.mubr.bf16.mxu0 %v6898_v29  ;;  %v6882_v8 = vmax.f32 %v6840_v16, 0.0  ;;  %v11541_v29 = vld [vmem:[#allocation7 + $0xd8] sm:$0xff]  }
0x13f1   :  { %v6842_v44 = vpop.f32.mrf.mxu1  ;;  %11084 = vmatmul.mubr.bf16.gmra.mxu0 %v6899_v15 }
0x13f2   :  { %v6843_v17 = vadd.f32 %v13276_v57, %v6842_v44  ;;  %v6885_v32 = vmax.f32 %v6851_v26, 0.0 }
0x13f4   :  { %v6883_v12 = vmax.f32 %v6843_v17, 0.0  ;;  %v6901_v61 = vpack.c.bf16 %v6885_v32, %v6884_v27  ;;  %v11542_v32 = vld [vmem:[#allocation7 + $0xd0] sm:$0xff]  }
0x13f6   :  { %v6900_v53 = vpack.c.bf16 %v6883_v12, %v6882_v8 }
0x13f8   :  { %11087 = vmatprep.mubr.bf16.mxu0 %v6900_v53 }
0x13f9   :  { %11088 = vmatmul.mubr.bf16.gmra.mxu0 %v6901_v61 }
0x1481   :  { %v11061_v45 = vpop.f32.mrf.mxu0 }
0x1482   :  { %v6945_v23 = vadd.f32 %v13314_v28, %v11061_v45 }
0x1483   :  { %v6936_v58 = vpop.f32.mrf.mxu0 }
0x1484   :  { %v6937_v24 = vadd.f32 %v13314_v28, %v6936_v58  ;;  %v7065_v34 = vmax.f32 %v6945_v23, 0.0 }
0x1485   :  { %v11062_v22 = vpop.f32.mrf.mxu0 }
0x1486   :  { %v6948_v5 = vadd.f32 %v13314_v28, %v11062_v22  ;;  %v7063_v11 = vmax.f32 %v6937_v24, 0.0  ;;  %v11543_v22 = vld [vmem:[#allocation7 + $0xc8] sm:$0xff]  }
0x1487   :  { %v6939_v57 = vpop.f32.mrf.mxu0 }
0x1488   :  { %v6940_v49 = vadd.f32 %v13314_v28, %v6939_v57  ;;  %v7066_v38 = vmax.f32 %v6948_v5, 0.0 }
0x1489   :  { %v11065_v52 = vpop.f32.mrf.mxu0 }
0x148a   :  { %v7064_v50 = vmax.f32 %v6940_v49, 0.0  ;;  %v7096_v18 = vpack.c.bf16 %v7066_v38, %v7065_v34  ;;  %v6961_v55 = vadd.f32 %v13314_v28, %v11065_v52 }
0x148b   :  { %v6952_v51 = vpop.f32.mrf.mxu0 }
0x148c   :  { %v7095_v41 = vpack.c.bf16 %v7064_v50, %v7063_v11  ;;  %v6953_v3 = vadd.f32 %v13314_v28, %v6952_v51  ;;  %v7069_v1 = vmax.f32 %v6961_v55, 0.0  ;;  %v11544_v11 = vld [vmem:[#allocation7 + $0xc0] sm:$0xff]  }
0x148d   :  { %v11066_v20 = vpop.f32.mrf.mxu0 }
0x148e   :  { %v6964_v54 = vadd.f32 %v13314_v28, %v11066_v20  ;;  %11107 = vmatprep.mubr.bf16.mxu1 %v7095_v41  ;;  %v7067_v63 = vmax.f32 %v6953_v3, 0.0 }
0x148f   :  { %v6955_v35 = vpop.f32.mrf.mxu0  ;;  %11108 = vmatmul.mubr.bf16.vlgmr.msra.gmra.mxu1 %v7096_v18 }
0x1490   :  { %v6956_v7 = vadd.f32 %v13314_v28, %v6955_v35  ;;  %11188 = vmatpush3.bf16.msra.mxu1 %v13243_v19  ;;  %v7070_v21 = vmax.f32 %v6964_v54, 0.0 }
0x1491   :  { %v11069_v56 = vpop.f32.mrf.mxu0  ;;  %11189 = vmatprep.subr.bf16.mxu1 %v11538_v25 }
0x1492   :  { %v7068_v14 = vmax.f32 %v6956_v7, 0.0  ;;  %v7098_v36 = vpack.c.bf16 %v7070_v21, %v7069_v1  ;;  %v6977_v19 = vadd.f32 %v13314_v28, %v11069_v56 }
0x1493   :  { %v6968_v48 = vpop.f32.mrf.mxu0 }
0x1494   :  { %v7097_v60 = vpack.c.bf16 %v7068_v14, %v7067_v63  ;;  %11190 = vmatpush3.bf16.msra.mxu1 %v11538_v25  ;;  %v6969_v40 = vadd.f32 %v13314_v28, %v6968_v48  ;;  %v7073_v9 = vmax.f32 %v6977_v19, 0.0 }
0x1495   :  { %v11070_v37 = vpop.f32.mrf.mxu0  ;;  %11191 = vmatprep.subr.bf16.mxu1 %v11539_v4 }
0x1496   :  { %v6980_v31 = vadd.f32 %v13314_v28, %v11070_v37  ;;  %11111 = vmatprep.mubr.bf16.mxu1 %v7097_v60  ;;  %v7071_v0 = vmax.f32 %v6969_v40, 0.0 }
0x1497   :  { %v6971_v6 = vpop.f32.mrf.mxu0  ;;  %11112 = vmatmul.mubr.bf16.gmra.mxu1 %v7098_v36 }
0x1498   :  { %v6972_v13 = vadd.f32 %v13314_v28, %v6971_v6  ;;  %11192 = vmatpush3.bf16.msra.mxu1 %v11539_v4  ;;  %v7074_v39 = vmax.f32 %v6980_v31, 0.0 }
0x1499   :  { %v11073_v30 = vpop.f32.mrf.mxu0  ;;  %11193 = vmatprep.subr.bf16.mxu1 %v11540_v62 }
0x149a   :  { %v7072_v47 = vmax.f32 %v6972_v13, 0.0  ;;  %v7100_v42 = vpack.c.bf16 %v7074_v39, %v7073_v9  ;;  %v6993_v16 = vadd.f32 %v13314_v28, %v11073_v30 }
0x149b   :  { %v6984_v10 = vpop.f32.mrf.mxu0 }
0x149c   :  { %v7099_v46 = vpack.c.bf16 %v7072_v47, %v7071_v0  ;;  %11194 = vmatpush3.bf16.msra.mxu1 %v11540_v62  ;;  %v6985_v15 = vadd.f32 %v13314_v28, %v6984_v10  ;;  %v7077_v27 = vmax.f32 %v6993_v16, 0.0 }
0x149d   :  { %v11074_v2 = vpop.f32.mrf.mxu0  ;;  %11195 = vmatprep.subr.bf16.mxu1 %v11541_v29 }
0x149e   :  { %v6996_v59 = vadd.f32 %v13314_v28, %v11074_v2  ;;  %11115 = vmatprep.mubr.bf16.mxu1 %v7099_v46  ;;  %v7075_v8 = vmax.f32 %v6985_v15, 0.0 }
0x149f   :  { %v6987_v26 = vpop.f32.mrf.mxu0  ;;  %11116 = vmatmul.mubr.bf16.gmra.mxu1 %v7100_v42 }
0x14a0   :  { %v6988_v43 = vadd.f32 %v13314_v28, %v6987_v26  ;;  %11196 = vmatpush3.bf16.msra.mxu1 %v11541_v29  ;;  %v7078_v44 = vmax.f32 %v6996_v59, 0.0 }
0x14a1   :  { %v11077_v17 = vpop.f32.mrf.mxu0  ;;  %11197 = vmatprep.subr.bf16.mxu1 %v11542_v32 }
0x14a2   :  { %v7076_v12 = vmax.f32 %v6988_v43, 0.0  ;;  %v7102_v45 = vpack.c.bf16 %v7078_v44, %v7077_v27  ;;  %v7009_v23 = vadd.f32 %v13314_v28, %v11077_v17  ;;  %v13349_v27 = vld [vmem:[#allocation8 + $0x4] ss:$0 sm:$0xff] }
0x14a3   :  { %v7000_v53 = vpop.f32.mrf.mxu0 }
0x14a4   :  { %v7101_v61 = vpack.c.bf16 %v7076_v12, %v7075_v8  ;;  %11198 = vmatpush3.bf16.msra.mxu1 %v11542_v32  ;;  %v7001_v24 = vadd.f32 %v13314_v28, %v7000_v53  ;;  %v7081_v51 = vmax.f32 %v7009_v23, 0.0  ;;  %v8918_v12 = vld [vmem:[#allocation5 + $0x400] sm:$0xff]  }
0x14a5   :  { %v11078_v58 = vpop.f32.mrf.mxu0  ;;  %11199 = vmatprep.subr.bf16.mxu1 %v11543_v22 }
0x14a6   :  { %v7012_v5 = vadd.f32 %v13314_v28, %v11078_v58  ;;  %11119 = vmatprep.mubr.bf16.mxu1 %v7101_v61  ;;  %v7079_v50 = vmax.f32 %v7001_v24, 0.0 }
0x14a7   :  { %v7003_v57 = vpop.f32.mrf.mxu0  ;;  %11120 = vmatmul.mubr.bf16.gmra.mxu1 %v7102_v45  ;;  %v9165_v45 = vld [vmem:[#allocation5 + $0x408] sm:$0xff]  }
0x14a8   :  { %v7004_v49 = vadd.f32 %v13314_v28, %v7003_v57  ;;  %11200 = vmatpush3.bf16.msra.mxu1 %v11543_v22  ;;  %v7082_v38 = vmax.f32 %v7012_v5, 0.0  ;;  %v8919_v22 = vunpack.c.l.bf16 %v8918_v12  ;;  %v8924_v24 = vunpack.c.h.bf16 %v9165_v45 }
0x14a9   :  { %v11081_v52 = vpop.f32.mrf.mxu0  ;;  %11201 = vmatprep.subr.bf16.mxu1 %v11544_v11  ;;  %v8920_v57 = vunpack.c.h.bf16 %v8918_v12 }
0x14aa   :  { %v7080_v34 = vmax.f32 %v7004_v49, 0.0  ;;  %v7104_v20 = vpack.c.bf16 %v7082_v38, %v7081_v51  ;;  %v7025_v35 = vadd.f32 %v13314_v28, %v11081_v52  ;;  %v8923_v38 = vunpack.c.l.bf16 %v9165_v45 }
0x14ab   :  { %v7016_v41 = vpop.f32.mrf.mxu0 }
0x14ac   :  { %v7103_v18 = vpack.c.bf16 %v7080_v34, %v7079_v50  ;;  %11202 = vmatpush3.bf16.msra.mxu1 %v11544_v11  ;;  %v7017_v54 = vadd.f32 %v13314_v28, %v7016_v41  ;;  %v7085_v1 = vmax.f32 %v7025_v35, 0.0  ;;  %v13354_v11 = vld [vmem:[#allocation8 + $0xd] ss:$0 sm:$0xff]  ;;  %v13356_v50 = vld [vmem:[#allocation8 + $0x17] ss:$0 sm:$0xff] }
0x14ad   :  { %v11082_v3 = vpop.f32.mrf.mxu0  ;;  %v7411_v41 = vmul.f32 %v8919_v22, %v13356_v50  ;;  %v7412_v35 = vmul.f32 %v8920_v57, %v13356_v50 }
0x14ae   :  { %v7028_v55 = vadd.f32 %v13314_v28, %v11082_v3  ;;  %11123 = vmatprep.mubr.bf16.mxu1 %v7103_v18  ;;  %v7083_v63 = vmax.f32 %v7017_v54, 0.0  ;;  %v7414_v18 = vmul.f32 %v8924_v24, %v13356_v50  ;;  %v11546_v24 = vld [vmem:[#allocation7 + $0x130] sm:$0xff]  }
0x14af   :  { %v7019_v7 = vpop.f32.mrf.mxu0  ;;  %11124 = vmatmul.mubr.bf16.gmra.mxu1 %v7104_v20 }
0x14b0   :  { %v7020_v21 = vadd.f32 %v13314_v28, %v7019_v7  ;;  %v7086_v56 = vmax.f32 %v7028_v55, 0.0  ;;  %v9167_v7 = vld [vmem:[#allocation5 + $0x418] sm:$0xff]  }
0x14b1   :  { %v11085_v25 = vpop.f32.mrf.mxu0 }
0x14b2   :  { %v7084_v14 = vmax.f32 %v7020_v21, 0.0  ;;  %v7106_v36 = vpack.c.bf16 %v7086_v56, %v7085_v1  ;;  %v7041_v31 = vadd.f32 %v13314_v28, %v11085_v25  ;;  %v7413_v56 = vmul.f32 %v8923_v38, %v13356_v50 }
0x14b3   :  { %v7032_v48 = vpop.f32.mrf.mxu0 }
0x14b4   :  { %v7105_v60 = vpack.c.bf16 %v7084_v14, %v7083_v63  ;;  %v7033_v4 = vadd.f32 %v13314_v28, %v7032_v48  ;;  %v7089_v0 = vmax.f32 %v7041_v31, 0.0  ;;  %v9166_v48 = vld [vmem:[#allocation5 + $0x410] sm:$0xff]   ;;  %v8932_v31 = vunpack.c.h.bf16 %v9167_v7 }
0x14b5   :  { %v11086_v37 = vpop.f32.mrf.mxu0 }
0x14b6   :  { %v7044_v40 = vadd.f32 %v13314_v28, %v11086_v37  ;;  %11127 = vmatprep.mubr.bf16.mxu1 %v7105_v60  ;;  %v7087_v30 = vmax.f32 %v7033_v4, 0.0 }
0x14b7   :  { %v7035_v19 = vpop.f32.mrf.mxu0  ;;  %11128 = vmatmul.mubr.bf16.gmra.mxu1 %v7106_v36  ;;  %v8931_v36 = vunpack.c.l.bf16 %v9167_v7  ;;  %v11547_v7 = vld [vmem:[#allocation7 + $0x128] sm:$0xff]  }
0x14b8   :  { %v7036_v6 = vadd.f32 %v13314_v28, %v7035_v19  ;;  %v7090_v13 = vmax.f32 %v7044_v40, 0.0  ;;  %v8928_v19 = vunpack.c.h.bf16 %v9166_v48 }
0x14b9   :  { %v11089_v39 = vpop.f32.mrf.mxu0 }
0x14ba   :  { %v7088_v62 = vmax.f32 %v7036_v6, 0.0  ;;  %v7108_v10 = vpack.c.bf16 %v7090_v13, %v7089_v0  ;;  %v7057_v29 = vadd.f32 %v13314_v28, %v11089_v39  ;;  %v8927_v39 = vunpack.c.l.bf16 %v9166_v48 }
0x14bb   :  { %v7048_v47 = vpop.f32.mrf.mxu0 }
0x14bc   :  { %v7107_v9 = vpack.c.bf16 %v7088_v62, %v7087_v30  ;;  %v7049_v42 = vadd.f32 %v13314_v28, %v7048_v47  ;;  %v7093_v44 = vmax.f32 %v7057_v29, 0.0 }
0x14bd   :  { %v11090_v46 = vpop.f32.mrf.mxu0 }
0x14be   :  { %v7060_v2 = vadd.f32 %v13314_v28, %v11090_v46  ;;  %11131 = vmatprep.mubr.bf16.mxu1 %v7107_v9  ;;  %v7091_v26 = vmax.f32 %v7049_v42, 0.0 }
0x14bf   :  { %v7051_v15 = vpop.f32.mrf.mxu0  ;;  %11132 = vmatmul.mubr.bf16.gmra.mxu1 %v7108_v10 }
0x14c0   :  { %v7052_v59 = vadd.f32 %v13314_v28, %v7051_v15  ;;  %v7094_v16 = vmax.f32 %v7060_v2, 0.0  ;;  %v7418_v2 = vmul.f32 %v8932_v31, %v13356_v50  ;;  %v7416_v15 = vmul.f32 %v8928_v19, %v13356_v50 }
0x14c2   :  { %v7092_v43 = vmax.f32 %v7052_v59, 0.0  ;;  %v7110_v32 = vpack.c.bf16 %v7094_v16, %v7093_v44  ;;  %v9168_v59 = vld [vmem:[#allocation5 + $0x420] sm:$0xff]   ;;  %v7417_v16 = vmul.f32 %v8931_v36, %v13356_v50 }
0x14c3   :  { %v8935_v45 = vunpack.c.l.bf16 %v9168_v59 }
0x14c4   :  { %v7109_v17 = vpack.c.bf16 %v7092_v43, %v7091_v26  ;;  %v7415_v43 = vmul.f32 %v8927_v39, %v13356_v50 }
0x14c6   :  { %11135 = vmatprep.mubr.bf16.mxu1 %v7109_v17 }
0x14c7   :  { %11136 = vmatmul.mubr.bf16.gmra.mxu1 %v7110_v32 }
0x154f   :  { %v11109_v8 = vpop.f32.mrf.mxu1 }
0x1550   :  { %v7154_v53 = vadd.f32 %v13349_v27, %v11109_v8 }
0x1551   :  { %v7145_v61 = vpop.f32.mrf.mxu1 }
0x1552   :  { %v7146_v58 = vadd.f32 %v13349_v27, %v7145_v61  ;;  %v7274_v49 = vmax.f32 %v7154_v53, 0.0  ;;  %v9169_v53 = vld [vmem:[#allocation5 + $0x428] sm:$0xff]  }
0x1553   :  { %v11110_v28 = vpop.f32.mrf.mxu1  ;;  %v8940_v22 = vunpack.c.h.bf16 %v9169_v53 }
0x1554   :  { %v7272_v5 = vmax.f32 %v7146_v58, 0.0  ;;  %v7157_v23 = vadd.f32 %v13349_v27, %v11110_v28  ;;  %v7312_v21 = vmul.f32 %v13354_v11, %v7274_v49  ;;  %v8936_v28 = vunpack.c.h.bf16 %v9168_v59 }
0x1555   :  { %v7148_v52 = vpop.f32.mrf.mxu1 }
0x1556   :  { %v7275_v34 = vmax.f32 %v7157_v23, 0.0  ;;  %v7149_v51 = vadd.f32 %v13349_v27, %v7148_v52  ;;  %v7310_v3 = vmul.f32 %v13354_v11, %v7272_v5  ;;  %v7445_v6 = vadd.f32 %v7413_v56, %v7312_v21 }
0x1557   :  { %v11113_v20 = vpop.f32.mrf.mxu1  ;;  %v8939_v52 = vunpack.c.l.bf16 %v9169_v53 }
0x1558   :  { %v7313_v54 = vmul.f32 %v13354_v11, %v7275_v34  ;;  %v7273_v55 = vmax.f32 %v7149_v51, 0.0  ;;  %v7170_v14 = vadd.f32 %v13349_v27, %v11113_v20  ;;  %v7443_v4 = vadd.f32 %v7411_v41, %v7310_v3 }
0x1559   :  { %v7161_v25 = vpop.f32.mrf.mxu1  ;;  %v7422_v3 = vmul.f32 %v8940_v22, %v13356_v50 }
0x155a   :  { %v7311_v63 = vmul.f32 %v13354_v11, %v7273_v55  ;;  %v7162_v1 = vadd.f32 %v13349_v27, %v7161_v25  ;;  %v7446_v60 = vadd.f32 %v7414_v18, %v7313_v54  ;;  %v7278_v0 = vmax.f32 %v7170_v14, 0.0 }
0x155b   :  { %v11114_v37 = vpop.f32.mrf.mxu1  ;;  %v7420_v54 = vmul.f32 %v8936_v28, %v13356_v50  ;;  %v7421_v14 = vmul.f32 %v8939_v52, %v13356_v50 }
0x155c   :  { %v7444_v40 = vadd.f32 %v7412_v35, %v7311_v63  ;;  %v7276_v13 = vmax.f32 %v7162_v1, 0.0  ;;  %v7173_v30 = vadd.f32 %v13349_v27, %v11114_v37  ;;  %v7476_v10 = vpack.c.bf16 %v7446_v60, %v7445_v6  ;;  %v9171_v37 = vld [vmem:[#allocation5 + $0x438] sm:$0xff]  }
0x155d   :  { %v7164_v62 = vpop.f32.mrf.mxu1  ;;  %v7316_v32 = vmul.f32 %v13354_v11, %v7278_v0  ;;  %v8948_v19 = vunpack.c.h.bf16 %v9171_v37  ;;  %v8947_v0 = vunpack.c.l.bf16 %v9171_v37 }
0x155e   :  { %v7165_v47 = vadd.f32 %v13349_v27, %v7164_v62  ;;  %v7475_v9 = vpack.c.bf16 %v7444_v40, %v7443_v4  ;;  %v7279_v46 = vmax.f32 %v7173_v30, 0.0  ;;  %v7314_v26 = vmul.f32 %v13354_v11, %v7276_v13  ;;  %v9170_v40 = vld [vmem:[#allocation5 + $0x430] sm:$0xff]   ;;  %v11548_v62 = vld [vmem:[#allocation7 + $0x120] sm:$0xff]  }
0x155f   :  { %v11117_v42 = vpop.f32.mrf.mxu1  ;;  %v7449_v51 = vadd.f32 %v7417_v16, %v7316_v32  ;;  %v8944_v30 = vunpack.c.h.bf16 %v9170_v40  ;;  %v9172_v32 = vld [vmem:[#allocation5 + $0x440] sm:$0xff]  }
0x1560   :  { %v7277_v29 = vmax.f32 %v7165_v47, 0.0  ;;  %11155 = vmatprep.mubr.bf16.mxu0 %v7475_v9  ;;  %v7317_v44 = vmul.f32 %v13354_v11, %v7279_v46  ;;  %v7186_v12 = vadd.f32 %v13349_v27, %v11117_v42  ;;  %v7447_v38 = vadd.f32 %v7415_v43, %v7314_v26 }
0x1561   :  { %v7177_v17 = vpop.f32.mrf.mxu1  ;;  %11156 = vmatmul.mubr.bf16.vlgmr.msra.gmra.mxu0 %v7476_v10  ;;  %v8943_v9 = vunpack.c.l.bf16 %v9170_v40  ;;  %v7426_v43 = vmul.f32 %v8948_v19, %v13356_v50  ;;  %v8952_v52 = vunpack.c.h.bf16 %v9172_v32 }
0x1562   :  { %v7315_v8 = vmul.f32 %v13354_v11, %v7277_v29  ;;  %v7178_v61 = vadd.f32 %v13349_v27, %v7177_v17  ;;  %11236 = vmatpush3.bf16.msra.mxu0 %v13299_v33  ;;  %v7450_v5 = vadd.f32 %v7418_v2, %v7317_v44  ;;  %v7282_v41 = vmax.f32 %v7186_v12, 0.0 }
0x1563   :  { %v11118_v58 = vpop.f32.mrf.mxu1  ;;  %11237 = vmatprep.subr.bf16.mxu0 %v11546_v24  ;;  %v7419_v33 = vmul.f32 %v8935_v45, %v13356_v50  ;;  %v7424_v17 = vmul.f32 %v8944_v30, %v13356_v50  ;;  %v7425_v12 = vmul.f32 %v8947_v0, %v13356_v50 }
0x1564   :  { %v7448_v23 = vadd.f32 %v7416_v15, %v7315_v8  ;;  %v7280_v57 = vmax.f32 %v7178_v61, 0.0  ;;  %v7189_v49 = vadd.f32 %v13349_v27, %v11118_v58  ;;  %v7478_v21 = vpack.c.bf16 %v7450_v5, %v7449_v51  ;;  %v11549_v8 = vld [vmem:[#allocation7 + $0x118] sm:$0xff]   ;;  %v9173_v5 = vld [vmem:[#allocation5 + $0x448] sm:$0xff]  }
0x1565   :  { %v7180_v34 = vpop.f32.mrf.mxu1  ;;  %v7320_v48 = vmul.f32 %v13354_v11, %v7282_v41  ;;  %v7423_v61 = vmul.f32 %v8943_v9, %v13356_v50 }
0x1566   :  { %v7283_v18 = vmax.f32 %v7189_v49, 0.0  ;;  %v7181_v20 = vadd.f32 %v13349_v27, %v7180_v34  ;;  %11238 = vmatpush3.bf16.msra.mxu0 %v11546_v24  ;;  %v7477_v35 = vpack.c.bf16 %v7448_v23, %v7447_v38  ;;  %v7318_v56 = vmul.f32 %v13354_v11, %v7280_v57 }
0x1567   :  { %v11121_v55 = vpop.f32.mrf.mxu1  ;;  %11239 = vmatprep.subr.bf16.mxu0 %v11547_v7  ;;  %v7453_v42 = vadd.f32 %v7421_v14, %v7320_v48  ;;  %v8951_v57 = vunpack.c.l.bf16 %v9172_v32  ;;  %v8956_v38 = vunpack.c.h.bf16 %v9173_v5 }
0x1568   :  { %v7321_v25 = vmul.f32 %v13354_v11, %v7283_v18  ;;  %v7281_v63 = vmax.f32 %v7181_v20, 0.0  ;;  %11159 = vmatprep.mubr.bf16.mxu0 %v7477_v35  ;;  %v7202_v36 = vadd.f32 %v13349_v27, %v11121_v55  ;;  %v7451_v6 = vadd.f32 %v7419_v33, %v7318_v56  ;;  %v11550_v20 = vld [vmem:[#allocation7 + $0x110] sm:$0xff]  }
0x1569   :  { %v7193_v1 = vpop.f32.mrf.mxu1  ;;  %11160 = vmatmul.mubr.bf16.gmra.mxu0 %v7478_v21  ;;  %v7427_v56 = vmul.f32 %v8951_v57, %v13356_v50 }
0x156a   :  { %v7319_v60 = vmul.f32 %v13354_v11, %v7281_v63  ;;  %v7194_v4 = vadd.f32 %v13349_v27, %v7193_v1  ;;  %11240 = vmatpush3.bf16.msra.mxu0 %v11547_v7  ;;  %v7454_v13 = vadd.f32 %v7422_v3, %v7321_v25  ;;  %v7286_v2 = vmax.f32 %v7202_v36, 0.0 }
0x156b   :  { %v11122_v31 = vpop.f32.mrf.mxu1  ;;  %11241 = vmatprep.subr.bf16.mxu0 %v11548_v62  ;;  %v8955_v3 = vunpack.c.l.bf16 %v9173_v5  ;;  %v7430_v25 = vmul.f32 %v8956_v38, %v13356_v50  ;;  %v7428_v63 = vmul.f32 %v8952_v52, %v13356_v50 }
0x156c   :  { %v7452_v39 = vadd.f32 %v7420_v54, %v7319_v60  ;;  %v7284_v47 = vmax.f32 %v7194_v4, 0.0  ;;  %v7205_v10 = vadd.f32 %v13349_v27, %v11122_v31  ;;  %v7480_v26 = vpack.c.bf16 %v7454_v13, %v7453_v42  ;;  %v11551_v4 = vld [vmem:[#allocation7 + $0x108] sm:$0xff]  }
0x156d   :  { %v7196_v46 = vpop.f32.mrf.mxu1  ;;  %v7324_v22 = vmul.f32 %v13354_v11, %v7286_v2  ;;  %v7429_v40 = vmul.f32 %v8955_v3, %v13356_v50  ;;  %v11552_v2 = vld [vmem:[#allocation7 + $0x100] sm:$0xff]  }
0x156e   :  { %v7197_v29 = vadd.f32 %v13349_v27, %v7196_v46  ;;  %v7479_v15 = vpack.c.bf16 %v7452_v39, %v7451_v6  ;;  %v7287_v59 = vmax.f32 %v7205_v10, 0.0  ;;  %11242 = vmatpush3.bf16.msra.mxu0 %v11548_v62  ;;  %v7322_v53 = vmul.f32 %v13354_v11, %v7284_v47  ;;  %v9175_v39 = vld [vmem:[#allocation5 + $0x458] sm:$0xff]   ;;  %v9174_v62 = vld [vmem:[#allocation5 + $0x450] sm:$0xff]  }
0x156f   :  { %v11125_v16 = vpop.f32.mrf.mxu1  ;;  %11243 = vmatprep.subr.bf16.mxu0 %v11549_v8  ;;  %v7457_v55 = vadd.f32 %v7425_v12, %v7324_v22  ;;  %v8964_v47 = vunpack.c.h.bf16 %v9175_v39  ;;  %v8960_v42 = vunpack.c.h.bf16 %v9174_v62  ;;  %v9176_v22 = vld [vmem:[#allocation5 + $0x460] sm:$0xff]  }
0x1570   :  { %v7285_v44 = vmax.f32 %v7197_v29, 0.0  ;;  %11163 = vmatprep.mubr.bf16.mxu0 %v7479_v15  ;;  %v7325_v45 = vmul.f32 %v13354_v11, %v7287_v59  ;;  %v7218_v24 = vadd.f32 %v13349_v27, %v11125_v16  ;;  %v7455_v33 = vadd.f32 %v7423_v61, %v7322_v53 }
0x1571   :  { %v7209_v58 = vpop.f32.mrf.mxu1  ;;  %11164 = vmatmul.mubr.bf16.gmra.mxu0 %v7480_v26  ;;  %v8963_v29 = vunpack.c.l.bf16 %v9175_v39  ;;  %v8959_v59 = vunpack.c.l.bf16 %v9174_v62  ;;  %v7434_v61 = vmul.f32 %v8964_v47, %v13356_v50 }
0x1572   :  { %v7323_v28 = vmul.f32 %v13354_v11, %v7285_v44  ;;  %v7210_v23 = vadd.f32 %v13349_v27, %v7209_v58  ;;  %11244 = vmatpush3.bf16.msra.mxu0 %v11549_v8  ;;  %v7458_v34 = vadd.f32 %v7426_v43, %v7325_v45  ;;  %v7290_v35 = vmax.f32 %v7218_v24, 0.0 }
0x1573   :  { %v11126_v49 = vpop.f32.mrf.mxu1  ;;  %11245 = vmatprep.subr.bf16.mxu0 %v11550_v20  ;;  %v7432_v58 = vmul.f32 %v8960_v42, %v13356_v50  ;;  %v7431_v5 = vmul.f32 %v8959_v59, %v13356_v50 }
0x1574   :  { %v7456_v51 = vadd.f32 %v7424_v17, %v7323_v28  ;;  %v7288_v41 = vmax.f32 %v7210_v23, 0.0  ;;  %v7221_v18 = vadd.f32 %v13349_v27, %v11126_v49  ;;  %v7482_v48 = vpack.c.bf16 %v7458_v34, %v7457_v55  ;;  %v9177_v34 = vld [vmem:[#allocation5 + $0x468] sm:$0xff]  }
0x1575   :  { %v7212_v54 = vpop.f32.mrf.mxu1  ;;  %v7328_v19 = vmul.f32 %v13354_v11, %v7290_v35  ;;  %v7433_v28 = vmul.f32 %v8963_v29, %v13356_v50 }
0x1576   :  { %v7291_v7 = vmax.f32 %v7221_v18, 0.0  ;;  %v7213_v21 = vadd.f32 %v13349_v27, %v7212_v54  ;;  %v7481_v1 = vpack.c.bf16 %v7456_v51, %v7455_v33  ;;  %11246 = vmatpush3.bf16.msra.mxu0 %v11550_v20  ;;  %v7326_v60 = vmul.f32 %v13354_v11, %v7288_v41 }
0x1577   :  { %v11129_v14 = vpop.f32.mrf.mxu1  ;;  %11247 = vmatprep.subr.bf16.mxu0 %v11551_v4  ;;  %v7461_v43 = vadd.f32 %v7429_v40, %v7328_v19  ;;  %v8967_v41 = vunpack.c.l.bf16 %v9176_v22  ;;  %v8972_v20 = vunpack.c.h.bf16 %v9177_v34  ;;  %v8968_v33 = vunpack.c.h.bf16 %v9176_v22 }
0x1578   :  { %v7329_v36 = vmul.f32 %v13354_v11, %v7291_v7  ;;  %v7289_v37 = vmax.f32 %v7213_v21, 0.0  ;;  %11167 = vmatprep.mubr.bf16.mxu0 %v7481_v1  ;;  %v7234_v13 = vadd.f32 %v13349_v27, %v11129_v14  ;;  %v7459_v9 = vadd.f32 %v7427_v56, %v7326_v60 }
0x1579   :  { %v7225_v31 = vpop.f32.mrf.mxu1  ;;  %11168 = vmatmul.mubr.bf16.gmra.mxu0 %v7482_v48  ;;  %v8971_v21 = vunpack.c.l.bf16 %v9177_v34  ;;  %v7435_v48 = vmul.f32 %v8967_v41, %v13356_v50  ;;  %v7438_v60 = vmul.f32 %v8972_v20, %v13356_v50 }
0x157a   :  { %v7327_v6 = vmul.f32 %v13354_v11, %v7289_v37  ;;  %v7226_v30 = vadd.f32 %v13349_v27, %v7225_v31  ;;  %11248 = vmatpush3.bf16.msra.mxu0 %v11551_v4  ;;  %v7462_v10 = vadd.f32 %v7430_v25, %v7329_v36  ;;  %v7294_v44 = vmax.f32 %v7234_v13, 0.0  ;;  %v9178_v13 = vld [vmem:[#allocation5 + $0x470] sm:$0xff]  }
0x157b   :  { %v11130_v0 = vpop.f32.mrf.mxu1  ;;  %11249 = vmatprep.subr.bf16.mxu0 %v11552_v2  ;;  %v7436_v36 = vmul.f32 %v8968_v33, %v13356_v50  ;;  %v7437_v39 = vmul.f32 %v8971_v21, %v13356_v50  ;;  %v8976_v29 = vunpack.c.h.bf16 %v9178_v13 }
0x157c   :  { %v7460_v46 = vadd.f32 %v7428_v63, %v7327_v6  ;;  %v7292_v15 = vmax.f32 %v7226_v30, 0.0  ;;  %v7237_v16 = vadd.f32 %v13349_v27, %v11130_v0  ;;  %v7484_v53 = vpack.c.bf16 %v7462_v10, %v7461_v43 }
0x157d   :  { %v7228_v26 = vpop.f32.mrf.mxu1  ;;  %v7332_v49 = vmul.f32 %v13354_v11, %v7294_v44 }
0x157e   :  { %v7229_v17 = vadd.f32 %v13349_v27, %v7228_v26  ;;  %v7483_v32 = vpack.c.bf16 %v7460_v46, %v7459_v9  ;;  %v7295_v8 = vmax.f32 %v7237_v16, 0.0  ;;  %11250 = vmatpush3.bf16.msra.mxu0 %v11552_v2  ;;  %v7330_v24 = vmul.f32 %v13354_v11, %v7292_v15  ;;  %v9179_v9 = vld [vmem:[#allocation5 + $0x478] sm:$0xff]  }
0x157f   :  { %v11133_v12 = vpop.f32.mrf.mxu1  ;;  %v7465_v25 = vadd.f32 %v7433_v28, %v7332_v49  ;;  %v8975_v46 = vunpack.c.l.bf16 %v9178_v13  ;;  %v8980_v2 = vunpack.c.h.bf16 %v9179_v9  ;;  %v8979_v43 = vunpack.c.l.bf16 %v9179_v9 }
0x1580   :  { %v7293_v45 = vmax.f32 %v7229_v17, 0.0  ;;  %11171 = vmatprep.mubr.bf16.mxu0 %v7483_v32  ;;  %v7333_v23 = vmul.f32 %v13354_v11, %v7295_v8  ;;  %v7250_v52 = vadd.f32 %v13349_v27, %v11133_v12  ;;  %v7463_v7 = vadd.f32 %v7431_v5, %v7330_v24 }
0x1581   :  { %v7241_v57 = vpop.f32.mrf.mxu1  ;;  %11172 = vmatmul.mubr.bf16.gmra.mxu0 %v7484_v53  ;;  %v7440_v5 = vmul.f32 %v8976_v29, %v13356_v50  ;;  %v7441_v49 = vmul.f32 %v8979_v43, %v13356_v50 }
0x1582   :  { %v7331_v38 = vmul.f32 %v13354_v11, %v7293_v45  ;;  %v7242_v51 = vadd.f32 %v13349_v27, %v7241_v57  ;;  %v7466_v3 = vadd.f32 %v7434_v61, %v7333_v23  ;;  %v7298_v63 = vmax.f32 %v7250_v52, 0.0 }
0x1583   :  { %v11134_v18 = vpop.f32.mrf.mxu1  ;;  %v7439_v61 = vmul.f32 %v8975_v46, %v13356_v50 }
0x1584   :  { %v7464_v54 = vadd.f32 %v7432_v58, %v7331_v38  ;;  %v7296_v55 = vmax.f32 %v7242_v51, 0.0  ;;  %v7253_v35 = vadd.f32 %v13349_v27, %v11134_v18  ;;  %v7486_v40 = vpack.c.bf16 %v7466_v3, %v7465_v25 }
0x1585   :  { %v7244_v56 = vpop.f32.mrf.mxu1  ;;  %v7336_v62 = vmul.f32 %v13354_v11, %v7298_v63  ;;  %v7442_v58 = vmul.f32 %v8980_v2, %v13356_v50 }
0x1586   :  { %v7299_v14 = vmax.f32 %v7253_v35, 0.0  ;;  %v7245_v1 = vadd.f32 %v13349_v27, %v7244_v56  ;;  %v7485_v4 = vpack.c.bf16 %v7464_v54, %v7463_v7  ;;  %v7334_v31 = vmul.f32 %v13354_v11, %v7296_v55  ;;  %v13452_v54 = vld [vmem:[#allocation8 + $0x2] ss:$0 sm:$0xff] }
0x1587   :  { %v11137_v37 = vpop.f32.mrf.mxu1  ;;  %v7469_v32 = vadd.f32 %v7437_v39, %v7336_v62 }
0x1588   :  { %v7337_v19 = vmul.f32 %v13354_v11, %v7299_v14  ;;  %v7297_v6 = vmax.f32 %v7245_v1, 0.0  ;;  %11175 = vmatprep.mubr.bf16.mxu0 %v7485_v4  ;;  %v7266_v47 = vadd.f32 %v13349_v27, %v11137_v37  ;;  %v7467_v15 = vadd.f32 %v7435_v48, %v7334_v31 }
0x1589   :  { %v7257_v30 = vpop.f32.mrf.mxu1  ;;  %11176 = vmatmul.mubr.bf16.gmra.mxu0 %v7486_v40 }
0x158a   :  { %v7335_v0 = vmul.f32 %v13354_v11, %v7297_v6  ;;  %v7258_v10 = vadd.f32 %v13349_v27, %v7257_v30  ;;  %v7470_v59 = vadd.f32 %v7438_v60, %v7337_v19  ;;  %v7302_v8 = vmax.f32 %v7266_v47, 0.0 }
0x158b   :  { %v11138_v42 = vpop.f32.mrf.mxu1 }
0x158c   :  { %v7468_v16 = vadd.f32 %v7436_v36, %v7335_v0  ;;  %v7300_v26 = vmax.f32 %v7258_v10, 0.0  ;;  %v7269_v44 = vadd.f32 %v13349_v27, %v11138_v42  ;;  %v7488_v22 = vpack.c.bf16 %v7470_v59, %v7469_v32 }
0x158d   :  { %v7260_v17 = vpop.f32.mrf.mxu1  ;;  %v7340_v57 = vmul.f32 %v13354_v11, %v7302_v8 }
0x158e   :  { %v7261_v12 = vadd.f32 %v13349_v27, %v7260_v17  ;;  %v7487_v53 = vpack.c.bf16 %v7468_v16, %v7467_v15  ;;  %v7303_v45 = vmax.f32 %v7269_v44, 0.0  ;;  %v7338_v28 = vmul.f32 %v13354_v11, %v7300_v26 }
0x158f   :  { %v7473_v51 = vadd.f32 %v7441_v49, %v7340_v57 }
0x1590   :  { %v7301_v24 = vmax.f32 %v7261_v12, 0.0  ;;  %11179 = vmatprep.mubr.bf16.mxu0 %v7487_v53  ;;  %v7341_v23 = vmul.f32 %v13354_v11, %v7303_v45  ;;  %v7471_v38 = vadd.f32 %v7439_v61, %v7338_v28 }
0x1591   :  { %11180 = vmatmul.mubr.bf16.gmra.mxu0 %v7488_v22 }
0x1592   :  { %v7339_v27 = vmul.f32 %v13354_v11, %v7301_v24  ;;  %v7474_v52 = vadd.f32 %v7442_v58, %v7341_v23 }
0x1594   :  { %v7472_v34 = vadd.f32 %v7440_v5, %v7339_v27  ;;  %v7490_v18 = vpack.c.bf16 %v7474_v52, %v7473_v51 }
0x1596   :  { %v7489_v41 = vpack.c.bf16 %v7472_v34, %v7471_v38 }
0x1598   :  { %11183 = vmatprep.mubr.bf16.mxu0 %v7489_v41 }
0x1599   :  { %11184 = vmatmul.mubr.bf16.gmra.mxu0 %v7490_v18 }
0x1621   :  { %v11157_v20 = vpop.f32.mrf.mxu0 }
0x1622   :  { %v7534_v11 = vadd.f32 %v13452_v54, %v11157_v20 }
0x1623   :  { %v7525_v33 = vpop.f32.mrf.mxu0 }
0x1624   :  { %v7526_v55 = vadd.f32 %v13452_v54, %v7525_v33  ;;  %v7654_v14 = vmax.f32 %v7534_v11, 0.0 }
0x1625   :  { %v11158_v3 = vpop.f32.mrf.mxu0 }
0x1626   :  { %v7537_v50 = vadd.f32 %v13452_v54, %v11158_v3  ;;  %v7652_v56 = vmax.f32 %v7526_v55, 0.0 }
0x1627   :  { %v7528_v35 = vpop.f32.mrf.mxu0 }
0x1628   :  { %v7529_v7 = vadd.f32 %v13452_v54, %v7528_v35  ;;  %v7655_v21 = vmax.f32 %v7537_v50, 0.0 }
0x1629   :  { %v11161_v63 = vpop.f32.mrf.mxu0 }
0x162a   :  { %v7653_v25 = vmax.f32 %v7529_v7, 0.0  ;;  %v7685_v60 = vpack.c.bf16 %v7655_v21, %v7654_v14  ;;  %v7550_v40 = vadd.f32 %v13452_v54, %v11161_v63 }
0x162b   :  { %v7541_v48 = vpop.f32.mrf.mxu0 }
0x162c   :  { %v7684_v1 = vpack.c.bf16 %v7653_v25, %v7652_v56  ;;  %v7542_v37 = vadd.f32 %v13452_v54, %v7541_v48  ;;  %v7658_v62 = vmax.f32 %v7550_v40, 0.0 }
0x162d   :  { %v11162_v36 = vpop.f32.mrf.mxu0 }
0x162e   :  { %11203 = vmatprep.mubr.bf16.mxu1 %v7684_v1  ;;  %v7553_v4 = vadd.f32 %v13452_v54, %v11162_v36  ;;  %v7656_v39 = vmax.f32 %v7542_v37, 0.0 }
0x162f   :  { %11204 = vmatmul.mubr.bf16.vlgmr.msra.gmra.mxu1 %v7685_v60  ;;  %v7544_v31 = vpop.f32.mrf.mxu0 }
0x1630   :  { %v7545_v19 = vadd.f32 %v13452_v54, %v7544_v31  ;;  %v7659_v6 = vmax.f32 %v7553_v4, 0.0 }
0x1631   :  { %v11165_v13 = vpop.f32.mrf.mxu0 }
0x1632   :  { %v7657_v30 = vmax.f32 %v7545_v19, 0.0  ;;  %v7687_v9 = vpack.c.bf16 %v7659_v6, %v7658_v62  ;;  %v7566_v2 = vadd.f32 %v13452_v54, %v11165_v13 }
0x1633   :  { %v7557_v0 = vpop.f32.mrf.mxu0 }
0x1634   :  { %v7686_v47 = vpack.c.bf16 %v7657_v30, %v7656_v39  ;;  %v7558_v46 = vadd.f32 %v13452_v54, %v7557_v0  ;;  %v7662_v44 = vmax.f32 %v7566_v2, 0.0 }
0x1635   :  { %v11166_v10 = vpop.f32.mrf.mxu0 }
0x1636   :  { %v7569_v42 = vadd.f32 %v13452_v54, %v11166_v10  ;;  %11207 = vmatprep.mubr.bf16.mxu1 %v7686_v47  ;;  %v7660_v26 = vmax.f32 %v7558_v46, 0.0 }
0x1637   :  { %v7560_v29 = vpop.f32.mrf.mxu0  ;;  %11208 = vmatmul.mubr.bf16.gmra.mxu1 %v7687_v9 }
0x1638   :  { %v7561_v15 = vadd.f32 %v13452_v54, %v7560_v29  ;;  %v7663_v59 = vmax.f32 %v7569_v42, 0.0 }
0x1639   :  { %v11169_v16 = vpop.f32.mrf.mxu0 }
0x163a   :  { %v7661_v43 = vmax.f32 %v7561_v15, 0.0  ;;  %v7689_v8 = vpack.c.bf16 %v7663_v59, %v7662_v44  ;;  %v7582_v45 = vadd.f32 %v13452_v54, %v11169_v16 }
0x163b   :  { %v7573_v17 = vpop.f32.mrf.mxu0 }
0x163c   :  { %v7688_v32 = vpack.c.bf16 %v7661_v43, %v7660_v26  ;;  %v7574_v53 = vadd.f32 %v13452_v54, %v7573_v17  ;;  %v7666_v57 = vmax.f32 %v7582_v45, 0.0 }
0x163d   :  { %v11170_v12 = vpop.f32.mrf.mxu0 }
0x163e   :  { %v7585_v61 = vadd.f32 %v13452_v54, %v11170_v12  ;;  %11211 = vmatprep.mubr.bf16.mxu1 %v7688_v32  ;;  %v7664_v5 = vmax.f32 %v7574_v53, 0.0 }
0x163f   :  { %v7576_v58 = vpop.f32.mrf.mxu0  ;;  %11212 = vmatmul.mubr.bf16.gmra.mxu1 %v7689_v8 }
0x1640   :  { %v7577_v22 = vadd.f32 %v13452_v54, %v7576_v58  ;;  %v7667_v28 = vmax.f32 %v7585_v61, 0.0 }
0x1641   :  { %v11173_v24 = vpop.f32.mrf.mxu0 }
0x1642   :  { %v7665_v23 = vmax.f32 %v7577_v22, 0.0  ;;  %v7691_v38 = vpack.c.bf16 %v7667_v28, %v7666_v57  ;;  %v7598_v41 = vadd.f32 %v13452_v54, %v11173_v24 }
0x1643   :  { %v7589_v49 = vpop.f32.mrf.mxu0 }
0x1644   :  { %v7690_v27 = vpack.c.bf16 %v7665_v23, %v7664_v5  ;;  %v7590_v34 = vadd.f32 %v13452_v54, %v7589_v49  ;;  %v7670_v11 = vmax.f32 %v7598_v41, 0.0  ;;  %v13486_v5 = vld [vmem:[#allocation8 + $0x3] ss:$0 sm:$0xff] }
0x1645   :  { %v11174_v52 = vpop.f32.mrf.mxu0 }
0x1646   :  { %v7601_v51 = vadd.f32 %v13452_v54, %v11174_v52  ;;  %11215 = vmatprep.mubr.bf16.mxu1 %v7690_v27  ;;  %v7668_v55 = vmax.f32 %v7590_v34, 0.0 }
0x1647   :  { %v7592_v18 = vpop.f32.mrf.mxu0  ;;  %11216 = vmatmul.mubr.bf16.gmra.mxu1 %v7691_v38 }
0x1648   :  { %v7593_v20 = vadd.f32 %v13452_v54, %v7592_v18  ;;  %v7671_v33 = vmax.f32 %v7601_v51, 0.0 }
0x1649   :  { %v11177_v3 = vpop.f32.mrf.mxu0 }
0x164a   :  { %v7669_v50 = vmax.f32 %v7593_v20, 0.0  ;;  %v7693_v21 = vpack.c.bf16 %v7671_v33, %v7670_v11  ;;  %v7614_v14 = vadd.f32 %v13452_v54, %v11177_v3 }
0x164b   :  { %v7605_v35 = vpop.f32.mrf.mxu0 }
0x164c   :  { %v7692_v7 = vpack.c.bf16 %v7669_v50, %v7668_v55  ;;  %v7606_v25 = vadd.f32 %v13452_v54, %v7605_v35  ;;  %v7674_v40 = vmax.f32 %v7614_v14, 0.0 }
0x164d   :  { %v11178_v56 = vpop.f32.mrf.mxu0 }
0x164e   :  { %v7617_v63 = vadd.f32 %v13452_v54, %v11178_v56  ;;  %11219 = vmatprep.mubr.bf16.mxu1 %v7692_v7  ;;  %v7672_v37 = vmax.f32 %v7606_v25, 0.0 }
0x164f   :  { %v7608_v1 = vpop.f32.mrf.mxu0  ;;  %11220 = vmatmul.mubr.bf16.gmra.mxu1 %v7693_v21 }
0x1650   :  { %v7609_v48 = vadd.f32 %v13452_v54, %v7608_v1  ;;  %v7675_v60 = vmax.f32 %v7617_v63, 0.0 }
0x1651   :  { %v11181_v36 = vpop.f32.mrf.mxu0 }
0x1652   :  { %v7673_v4 = vmax.f32 %v7609_v48, 0.0  ;;  %v7695_v6 = vpack.c.bf16 %v7675_v60, %v7674_v40  ;;  %v7630_v62 = vadd.f32 %v13452_v54, %v11181_v36 }
0x1653   :  { %v7621_v31 = vpop.f32.mrf.mxu0 }
0x1654   :  { %v7694_v19 = vpack.c.bf16 %v7673_v4, %v7672_v37  ;;  %v7622_v39 = vadd.f32 %v13452_v54, %v7621_v31  ;;  %v7678_v2 = vmax.f32 %v7630_v62, 0.0 }
0x1655   :  { %v11182_v13 = vpop.f32.mrf.mxu0 }
0x1656   :  { %v7633_v30 = vadd.f32 %v13452_v54, %v11182_v13  ;;  %11223 = vmatprep.mubr.bf16.mxu1 %v7694_v19  ;;  %v7676_v46 = vmax.f32 %v7622_v39, 0.0 }
0x1657   :  { %v7624_v0 = vpop.f32.mrf.mxu0  ;;  %11224 = vmatmul.mubr.bf16.gmra.mxu1 %v7695_v6 }
0x1658   :  { %v7625_v47 = vadd.f32 %v13452_v54, %v7624_v0  ;;  %v7679_v9 = vmax.f32 %v7633_v30, 0.0 }
0x1659   :  { %v11185_v10 = vpop.f32.mrf.mxu0 }
0x165a   :  { %v7677_v42 = vmax.f32 %v7625_v47, 0.0  ;;  %v7697_v59 = vpack.c.bf16 %v7679_v9, %v7678_v2  ;;  %v7646_v44 = vadd.f32 %v13452_v54, %v11185_v10 }
0x165b   :  { %v7637_v29 = vpop.f32.mrf.mxu0 }
0x165c   :  { %v7696_v15 = vpack.c.bf16 %v7677_v42, %v7676_v46  ;;  %v7638_v26 = vadd.f32 %v13452_v54, %v7637_v29  ;;  %v7682_v61 = vmax.f32 %v7646_v44, 0.0 }
0x165d   :  { %v11186_v16 = vpop.f32.mrf.mxu0 }
0x165e   :  { %v7649_v43 = vadd.f32 %v13452_v54, %v11186_v16  ;;  %11227 = vmatprep.mubr.bf16.mxu1 %v7696_v15  ;;  %v7680_v12 = vmax.f32 %v7638_v26, 0.0 }
0x165f   :  { %v7640_v17 = vpop.f32.mrf.mxu0  ;;  %11228 = vmatmul.mubr.bf16.gmra.mxu1 %v7697_v59 }
0x1660   :  { %v7641_v32 = vadd.f32 %v13452_v54, %v7640_v17  ;;  %v7683_v8 = vmax.f32 %v7649_v43, 0.0 }
0x1662   :  { %v7681_v53 = vmax.f32 %v7641_v32, 0.0  ;;  %v7699_v58 = vpack.c.bf16 %v7683_v8, %v7682_v61 }
0x1664   :  { %v7698_v45 = vpack.c.bf16 %v7681_v53, %v7680_v12 }
0x1666   :  { %11231 = vmatprep.mubr.bf16.mxu1 %v7698_v45 }
0x1667   :  { %11232 = vmatmul.mubr.bf16.gmra.mxu1 %v7699_v58 }
0x16ef   :  { %v11205_v22 = vpop.f32.mrf.mxu1 }
0x16f0   :  { %v7743_v49 = vadd.f32 %v13486_v5, %v11205_v22 }
0x16f1   :  { %v7734_v28 = vpop.f32.mrf.mxu1 }
0x16f2   :  { %v7735_v23 = vadd.f32 %v13486_v5, %v7734_v28  ;;  %v7863_v41 = vmax.f32 %v7743_v49, 0.0 }
0x16f3   :  { %v11206_v24 = vpop.f32.mrf.mxu1 }
0x16f4   :  { %v7746_v57 = vadd.f32 %v13486_v5, %v11206_v24  ;;  %v7861_v52 = vmax.f32 %v7735_v23, 0.0 }
0x16f5   :  { %v7737_v54 = vpop.f32.mrf.mxu1 }
0x16f6   :  { %v7738_v27 = vadd.f32 %v13486_v5, %v7737_v54  ;;  %v7864_v38 = vmax.f32 %v7746_v57, 0.0 }
0x16f7   :  { %v11209_v51 = vpop.f32.mrf.mxu1 }
0x16f8   :  { %v7862_v34 = vmax.f32 %v7738_v27, 0.0  ;;  %v7894_v33 = vpack.c.bf16 %v7864_v38, %v7863_v41  ;;  %v7759_v11 = vadd.f32 %v13486_v5, %v11209_v51 }
0x16f9   :  { %v7750_v20 = vpop.f32.mrf.mxu1 }
0x16fa   :  { %v7893_v18 = vpack.c.bf16 %v7862_v34, %v7861_v52  ;;  %v7751_v55 = vadd.f32 %v13486_v5, %v7750_v20  ;;  %v7867_v14 = vmax.f32 %v7759_v11, 0.0 }
0x16fb   :  { %v11210_v3 = vpop.f32.mrf.mxu1 }
0x16fc   :  { %11251 = vmatprep.mubr.bf16.mxu0 %v7893_v18  ;;  %v7762_v50 = vadd.f32 %v13486_v5, %v11210_v3  ;;  %v7865_v25 = vmax.f32 %v7751_v55, 0.0 }
0x16fd   :  { %11252 = vmatmul.mubr.bf16.vlgmr.msra.gmra.mxu0 %v7894_v33  ;;  %v7753_v35 = vpop.f32.mrf.mxu1 }
0x16fe   :  { %v7754_v7 = vadd.f32 %v13486_v5, %v7753_v35  ;;  %v7868_v21 = vmax.f32 %v7762_v50, 0.0 }
0x16ff   :  { %v11213_v56 = vpop.f32.mrf.mxu1 }
0x1700   :  { %v7866_v63 = vmax.f32 %v7754_v7, 0.0  ;;  %v7896_v60 = vpack.c.bf16 %v7868_v21, %v7867_v14  ;;  %v7775_v40 = vadd.f32 %v13486_v5, %v11213_v56 }
0x1701   :  { %v7766_v1 = vpop.f32.mrf.mxu1 }
0x1702   :  { %v7895_v48 = vpack.c.bf16 %v7866_v63, %v7865_v25  ;;  %v7767_v37 = vadd.f32 %v13486_v5, %v7766_v1  ;;  %v7871_v62 = vmax.f32 %v7775_v40, 0.0 }
0x1703   :  { %v11214_v36 = vpop.f32.mrf.mxu1 }
0x1704   :  { %v7778_v4 = vadd.f32 %v13486_v5, %v11214_v36  ;;  %11255 = vmatprep.mubr.bf16.mxu0 %v7895_v48  ;;  %v7869_v39 = vmax.f32 %v7767_v37, 0.0 }
0x1705   :  { %v7769_v31 = vpop.f32.mrf.mxu1  ;;  %11256 = vmatmul.mubr.bf16.gmra.mxu0 %v7896_v60 }
0x1706   :  { %v7770_v19 = vadd.f32 %v13486_v5, %v7769_v31  ;;  %v7872_v6 = vmax.f32 %v7778_v4, 0.0 }
0x1707   :  { %v11217_v13 = vpop.f32.mrf.mxu1 }
0x1708   :  { %v7870_v30 = vmax.f32 %v7770_v19, 0.0  ;;  %v7898_v9 = vpack.c.bf16 %v7872_v6, %v7871_v62  ;;  %v7791_v2 = vadd.f32 %v13486_v5, %v11217_v13 }
0x1709   :  { %v7782_v0 = vpop.f32.mrf.mxu1 }
0x170a   :  { %v7897_v47 = vpack.c.bf16 %v7870_v30, %v7869_v39  ;;  %v7783_v46 = vadd.f32 %v13486_v5, %v7782_v0  ;;  %v7875_v44 = vmax.f32 %v7791_v2, 0.0 }
0x170b   :  { %v11218_v10 = vpop.f32.mrf.mxu1 }
0x170c   :  { %v7794_v42 = vadd.f32 %v13486_v5, %v11218_v10  ;;  %11259 = vmatprep.mubr.bf16.mxu0 %v7897_v47  ;;  %v7873_v26 = vmax.f32 %v7783_v46, 0.0 }
0x170d   :  { %v7785_v29 = vpop.f32.mrf.mxu1  ;;  %11260 = vmatmul.mubr.bf16.gmra.mxu0 %v7898_v9 }
0x170e   :  { %v7786_v15 = vadd.f32 %v13486_v5, %v7785_v29  ;;  %v7876_v59 = vmax.f32 %v7794_v42, 0.0 }
0x170f   :  { %v11221_v16 = vpop.f32.mrf.mxu1 }
0x1710   :  { %v7874_v43 = vmax.f32 %v7786_v15, 0.0  ;;  %v7900_v8 = vpack.c.bf16 %v7876_v59, %v7875_v44  ;;  %v7807_v45 = vadd.f32 %v13486_v5, %v11221_v16  ;;  %v9180_v15 = vld [vmem:[#allocation5 + $0x488] sm:$0xff]   ;;  %v8982_v59 = vld [vmem:[#allocation5 + $0x480] sm:$0xff]  }
0x1711   :  { %v7798_v17 = vpop.f32.mrf.mxu1  ;;  %v8987_v16 = vunpack.c.l.bf16 %v9180_v15  ;;  %v8983_v44 = vunpack.c.l.bf16 %v8982_v59 }
0x1712   :  { %v7899_v32 = vpack.c.bf16 %v7874_v43, %v7873_v26  ;;  %v7799_v53 = vadd.f32 %v13486_v5, %v7798_v17  ;;  %v7879_v49 = vmax.f32 %v7807_v45, 0.0  ;;  %v13520_v43 = vld [vmem:[#allocation8 + $0x18] ss:$0 sm:$0xff]  ;;  %v13522_v17 = vld [vmem:[#allocation8 + $0x4] ss:$0 sm:$0xff] }
0x1713   :  { %v11222_v12 = vpop.f32.mrf.mxu1 }
0x1714   :  { %v7810_v61 = vadd.f32 %v13486_v5, %v11222_v12  ;;  %11263 = vmatprep.mubr.bf16.mxu0 %v7899_v32  ;;  %v7877_v23 = vmax.f32 %v7799_v53, 0.0  ;;  %v8988_v12 = vunpack.c.h.bf16 %v9180_v15 }
0x1715   :  { %v7801_v58 = vpop.f32.mrf.mxu1  ;;  %11264 = vmatmul.mubr.bf16.gmra.mxu0 %v7900_v8 }
0x1716   :  { %v7802_v22 = vadd.f32 %v13486_v5, %v7801_v58  ;;  %v7880_v28 = vmax.f32 %v7810_v61, 0.0  ;;  %v8211_v61 = vmul.f32 %v8987_v16, %v13520_v43  ;;  %v8209_v58 = vmul.f32 %v8983_v44, %v13520_v43 }
0x1717   :  { %v11225_v24 = vpop.f32.mrf.mxu1 }
0x1718   :  { %v7878_v57 = vmax.f32 %v7802_v22, 0.0  ;;  %v7902_v38 = vpack.c.bf16 %v7880_v28, %v7879_v49  ;;  %v7823_v41 = vadd.f32 %v13486_v5, %v11225_v24  ;;  %v9182_v49 = vld [vmem:[#allocation5 + $0x498] sm:$0xff]  }
0x1719   :  { %v7814_v54 = vpop.f32.mrf.mxu1 }
0x171a   :  { %v7901_v27 = vpack.c.bf16 %v7878_v57, %v7877_v23  ;;  %v7815_v34 = vadd.f32 %v13486_v5, %v7814_v54  ;;  %v7883_v11 = vmax.f32 %v7823_v41, 0.0  ;;  %v8984_v57 = vunpack.c.h.bf16 %v8982_v59  ;;  %v9181_v41 = vld [vmem:[#allocation5 + $0x490] sm:$0xff]  }
0x171b   :  { %v11226_v52 = vpop.f32.mrf.mxu1  ;;  %v8212_v54 = vmul.f32 %v8988_v12, %v13520_v43 }
0x171c   :  { %v7826_v51 = vadd.f32 %v13486_v5, %v11226_v52  ;;  %11267 = vmatprep.mubr.bf16.mxu0 %v7901_v27  ;;  %v7881_v55 = vmax.f32 %v7815_v34, 0.0 }
0x171d   :  { %v7817_v18 = vpop.f32.mrf.mxu1  ;;  %11268 = vmatmul.mubr.bf16.gmra.mxu0 %v7902_v38 }
0x171e   :  { %v7818_v20 = vadd.f32 %v13486_v5, %v7817_v18  ;;  %v7884_v33 = vmax.f32 %v7826_v51, 0.0  ;;  %v8995_v18 = vunpack.c.l.bf16 %v9182_v49 }
0x171f   :  { %v11229_v3 = vpop.f32.mrf.mxu1 }
0x1720   :  { %v7882_v50 = vmax.f32 %v7818_v20, 0.0  ;;  %v7904_v21 = vpack.c.bf16 %v7884_v33, %v7883_v11  ;;  %v7839_v14 = vadd.f32 %v13486_v5, %v11229_v3 }
0x1721   :  { %v7830_v35 = vpop.f32.mrf.mxu1 }
0x1722   :  { %v7903_v7 = vpack.c.bf16 %v7882_v50, %v7881_v55  ;;  %v7831_v25 = vadd.f32 %v13486_v5, %v7830_v35  ;;  %v7887_v40 = vmax.f32 %v7839_v14, 0.0  ;;  %v8210_v55 = vmul.f32 %v8984_v57, %v13520_v43 }
0x1723   :  { %v11230_v56 = vpop.f32.mrf.mxu1  ;;  %v8991_v35 = vunpack.c.l.bf16 %v9181_v41  ;;  %v8215_v14 = vmul.f32 %v8995_v18, %v13520_v43 }
0x1724   :  { %v7842_v63 = vadd.f32 %v13486_v5, %v11230_v56  ;;  %11271 = vmatprep.mubr.bf16.mxu0 %v7903_v7  ;;  %v7885_v37 = vmax.f32 %v7831_v25, 0.0  ;;  %v8996_v25 = vunpack.c.h.bf16 %v9182_v49  ;;  %v9185_v49 = vld [vmem:[#allocation5 + $0x4b0] sm:$0xff]  }
0x1725   :  { %v7833_v1 = vpop.f32.mrf.mxu1  ;;  %11272 = vmatmul.mubr.bf16.gmra.mxu0 %v7904_v21 }
0x1726   :  { %v7834_v48 = vadd.f32 %v13486_v5, %v7833_v1  ;;  %v7888_v60 = vmax.f32 %v7842_v63, 0.0 }
0x1727   :  { %v11233_v36 = vpop.f32.mrf.mxu1 }
0x1728   :  { %v7886_v4 = vmax.f32 %v7834_v48, 0.0  ;;  %v7906_v6 = vpack.c.bf16 %v7888_v60, %v7887_v40  ;;  %v7855_v62 = vadd.f32 %v13486_v5, %v11233_v36  ;;  %v9184_v48 = vld [vmem:[#allocation5 + $0x4a8] sm:$0xff]  }
0x1729   :  { %v7846_v31 = vpop.f32.mrf.mxu1  ;;  %v9004_v44 = vunpack.c.h.bf16 %v9184_v48 }
0x172a   :  { %v7905_v19 = vpack.c.bf16 %v7886_v4, %v7885_v37  ;;  %v7847_v39 = vadd.f32 %v13486_v5, %v7846_v31  ;;  %v7891_v42 = vmax.f32 %v7855_v62, 0.0  ;;  %v8992_v37 = vunpack.c.h.bf16 %v9181_v41 }
0x172b   :  { %v11234_v13 = vpop.f32.mrf.mxu1  ;;  %v8213_v31 = vmul.f32 %v8991_v35, %v13520_v43 }
0x172c   :  { %v7858_v30 = vadd.f32 %v13486_v5, %v11234_v13  ;;  %11275 = vmatprep.mubr.bf16.mxu0 %v7905_v19  ;;  %v7889_v10 = vmax.f32 %v7847_v39, 0.0  ;;  %v8216_v13 = vmul.f32 %v8996_v25, %v13520_v43 }
0x172d   :  { %v7849_v0 = vpop.f32.mrf.mxu1  ;;  %11276 = vmatmul.mubr.bf16.gmra.mxu0 %v7906_v6  ;;  %v9183_v6 = vld [vmem:[#allocation5 + $0x4a0] sm:$0xff]  }
0x172e   :  { %v7850_v47 = vadd.f32 %v13486_v5, %v7849_v0  ;;  %v7892_v9 = vmax.f32 %v7858_v30, 0.0  ;;  %v13525_v5 = vld [vmem:[#allocation8 + $0xe] ss:$0 sm:$0xff]  ;;  %v9003_v30 = vunpack.c.l.bf16 %v9184_v48 }
0x1730   :  { %v7890_v46 = vmax.f32 %v7850_v47, 0.0  ;;  %v7908_v29 = vpack.c.bf16 %v7892_v9, %v7891_v42  ;;  %v8999_v42 = vunpack.c.l.bf16 %v9183_v6  ;;  %v8219_v16 = vmul.f32 %v9003_v30, %v13520_v43 }
0x1732   :  { %v7907_v2 = vpack.c.bf16 %v7890_v46, %v7889_v10  ;;  %v8214_v10 = vmul.f32 %v8992_v37, %v13520_v43 }
0x1734   :  { %11279 = vmatprep.mubr.bf16.mxu0 %v7907_v2 }
0x1735   :  { %11280 = vmatmul.mubr.bf16.gmra.mxu0 %v7908_v29 }
0x17bd   :  { %v11253_v26 = vpop.f32.mrf.mxu0 }
0x17be   :  { %v7952_v32 = vadd.f32 %v13522_v17, %v11253_v26 }
0x17bf   :  { %v7943_v8 = vpop.f32.mrf.mxu0 }
0x17c0   :  { %v8072_v53 = vmax.f32 %v7952_v32, 0.0  ;;  %v7944_v45 = vadd.f32 %v13522_v17, %v7943_v8 }
0x17c1   :  { %v11254_v22 = vpop.f32.mrf.mxu0 }
0x17c2   :  { %v8110_v28 = vmul.f32 %v13525_v5, %v8072_v53  ;;  %v8070_v24 = vmax.f32 %v7944_v45, 0.0  ;;  %v7955_v23 = vadd.f32 %v13522_v17, %v11254_v22  ;;  %v8217_v45 = vmul.f32 %v8999_v42, %v13520_v43 }
0x17c3   :  { %v7946_v27 = vpop.f32.mrf.mxu0  ;;  %v9000_v22 = vunpack.c.h.bf16 %v9183_v6 }
0x17c4   :  { %v8243_v38 = vadd.f32 %v8211_v61, %v8110_v28  ;;  %v8108_v52 = vmul.f32 %v13525_v5, %v8070_v24  ;;  %v8073_v34 = vmax.f32 %v7955_v23, 0.0  ;;  %v7947_v51 = vadd.f32 %v13522_v17, %v7946_v27  ;;  %v9186_v61 = vld [vmem:[#allocation5 + $0x4b8] sm:$0xff]  }
0x17c5   :  { %v11257_v50 = vpop.f32.mrf.mxu0  ;;  %v8218_v18 = vmul.f32 %v9000_v22, %v13520_v43 }
0x17c6   :  { %8275 = vst [vmem:[#allocation10 + $0x10] sm:$0xff] %v8243_v38  ;;  %v8241_v20 = vadd.f32 %v8209_v58, %v8108_v52  ;;  %v8111_v33 = vmul.f32 %v13525_v5, %v8073_v34  ;;  %v8071_v3 = vmax.f32 %v7947_v51, 0.0  ;;  %v7968_v11 = vadd.f32 %v13522_v17, %v11257_v50 }
0x17c7   :  { %v7959_v56 = vpop.f32.mrf.mxu0  ;;  %v9011_v38 = vunpack.c.l.bf16 %v9186_v61 }
0x17c8   :  { %8273 = vst [vmem:[#allocation10] sm:$0xff] %v8241_v20  ;;  %v8244_v7 = vadd.f32 %v8212_v54, %v8111_v33  ;;  %v8109_v21 = vmul.f32 %v13525_v5, %v8071_v3  ;;  %v8076_v63 = vmax.f32 %v7968_v11, 0.0  ;;  %v7960_v1 = vadd.f32 %v13522_v17, %v7959_v56 }
0x17c9   :  { %v11258_v36 = vpop.f32.mrf.mxu0  ;;  %v8220_v54 = vmul.f32 %v9004_v44, %v13520_v43  ;;  %v9007_v33 = vunpack.c.l.bf16 %v9185_v49  ;;  %v8223_v35 = vmul.f32 %v9011_v38, %v13520_v43 }
0x17ca   :  { %8276 = vst [vmem:[#allocation10 + $0x18] sm:$0xff] %v8244_v7  ;;  %v8242_v60 = vadd.f32 %v8210_v55, %v8109_v21  ;;  %v8114_v4 = vmul.f32 %v13525_v5, %v8076_v63  ;;  %v8074_v40 = vmax.f32 %v7960_v1, 0.0  ;;  %v7971_v19 = vadd.f32 %v13522_v17, %v11258_v36  ;;  %v9188_v1 = vld [vmem:[#allocation5 + $0x4c8] sm:$0xff]  }
0x17cb   :  { %v7962_v39 = vpop.f32.mrf.mxu0  ;;  %v9012_v21 = vunpack.c.h.bf16 %v9186_v61  ;;  %v8221_v48 = vmul.f32 %v9007_v33, %v13520_v43  ;;  %v9008_v36 = vunpack.c.h.bf16 %v9185_v49 }
0x17cc   :  { %8274 = vst [vmem:[#allocation10 + $0x8] sm:$0xff] %v8242_v60  ;;  %v8247_v62 = vadd.f32 %v8215_v14, %v8114_v4  ;;  %v8112_v0 = vmul.f32 %v13525_v5, %v8074_v40  ;;  %v8077_v47 = vmax.f32 %v7971_v19, 0.0  ;;  %v7963_v9 = vadd.f32 %v13522_v17, %v7962_v39  ;;  %v9187_v19 = vld [vmem:[#allocation5 + $0x4c0] sm:$0xff]  }
0x17cd   :  { %v11261_v46 = vpop.f32.mrf.mxu0  ;;  %v8224_v6 = vmul.f32 %v9012_v21, %v13520_v43  ;;  %v9019_v39 = vunpack.c.l.bf16 %v9188_v1 }
0x17ce   :  { %8279 = vst [vmem:[#allocation10 + $0x30] sm:$0xff] %v8247_v62  ;;  %v8245_v2 = vadd.f32 %v8213_v31, %v8112_v0  ;;  %v8115_v29 = vmul.f32 %v13525_v5, %v8077_v47  ;;  %v8075_v15 = vmax.f32 %v7963_v9, 0.0  ;;  %v7984_v59 = vadd.f32 %v13522_v17, %v11261_v46 }
0x17cf   :  { %v7975_v26 = vpop.f32.mrf.mxu0  ;;  %v8222_v9 = vmul.f32 %v9008_v36, %v13520_v43  ;;  %v9015_v46 = vunpack.c.l.bf16 %v9187_v19 }
0x17d0   :  { %8277 = vst [vmem:[#allocation10 + $0x20] sm:$0xff] %v8245_v2  ;;  %v8248_v32 = vadd.f32 %v8216_v13, %v8115_v29  ;;  %v8113_v8 = vmul.f32 %v13525_v5, %v8075_v15  ;;  %v8080_v12 = vmax.f32 %v7984_v59, 0.0  ;;  %v7976_v53 = vadd.f32 %v13522_v17, %v7975_v26 }
0x17d1   :  { %v11262_v58 = vpop.f32.mrf.mxu0  ;;  %v8227_v59 = vmul.f32 %v9019_v39, %v13520_v43  ;;  %v9020_v26 = vunpack.c.h.bf16 %v9188_v1  ;;  %v8225_v61 = vmul.f32 %v9015_v46, %v13520_v43 }
0x17d2   :  { %8280 = vst [vmem:[#allocation10 + $0x38] sm:$0xff] %v8248_v32  ;;  %v8246_v28 = vadd.f32 %v8214_v10, %v8113_v8  ;;  %v8118_v24 = vmul.f32 %v13525_v5, %v8080_v12  ;;  %v8078_v23 = vmax.f32 %v7976_v53, 0.0  ;;  %v7987_v57 = vadd.f32 %v13522_v17, %v11262_v58  ;;  %v9190_v53 = vld [vmem:[#allocation5 + $0x4d8] sm:$0xff]  }
0x17d3   :  { %v7978_v27 = vpop.f32.mrf.mxu0  ;;  %v9016_v58 = vunpack.c.h.bf16 %v9187_v19  ;;  %v8228_v49 = vmul.f32 %v9020_v26, %v13520_v43 }
0x17d4   :  { %8278 = vst [vmem:[#allocation10 + $0x28] sm:$0xff] %v8246_v28  ;;  %v8251_v52 = vadd.f32 %v8219_v16, %v8118_v24  ;;  %v8116_v34 = vmul.f32 %v13525_v5, %v8078_v23  ;;  %v8081_v51 = vmax.f32 %v7987_v57, 0.0  ;;  %v7979_v41 = vadd.f32 %v13522_v17, %v7978_v27  ;;  %v9189_v57 = vld [vmem:[#allocation5 + $0x4d0] sm:$0xff]  }
0x17d5   :  { %v11265_v20 = vpop.f32.mrf.mxu0  ;;  %v9027_v27 = vunpack.c.l.bf16 %v9190_v53 }
0x17d6   :  { %8283 = vst [vmem:[#allocation10 + $0x50] sm:$0xff] %v8251_v52  ;;  %v8249_v3 = vadd.f32 %v8217_v45, %v8116_v34  ;;  %v8119_v55 = vmul.f32 %v13525_v5, %v8081_v51  ;;  %v8079_v50 = vmax.f32 %v7979_v41, 0.0  ;;  %v8000_v11 = vadd.f32 %v13522_v17, %v11265_v20 }
0x17d7   :  { %v7991_v7 = vpop.f32.mrf.mxu0  ;;  %v8226_v41 = vmul.f32 %v9016_v58, %v13520_v43  ;;  %v9023_v20 = vunpack.c.l.bf16 %v9189_v57 }
0x17d8   :  { %8281 = vst [vmem:[#allocation10 + $0x40] sm:$0xff] %v8249_v3  ;;  %v8252_v56 = vadd.f32 %v8220_v54, %v8119_v55  ;;  %v8117_v25 = vmul.f32 %v13525_v5, %v8079_v50  ;;  %v8084_v63 = vmax.f32 %v8000_v11, 0.0  ;;  %v7992_v14 = vadd.f32 %v13522_v17, %v7991_v7 }
0x17d9   :  { %v11266_v60 = vpop.f32.mrf.mxu0  ;;  %v8231_v11 = vmul.f32 %v9027_v27, %v13520_v43  ;;  %v9028_v7 = vunpack.c.h.bf16 %v9190_v53  ;;  %v8229_v1 = vmul.f32 %v9023_v20, %v13520_v43 }
0x17da   :  { %8284 = vst [vmem:[#allocation10 + $0x58] sm:$0xff] %v8252_v56  ;;  %v8250_v37 = vadd.f32 %v8218_v18, %v8117_v25  ;;  %v8122_v4 = vmul.f32 %v13525_v5, %v8084_v63  ;;  %v8082_v40 = vmax.f32 %v7992_v14, 0.0  ;;  %v8003_v31 = vadd.f32 %v13522_v17, %v11266_v60  ;;  %v9192_v14 = vld [vmem:[#allocation5 + $0x4e8] sm:$0xff]  }
0x17db   :  { %v7994_v13 = vpop.f32.mrf.mxu0  ;;  %v9024_v60 = vunpack.c.h.bf16 %v9189_v57  ;;  %v8232_v19 = vmul.f32 %v9028_v7, %v13520_v43 }
0x17dc   :  { %8282 = vst [vmem:[#allocation10 + $0x48] sm:$0xff] %v8250_v37  ;;  %v8255_v30 = vadd.f32 %v8223_v35, %v8122_v4  ;;  %v8120_v62 = vmul.f32 %v13525_v5, %v8082_v40  ;;  %v8085_v0 = vmax.f32 %v8003_v31, 0.0  ;;  %v7995_v47 = vadd.f32 %v13522_v17, %v7994_v13  ;;  %v9191_v31 = vld [vmem:[#allocation5 + $0x4e0] sm:$0xff]  }
0x17dd   :  { %v11269_v10 = vpop.f32.mrf.mxu0  ;;  %v9035_v13 = vunpack.c.l.bf16 %v9192_v14 }
0x17de   :  { %8287 = vst [vmem:[#allocation10 + $0x70] sm:$0xff] %v8255_v30  ;;  %v8253_v42 = vadd.f32 %v8221_v48, %v8120_v62  ;;  %v8123_v2 = vmul.f32 %v13525_v5, %v8085_v0  ;;  %v8083_v29 = vmax.f32 %v7995_v47, 0.0  ;;  %v8016_v15 = vadd.f32 %v13522_v17, %v11269_v10 }
0x17df   :  { %v8007_v16 = vpop.f32.mrf.mxu0  ;;  %v8230_v47 = vmul.f32 %v9024_v60, %v13520_v43  ;;  %v9031_v10 = vunpack.c.l.bf16 %v9191_v31 }
0x17e0   :  { %8285 = vst [vmem:[#allocation10 + $0x60] sm:$0xff] %v8253_v42  ;;  %v8256_v44 = vadd.f32 %v8224_v6, %v8123_v2  ;;  %v8121_v32 = vmul.f32 %v13525_v5, %v8083_v29  ;;  %v8088_v8 = vmax.f32 %v8016_v15, 0.0  ;;  %v8008_v12 = vadd.f32 %v13522_v17, %v8007_v16 }
0x17e1   :  { %v11270_v45 = vpop.f32.mrf.mxu0  ;;  %v8235_v15 = vmul.f32 %v9035_v13, %v13520_v43  ;;  %v9036_v16 = vunpack.c.h.bf16 %v9192_v14  ;;  %v8233_v53 = vmul.f32 %v9031_v10, %v13520_v43 }
0x17e2   :  { %8288 = vst [vmem:[#allocation10 + $0x78] sm:$0xff] %v8256_v44  ;;  %v8254_v22 = vadd.f32 %v8222_v9, %v8121_v32  ;;  %v8126_v28 = vmul.f32 %v13525_v5, %v8088_v8  ;;  %v8086_v24 = vmax.f32 %v8008_v12, 0.0  ;;  %v8019_v23 = vadd.f32 %v13522_v17, %v11270_v45  ;;  %v9194_v12 = vld [vmem:[#allocation5 + $0x4f8] sm:$0xff]  }
0x17e3   :  { %v8010_v54 = vpop.f32.mrf.mxu0  ;;  %v9032_v45 = vunpack.c.h.bf16 %v9191_v31  ;;  %v8236_v57 = vmul.f32 %v9036_v16, %v13520_v43 }
0x17e4   :  { %8286 = vst [vmem:[#allocation10 + $0x68] sm:$0xff] %v8254_v22  ;;  %v8259_v38 = vadd.f32 %v8227_v59, %v8126_v28  ;;  %v8124_v52 = vmul.f32 %v13525_v5, %v8086_v24  ;;  %v8089_v34 = vmax.f32 %v8019_v23, 0.0  ;;  %v8011_v51 = vadd.f32 %v13522_v17, %v8010_v54  ;;  %v9193_v23 = vld [vmem:[#allocation5 + $0x4f0] sm:$0xff]  }
0x17e5   :  { %v11273_v18 = vpop.f32.mrf.mxu0  ;;  %v9043_v54 = vunpack.c.l.bf16 %v9194_v12 }
0x17e6   :  { %8291 = vst [vmem:[#allocation10 + $0x90] sm:$0xff] %v8259_v38  ;;  %v8257_v33 = vadd.f32 %v8225_v61, %v8124_v52  ;;  %v8127_v3 = vmul.f32 %v13525_v5, %v8089_v34  ;;  %v8087_v55 = vmax.f32 %v8011_v51, 0.0  ;;  %v8032_v50 = vadd.f32 %v13522_v17, %v11273_v18 }
0x17e7   :  { %v8023_v35 = vpop.f32.mrf.mxu0  ;;  %v8234_v51 = vmul.f32 %v9032_v45, %v13520_v43  ;;  %v9039_v18 = vunpack.c.l.bf16 %v9193_v23 }
0x17e8   :  { %8289 = vst [vmem:[#allocation10 + $0x80] sm:$0xff] %v8257_v33  ;;  %v8260_v21 = vadd.f32 %v8228_v49, %v8127_v3  ;;  %v8125_v56 = vmul.f32 %v13525_v5, %v8087_v55  ;;  %v8092_v25 = vmax.f32 %v8032_v50, 0.0  ;;  %v8024_v63 = vadd.f32 %v13522_v17, %v8023_v35 }
0x17e9   :  { %v11274_v48 = vpop.f32.mrf.mxu0  ;;  %v8239_v50 = vmul.f32 %v9043_v54, %v13520_v43  ;;  %v9044_v35 = vunpack.c.h.bf16 %v9194_v12 }
0x17ea   :  { %8292 = vst [vmem:[#allocation10 + $0x98] sm:$0xff] %v8260_v21  ;;  %v8258_v36 = vadd.f32 %v8226_v41, %v8125_v56  ;;  %v8130_v37 = vmul.f32 %v13525_v5, %v8092_v25  ;;  %v8090_v4 = vmax.f32 %v8024_v63, 0.0  ;;  %v8035_v40 = vadd.f32 %v13522_v17, %v11274_v48 }
0x17eb   :  { %v8026_v6 = vpop.f32.mrf.mxu0  ;;  %v8237_v63 = vmul.f32 %v9039_v18, %v13520_v43 }
0x17ec   :  { %8290 = vst [vmem:[#allocation10 + $0x88] sm:$0xff] %v8258_v36  ;;  %v8263_v39 = vadd.f32 %v8231_v11, %v8130_v37  ;;  %v8128_v30 = vmul.f32 %v13525_v5, %v8090_v4  ;;  %v8093_v62 = vmax.f32 %v8035_v40, 0.0  ;;  %v8027_v0 = vadd.f32 %v13522_v17, %v8026_v6 }
0x17ed   :  { %v11277_v9 = vpop.f32.mrf.mxu0  ;;  %v8240_v4 = vmul.f32 %v9044_v35, %v13520_v43 }
0x17ee   :  { %8295 = vst [vmem:[#allocation10 + $0xb0] sm:$0xff] %v8263_v39  ;;  %v8261_v46 = vadd.f32 %v8229_v1, %v8128_v30  ;;  %v8131_v42 = vmul.f32 %v13525_v5, %v8093_v62  ;;  %v8091_v2 = vmax.f32 %v8027_v0, 0.0  ;;  %v8048_v29 = vadd.f32 %v13522_v17, %v11277_v9 }
0x17ef   :  { %v8039_v59 = vpop.f32.mrf.mxu0  ;;  %v9040_v1 = vunpack.c.h.bf16 %v9193_v23 }
0x17f0   :  { %8293 = vst [vmem:[#allocation10 + $0xa0] sm:$0xff] %v8261_v46  ;;  %v8264_v26 = vadd.f32 %v8232_v19, %v8131_v42  ;;  %v8129_v44 = vmul.f32 %v13525_v5, %v8091_v2  ;;  %v8096_v32 = vmax.f32 %v8048_v29, 0.0  ;;  %v8040_v8 = vadd.f32 %v13522_v17, %v8039_v59 }
0x17f1   :  { %v11278_v61 = vpop.f32.mrf.mxu0  ;;  %v8238_v0 = vmul.f32 %v9040_v1, %v13520_v43 }
0x17f2   :  { %8296 = vst [vmem:[#allocation10 + $0xb8] sm:$0xff] %v8264_v26  ;;  %v8262_v58 = vadd.f32 %v8230_v47, %v8129_v44  ;;  %v8134_v22 = vmul.f32 %v13525_v5, %v8096_v32  ;;  %v8094_v28 = vmax.f32 %v8040_v8, 0.0  ;;  %v8051_v24 = vadd.f32 %v13522_v17, %v11278_v61 }
0x17f3   :  { %v8042_v49 = vpop.f32.mrf.mxu0 }
0x17f4   :  { %8294 = vst [vmem:[#allocation10 + $0xa8] sm:$0xff] %v8262_v58  ;;  %v8267_v27 = vadd.f32 %v8235_v15, %v8134_v22  ;;  %v8132_v38 = vmul.f32 %v13525_v5, %v8094_v28  ;;  %v8097_v52 = vmax.f32 %v8051_v24, 0.0  ;;  %v8043_v34 = vadd.f32 %v13522_v17, %v8042_v49 }
0x17f5   :  { %v11281_v41 = vpop.f32.mrf.mxu0 }
0x17f6   :  { %8299 = vst [vmem:[#allocation10 + $0xd0] sm:$0xff] %v8267_v27  ;;  %v8265_v20 = vadd.f32 %v8233_v53, %v8132_v38  ;;  %v8135_v33 = vmul.f32 %v13525_v5, %v8097_v52  ;;  %v8095_v3 = vmax.f32 %v8043_v34, 0.0  ;;  %v8064_v55 = vadd.f32 %v13522_v17, %v11281_v41 }
0x17f7   :  { %v8055_v11 = vpop.f32.mrf.mxu0 }
0x17f8   :  { %8297 = vst [vmem:[#allocation10 + $0xc0] sm:$0xff] %v8265_v20  ;;  %v8268_v7 = vadd.f32 %v8236_v57, %v8135_v33  ;;  %v8133_v21 = vmul.f32 %v13525_v5, %v8095_v3  ;;  %v8100_v56 = vmax.f32 %v8064_v55, 0.0  ;;  %v8056_v25 = vadd.f32 %v13522_v17, %v8055_v11 }
0x17f9   :  { %v11282_v14 = vpop.f32.mrf.mxu0 }
0x17fa   :  { %8300 = vst [vmem:[#allocation10 + $0xd8] sm:$0xff] %v8268_v7  ;;  %v8266_v48 = vadd.f32 %v8234_v51, %v8133_v21  ;;  %v8138_v60 = vmul.f32 %v13525_v5, %v8100_v56  ;;  %v8098_v36 = vmax.f32 %v8056_v25, 0.0  ;;  %v8067_v37 = vadd.f32 %v13522_v17, %v11282_v14 }
0x17fb   :  { %v8058_v40 = vpop.f32.mrf.mxu0 }
0x17fc   :  { %8298 = vst [vmem:[#allocation10 + $0xc8] sm:$0xff] %v8266_v48  ;;  %v8271_v31 = vadd.f32 %v8239_v50, %v8138_v60  ;;  %v8136_v19 = vmul.f32 %v13525_v5, %v8098_v36  ;;  %v8101_v6 = vmax.f32 %v8067_v37, 0.0  ;;  %v8059_v13 = vadd.f32 %v13522_v17, %v8058_v40 }
0x17fe   :  { %8303 = vst [vmem:[#allocation10 + $0xf0] sm:$0xff] %v8271_v31  ;;  %v8269_v39 = vadd.f32 %v8237_v63, %v8136_v19  ;;  %v8139_v30 = vmul.f32 %v13525_v5, %v8101_v6  ;;  %v8099_v62 = vmax.f32 %v8059_v13, 0.0 }
0x1800   :  { %8301 = vst [vmem:[#allocation10 + $0xe0] sm:$0xff] %v8269_v39  ;;  %v8272_v47 = vadd.f32 %v8240_v4, %v8139_v30  ;;  %v8137_v9 = vmul.f32 %v13525_v5, %v8099_v62 }
0x1802   :  { %8304 = vst [vmem:[#allocation10 + $0xf8] sm:$0xff] %v8272_v47  ;;  %v8270_v10 = vadd.f32 %v8238_v0, %v8137_v9 }
0x1804   :  { %8302 = vst [vmem:[#allocation10 + $0xe8] sm:$0xff] %v8270_v10 }
0x1805   :  { %11647 = shalt.err (!%p11644_p10)
}
0x1806   :  { %8316 = dma.vmem_to_hbm [thread:$0]  %s8311_s3, 4096, %s13632_s4, [#allocation4], %s11670_s0, %s11670_s0, %s11671_s8  }
0x1807   :  { %11662 = dma.done.wait [#allocation4], 4096  }
0x1808   :  { %11663 = vsyncadd [#allocation4], 4294963200 }
0x1809   :  { %8320 = vsyncpa [#allocation3], 1 }
0x180a   :  { %8321 = vsyncpa [#allocation6], 1 }
0x180b   :  { %8322 = vsyncpa [#allocation9], 1 }
0x180c   :  { %8323 = vsyncpa [#allocation4], 1 }

</bundles_post_ra>
